<compile_context>
chip_gen: v6e
topology: v6e:2x2x1
jax: 0.10.0
libtpu: 0.0.40
codegen_flags: <defaults>
</compile_context>

<pallas_src>
import functools

import jax
import jax.numpy as jnp
from jax import lax
from jax.experimental import pallas as pl
from jax.experimental.pallas import tpu as pltpu

EPS = 1e-5


def _round_up(x, m):
    return ((x + m - 1) // m) * m


def _vmem_limit_bytes():
    """Chip-aware VMEM limit: ~3/4 of physical, capped at 96 MiB."""
    try:
        cap = int(pltpu.get_tpu_info().vmem_capacity_bytes)
        if cap <= 0:
            raise ValueError("bad vmem capacity")
    except Exception:
        cap = 64 * 1024 * 1024                      # conservative fallback
    return int(min(cap * 3 // 4, 96 * 1024 * 1024))


# --------------------------------------------------------------------------
# Kernel A: conv1 (3x3, pad 1) + shortcut 1x1 conv + BN stat partials
# --------------------------------------------------------------------------
def _conv1_shortcut_kernel(x_ref, w1_ref, ws_ref,
                           y1_ref, ysc_ref, s1_ref, q1_ref, ss_ref, qs_ref,
                           *, H, W, CINP, CP, RB):
    s1 = jnp.zeros((1, CP), jnp.float32)
    q1 = jnp.zeros((1, CP), jnp.float32)
    ss = jnp.zeros((1, CP), jnp.float32)
    qs = jnp.zeros((1, CP), jnp.float32)

    for r0 in range(0, H, RB):                      # M-blocked accumulation
        rb = min(RB, H - r0)
        m = rb * W
        acc = jnp.zeros((m, CP), jnp.float32)
        for dh in range(3):
            band = x_ref[0, r0 + dh:r0 + dh + rb, :, :]       # (rb, W+2, CINP) bf16
            for dw in range(3):
                sl = band[:, dw:dw + W, :].reshape(m, CINP)
                acc = acc + jnp.dot(sl, w1_ref[dh * 3 + dw],
                                    preferred_element_type=jnp.float32)
        xc = x_ref[0, r0 + 1:r0 + 1 + rb, 1:W + 1, :].reshape(m, CINP)
        sc = jnp.dot(xc, ws_ref[...], preferred_element_type=jnp.float32)

        s1 = s1 + jnp.sum(acc, axis=0, keepdims=True)
        q1 = q1 + jnp.sum(acc * acc, axis=0, keepdims=True)
        ss = ss + jnp.sum(sc, axis=0, keepdims=True)
        qs = qs + jnp.sum(sc * sc, axis=0, keepdims=True)
        y1_ref[0, r0:r0 + rb] = acc.reshape(rb, W, CP).astype(y1_ref.dtype)
        ysc_ref[0, r0:r0 + rb] = sc.reshape(rb, W, CP).astype(ysc_ref.dtype)

    s1_ref[0] = s1
    q1_ref[0] = q1
    ss_ref[0] = ss
    qs_ref[0] = qs


# --------------------------------------------------------------------------
# Kernel B: bn1-apply + ReLU, dw-folded conv2 (3x3, pad 1), bn2 stat partials
# --------------------------------------------------------------------------
def _bn1_relu_conv2_kernel(y1_ref, aff1_ref, w2_ref,
                           y2_ref, s2_ref, q2_ref, a3_ref,
                           *, H, W, CP, RB):
    scale = aff1_ref[0:1, :]
    shift = aff1_ref[1:2, :]
    a1 = jnp.maximum(y1_ref[0].astype(jnp.float32) * scale + shift, 0.0)
    a1 = a1.astype(a3_ref.dtype)                               # (H, W, CP) bf16

    # dw-folded activation slab: A3[i, w, dw*CP + c] = a1_pad[i, w+dw, c]
    # (a1_pad = a1 zero-padded by 1 on every side).  Lane offsets are CP
    # multiples -> 128-aligned stores.
    a3_ref[1:H + 1, :, CP:2 * CP] = a1                         # dw = 1 (centre)
    if W > 1:
        a3_ref[1:H + 1, 1:W, 0:CP] = a1[:, 0:W - 1, :]         # dw = 0
        a3_ref[1:H + 1, 0:W - 1, 2 * CP:3 * CP] = a1[:, 1:W, :]  # dw = 2
    # Re-zero only the 1-wide halo the taps read (cheap; megacore-safe).
    zc = jnp.zeros((H, 1, CP), a3_ref.dtype)
    a3_ref[1:H + 1, 0:1, 0:CP] = zc
    a3_ref[1:H + 1, W - 1:W, 2 * CP:3 * CP] = zc
    zr = jnp.zeros((1, W, 3 * CP), a3_ref.dtype)
    a3_ref[0:1, :, :] = zr
    a3_ref[H + 1:H + 2, :, :] = zr

    s2 = jnp.zeros((1, CP), jnp.float32)
    q2 = jnp.zeros((1, CP), jnp.float32)
    for r0 in range(0, H, RB):                                 # M-blocked
        rb = min(RB, H - r0)
        m = rb * W
        acc = jnp.zeros((m, CP), jnp.float32)
        for dh in range(3):                                    # 3 dots, K = 3*CP
            slab = a3_ref[r0 + dh:r0 + dh + rb]                # (rb, W, 3*CP)
            acc = acc + jnp.dot(slab.reshape(m, 3 * CP), w2_ref[dh],
                                preferred_element_type=jnp.float32)
        s2 = s2 + jnp.sum(acc, axis=0, keepdims=True)
        q2 = q2 + jnp.sum(acc * acc, axis=0, keepdims=True)
        y2_ref[0, r0:r0 + rb] = acc.reshape(rb, W, CP).astype(y2_ref.dtype)

    s2_ref[0] = s2
    q2_ref[0] = q2


# --------------------------------------------------------------------------
# Kernel C: bn2-apply + shortcut-bn-apply + residual add + channel softmax
# --------------------------------------------------------------------------
def _bn2_residual_softmax_kernel(y2_ref, ysc_ref, aff_ref, out_ref,
                                 *, H, W, CP, P):
    y2 = y2_ref[0].astype(jnp.float32)
    sc = ysc_ref[0].astype(jnp.float32)
    logits = (y2 * aff_ref[0:1, :] + aff_ref[1:2, :]
              + sc * aff_ref[2:3, :] + aff_ref[3:4, :])
    if P != CP:                                                # skip when no padding
        lane = lax.broadcasted_iota(jnp.int32, (H, W, CP), 2)
        logits = jnp.where(lane < P, logits, -1e30)            # f32 logits -> safe
    m = jnp.max(logits, axis=2, keepdims=True)
    e = jnp.exp(logits - m)
    denom = jnp.sum(e, axis=2, keepdims=True)
    sm = e * pl.reciprocal(denom, approx=True)
    out_ref[0] = sm[..., :P].astype(out_ref.dtype)             # only real channels


# --------------------------------------------------------------------------
# Parameter / stats glue
# --------------------------------------------------------------------------
def _prep_conv3x3_taps(w_oihw, cin_p, cout_p):
    co, ci, _, _ = w_oihw.shape
    wt = jnp.transpose(w_oihw, (2, 3, 1, 0))                   # (kh, kw, ci, co)
    wt = jnp.pad(wt, ((0, 0), (0, 0), (0, cin_p - ci), (0, cout_p - co)))
    return wt.reshape(9, cin_p, cout_p).astype(jnp.bfloat16)


def _prep_conv3x3_kfold(w_oihw, cin_p, cout_p):
    co, ci, _, _ = w_oihw.shape
    wt = jnp.transpose(w_oihw, (2, 3, 1, 0))                   # (kh, kw, ci, co)
    wt = jnp.pad(wt, ((0, 0), (0, 0), (0, cin_p - ci), (0, cout_p - co)))
    return wt.reshape(3, 3 * cin_p, cout_p).astype(jnp.bfloat16)   # K = (dw, ci)


def _prep_conv1x1_weight(w_oihw, cin_p, cout_p):
    co, ci = w_oihw.shape[0], w_oihw.shape[1]
    wt = jnp.transpose(w_oihw.reshape(co, ci), (1, 0))         # (ci, co)
    wt = jnp.pad(wt, ((0, cin_p - ci), (0, cout_p - co)))
    return wt.astype(jnp.bfloat16)


def _bn_affine(sums, sumsqs, gamma, beta, count):
    """Fold batch stats (biased var, torch train-mode) + affine into scale/shift."""
    s = jnp.sum(sums[:, 0, :], axis=0)
    q = jnp.sum(sumsqs[:, 0, :], axis=0)
    mean = s / count
    var = jnp.maximum(q / count - mean * mean, 0.0)
    scale = gamma * lax.rsqrt(var + EPS)
    shift = beta - mean * scale
    return jnp.stack([scale, shift], axis=0)                   # (2, CP) f32


# --------------------------------------------------------------------------
# Forward
# --------------------------------------------------------------------------
def basic_block_forward_nhwc(x_nhwc, params):
    n, h, w, cin = x_nhwc.shape
    p = params["w1"].shape[0]
    cp = _round_up(p, 128)          # lane-dense channel axis
    cinp = _round_up(cin, 8)        # sublane-aligned input channels
    # Rows per M-block: keep the per-block f32 accumulator around <= 64 KiB.
    rb = max(1, min(h, (16384 // cp) // max(1, w)))
    count = jnp.float32(n * h * w)

    # bf16 padded input: the MXU casts to bf16 anyway; halves the input DMA.
    x_pad = jnp.pad(x_nhwc, ((0, 0), (1, 1), (1, 1),
                             (0, cinp - cin))).astype(jnp.bfloat16)

    w1m = _prep_conv3x3_taps(params["w1"], cinp, cp)           # (9, cinp, cp)
    w2m = _prep_conv3x3_kfold(params["w2"], cp, cp)            # (3, 3*cp, cp)
    wsm = _prep_conv1x1_weight(params["ws"], cinp, cp)         # (cinp, cp)

    pad_c = lambda v: jnp.pad(v.astype(jnp.float32), (0, cp - p))
    g1, b1 = pad_c(params["g1"]), pad_c(params["b1"])
    g2, b2 = pad_c(params["g2"]), pad_c(params["b2"])
    gs, bs = pad_c(params["gs"]), pad_c(params["bs"])

    cparams = pltpu.CompilerParams(
        dimension_semantics=("parallel",),
        vmem_limit_bytes=_vmem_limit_bytes(),
    )

    act_spec = pl.BlockSpec((1, h, w, cp), lambda i: (i, 0, 0, 0))
    stat_spec = pl.BlockSpec((1, 1, cp), lambda i: (i, 0, 0))
    act_shape = jax.ShapeDtypeStruct((n, h, w, cp), jnp.bfloat16)
    stat_shape = jax.ShapeDtypeStruct((n, 1, cp), jnp.float32)

    # ---- kernel A: conv1 + shortcut 1x1 conv + BN stat partials -------------
    y1, ysc, s1, q1, ss, qs = pl.pallas_call(
        functools.partial(_conv1_shortcut_kernel,
                          H=h, W=w, CINP=cinp, CP=cp, RB=rb),
        grid=(n,),
        in_specs=[
            pl.BlockSpec((1, h + 2, w + 2, cinp), lambda i: (i, 0, 0, 0)),
            pl.BlockSpec((9, cinp, cp), lambda i: (0, 0, 0)),      # resident weights
            pl.BlockSpec((cinp, cp), lambda i: (0, 0)),            # resident weights
        ],
        out_specs=[act_spec, act_spec, stat_spec, stat_spec, stat_spec, stat_spec],
        out_shape=[act_shape, act_shape, stat_shape, stat_shape, stat_shape, stat_shape],
        compiler_params=cparams,
    )(x_pad, w1m, wsm)

    aff1 = _bn_affine(s1, q1, g1, b1, count)                   # (2, cp)

    # ---- kernel B: bn1+relu apply, dw-folded conv2, bn2 stat partials --------
    y2, s2, q2 = pl.pallas_call(
        functools.partial(_bn1_relu_conv2_kernel, H=h, W=w, CP=cp, RB=rb),
        grid=(n,),
        in_specs=[
            act_spec,
            pl.BlockSpec((2, cp), lambda i: (0, 0)),               # resident affine
            pl.BlockSpec((3, 3 * cp, cp), lambda i: (0, 0, 0)),    # resident weights
        ],
        out_specs=[act_spec, stat_spec, stat_spec],
        out_shape=[act_shape, stat_shape, stat_shape],
        scratch_shapes=[pltpu.VMEM((h + 2, w, 3 * cp), jnp.bfloat16)],
        compiler_params=cparams,
    )(y1, aff1, w2m)

    aff2 = _bn_affine(s2, q2, g2, b2, count)
    affs = _bn_affine(ss, qs, gs, bs, count)
    aff_final = jnp.concatenate([aff2, affs], axis=0)          # (4, cp)

    # ---- kernel C: bn2 + bn_s + residual add + channel softmax ---------------
    out = pl.pallas_call(
        functools.partial(_bn2_residual_softmax_kernel, H=h, W=w, CP=cp, P=p),
        grid=(n,),
        in_specs=[
            act_spec,
            act_spec,
            pl.BlockSpec((4, cp), lambda i: (0, 0)),               # resident affines
        ],
        out_specs=pl.BlockSpec((1, h, w, p), lambda i: (i, 0, 0, 0)),
        out_shape=jax.ShapeDtypeStruct((n, h, w, p), jnp.float32),
        compiler_params=cparams,
    )(y2, ysc, aff_final)

    return out                                                  # (n, h, w, p)


def basic_block_forward(x_nchw, params):
    """PyTorch-layout wrapper (NCHW in / NCHW out).  At scale keep activations
    NHWC end-to-end (use basic_block_forward_nhwc) and drop these transposes."""
    x_nhwc = jnp.transpose(x_nchw, (0, 2, 3, 1))
    out = basic_block_forward_nhwc(x_nhwc, params)
    return jnp.transpose(out, (0, 3, 1, 2))


# --------------------------------------------------------------------------
# Params + pure-JAX reference
# --------------------------------------------------------------------------
def init_params(key, in_planes, planes):
    ks = jax.random.split(key, 9)
    f32 = jnp.float32
    return dict(
        w1=0.1 * jax.random.normal(ks[0], (planes, in_planes, 3, 3), f32),
        w2=0.1 * jax.random.normal(ks[1], (planes, planes, 3, 3), f32),
        ws=0.1 * jax.random.normal(ks[2], (planes, in_planes, 1, 1), f32),
        g1=1.0 + 0.1 * jax.random.normal(ks[3], (planes,), f32),
        b1=0.1 * jax.random.normal(ks[4], (planes,), f32),
        g2=1.0 + 0.1 * jax.random.normal(ks[5], (planes,), f32),
        b2=0.1 * jax.random.normal(ks[6], (planes,), f32),
        gs=1.0 + 0.1 * jax.random.normal(ks[7], (planes,), f32),
        bs=0.1 * jax.random.normal(ks[8], (planes,), f32),
    )


def _reference(x, params):
    def conv(x, w, pad):
        return lax.conv_general_dilated(
            x, w, (1, 1), ((pad, pad), (pad, pad)),
            dimension_numbers=("NCHW", "OIHW", "NCHW"))

    def bn(x, g, b):
        mean = jnp.mean(x, axis=(0, 2, 3), keepdims=True)
        var = jnp.mean((x - mean) ** 2, axis=(0, 2, 3), keepdims=True)
        return ((x - mean) * lax.rsqrt(var + EPS) * g.reshape(1, -1, 1, 1)
                + b.reshape(1, -1, 1, 1))

    out = jax.nn.relu(bn(conv(x, params["w1"], 1), params["g1"], params["b1"]))
    out = bn(conv(out, params["w2"], 1), params["g2"], params["b2"])
    out = out + bn(conv(x, params["ws"], 0), params["gs"], params["bs"])
    return jax.nn.softmax(out, axis=1)


if __name__ == "__main__":
    key = jax.random.PRNGKey(0)
    k_x, k_p = jax.random.split(key)

    N, IN_PLANES, PLANES, H, W = 2, 4, 8, 16, 16
    x = jax.random.normal(k_x, (N, IN_PLANES, H, W), jnp.float32)
    params = init_params(k_p, IN_PLANES, PLANES)

    fwd = jax.jit(basic_block_forward)
    out = jax.block_until_ready(fwd(x, params))
    ref = jax.block_until_ready(_reference(x, params))

    assert out.shape == (N, PLANES, H, W), out.shape
    max_err = float(jnp.max(jnp.abs(out - ref)))
    # bf16 MXU operands / bf16 HBM intermediates vs. a pure-f32 reference.
    assert max_err < 2e-2, f"mismatch vs reference: {max_err}"
    print("KERNEL_OK")
</pallas_src>

<mosaic_0001>
module attributes {stable_mosaic.version = 11 : i64} {
  func.func @_conv1_shortcut_kernel(%arg0: i32, %arg1: memref<1x18x18x8xbf16, #tpu.memory_space<vmem>>, %arg2: memref<9x8x128xbf16, #tpu.memory_space<vmem>>, %arg3: memref<8x128xbf16, #tpu.memory_space<vmem>>, %arg4: memref<1x16x16x128xbf16, #tpu.memory_space<vmem>>, %arg5: memref<1x16x16x128xbf16, #tpu.memory_space<vmem>>, %arg6: memref<1x1x128xf32, #tpu.memory_space<vmem>>, %arg7: memref<1x1x128xf32, #tpu.memory_space<vmem>>, %arg8: memref<1x1x128xf32, #tpu.memory_space<vmem>>, %arg9: memref<1x1x128xf32, #tpu.memory_space<vmem>>) attributes {dimension_semantics = [#tpu.dimension_semantics<parallel>], iteration_bounds = array<i64: 2>, scalar_prefetch = 0 : i64, scratch_operands = 0 : i64, tpu.core_type = #tpu.core_type<tc>, window_params = [{transform_indices = @transform_0, window_bounds = array<i64: 1, 18, 18, 8>}, {pipeline_mode = #tpu.pipeline_mode<synchronous>, transform_indices = @transform_1, window_bounds = array<i64: 9, 8, 128>}, {pipeline_mode = #tpu.pipeline_mode<synchronous>, transform_indices = @transform_2, window_bounds = array<i64: 8, 128>}, {transform_indices = @transform_3, window_bounds = array<i64: 1, 16, 16, 128>}, {transform_indices = @transform_4, window_bounds = array<i64: 1, 16, 16, 128>}, {transform_indices = @transform_5, window_bounds = array<i64: 1, 1, 128>}, {transform_indices = @transform_6, window_bounds = array<i64: 1, 1, 128>}, {transform_indices = @transform_7, window_bounds = array<i64: 1, 1, 128>}, {transform_indices = @transform_8, window_bounds = array<i64: 1, 1, 128>}]} {
    %cst = arith.constant 0.000000e+00 : f32
    %0 = vector.broadcast %cst : f32 to vector<1x128xf32>
    %cst_0 = arith.constant 0.000000e+00 : f32
    %1 = vector.broadcast %cst_0 : f32 to vector<1x128xf32>
    %cst_1 = arith.constant 0.000000e+00 : f32
    %2 = vector.broadcast %cst_1 : f32 to vector<1x128xf32>
    %cst_2 = arith.constant 0.000000e+00 : f32
    %3 = vector.broadcast %cst_2 : f32 to vector<1x128xf32>
    %cst_3 = arith.constant 0.000000e+00 : f32
    %4 = vector.broadcast %cst_3 : f32 to vector<128x128xf32>
    %c0 = arith.constant 0 : index
    %c0_4 = arith.constant 0 : index
    %c0_5 = arith.constant 0 : index
    %c0_6 = arith.constant 0 : index
    %5 = vector.load %arg1[%c0, %c0_4, %c0_5, %c0_6] : memref<1x18x18x8xbf16, #tpu.memory_space<vmem>>, vector<1x8x18x8xbf16>
    %6 = vector.shape_cast %5 : vector<1x8x18x8xbf16> to vector<8x18x8xbf16>
    %7 = vector.extract_strided_slice %6 {offsets = [0, 0, 0], sizes = [8, 16, 8], strides = [1, 1, 1]} : vector<8x18x8xbf16> to vector<8x16x8xbf16>
    %8 = vector.shape_cast %7 : vector<8x16x8xbf16> to vector<128x8xbf16>
    %c0_7 = arith.constant 0 : index
    %c0_8 = arith.constant 0 : index
    %c0_9 = arith.constant 0 : index
    %9 = vector.load %arg2[%c0_7, %c0_8, %c0_9] : memref<9x8x128xbf16, #tpu.memory_space<vmem>>, vector<1x8x128xbf16>
    %10 = vector.shape_cast %9 : vector<1x8x128xbf16> to vector<8x128xbf16>
    %cst_10 = arith.constant dense<0.000000e+00> : vector<128x128xf32>
    %11 = tpu.matmul %8, %10, %cst_10 {dimension_numbers = #tpu.dot_dimension_numbers<[1], [0], [0], [1], [0, 0, 1, 1], [], []>} : vector<128x8xbf16>, vector<8x128xbf16>, vector<128x128xf32> -> vector<128x128xf32>
    %12 = arith.addf %4, %11 : vector<128x128xf32>
    %13 = vector.extract_strided_slice %6 {offsets = [0, 1, 0], sizes = [8, 16, 8], strides = [1, 1, 1]} : vector<8x18x8xbf16> to vector<8x16x8xbf16>
    %14 = vector.shape_cast %13 : vector<8x16x8xbf16> to vector<128x8xbf16>
    %c1 = arith.constant 1 : index
    %c0_11 = arith.constant 0 : index
    %c0_12 = arith.constant 0 : index
    %15 = vector.load %arg2[%c1, %c0_11, %c0_12] : memref<9x8x128xbf16, #tpu.memory_space<vmem>>, vector<1x8x128xbf16>
    %16 = vector.shape_cast %15 : vector<1x8x128xbf16> to vector<8x128xbf16>
    %cst_13 = arith.constant dense<0.000000e+00> : vector<128x128xf32>
    %17 = tpu.matmul %14, %16, %cst_13 {dimension_numbers = #tpu.dot_dimension_numbers<[1], [0], [0], [1], [0, 0, 1, 1], [], []>} : vector<128x8xbf16>, vector<8x128xbf16>, vector<128x128xf32> -> vector<128x128xf32>
    %18 = arith.addf %12, %17 : vector<128x128xf32>
    %19 = vector.extract_strided_slice %6 {offsets = [0, 2, 0], sizes = [8, 16, 8], strides = [1, 1, 1]} : vector<8x18x8xbf16> to vector<8x16x8xbf16>
    %20 = vector.shape_cast %19 : vector<8x16x8xbf16> to vector<128x8xbf16>
    %c2 = arith.constant 2 : index
    %c0_14 = arith.constant 0 : index
    %c0_15 = arith.constant 0 : index
    %21 = vector.load %arg2[%c2, %c0_14, %c0_15] : memref<9x8x128xbf16, #tpu.memory_space<vmem>>, vector<1x8x128xbf16>
    %22 = vector.shape_cast %21 : vector<1x8x128xbf16> to vector<8x128xbf16>
    %cst_16 = arith.constant dense<0.000000e+00> : vector<128x128xf32>
    %23 = tpu.matmul %20, %22, %cst_16 {dimension_numbers = #tpu.dot_dimension_numbers<[1], [0], [0], [1], [0, 0, 1, 1], [], []>} : vector<128x8xbf16>, vector<8x128xbf16>, vector<128x128xf32> -> vector<128x128xf32>
    %24 = arith.addf %18, %23 : vector<128x128xf32>
    %c0_17 = arith.constant 0 : index
    %c1_18 = arith.constant 1 : index
    %c0_19 = arith.constant 0 : index
    %c0_20 = arith.constant 0 : index
    %25 = vector.load %arg1[%c0_17, %c1_18, %c0_19, %c0_20] : memref<1x18x18x8xbf16, #tpu.memory_space<vmem>>, vector<1x8x18x8xbf16>
    %26 = vector.shape_cast %25 : vector<1x8x18x8xbf16> to vector<8x18x8xbf16>
    %27 = vector.extract_strided_slice %26 {offsets = [0, 0, 0], sizes = [8, 16, 8], strides = [1, 1, 1]} : vector<8x18x8xbf16> to vector<8x16x8xbf16>
    %28 = vector.shape_cast %27 : vector<8x16x8xbf16> to vector<128x8xbf16>
    %c3 = arith.constant 3 : index
    %c0_21 = arith.constant 0 : index
    %c0_22 = arith.constant 0 : index
    %29 = vector.load %arg2[%c3, %c0_21, %c0_22] : memref<9x8x128xbf16, #tpu.memory_space<vmem>>, vector<1x8x128xbf16>
    %30 = vector.shape_cast %29 : vector<1x8x128xbf16> to vector<8x128xbf16>
    %cst_23 = arith.constant dense<0.000000e+00> : vector<128x128xf32>
    %31 = tpu.matmul %28, %30, %cst_23 {dimension_numbers = #tpu.dot_dimension_numbers<[1], [0], [0], [1], [0, 0, 1, 1], [], []>} : vector<128x8xbf16>, vector<8x128xbf16>, vector<128x128xf32> -> vector<128x128xf32>
    %32 = arith.addf %24, %31 : vector<128x128xf32>
    %33 = vector.extract_strided_slice %26 {offsets = [0, 1, 0], sizes = [8, 16, 8], strides = [1, 1, 1]} : vector<8x18x8xbf16> to vector<8x16x8xbf16>
    %34 = vector.shape_cast %33 : vector<8x16x8xbf16> to vector<128x8xbf16>
    %c4 = arith.constant 4 : index
    %c0_24 = arith.constant 0 : index
    %c0_25 = arith.constant 0 : index
    %35 = vector.load %arg2[%c4, %c0_24, %c0_25] : memref<9x8x128xbf16, #tpu.memory_space<vmem>>, vector<1x8x128xbf16>
    %36 = vector.shape_cast %35 : vector<1x8x128xbf16> to vector<8x128xbf16>
    %cst_26 = arith.constant dense<0.000000e+00> : vector<128x128xf32>
    %37 = tpu.matmul %34, %36, %cst_26 {dimension_numbers = #tpu.dot_dimension_numbers<[1], [0], [0], [1], [0, 0, 1, 1], [], []>} : vector<128x8xbf16>, vector<8x128xbf16>, vector<128x128xf32> -> vector<128x128xf32>
    %38 = arith.addf %32, %37 : vector<128x128xf32>
    %39 = vector.extract_strided_slice %26 {offsets = [0, 2, 0], sizes = [8, 16, 8], strides = [1, 1, 1]} : vector<8x18x8xbf16> to vector<8x16x8xbf16>
    %40 = vector.shape_cast %39 : vector<8x16x8xbf16> to vector<128x8xbf16>
    %c5 = arith.constant 5 : index
    %c0_27 = arith.constant 0 : index
    %c0_28 = arith.constant 0 : index
    %41 = vector.load %arg2[%c5, %c0_27, %c0_28] : memref<9x8x128xbf16, #tpu.memory_space<vmem>>, vector<1x8x128xbf16>
    %42 = vector.shape_cast %41 : vector<1x8x128xbf16> to vector<8x128xbf16>
    %cst_29 = arith.constant dense<0.000000e+00> : vector<128x128xf32>
    %43 = tpu.matmul %40, %42, %cst_29 {dimension_numbers = #tpu.dot_dimension_numbers<[1], [0], [0], [1], [0, 0, 1, 1], [], []>} : vector<128x8xbf16>, vector<8x128xbf16>, vector<128x128xf32> -> vector<128x128xf32>
    %44 = arith.addf %38, %43 : vector<128x128xf32>
    %c0_30 = arith.constant 0 : index
    %c2_31 = arith.constant 2 : index
    %c0_32 = arith.constant 0 : index
    %c0_33 = arith.constant 0 : index
    %45 = vector.load %arg1[%c0_30, %c2_31, %c0_32, %c0_33] : memref<1x18x18x8xbf16, #tpu.memory_space<vmem>>, vector<1x8x18x8xbf16>
    %46 = vector.shape_cast %45 : vector<1x8x18x8xbf16> to vector<8x18x8xbf16>
    %47 = vector.extract_strided_slice %46 {offsets = [0, 0, 0], sizes = [8, 16, 8], strides = [1, 1, 1]} : vector<8x18x8xbf16> to vector<8x16x8xbf16>
    %48 = vector.shape_cast %47 : vector<8x16x8xbf16> to vector<128x8xbf16>
    %c6 = arith.constant 6 : index
    %c0_34 = arith.constant 0 : index
    %c0_35 = arith.constant 0 : index
    %49 = vector.load %arg2[%c6, %c0_34, %c0_35] : memref<9x8x128xbf16, #tpu.memory_space<vmem>>, vector<1x8x128xbf16>
    %50 = vector.shape_cast %49 : vector<1x8x128xbf16> to vector<8x128xbf16>
    %cst_36 = arith.constant dense<0.000000e+00> : vector<128x128xf32>
    %51 = tpu.matmul %48, %50, %cst_36 {dimension_numbers = #tpu.dot_dimension_numbers<[1], [0], [0], [1], [0, 0, 1, 1], [], []>} : vector<128x8xbf16>, vector<8x128xbf16>, vector<128x128xf32> -> vector<128x128xf32>
    %52 = arith.addf %44, %51 : vector<128x128xf32>
    %53 = vector.extract_strided_slice %46 {offsets = [0, 1, 0], sizes = [8, 16, 8], strides = [1, 1, 1]} : vector<8x18x8xbf16> to vector<8x16x8xbf16>
    %54 = vector.shape_cast %53 : vector<8x16x8xbf16> to vector<128x8xbf16>
    %c7 = arith.constant 7 : index
    %c0_37 = arith.constant 0 : index
    %c0_38 = arith.constant 0 : index
    %55 = vector.load %arg2[%c7, %c0_37, %c0_38] : memref<9x8x128xbf16, #tpu.memory_space<vmem>>, vector<1x8x128xbf16>
    %56 = vector.shape_cast %55 : vector<1x8x128xbf16> to vector<8x128xbf16>
    %cst_39 = arith.constant dense<0.000000e+00> : vector<128x128xf32>
    %57 = tpu.matmul %54, %56, %cst_39 {dimension_numbers = #tpu.dot_dimension_numbers<[1], [0], [0], [1], [0, 0, 1, 1], [], []>} : vector<128x8xbf16>, vector<8x128xbf16>, vector<128x128xf32> -> vector<128x128xf32>
    %58 = arith.addf %52, %57 : vector<128x128xf32>
    %59 = vector.extract_strided_slice %46 {offsets = [0, 2, 0], sizes = [8, 16, 8], strides = [1, 1, 1]} : vector<8x18x8xbf16> to vector<8x16x8xbf16>
    %60 = vector.shape_cast %59 : vector<8x16x8xbf16> to vector<128x8xbf16>
    %c8 = arith.constant 8 : index
    %c0_40 = arith.constant 0 : index
    %c0_41 = arith.constant 0 : index
    %61 = vector.load %arg2[%c8, %c0_40, %c0_41] : memref<9x8x128xbf16, #tpu.memory_space<vmem>>, vector<1x8x128xbf16>
    %62 = vector.shape_cast %61 : vector<1x8x128xbf16> to vector<8x128xbf16>
    %cst_42 = arith.constant dense<0.000000e+00> : vector<128x128xf32>
    %63 = tpu.matmul %60, %62, %cst_42 {dimension_numbers = #tpu.dot_dimension_numbers<[1], [0], [0], [1], [0, 0, 1, 1], [], []>} : vector<128x8xbf16>, vector<8x128xbf16>, vector<128x128xf32> -> vector<128x128xf32>
    %64 = arith.addf %58, %63 : vector<128x128xf32>
    %c0_43 = arith.constant 0 : index
    %c1_44 = arith.constant 1 : index
    %c1_45 = arith.constant 1 : index
    %c0_46 = arith.constant 0 : index
    %65 = vector.load %arg1[%c0_43, %c1_44, %c1_45, %c0_46] : memref<1x18x18x8xbf16, #tpu.memory_space<vmem>>, vector<1x8x16x8xbf16>
    %66 = vector.shape_cast %65 : vector<1x8x16x8xbf16> to vector<8x16x8xbf16>
    %67 = vector.shape_cast %66 : vector<8x16x8xbf16> to vector<128x8xbf16>
    %c0_47 = arith.constant 0 : index
    %c0_48 = arith.constant 0 : index
    %68 = vector.load %arg3[%c0_47, %c0_48] : memref<8x128xbf16, #tpu.memory_space<vmem>>, vector<8x128xbf16>
    %cst_49 = arith.constant dense<0.000000e+00> : vector<128x128xf32>
    %69 = tpu.matmul %67, %68, %cst_49 {dimension_numbers = #tpu.dot_dimension_numbers<[1], [0], [0], [1], [0, 0, 1, 1], [], []>} : vector<128x8xbf16>, vector<8x128xbf16>, vector<128x128xf32> -> vector<128x128xf32>
    %cst_50 = arith.constant dense<0.000000e+00> : vector<128xf32>
    %70 = vector.multi_reduction <add>, %64, %cst_50 [0] : vector<128x128xf32> to vector<128xf32>
    %71 = vector.shape_cast %70 : vector<128xf32> to vector<1x128xf32>
    %72 = arith.addf %0, %71 : vector<1x128xf32>
    %73 = arith.mulf %64, %64 : vector<128x128xf32>
    %cst_51 = arith.constant dense<0.000000e+00> : vector<128xf32>
    %74 = vector.multi_reduction <add>, %73, %cst_51 [0] : vector<128x128xf32> to vector<128xf32>
    %75 = vector.shape_cast %74 : vector<128xf32> to vector<1x128xf32>
    %76 = arith.addf %1, %75 : vector<1x128xf32>
    %cst_52 = arith.constant dense<0.000000e+00> : vector<128xf32>
    %77 = vector.multi_reduction <add>, %69, %cst_52 [0] : vector<128x128xf32> to vector<128xf32>
    %78 = vector.shape_cast %77 : vector<128xf32> to vector<1x128xf32>
    %79 = arith.addf %2, %78 : vector<1x128xf32>
    %80 = arith.mulf %69, %69 : vector<128x128xf32>
    %cst_53 = arith.constant dense<0.000000e+00> : vector<128xf32>
    %81 = vector.multi_reduction <add>, %80, %cst_53 [0] : vector<128x128xf32> to vector<128xf32>
    %82 = vector.shape_cast %81 : vector<128xf32> to vector<1x128xf32>
    %83 = arith.addf %3, %82 : vector<1x128xf32>
    %84 = vector.shape_cast %64 : vector<128x128xf32> to vector<8x16x128xf32>
    %85 = arith.truncf %84 : vector<8x16x128xf32> to vector<8x16x128xbf16>
    %c0_54 = arith.constant 0 : index
    %c0_55 = arith.constant 0 : index
    %c0_56 = arith.constant 0 : index
    %c0_57 = arith.constant 0 : index
    %86 = vector.load %arg4[%c0_54, %c0_55, %c0_56, %c0_57] : memref<1x16x16x128xbf16, #tpu.memory_space<vmem>>, vector<1x8x16x128xbf16>
    %87 = vector.shape_cast %86 : vector<1x8x16x128xbf16> to vector<8x16x128xbf16>
    %88 = vector.shape_cast %85 : vector<8x16x128xbf16> to vector<1x8x16x128xbf16>
    tpu.vector_store %arg4[%c0_54, %c0_55, %c0_56, %c0_57], %88 {strides = array<i32>} : memref<1x16x16x128xbf16, #tpu.memory_space<vmem>>, vector<1x8x16x128xbf16>,
    %89 = vector.shape_cast %69 : vector<128x128xf32> to vector<8x16x128xf32>
    %90 = arith.truncf %89 : vector<8x16x128xf32> to vector<8x16x128xbf16>
    %c0_58 = arith.constant 0 : index
    %c0_59 = arith.constant 0 : index
    %c0_60 = arith.constant 0 : index
    %c0_61 = arith.constant 0 : index
    %91 = vector.load %arg5[%c0_58, %c0_59, %c0_60, %c0_61] : memref<1x16x16x128xbf16, #tpu.memory_space<vmem>>, vector<1x8x16x128xbf16>
    %92 = vector.shape_cast %91 : vector<1x8x16x128xbf16> to vector<8x16x128xbf16>
    %93 = vector.shape_cast %90 : vector<8x16x128xbf16> to vector<1x8x16x128xbf16>
    tpu.vector_store %arg5[%c0_58, %c0_59, %c0_60, %c0_61], %93 {strides = array<i32>} : memref<1x16x16x128xbf16, #tpu.memory_space<vmem>>, vector<1x8x16x128xbf16>,
    %cst_62 = arith.constant 0.000000e+00 : f32
    %94 = vector.broadcast %cst_62 : f32 to vector<128x128xf32>
    %c0_63 = arith.constant 0 : index
    %c8_64 = arith.constant 8 : index
    %c0_65 = arith.constant 0 : index
    %c0_66 = arith.constant 0 : index
    %95 = vector.load %arg1[%c0_63, %c8_64, %c0_65, %c0_66] : memref<1x18x18x8xbf16, #tpu.memory_space<vmem>>, vector<1x8x18x8xbf16>
    %96 = vector.shape_cast %95 : vector<1x8x18x8xbf16> to vector<8x18x8xbf16>
    %97 = vector.extract_strided_slice %96 {offsets = [0, 0, 0], sizes = [8, 16, 8], strides = [1, 1, 1]} : vector<8x18x8xbf16> to vector<8x16x8xbf16>
    %98 = vector.shape_cast %97 : vector<8x16x8xbf16> to vector<128x8xbf16>
    %c0_67 = arith.constant 0 : index
    %c0_68 = arith.constant 0 : index
    %c0_69 = arith.constant 0 : index
    %99 = vector.load %arg2[%c0_67, %c0_68, %c0_69] : memref<9x8x128xbf16, #tpu.memory_space<vmem>>, vector<1x8x128xbf16>
    %100 = vector.shape_cast %99 : vector<1x8x128xbf16> to vector<8x128xbf16>
    %cst_70 = arith.constant dense<0.000000e+00> : vector<128x128xf32>
    %101 = tpu.matmul %98, %100, %cst_70 {dimension_numbers = #tpu.dot_dimension_numbers<[1], [0], [0], [1], [0, 0, 1, 1], [], []>} : vector<128x8xbf16>, vector<8x128xbf16>, vector<128x128xf32> -> vector<128x128xf32>
    %102 = arith.addf %94, %101 : vector<128x128xf32>
    %103 = vector.extract_strided_slice %96 {offsets = [0, 1, 0], sizes = [8, 16, 8], strides = [1, 1, 1]} : vector<8x18x8xbf16> to vector<8x16x8xbf16>
    %104 = vector.shape_cast %103 : vector<8x16x8xbf16> to vector<128x8xbf16>
    %c1_71 = arith.constant 1 : index
    %c0_72 = arith.constant 0 : index
    %c0_73 = arith.constant 0 : index
    %105 = vector.load %arg2[%c1_71, %c0_72, %c0_73] : memref<9x8x128xbf16, #tpu.memory_space<vmem>>, vector<1x8x128xbf16>
    %106 = vector.shape_cast %105 : vector<1x8x128xbf16> to vector<8x128xbf16>
    %cst_74 = arith.constant dense<0.000000e+00> : vector<128x128xf32>
    %107 = tpu.matmul %104, %106, %cst_74 {dimension_numbers = #tpu.dot_dimension_numbers<[1], [0], [0], [1], [0, 0, 1, 1], [], []>} : vector<128x8xbf16>, vector<8x128xbf16>, vector<128x128xf32> -> vector<128x128xf32>
    %108 = arith.addf %102, %107 : vector<128x128xf32>
    %109 = vector.extract_strided_slice %96 {offsets = [0, 2, 0], sizes = [8, 16, 8], strides = [1, 1, 1]} : vector<8x18x8xbf16> to vector<8x16x8xbf16>
    %110 = vector.shape_cast %109 : vector<8x16x8xbf16> to vector<128x8xbf16>
    %c2_75 = arith.constant 2 : index
    %c0_76 = arith.constant 0 : index
    %c0_77 = arith.constant 0 : index
    %111 = vector.load %arg2[%c2_75, %c0_76, %c0_77] : memref<9x8x128xbf16, #tpu.memory_space<vmem>>, vector<1x8x128xbf16>
    %112 = vector.shape_cast %111 : vector<1x8x128xbf16> to vector<8x128xbf16>
    %cst_78 = arith.constant dense<0.000000e+00> : vector<128x128xf32>
    %113 = tpu.matmul %110, %112, %cst_78 {dimension_numbers = #tpu.dot_dimension_numbers<[1], [0], [0], [1], [0, 0, 1, 1], [], []>} : vector<128x8xbf16>, vector<8x128xbf16>, vector<128x128xf32> -> vector<128x128xf32>
    %114 = arith.addf %108, %113 : vector<128x128xf32>
    %c0_79 = arith.constant 0 : index
    %c9 = arith.constant 9 : index
    %c0_80 = arith.constant 0 : index
    %c0_81 = arith.constant 0 : index
    %115 = vector.load %arg1[%c0_79, %c9, %c0_80, %c0_81] : memref<1x18x18x8xbf16, #tpu.memory_space<vmem>>, vector<1x8x18x8xbf16>
    %116 = vector.shape_cast %115 : vector<1x8x18x8xbf16> to vector<8x18x8xbf16>
    %117 = vector.extract_strided_slice %116 {offsets = [0, 0, 0], sizes = [8, 16, 8], strides = [1, 1, 1]} : vector<8x18x8xbf16> to vector<8x16x8xbf16>
    %118 = vector.shape_cast %117 : vector<8x16x8xbf16> to vector<128x8xbf16>
    %c3_82 = arith.constant 3 : index
    %c0_83 = arith.constant 0 : index
    %c0_84 = arith.constant 0 : index
    %119 = vector.load %arg2[%c3_82, %c0_83, %c0_84] : memref<9x8x128xbf16, #tpu.memory_space<vmem>>, vector<1x8x128xbf16>
    %120 = vector.shape_cast %119 : vector<1x8x128xbf16> to vector<8x128xbf16>
    %cst_85 = arith.constant dense<0.000000e+00> : vector<128x128xf32>
    %121 = tpu.matmul %118, %120, %cst_85 {dimension_numbers = #tpu.dot_dimension_numbers<[1], [0], [0], [1], [0, 0, 1, 1], [], []>} : vector<128x8xbf16>, vector<8x128xbf16>, vector<128x128xf32> -> vector<128x128xf32>
    %122 = arith.addf %114, %121 : vector<128x128xf32>
    %123 = vector.extract_strided_slice %116 {offsets = [0, 1, 0], sizes = [8, 16, 8], strides = [1, 1, 1]} : vector<8x18x8xbf16> to vector<8x16x8xbf16>
    %124 = vector.shape_cast %123 : vector<8x16x8xbf16> to vector<128x8xbf16>
    %c4_86 = arith.constant 4 : index
    %c0_87 = arith.constant 0 : index
    %c0_88 = arith.constant 0 : index
    %125 = vector.load %arg2[%c4_86, %c0_87, %c0_88] : memref<9x8x128xbf16, #tpu.memory_space<vmem>>, vector<1x8x128xbf16>
    %126 = vector.shape_cast %125 : vector<1x8x128xbf16> to vector<8x128xbf16>
    %cst_89 = arith.constant dense<0.000000e+00> : vector<128x128xf32>
    %127 = tpu.matmul %124, %126, %cst_89 {dimension_numbers = #tpu.dot_dimension_numbers<[1], [0], [0], [1], [0, 0, 1, 1], [], []>} : vector<128x8xbf16>, vector<8x128xbf16>, vector<128x128xf32> -> vector<128x128xf32>
    %128 = arith.addf %122, %127 : vector<128x128xf32>
    %129 = vector.extract_strided_slice %116 {offsets = [0, 2, 0], sizes = [8, 16, 8], strides = [1, 1, 1]} : vector<8x18x8xbf16> to vector<8x16x8xbf16>
    %130 = vector.shape_cast %129 : vector<8x16x8xbf16> to vector<128x8xbf16>
    %c5_90 = arith.constant 5 : index
    %c0_91 = arith.constant 0 : index
    %c0_92 = arith.constant 0 : index
    %131 = vector.load %arg2[%c5_90, %c0_91, %c0_92] : memref<9x8x128xbf16, #tpu.memory_space<vmem>>, vector<1x8x128xbf16>
    %132 = vector.shape_cast %131 : vector<1x8x128xbf16> to vector<8x128xbf16>
    %cst_93 = arith.constant dense<0.000000e+00> : vector<128x128xf32>
    %133 = tpu.matmul %130, %132, %cst_93 {dimension_numbers = #tpu.dot_dimension_numbers<[1], [0], [0], [1], [0, 0, 1, 1], [], []>} : vector<128x8xbf16>, vector<8x128xbf16>, vector<128x128xf32> -> vector<128x128xf32>
    %134 = arith.addf %128, %133 : vector<128x128xf32>
    %c0_94 = arith.constant 0 : index
    %c10 = arith.constant 10 : index
    %c0_95 = arith.constant 0 : index
    %c0_96 = arith.constant 0 : index
    %135 = vector.load %arg1[%c0_94, %c10, %c0_95, %c0_96] : memref<1x18x18x8xbf16, #tpu.memory_space<vmem>>, vector<1x8x18x8xbf16>
    %136 = vector.shape_cast %135 : vector<1x8x18x8xbf16> to vector<8x18x8xbf16>
    %137 = vector.extract_strided_slice %136 {offsets = [0, 0, 0], sizes = [8, 16, 8], strides = [1, 1, 1]} : vector<8x18x8xbf16> to vector<8x16x8xbf16>
    %138 = vector.shape_cast %137 : vector<8x16x8xbf16> to vector<128x8xbf16>
    %c6_97 = arith.constant 6 : index
    %c0_98 = arith.constant 0 : index
    %c0_99 = arith.constant 0 : index
    %139 = vector.load %arg2[%c6_97, %c0_98, %c0_99] : memref<9x8x128xbf16, #tpu.memory_space<vmem>>, vector<1x8x128xbf16>
    %140 = vector.shape_cast %139 : vector<1x8x128xbf16> to vector<8x128xbf16>
    %cst_100 = arith.constant dense<0.000000e+00> : vector<128x128xf32>
    %141 = tpu.matmul %138, %140, %cst_100 {dimension_numbers = #tpu.dot_dimension_numbers<[1], [0], [0], [1], [0, 0, 1, 1], [], []>} : vector<128x8xbf16>, vector<8x128xbf16>, vector<128x128xf32> -> vector<128x128xf32>
    %142 = arith.addf %134, %141 : vector<128x128xf32>
    %143 = vector.extract_strided_slice %136 {offsets = [0, 1, 0], sizes = [8, 16, 8], strides = [1, 1, 1]} : vector<8x18x8xbf16> to vector<8x16x8xbf16>
    %144 = vector.shape_cast %143 : vector<8x16x8xbf16> to vector<128x8xbf16>
    %c7_101 = arith.constant 7 : index
    %c0_102 = arith.constant 0 : index
    %c0_103 = arith.constant 0 : index
    %145 = vector.load %arg2[%c7_101, %c0_102, %c0_103] : memref<9x8x128xbf16, #tpu.memory_space<vmem>>, vector<1x8x128xbf16>
    %146 = vector.shape_cast %145 : vector<1x8x128xbf16> to vector<8x128xbf16>
    %cst_104 = arith.constant dense<0.000000e+00> : vector<128x128xf32>
    %147 = tpu.matmul %144, %146, %cst_104 {dimension_numbers = #tpu.dot_dimension_numbers<[1], [0], [0], [1], [0, 0, 1, 1], [], []>} : vector<128x8xbf16>, vector<8x128xbf16>, vector<128x128xf32> -> vector<128x128xf32>
    %148 = arith.addf %142, %147 : vector<128x128xf32>
    %149 = vector.extract_strided_slice %136 {offsets = [0, 2, 0], sizes = [8, 16, 8], strides = [1, 1, 1]} : vector<8x18x8xbf16> to vector<8x16x8xbf16>
    %150 = vector.shape_cast %149 : vector<8x16x8xbf16> to vector<128x8xbf16>
    %c8_105 = arith.constant 8 : index
    %c0_106 = arith.constant 0 : index
    %c0_107 = arith.constant 0 : index
    %151 = vector.load %arg2[%c8_105, %c0_106, %c0_107] : memref<9x8x128xbf16, #tpu.memory_space<vmem>>, vector<1x8x128xbf16>
    %152 = vector.shape_cast %151 : vector<1x8x128xbf16> to vector<8x128xbf16>
    %cst_108 = arith.constant dense<0.000000e+00> : vector<128x128xf32>
    %153 = tpu.matmul %150, %152, %cst_108 {dimension_numbers = #tpu.dot_dimension_numbers<[1], [0], [0], [1], [0, 0, 1, 1], [], []>} : vector<128x8xbf16>, vector<8x128xbf16>, vector<128x128xf32> -> vector<128x128xf32>
    %154 = arith.addf %148, %153 : vector<128x128xf32>
    %c0_109 = arith.constant 0 : index
    %c9_110 = arith.constant 9 : index
    %c1_111 = arith.constant 1 : index
    %c0_112 = arith.constant 0 : index
    %155 = vector.load %arg1[%c0_109, %c9_110, %c1_111, %c0_112] : memref<1x18x18x8xbf16, #tpu.memory_space<vmem>>, vector<1x8x16x8xbf16>
    %156 = vector.shape_cast %155 : vector<1x8x16x8xbf16> to vector<8x16x8xbf16>
    %157 = vector.shape_cast %156 : vector<8x16x8xbf16> to vector<128x8xbf16>
    %c0_113 = arith.constant 0 : index
    %c0_114 = arith.constant 0 : index
    %158 = vector.load %arg3[%c0_113, %c0_114] : memref<8x128xbf16, #tpu.memory_space<vmem>>, vector<8x128xbf16>
    %cst_115 = arith.constant dense<0.000000e+00> : vector<128x128xf32>
    %159 = tpu.matmul %157, %158, %cst_115 {dimension_numbers = #tpu.dot_dimension_numbers<[1], [0], [0], [1], [0, 0, 1, 1], [], []>} : vector<128x8xbf16>, vector<8x128xbf16>, vector<128x128xf32> -> vector<128x128xf32>
    %cst_116 = arith.constant dense<0.000000e+00> : vector<128xf32>
    %160 = vector.multi_reduction <add>, %154, %cst_116 [0] : vector<128x128xf32> to vector<128xf32>
    %161 = vector.shape_cast %160 : vector<128xf32> to vector<1x128xf32>
    %162 = arith.addf %72, %161 : vector<1x128xf32>
    %163 = arith.mulf %154, %154 : vector<128x128xf32>
    %cst_117 = arith.constant dense<0.000000e+00> : vector<128xf32>
    %164 = vector.multi_reduction <add>, %163, %cst_117 [0] : vector<128x128xf32> to vector<128xf32>
    %165 = vector.shape_cast %164 : vector<128xf32> to vector<1x128xf32>
    %166 = arith.addf %76, %165 : vector<1x128xf32>
    %cst_118 = arith.constant dense<0.000000e+00> : vector<128xf32>
    %167 = vector.multi_reduction <add>, %159, %cst_118 [0] : vector<128x128xf32> to vector<128xf32>
    %168 = vector.shape_cast %167 : vector<128xf32> to vector<1x128xf32>
    %169 = arith.addf %79, %168 : vector<1x128xf32>
    %170 = arith.mulf %159, %159 : vector<128x128xf32>
    %cst_119 = arith.constant dense<0.000000e+00> : vector<128xf32>
    %171 = vector.multi_reduction <add>, %170, %cst_119 [0] : vector<128x128xf32> to vector<128xf32>
    %172 = vector.shape_cast %171 : vector<128xf32> to vector<1x128xf32>
    %173 = arith.addf %83, %172 : vector<1x128xf32>
    %174 = vector.shape_cast %154 : vector<128x128xf32> to vector<8x16x128xf32>
    %175 = arith.truncf %174 : vector<8x16x128xf32> to vector<8x16x128xbf16>
    %c0_120 = arith.constant 0 : index
    %c8_121 = arith.constant 8 : index
    %c0_122 = arith.constant 0 : index
    %c0_123 = arith.constant 0 : index
    %176 = vector.load %arg4[%c0_120, %c8_121, %c0_122, %c0_123] : memref<1x16x16x128xbf16, #tpu.memory_space<vmem>>, vector<1x8x16x128xbf16>
    %177 = vector.shape_cast %176 : vector<1x8x16x128xbf16> to vector<8x16x128xbf16>
    %178 = vector.shape_cast %175 : vector<8x16x128xbf16> to vector<1x8x16x128xbf16>
    tpu.vector_store %arg4[%c0_120, %c8_121, %c0_122, %c0_123], %178 {strides = array<i32>} : memref<1x16x16x128xbf16, #tpu.memory_space<vmem>>, vector<1x8x16x128xbf16>,
    %179 = vector.shape_cast %159 : vector<128x128xf32> to vector<8x16x128xf32>
    %180 = arith.truncf %179 : vector<8x16x128xf32> to vector<8x16x128xbf16>
    %c0_124 = arith.constant 0 : index
    %c8_125 = arith.constant 8 : index
    %c0_126 = arith.constant 0 : index
    %c0_127 = arith.constant 0 : index
    %181 = vector.load %arg5[%c0_124, %c8_125, %c0_126, %c0_127] : memref<1x16x16x128xbf16, #tpu.memory_space<vmem>>, vector<1x8x16x128xbf16>
    %182 = vector.shape_cast %181 : vector<1x8x16x128xbf16> to vector<8x16x128xbf16>
    %183 = vector.shape_cast %180 : vector<8x16x128xbf16> to vector<1x8x16x128xbf16>
    tpu.vector_store %arg5[%c0_124, %c8_125, %c0_126, %c0_127], %183 {strides = array<i32>} : memref<1x16x16x128xbf16, #tpu.memory_space<vmem>>, vector<1x8x16x128xbf16>,
    %c0_128 = arith.constant 0 : index
    %c0_129 = arith.constant 0 : index
    %c0_130 = arith.constant 0 : index
    %184 = vector.load %arg6[%c0_128, %c0_129, %c0_130] : memref<1x1x128xf32, #tpu.memory_space<vmem>>, vector<1x1x128xf32>
    %185 = vector.shape_cast %184 : vector<1x1x128xf32> to vector<1x128xf32>
    %186 = vector.shape_cast %162 : vector<1x128xf32> to vector<1x1x128xf32>
    tpu.vector_store %arg6[%c0_128, %c0_129, %c0_130], %186 {strides = array<i32>} : memref<1x1x128xf32, #tpu.memory_space<vmem>>, vector<1x1x128xf32>,
    %c0_131 = arith.constant 0 : index
    %c0_132 = arith.constant 0 : index
    %c0_133 = arith.constant 0 : index
    %187 = vector.load %arg7[%c0_131, %c0_132, %c0_133] : memref<1x1x128xf32, #tpu.memory_space<vmem>>, vector<1x1x128xf32>
    %188 = vector.shape_cast %187 : vector<1x1x128xf32> to vector<1x128xf32>
    %189 = vector.shape_cast %166 : vector<1x128xf32> to vector<1x1x128xf32>
    tpu.vector_store %arg7[%c0_131, %c0_132, %c0_133], %189 {strides = array<i32>} : memref<1x1x128xf32, #tpu.memory_space<vmem>>, vector<1x1x128xf32>,
    %c0_134 = arith.constant 0 : index
    %c0_135 = arith.constant 0 : index
    %c0_136 = arith.constant 0 : index
    %190 = vector.load %arg8[%c0_134, %c0_135, %c0_136] : memref<1x1x128xf32, #tpu.memory_space<vmem>>, vector<1x1x128xf32>
    %191 = vector.shape_cast %190 : vector<1x1x128xf32> to vector<1x128xf32>
    %192 = vector.shape_cast %169 : vector<1x128xf32> to vector<1x1x128xf32>
    tpu.vector_store %arg8[%c0_134, %c0_135, %c0_136], %192 {strides = array<i32>} : memref<1x1x128xf32, #tpu.memory_space<vmem>>, vector<1x1x128xf32>,
    %c0_137 = arith.constant 0 : index
    %c0_138 = arith.constant 0 : index
    %c0_139 = arith.constant 0 : index
    %193 = vector.load %arg9[%c0_137, %c0_138, %c0_139] : memref<1x1x128xf32, #tpu.memory_space<vmem>>, vector<1x1x128xf32>
    %194 = vector.shape_cast %193 : vector<1x1x128xf32> to vector<1x128xf32>
    %195 = vector.shape_cast %173 : vector<1x128xf32> to vector<1x1x128xf32>
    tpu.vector_store %arg9[%c0_137, %c0_138, %c0_139], %195 {strides = array<i32>} : memref<1x1x128xf32, #tpu.memory_space<vmem>>, vector<1x1x128xf32>,
    return
  }
  func.func @transform_0(%arg0: i32) -> (i32, i32, i32, i32) {
    %c0_i32 = arith.constant 0 : i32
    %c0_i32_0 = arith.constant 0 : i32
    %c0_i32_1 = arith.constant 0 : i32
    %c0_i32_2 = arith.constant 0 : i32
    return %arg0, %c0_i32, %c0_i32_0, %c0_i32_1 : i32, i32, i32, i32
  }
  func.func @transform_1(%arg0: i32) -> (i32, i32, i32) {
    %c0_i32 = arith.constant 0 : i32
    %c0_i32_0 = arith.constant 0 : i32
    %c0_i32_1 = arith.constant 0 : i32
    %c0_i32_2 = arith.constant 0 : i32
    return %c0_i32, %c0_i32_0, %c0_i32_1 : i32, i32, i32
  }
  func.func @transform_2(%arg0: i32) -> (i32, i32) {
    %c0_i32 = arith.constant 0 : i32
    %c0_i32_0 = arith.constant 0 : i32
    %c0_i32_1 = arith.constant 0 : i32
    return %c0_i32, %c0_i32_0 : i32, i32
  }
  func.func @transform_3(%arg0: i32) -> (i32, i32, i32, i32) {
    %c0_i32 = arith.constant 0 : i32
    %c0_i32_0 = arith.constant 0 : i32
    %c0_i32_1 = arith.constant 0 : i32
    %c0_i32_2 = arith.constant 0 : i32
    return %arg0, %c0_i32, %c0_i32_0, %c0_i32_1 : i32, i32, i32, i32
  }
  func.func @transform_4(%arg0: i32) -> (i32, i32, i32, i32) {
    %c0_i32 = arith.constant 0 : i32
    %c0_i32_0 = arith.constant 0 : i32
    %c0_i32_1 = arith.constant 0 : i32
    %c0_i32_2 = arith.constant 0 : i32
    return %arg0, %c0_i32, %c0_i32_0, %c0_i32_1 : i32, i32, i32, i32
  }
  func.func @transform_5(%arg0: i32) -> (i32, i32, i32) {
    %c0_i32 = arith.constant 0 : i32
    %c0_i32_0 = arith.constant 0 : i32
    %c0_i32_1 = arith.constant 0 : i32
    return %arg0, %c0_i32, %c0_i32_0 : i32, i32, i32
  }
  func.func @transform_6(%arg0: i32) -> (i32, i32, i32) {
    %c0_i32 = arith.constant 0 : i32
    %c0_i32_0 = arith.constant 0 : i32
    %c0_i32_1 = arith.constant 0 : i32
    return %arg0, %c0_i32, %c0_i32_0 : i32, i32, i32
  }
  func.func @transform_7(%arg0: i32) -> (i32, i32, i32) {
    %c0_i32 = arith.constant 0 : i32
    %c0_i32_0 = arith.constant 0 : i32
    %c0_i32_1 = arith.constant 0 : i32
    return %arg0, %c0_i32, %c0_i32_0 : i32, i32, i32
  }
  func.func @transform_8(%arg0: i32) -> (i32, i32, i32) {
    %c0_i32 = arith.constant 0 : i32
    %c0_i32_0 = arith.constant 0 : i32
    %c0_i32_1 = arith.constant 0 : i32
    return %arg0, %c0_i32, %c0_i32_0 : i32, i32, i32
  }
}

module attributes {stable_mosaic.version = 11 : i64} {
  func.func @_bn2_residual_softmax_kernel(%arg0: i32, %arg1: memref<1x16x16x128xbf16, #tpu.memory_space<vmem>>, %arg2: memref<1x16x16x128xbf16, #tpu.memory_space<vmem>>, %arg3: memref<4x128xf32, #tpu.memory_space<vmem>>, %arg4: memref<1x16x16x8xf32, #tpu.memory_space<vmem>>) attributes {dimension_semantics = [#tpu.dimension_semantics<parallel>], iteration_bounds = array<i64: 2>, scalar_prefetch = 0 : i64, scratch_operands = 0 : i64, tpu.core_type = #tpu.core_type<tc>, window_params = [{transform_indices = @transform_0, window_bounds = array<i64: 1, 16, 16, 128>}, {transform_indices = @transform_1, window_bounds = array<i64: 1, 16, 16, 128>}, {pipeline_mode = #tpu.pipeline_mode<synchronous>, transform_indices = @transform_2, window_bounds = array<i64: 4, 128>}, {transform_indices = @transform_3, window_bounds = array<i64: 1, 16, 16, 8>}]} {
    %c0 = arith.constant 0 : index
    %c0_0 = arith.constant 0 : index
    %c0_1 = arith.constant 0 : index
    %c0_2 = arith.constant 0 : index
    %0 = vector.load %arg1[%c0, %c0_0, %c0_1, %c0_2] : memref<1x16x16x128xbf16, #tpu.memory_space<vmem>>, vector<1x16x16x128xbf16>
    %1 = vector.shape_cast %0 : vector<1x16x16x128xbf16> to vector<16x16x128xbf16>
    %2 = arith.extf %1 : vector<16x16x128xbf16> to vector<16x16x128xf32>
    %c0_3 = arith.constant 0 : index
    %c0_4 = arith.constant 0 : index
    %c0_5 = arith.constant 0 : index
    %c0_6 = arith.constant 0 : index
    %3 = vector.load %arg2[%c0_3, %c0_4, %c0_5, %c0_6] : memref<1x16x16x128xbf16, #tpu.memory_space<vmem>>, vector<1x16x16x128xbf16>
    %4 = vector.shape_cast %3 : vector<1x16x16x128xbf16> to vector<16x16x128xbf16>
    %5 = arith.extf %4 : vector<16x16x128xbf16> to vector<16x16x128xf32>
    %c0_7 = arith.constant 0 : index
    %c0_8 = arith.constant 0 : index
    %6 = vector.load %arg3[%c0_7, %c0_8] : memref<4x128xf32, #tpu.memory_space<vmem>>, vector<1x128xf32>
    %7 = vector.shape_cast %6 : vector<1x128xf32> to vector<1x1x128xf32>
    %8 = vector.broadcast %7 : vector<1x1x128xf32> to vector<16x16x128xf32>
    %9 = arith.mulf %2, %8 : vector<16x16x128xf32>
    %c1 = arith.constant 1 : index
    %c0_9 = arith.constant 0 : index
    %10 = vector.load %arg3[%c1, %c0_9] : memref<4x128xf32, #tpu.memory_space<vmem>>, vector<1x128xf32>
    %11 = vector.shape_cast %10 : vector<1x128xf32> to vector<1x1x128xf32>
    %12 = vector.broadcast %11 : vector<1x1x128xf32> to vector<16x16x128xf32>
    %13 = arith.addf %9, %12 : vector<16x16x128xf32>
    %c2 = arith.constant 2 : index
    %c0_10 = arith.constant 0 : index
    %14 = vector.load %arg3[%c2, %c0_10] : memref<4x128xf32, #tpu.memory_space<vmem>>, vector<1x128xf32>
    %15 = vector.shape_cast %14 : vector<1x128xf32> to vector<1x1x128xf32>
    %16 = vector.broadcast %15 : vector<1x1x128xf32> to vector<16x16x128xf32>
    %17 = arith.mulf %5, %16 : vector<16x16x128xf32>
    %18 = arith.addf %13, %17 : vector<16x16x128xf32>
    %c3 = arith.constant 3 : index
    %c0_11 = arith.constant 0 : index
    %19 = vector.load %arg3[%c3, %c0_11] : memref<4x128xf32, #tpu.memory_space<vmem>>, vector<1x128xf32>
    %20 = vector.shape_cast %19 : vector<1x128xf32> to vector<1x1x128xf32>
    %21 = vector.broadcast %20 : vector<1x1x128xf32> to vector<16x16x128xf32>
    %22 = arith.addf %18, %21 : vector<16x16x128xf32>
    %23 = tpu.iota {dimensions = array<i32: 2>} : vector<16x16x128xi32>
    %c8_i32 = arith.constant 8 : i32
    %24 = vector.broadcast %c8_i32 : i32 to vector<16x16x128xi32>
    %25 = arith.cmpi slt, %23, %24 : vector<16x16x128xi32>
    %cst = arith.constant -1.000000e+30 : f32
    %26 = vector.broadcast %cst : f32 to vector<16x16x128xf32>
    %27 = arith.select %25, %22, %26 : vector<16x16x128xi1>, vector<16x16x128xf32>
    %cst_12 = arith.constant dense<0xFF800000> : vector<16x16xf32>
    %28 = vector.multi_reduction <maximumf>, %27, %cst_12 [2] : vector<16x16x128xf32> to vector<16x16xf32>
    %29 = vector.shape_cast %28 : vector<16x16xf32> to vector<16x16x1xf32>
    %30 = vector.broadcast %29 : vector<16x16x1xf32> to vector<16x16x128xf32>
    %31 = arith.subf %27, %30 : vector<16x16x128xf32>
    %32 = math.exp %31 : vector<16x16x128xf32>
    %cst_13 = arith.constant dense<0.000000e+00> : vector<16x16xf32>
    %33 = vector.multi_reduction <add>, %32, %cst_13 [2] : vector<16x16x128xf32> to vector<16x16xf32>
    %34 = vector.shape_cast %33 : vector<16x16xf32> to vector<16x16x1xf32>
    %35 = tpu.reciprocal %34 {approx = true} : vector<16x16x1xf32> -> vector<16x16x1xf32>
    %36 = vector.broadcast %35 : vector<16x16x1xf32> to vector<16x16x128xf32>
    %37 = arith.mulf %32, %36 : vector<16x16x128xf32>
    %38 = vector.extract_strided_slice %37 {offsets = [0, 0, 0], sizes = [16, 16, 8], strides = [1, 1, 1]} : vector<16x16x128xf32> to vector<16x16x8xf32>
    %c0_14 = arith.constant 0 : index
    %c0_15 = arith.constant 0 : index
    %c0_16 = arith.constant 0 : index
    %c0_17 = arith.constant 0 : index
    %39 = vector.load %arg4[%c0_14, %c0_15, %c0_16, %c0_17] : memref<1x16x16x8xf32, #tpu.memory_space<vmem>>, vector<1x16x16x8xf32>
    %40 = vector.shape_cast %39 : vector<1x16x16x8xf32> to vector<16x16x8xf32>
    %41 = vector.shape_cast %38 : vector<16x16x8xf32> to vector<1x16x16x8xf32>
    tpu.vector_store %arg4[%c0_14, %c0_15, %c0_16, %c0_17], %41 {strides = array<i32>} : memref<1x16x16x8xf32, #tpu.memory_space<vmem>>, vector<1x16x16x8xf32>,
    return
  }
  func.func @transform_0(%arg0: i32) -> (i32, i32, i32, i32) {
    %c0_i32 = arith.constant 0 : i32
    %c0_i32_0 = arith.constant 0 : i32
    %c0_i32_1 = arith.constant 0 : i32
    %c0_i32_2 = arith.constant 0 : i32
    return %arg0, %c0_i32, %c0_i32_0, %c0_i32_1 : i32, i32, i32, i32
  }
  func.func @transform_1(%arg0: i32) -> (i32, i32, i32, i32) {
    %c0_i32 = arith.constant 0 : i32
    %c0_i32_0 = arith.constant 0 : i32
    %c0_i32_1 = arith.constant 0 : i32
    %c0_i32_2 = arith.constant 0 : i32
    return %arg0, %c0_i32, %c0_i32_0, %c0_i32_1 : i32, i32, i32, i32
  }
  func.func @transform_2(%arg0: i32) -> (i32, i32) {
    %c0_i32 = arith.constant 0 : i32
    %c0_i32_0 = arith.constant 0 : i32
    %c0_i32_1 = arith.constant 0 : i32
    return %c0_i32, %c0_i32_0 : i32, i32
  }
  func.func @transform_3(%arg0: i32) -> (i32, i32, i32, i32) {
    %c0_i32 = arith.constant 0 : i32
    %c0_i32_0 = arith.constant 0 : i32
    %c0_i32_1 = arith.constant 0 : i32
    %c0_i32_2 = arith.constant 0 : i32
    return %arg0, %c0_i32, %c0_i32_0, %c0_i32_1 : i32, i32, i32, i32
  }
}

module attributes {stable_mosaic.version = 11 : i64} {
  func.func @_bn1_relu_conv2_kernel(%arg0: i32, %arg1: memref<1x16x16x128xbf16, #tpu.memory_space<vmem>>, %arg2: memref<2x128xf32, #tpu.memory_space<vmem>>, %arg3: memref<3x384x128xbf16, #tpu.memory_space<vmem>>, %arg4: memref<1x16x16x128xbf16, #tpu.memory_space<vmem>>, %arg5: memref<1x1x128xf32, #tpu.memory_space<vmem>>, %arg6: memref<1x1x128xf32, #tpu.memory_space<vmem>>, %arg7: memref<18x16x384xbf16, #tpu.memory_space<vmem>>) attributes {dimension_semantics = [#tpu.dimension_semantics<parallel>], iteration_bounds = array<i64: 2>, scalar_prefetch = 0 : i64, scratch_operands = 1 : i64, tpu.core_type = #tpu.core_type<tc>, window_params = [{transform_indices = @transform_0, window_bounds = array<i64: 1, 16, 16, 128>}, {pipeline_mode = #tpu.pipeline_mode<synchronous>, transform_indices = @transform_1, window_bounds = array<i64: 2, 128>}, {pipeline_mode = #tpu.pipeline_mode<synchronous>, transform_indices = @transform_2, window_bounds = array<i64: 3, 384, 128>}, {transform_indices = @transform_3, window_bounds = array<i64: 1, 16, 16, 128>}, {transform_indices = @transform_4, window_bounds = array<i64: 1, 1, 128>}, {transform_indices = @transform_5, window_bounds = array<i64: 1, 1, 128>}]} {
    %c0 = arith.constant 0 : index
    %c0_0 = arith.constant 0 : index
    %0 = vector.load %arg2[%c0, %c0_0] : memref<2x128xf32, #tpu.memory_space<vmem>>, vector<1x128xf32>
    %c1 = arith.constant 1 : index
    %c0_1 = arith.constant 0 : index
    %1 = vector.load %arg2[%c1, %c0_1] : memref<2x128xf32, #tpu.memory_space<vmem>>, vector<1x128xf32>
    %c0_2 = arith.constant 0 : index
    %c0_3 = arith.constant 0 : index
    %c0_4 = arith.constant 0 : index
    %c0_5 = arith.constant 0 : index
    %2 = vector.load %arg1[%c0_2, %c0_3, %c0_4, %c0_5] : memref<1x16x16x128xbf16, #tpu.memory_space<vmem>>, vector<1x16x16x128xbf16>
    %3 = vector.shape_cast %2 : vector<1x16x16x128xbf16> to vector<16x16x128xbf16>
    %4 = arith.extf %3 : vector<16x16x128xbf16> to vector<16x16x128xf32>
    %5 = vector.shape_cast %0 : vector<1x128xf32> to vector<1x1x128xf32>
    %6 = vector.broadcast %5 : vector<1x1x128xf32> to vector<16x16x128xf32>
    %7 = arith.mulf %4, %6 : vector<16x16x128xf32>
    %8 = vector.shape_cast %1 : vector<1x128xf32> to vector<1x1x128xf32>
    %9 = vector.broadcast %8 : vector<1x1x128xf32> to vector<16x16x128xf32>
    %10 = arith.addf %7, %9 : vector<16x16x128xf32>
    %cst = arith.constant 0.000000e+00 : f32
    %11 = vector.broadcast %cst : f32 to vector<16x16x128xf32>
    %12 = arith.maximumf %10, %11 : vector<16x16x128xf32>
    %13 = arith.truncf %12 : vector<16x16x128xf32> to vector<16x16x128xbf16>
    %c1_6 = arith.constant 1 : index
    %c0_7 = arith.constant 0 : index
    %c128 = arith.constant 128 : index
    %14 = vector.load %arg7[%c1_6, %c0_7, %c128] : memref<18x16x384xbf16, #tpu.memory_space<vmem>>, vector<16x16x128xbf16>
    tpu.vector_store %arg7[%c1_6, %c0_7, %c128], %13 {strides = array<i32>} : memref<18x16x384xbf16, #tpu.memory_space<vmem>>, vector<16x16x128xbf16>,
    %15 = vector.extract_strided_slice %13 {offsets = [0, 0, 0], sizes = [16, 15, 128], strides = [1, 1, 1]} : vector<16x16x128xbf16> to vector<16x15x128xbf16>
    %c1_8 = arith.constant 1 : index
    %c1_9 = arith.constant 1 : index
    %c0_10 = arith.constant 0 : index
    %16 = vector.load %arg7[%c1_8, %c1_9, %c0_10] : memref<18x16x384xbf16, #tpu.memory_space<vmem>>, vector<16x15x128xbf16>
    tpu.vector_store %arg7[%c1_8, %c1_9, %c0_10], %15 {strides = array<i32>} : memref<18x16x384xbf16, #tpu.memory_space<vmem>>, vector<16x15x128xbf16>,
    %17 = vector.extract_strided_slice %13 {offsets = [0, 1, 0], sizes = [16, 15, 128], strides = [1, 1, 1]} : vector<16x16x128xbf16> to vector<16x15x128xbf16>
    %c1_11 = arith.constant 1 : index
    %c0_12 = arith.constant 0 : index
    %c256 = arith.constant 256 : index
    %18 = vector.load %arg7[%c1_11, %c0_12, %c256] : memref<18x16x384xbf16, #tpu.memory_space<vmem>>, vector<16x15x128xbf16>
    tpu.vector_store %arg7[%c1_11, %c0_12, %c256], %17 {strides = array<i32>} : memref<18x16x384xbf16, #tpu.memory_space<vmem>>, vector<16x15x128xbf16>,
    %cst_13 = arith.constant 0.000000e+00 : bf16
    %19 = vector.broadcast %cst_13 : bf16 to vector<16x1x128xbf16>
    %c1_14 = arith.constant 1 : index
    %c0_15 = arith.constant 0 : index
    %c0_16 = arith.constant 0 : index
    %20 = vector.load %arg7[%c1_14, %c0_15, %c0_16] : memref<18x16x384xbf16, #tpu.memory_space<vmem>>, vector<16x1x128xbf16>
    tpu.vector_store %arg7[%c1_14, %c0_15, %c0_16], %19 {strides = array<i32>} : memref<18x16x384xbf16, #tpu.memory_space<vmem>>, vector<16x1x128xbf16>,
    %c1_17 = arith.constant 1 : index
    %c15 = arith.constant 15 : index
    %c256_18 = arith.constant 256 : index
    %21 = vector.load %arg7[%c1_17, %c15, %c256_18] : memref<18x16x384xbf16, #tpu.memory_space<vmem>>, vector<16x1x128xbf16>
    tpu.vector_store %arg7[%c1_17, %c15, %c256_18], %19 {strides = array<i32>} : memref<18x16x384xbf16, #tpu.memory_space<vmem>>, vector<16x1x128xbf16>,
    %cst_19 = arith.constant 0.000000e+00 : bf16
    %22 = vector.broadcast %cst_19 : bf16 to vector<1x16x384xbf16>
    %c0_20 = arith.constant 0 : index
    %c0_21 = arith.constant 0 : index
    %c0_22 = arith.constant 0 : index
    %23 = vector.load %arg7[%c0_20, %c0_21, %c0_22] : memref<18x16x384xbf16, #tpu.memory_space<vmem>>, vector<1x16x384xbf16>
    tpu.vector_store %arg7[%c0_20, %c0_21, %c0_22], %22 {strides = array<i32>} : memref<18x16x384xbf16, #tpu.memory_space<vmem>>, vector<1x16x384xbf16>,
    %c17 = arith.constant 17 : index
    %c0_23 = arith.constant 0 : index
    %c0_24 = arith.constant 0 : index
    %24 = vector.load %arg7[%c17, %c0_23, %c0_24] : memref<18x16x384xbf16, #tpu.memory_space<vmem>>, vector<1x16x384xbf16>
    tpu.vector_store %arg7[%c17, %c0_23, %c0_24], %22 {strides = array<i32>} : memref<18x16x384xbf16, #tpu.memory_space<vmem>>, vector<1x16x384xbf16>,
    %cst_25 = arith.constant 0.000000e+00 : f32
    %25 = vector.broadcast %cst_25 : f32 to vector<1x128xf32>
    %cst_26 = arith.constant 0.000000e+00 : f32
    %26 = vector.broadcast %cst_26 : f32 to vector<1x128xf32>
    %cst_27 = arith.constant 0.000000e+00 : f32
    %27 = vector.broadcast %cst_27 : f32 to vector<128x128xf32>
    %c0_28 = arith.constant 0 : index
    %c0_29 = arith.constant 0 : index
    %c0_30 = arith.constant 0 : index
    %28 = vector.load %arg7[%c0_28, %c0_29, %c0_30] : memref<18x16x384xbf16, #tpu.memory_space<vmem>>, vector<8x16x384xbf16>
    %29 = vector.shape_cast %28 : vector<8x16x384xbf16> to vector<128x384xbf16>
    %c0_31 = arith.constant 0 : index
    %c0_32 = arith.constant 0 : index
    %c0_33 = arith.constant 0 : index
    %30 = vector.load %arg3[%c0_31, %c0_32, %c0_33] : memref<3x384x128xbf16, #tpu.memory_space<vmem>>, vector<1x384x128xbf16>
    %31 = vector.shape_cast %30 : vector<1x384x128xbf16> to vector<384x128xbf16>
    %cst_34 = arith.constant dense<0.000000e+00> : vector<128x128xf32>
    %32 = tpu.matmul %29, %31, %cst_34 {dimension_numbers = #tpu.dot_dimension_numbers<[1], [0], [0], [1], [0, 0, 1, 1], [], []>} : vector<128x384xbf16>, vector<384x128xbf16>, vector<128x128xf32> -> vector<128x128xf32>
    %33 = arith.addf %27, %32 : vector<128x128xf32>
    %c1_35 = arith.constant 1 : index
    %c0_36 = arith.constant 0 : index
    %c0_37 = arith.constant 0 : index
    %34 = vector.load %arg7[%c1_35, %c0_36, %c0_37] : memref<18x16x384xbf16, #tpu.memory_space<vmem>>, vector<8x16x384xbf16>
    %35 = vector.shape_cast %34 : vector<8x16x384xbf16> to vector<128x384xbf16>
    %c1_38 = arith.constant 1 : index
    %c0_39 = arith.constant 0 : index
    %c0_40 = arith.constant 0 : index
    %36 = vector.load %arg3[%c1_38, %c0_39, %c0_40] : memref<3x384x128xbf16, #tpu.memory_space<vmem>>, vector<1x384x128xbf16>
    %37 = vector.shape_cast %36 : vector<1x384x128xbf16> to vector<384x128xbf16>
    %cst_41 = arith.constant dense<0.000000e+00> : vector<128x128xf32>
    %38 = tpu.matmul %35, %37, %cst_41 {dimension_numbers = #tpu.dot_dimension_numbers<[1], [0], [0], [1], [0, 0, 1, 1], [], []>} : vector<128x384xbf16>, vector<384x128xbf16>, vector<128x128xf32> -> vector<128x128xf32>
    %39 = arith.addf %33, %38 : vector<128x128xf32>
    %c2 = arith.constant 2 : index
    %c0_42 = arith.constant 0 : index
    %c0_43 = arith.constant 0 : index
    %40 = vector.load %arg7[%c2, %c0_42, %c0_43] : memref<18x16x384xbf16, #tpu.memory_space<vmem>>, vector<8x16x384xbf16>
    %41 = vector.shape_cast %40 : vector<8x16x384xbf16> to vector<128x384xbf16>
    %c2_44 = arith.constant 2 : index
    %c0_45 = arith.constant 0 : index
    %c0_46 = arith.constant 0 : index
    %42 = vector.load %arg3[%c2_44, %c0_45, %c0_46] : memref<3x384x128xbf16, #tpu.memory_space<vmem>>, vector<1x384x128xbf16>
    %43 = vector.shape_cast %42 : vector<1x384x128xbf16> to vector<384x128xbf16>
    %cst_47 = arith.constant dense<0.000000e+00> : vector<128x128xf32>
    %44 = tpu.matmul %41, %43, %cst_47 {dimension_numbers = #tpu.dot_dimension_numbers<[1], [0], [0], [1], [0, 0, 1, 1], [], []>} : vector<128x384xbf16>, vector<384x128xbf16>, vector<128x128xf32> -> vector<128x128xf32>
    %45 = arith.addf %39, %44 : vector<128x128xf32>
    %cst_48 = arith.constant dense<0.000000e+00> : vector<128xf32>
    %46 = vector.multi_reduction <add>, %45, %cst_48 [0] : vector<128x128xf32> to vector<128xf32>
    %47 = vector.shape_cast %46 : vector<128xf32> to vector<1x128xf32>
    %48 = arith.addf %25, %47 : vector<1x128xf32>
    %49 = arith.mulf %45, %45 : vector<128x128xf32>
    %cst_49 = arith.constant dense<0.000000e+00> : vector<128xf32>
    %50 = vector.multi_reduction <add>, %49, %cst_49 [0] : vector<128x128xf32> to vector<128xf32>
    %51 = vector.shape_cast %50 : vector<128xf32> to vector<1x128xf32>
    %52 = arith.addf %26, %51 : vector<1x128xf32>
    %53 = vector.shape_cast %45 : vector<128x128xf32> to vector<8x16x128xf32>
    %54 = arith.truncf %53 : vector<8x16x128xf32> to vector<8x16x128xbf16>
    %c0_50 = arith.constant 0 : index
    %c0_51 = arith.constant 0 : index
    %c0_52 = arith.constant 0 : index
    %c0_53 = arith.constant 0 : index
    %55 = vector.load %arg4[%c0_50, %c0_51, %c0_52, %c0_53] : memref<1x16x16x128xbf16, #tpu.memory_space<vmem>>, vector<1x8x16x128xbf16>
    %56 = vector.shape_cast %55 : vector<1x8x16x128xbf16> to vector<8x16x128xbf16>
    %57 = vector.shape_cast %54 : vector<8x16x128xbf16> to vector<1x8x16x128xbf16>
    tpu.vector_store %arg4[%c0_50, %c0_51, %c0_52, %c0_53], %57 {strides = array<i32>} : memref<1x16x16x128xbf16, #tpu.memory_space<vmem>>, vector<1x8x16x128xbf16>,
    %cst_54 = arith.constant 0.000000e+00 : f32
    %58 = vector.broadcast %cst_54 : f32 to vector<128x128xf32>
    %c8 = arith.constant 8 : index
    %c0_55 = arith.constant 0 : index
    %c0_56 = arith.constant 0 : index
    %59 = vector.load %arg7[%c8, %c0_55, %c0_56] : memref<18x16x384xbf16, #tpu.memory_space<vmem>>, vector<8x16x384xbf16>
    %60 = vector.shape_cast %59 : vector<8x16x384xbf16> to vector<128x384xbf16>
    %c0_57 = arith.constant 0 : index
    %c0_58 = arith.constant 0 : index
    %c0_59 = arith.constant 0 : index
    %61 = vector.load %arg3[%c0_57, %c0_58, %c0_59] : memref<3x384x128xbf16, #tpu.memory_space<vmem>>, vector<1x384x128xbf16>
    %62 = vector.shape_cast %61 : vector<1x384x128xbf16> to vector<384x128xbf16>
    %cst_60 = arith.constant dense<0.000000e+00> : vector<128x128xf32>
    %63 = tpu.matmul %60, %62, %cst_60 {dimension_numbers = #tpu.dot_dimension_numbers<[1], [0], [0], [1], [0, 0, 1, 1], [], []>} : vector<128x384xbf16>, vector<384x128xbf16>, vector<128x128xf32> -> vector<128x128xf32>
    %64 = arith.addf %58, %63 : vector<128x128xf32>
    %c9 = arith.constant 9 : index
    %c0_61 = arith.constant 0 : index
    %c0_62 = arith.constant 0 : index
    %65 = vector.load %arg7[%c9, %c0_61, %c0_62] : memref<18x16x384xbf16, #tpu.memory_space<vmem>>, vector<8x16x384xbf16>
    %66 = vector.shape_cast %65 : vector<8x16x384xbf16> to vector<128x384xbf16>
    %c1_63 = arith.constant 1 : index
    %c0_64 = arith.constant 0 : index
    %c0_65 = arith.constant 0 : index
    %67 = vector.load %arg3[%c1_63, %c0_64, %c0_65] : memref<3x384x128xbf16, #tpu.memory_space<vmem>>, vector<1x384x128xbf16>
    %68 = vector.shape_cast %67 : vector<1x384x128xbf16> to vector<384x128xbf16>
    %cst_66 = arith.constant dense<0.000000e+00> : vector<128x128xf32>
    %69 = tpu.matmul %66, %68, %cst_66 {dimension_numbers = #tpu.dot_dimension_numbers<[1], [0], [0], [1], [0, 0, 1, 1], [], []>} : vector<128x384xbf16>, vector<384x128xbf16>, vector<128x128xf32> -> vector<128x128xf32>
    %70 = arith.addf %64, %69 : vector<128x128xf32>
    %c10 = arith.constant 10 : index
    %c0_67 = arith.constant 0 : index
    %c0_68 = arith.constant 0 : index
    %71 = vector.load %arg7[%c10, %c0_67, %c0_68] : memref<18x16x384xbf16, #tpu.memory_space<vmem>>, vector<8x16x384xbf16>
    %72 = vector.shape_cast %71 : vector<8x16x384xbf16> to vector<128x384xbf16>
    %c2_69 = arith.constant 2 : index
    %c0_70 = arith.constant 0 : index
    %c0_71 = arith.constant 0 : index
    %73 = vector.load %arg3[%c2_69, %c0_70, %c0_71] : memref<3x384x128xbf16, #tpu.memory_space<vmem>>, vector<1x384x128xbf16>
    %74 = vector.shape_cast %73 : vector<1x384x128xbf16> to vector<384x128xbf16>
    %cst_72 = arith.constant dense<0.000000e+00> : vector<128x128xf32>
    %75 = tpu.matmul %72, %74, %cst_72 {dimension_numbers = #tpu.dot_dimension_numbers<[1], [0], [0], [1], [0, 0, 1, 1], [], []>} : vector<128x384xbf16>, vector<384x128xbf16>, vector<128x128xf32> -> vector<128x128xf32>
    %76 = arith.addf %70, %75 : vector<128x128xf32>
    %cst_73 = arith.constant dense<0.000000e+00> : vector<128xf32>
    %77 = vector.multi_reduction <add>, %76, %cst_73 [0] : vector<128x128xf32> to vector<128xf32>
    %78 = vector.shape_cast %77 : vector<128xf32> to vector<1x128xf32>
    %79 = arith.addf %48, %78 : vector<1x128xf32>
    %80 = arith.mulf %76, %76 : vector<128x128xf32>
    %cst_74 = arith.constant dense<0.000000e+00> : vector<128xf32>
    %81 = vector.multi_reduction <add>, %80, %cst_74 [0] : vector<128x128xf32> to vector<128xf32>
    %82 = vector.shape_cast %81 : vector<128xf32> to vector<1x128xf32>
    %83 = arith.addf %52, %82 : vector<1x128xf32>
    %84 = vector.shape_cast %76 : vector<128x128xf32> to vector<8x16x128xf32>
    %85 = arith.truncf %84 : vector<8x16x128xf32> to vector<8x16x128xbf16>
    %c0_75 = arith.constant 0 : index
    %c8_76 = arith.constant 8 : index
    %c0_77 = arith.constant 0 : index
    %c0_78 = arith.constant 0 : index
    %86 = vector.load %arg4[%c0_75, %c8_76, %c0_77, %c0_78] : memref<1x16x16x128xbf16, #tpu.memory_space<vmem>>, vector<1x8x16x128xbf16>
    %87 = vector.shape_cast %86 : vector<1x8x16x128xbf16> to vector<8x16x128xbf16>
    %88 = vector.shape_cast %85 : vector<8x16x128xbf16> to vector<1x8x16x128xbf16>
    tpu.vector_store %arg4[%c0_75, %c8_76, %c0_77, %c0_78], %88 {strides = array<i32>} : memref<1x16x16x128xbf16, #tpu.memory_space<vmem>>, vector<1x8x16x128xbf16>,
    %c0_79 = arith.constant 0 : index
    %c0_80 = arith.constant 0 : index
    %c0_81 = arith.constant 0 : index
    %89 = vector.load %arg5[%c0_79, %c0_80, %c0_81] : memref<1x1x128xf32, #tpu.memory_space<vmem>>, vector<1x1x128xf32>
    %90 = vector.shape_cast %89 : vector<1x1x128xf32> to vector<1x128xf32>
    %91 = vector.shape_cast %79 : vector<1x128xf32> to vector<1x1x128xf32>
    tpu.vector_store %arg5[%c0_79, %c0_80, %c0_81], %91 {strides = array<i32>} : memref<1x1x128xf32, #tpu.memory_space<vmem>>, vector<1x1x128xf32>,
    %c0_82 = arith.constant 0 : index
    %c0_83 = arith.constant 0 : index
    %c0_84 = arith.constant 0 : index
    %92 = vector.load %arg6[%c0_82, %c0_83, %c0_84] : memref<1x1x128xf32, #tpu.memory_space<vmem>>, vector<1x1x128xf32>
    %93 = vector.shape_cast %92 : vector<1x1x128xf32> to vector<1x128xf32>
    %94 = vector.shape_cast %83 : vector<1x128xf32> to vector<1x1x128xf32>
    tpu.vector_store %arg6[%c0_82, %c0_83, %c0_84], %94 {strides = array<i32>} : memref<1x1x128xf32, #tpu.memory_space<vmem>>, vector<1x1x128xf32>,
    return
  }
  func.func @transform_0(%arg0: i32) -> (i32, i32, i32, i32) {
    %c0_i32 = arith.constant 0 : i32
    %c0_i32_0 = arith.constant 0 : i32
    %c0_i32_1 = arith.constant 0 : i32
    %c0_i32_2 = arith.constant 0 : i32
    return %arg0, %c0_i32, %c0_i32_0, %c0_i32_1 : i32, i32, i32, i32
  }
  func.func @transform_1(%arg0: i32) -> (i32, i32) {
    %c0_i32 = arith.constant 0 : i32
    %c0_i32_0 = arith.constant 0 : i32
    %c0_i32_1 = arith.constant 0 : i32
    return %c0_i32, %c0_i32_0 : i32, i32
  }
  func.func @transform_2(%arg0: i32) -> (i32, i32, i32) {
    %c0_i32 = arith.constant 0 : i32
    %c0_i32_0 = arith.constant 0 : i32
    %c0_i32_1 = arith.constant 0 : i32
    %c0_i32_2 = arith.constant 0 : i32
    return %c0_i32, %c0_i32_0, %c0_i32_1 : i32, i32, i32
  }
  func.func @transform_3(%arg0: i32) -> (i32, i32, i32, i32) {
    %c0_i32 = arith.constant 0 : i32
    %c0_i32_0 = arith.constant 0 : i32
    %c0_i32_1 = arith.constant 0 : i32
    %c0_i32_2 = arith.constant 0 : i32
    return %arg0, %c0_i32, %c0_i32_0, %c0_i32_1 : i32, i32, i32, i32
  }
  func.func @transform_4(%arg0: i32) -> (i32, i32, i32) {
    %c0_i32 = arith.constant 0 : i32
    %c0_i32_0 = arith.constant 0 : i32
    %c0_i32_1 = arith.constant 0 : i32
    return %arg0, %c0_i32, %c0_i32_0 : i32, i32, i32
  }
  func.func @transform_5(%arg0: i32) -> (i32, i32, i32) {
    %c0_i32 = arith.constant 0 : i32
    %c0_i32_0 = arith.constant 0 : i32
    %c0_i32_1 = arith.constant 0 : i32
    return %arg0, %c0_i32, %c0_i32_0 : i32, i32, i32
  }
}

</mosaic_0001>

<bundles_post_ra>
// kernel: basic_block_forward.5
= control target key start
LH: loop header
LB: loop body
LE: loop exit
PB: predicated region body
PF: predicated region fallthrough
CT: control target
= control target key end

     0   :  { %s1264_s12 = smov 0   ;;  %s1861_s0 = inlined_call_operand.vmem [shape: bf16[2,16,16,128], index: 0, kind: input, shape index: {}]   ;;  %s1862_s1 = inlined_call_operand.vmem [shape: bf16[2,16,16,128], index: 1, kind: input, shape index: {}]   ;;  %s1863_s2 = inlined_call_operand.vmem [shape: f32[4,128], index: 2, kind: input, shape index: {}]   ;;  %s1864_s3 = inlined_call_operand.vmem [shape: f32[2,16,16,8], index: 3, kind: output, shape index: {}]  }
   0x1 LB: > { %s922_s13 = sadd.s32 4294967295, %s1242_s12   ;;  %p926_p0 = scmp.ge.s32.totalorder %s1242_s12, 1  ;;  %s1242_s12 = sphi %s1264_s12, %s13_s12  }
   0x2   : > { %p147_p1 = scmp.lt.s32.totalorder %s1242_s12, 3 }
   0x4   : > { %p148_p2 = pnand %p926_p0, %p147_p1 }
   0x5   : > { %p176_p3 = scmp.lt.s32.totalorder (!%p148_p2), %s922_s13, 1 }
   0x6   : > { %151 = sbr.rel (%p148_p2) target bundleno = 401 (0x191), region = 32 }
   0xb   : > { %v499_v0 = vlaneseq  ;;  %s1866_s13 = smov (!%p176_p3, %s922_s13), 1  ;;  %v1290_v2 = vld [vmem:[%s1863_s2] ss:$0 sm:$0xff]  ;;  %v1295_v3 = vld [vmem:[%s1863_s2 + $0x2] ss:$0 sm:$0xff]  ;;  %vm822_vm1 = vcmask 64512  }
   0xc   : > { %s939_s14 = sshll.u32 %s1866_s13, 7  ;;  %v1305_v12 = vld [vmem:[%s1863_s2 + $0x1] ss:$0 sm:$0xff]  ;;  %v1323_v31 = vld [vmem:[%s1863_s2 + $0x3] ss:$0 sm:$0xff]  ;;  %s941_s29 = sshll.u32 %s1866_s13, 8 }
   0xd   : > { %v1274_v1 = vand.u32 127, %v499_v0  ;;  %s1280_s17 = scalar_lea.vmem %s1861_s0, %s939_s14  ;;  %s1285_s20 = scalar_lea.vmem %s1862_s1, %s939_s14 }
   0xe   : > { %v943_v4 = vld [vmem:[%s1280_s17] sm:$0xff]   ;;  %v1070_v6 = vld [vmem:[%s1280_s17 + $0x8] sm:$0xff]   ;;  %v1071_v17 = vld [vmem:[%s1280_s17 + $0x10] sm:$0xff]   ;;  %s1760_s5 = scalar_lea.vmem %s1864_s3, %s941_s29 }
   0xf   : > { %v1007_v5 = vld [vmem:[%s1285_s20] sm:$0xff]   ;;  %vm501_vm0 = vcmp.lt.s32.totalorder %v1274_v1, 8  ;;  %v944_v7 = vunpack.c.l.bf16 %v943_v4  ;;  %v948_v9 = vunpack.c.l.bf16 %v1070_v6  ;;  %v1085_v10 = vld [vmem:[%s1285_s20 + $0x8] sm:$0xff]   ;;  %v945_v11 = vunpack.c.h.bf16 %v943_v4  ;;  %v1086_v22 = vld [vmem:[%s1285_s20 + $0x10] sm:$0xff]  }
  0x10   : > { %v1008_v8 = vunpack.c.l.bf16 %v1007_v5  ;;  %v1012_v13 = vunpack.c.l.bf16 %v1085_v10  ;;  %v1009_v14 = vunpack.c.h.bf16 %v1007_v5  ;;  %v949_v15 = vunpack.c.h.bf16 %v1070_v6  ;;  %v1072_v40 = vld [vmem:[%s1280_s17 + $0x18] sm:$0xff]   ;;  %v1073_v54 = vld [vmem:[%s1280_s17 + $0x20] sm:$0xff]  }
  0x11   : > { %v1013_v16 = vunpack.c.h.bf16 %v1085_v10  ;;  %v324_v18 = vmul.f32 %v944_v7, %v1290_v2  ;;  %v326_v20 = vmul.f32 %v948_v9, %v1290_v2  ;;  %v325_v21 = vmul.f32 %v945_v11, %v1290_v2  ;;  %v1087_v41 = vld [vmem:[%s1285_s20 + $0x18] sm:$0xff]   ;;  %v1088_v55 = vld [vmem:[%s1285_s20 + $0x20] sm:$0xff]   ;;  %v1074_v11 = vld [vmem:[%s1280_s17 + $0x28] sm:$0xff]  }
  0x12   : > { %v398_v19 = vmul.f32 %v1008_v8, %v1295_v3  ;;  %v400_v23 = vmul.f32 %v1012_v13, %v1295_v3  ;;  %v399_v24 = vmul.f32 %v1009_v14, %v1295_v3  ;;  %v327_v25 = vmul.f32 %v949_v15, %v1290_v2 }
  0x13   : > { %v401_v26 = vmul.f32 %v1013_v16, %v1295_v3  ;;  %v361_v27 = vadd.f32 %v1305_v12, %v324_v18  ;;  %v363_v28 = vadd.f32 %v1305_v12, %v326_v20  ;;  %v362_v29 = vadd.f32 %v1305_v12, %v325_v21 }
  0x14   : > { %v952_v30 = vunpack.c.l.bf16 %v1071_v17  ;;  %v364_v32 = vadd.f32 %v1305_v12, %v327_v25  ;;  %v1016_v33 = vunpack.c.l.bf16 %v1086_v22  ;;  %v953_v34 = vunpack.c.h.bf16 %v1071_v17  ;;  %v1089_v17 = vld [vmem:[%s1285_s20 + $0x28] sm:$0xff]  }
  0x15   : > { %v1017_v35 = vunpack.c.h.bf16 %v1086_v22  ;;  %v430_v36 = vadd.f32 %v398_v19, %v361_v27  ;;  %v432_v37 = vadd.f32 %v400_v23, %v363_v28  ;;  %v431_v38 = vadd.f32 %v399_v24, %v362_v29 }
  0x16   : > { %v328_v39 = vmul.f32 %v952_v30, %v1290_v2  ;;  %v433_v42 = vadd.f32 %v401_v26, %v364_v32  ;;  %v402_v43 = vmul.f32 %v1016_v33, %v1295_v3  ;;  %v329_v44 = vmul.f32 %v953_v34, %v1290_v2 }
  0x17   : > { %v403_v45 = vmul.f32 %v1017_v35, %v1295_v3  ;;  %v467_v46 = vadd.f32 %v1323_v31, %v430_v36  ;;  %v469_v47 = vadd.f32 %v1323_v31, %v432_v37  ;;  %v468_v48 = vadd.f32 %v1323_v31, %v431_v38  ;;  %v1075_v35 = vld [vmem:[%s1280_s17 + $0x30] sm:$0xff]  }
  0x18   : > { %v365_v49 = vadd.f32 %v1305_v12, %v328_v39  ;;  %v470_v50 = vadd.f32 %v1323_v31, %v433_v42  ;;  %v366_v51 = vadd.f32 %v1305_v12, %v329_v44  ;;  %v956_v52 = vunpack.c.l.bf16 %v1072_v40  ;;  %v1090_v36 = vld [vmem:[%s1285_s20 + $0x30] sm:$0xff]  }
  0x19   : > { %v1020_v53 = vunpack.c.l.bf16 %v1087_v41  ;;  %v1342_v56 = vsel %vm501_vm0, %v467_v46, -1e+30  ;;  %v1346_v57 = vsel %vm501_vm0, %v469_v47, -1e+30  ;;  %v1350_v58 = vsel %vm501_vm0, %v468_v48, -1e+30 }
  0x1a   : > { %v434_v59 = vadd.f32 %v402_v43, %v365_v49  ;;  %534 = vmax.xlane.f32.xlu0 %v1342_v56  ;;  %538 = vmax.xlane.f32.xlu1 %v1346_v57  ;;  %v1356_v60 = vsel %vm501_vm0, %v470_v50, -1e+30  ;;  %v435_v61 = vadd.f32 %v403_v45, %v366_v51  ;;  %v330_v62 = vmul.f32 %v956_v52, %v1290_v2  ;;  %v1076_v49 = vld [vmem:[%s1280_s17 + $0x38] sm:$0xff]  }
  0x1b   : > { %v404_v63 = vmul.f32 %v1020_v53, %v1295_v3  ;;  %v957_v4 = vunpack.c.h.bf16 %v1072_v40  ;;  %v1021_v5 = vunpack.c.h.bf16 %v1087_v41  ;;  %v960_v6 = vunpack.c.l.bf16 %v1073_v54 }
  0x1c   : > { %v471_v0 = vadd.f32 %v1323_v31, %v434_v59  ;;  %v472_v7 = vadd.f32 %v1323_v31, %v435_v61  ;;  %v367_v8 = vadd.f32 %v1305_v12, %v330_v62  ;;  %v1024_v9 = vunpack.c.l.bf16 %v1088_v55 }
  0x1d   : > { %v961_v10 = vunpack.c.h.bf16 %v1073_v54  ;;  %v331_v14 = vmul.f32 %v957_v4, %v1290_v2  ;;  %v405_v15 = vmul.f32 %v1021_v5, %v1295_v3  ;;  %v332_v16 = vmul.f32 %v960_v6, %v1290_v2  ;;  %v1091_v54 = vld [vmem:[%s1285_s20 + $0x38] sm:$0xff]  }
  0x1e   : > { %v1366_v13 = vsel %vm501_vm0, %v471_v0, -1e+30  ;;  %536 = vmax.xlane.f32.xlu0 %v1350_v58  ;;  %540 = vmax.xlane.f32.xlu1 %v1356_v60  ;;  %v1376_v18 = vsel %vm501_vm0, %v472_v7, -1e+30  ;;  %v436_v19 = vadd.f32 %v404_v63, %v367_v8  ;;  %v406_v20 = vmul.f32 %v1024_v9, %v1295_v3 }
  0x1f   : > { %v1025_v21 = vunpack.c.h.bf16 %v1088_v55  ;;  %v368_v22 = vadd.f32 %v1305_v12, %v331_v14  ;;  %v369_v23 = vadd.f32 %v1305_v12, %v332_v16  ;;  %v333_v24 = vmul.f32 %v961_v10, %v1290_v2  ;;  %v1077_v10 = vld [vmem:[%s1280_s17 + $0x40] sm:$0xff]  }
  0x20   : > { %v964_v25 = vunpack.c.l.bf16 %v1074_v11  ;;  %v473_v26 = vadd.f32 %v1323_v31, %v436_v19  ;;  %v1028_v28 = vunpack.c.l.bf16 %v1089_v17  ;;  %v965_v29 = vunpack.c.h.bf16 %v1074_v11 }
  0x21   : > { %v407_v27 = vmul.f32 %v1025_v21, %v1295_v3  ;;  %v437_v30 = vadd.f32 %v405_v15, %v368_v22  ;;  %v438_v32 = vadd.f32 %v406_v20, %v369_v23  ;;  %v370_v33 = vadd.f32 %v1305_v12, %v333_v24 }
  0x22   : > { %v334_v34 = vmul.f32 %v964_v25, %v1290_v2  ;;  %542 = vmax.xlane.f32.xlu0 %v1366_v13  ;;  %544 = vmax.xlane.f32.xlu1 %v1376_v18  ;;  %v1392_v37 = vsel %vm501_vm0, %v473_v26, -1e+30  ;;  %v408_v38 = vmul.f32 %v1028_v28, %v1295_v3  ;;  %v1029_v39 = vunpack.c.h.bf16 %v1089_v17  ;;  %v1092_v17 = vld [vmem:[%s1285_s20 + $0x40] sm:$0xff]  }
  0x23   : > { %v335_v40 = vmul.f32 %v965_v29, %v1290_v2  ;;  %v474_v41 = vadd.f32 %v1323_v31, %v437_v30  ;;  %v475_v42 = vadd.f32 %v1323_v31, %v438_v32  ;;  %v439_v43 = vadd.f32 %v407_v27, %v370_v33 }
  0x24   : > { %v371_v44 = vadd.f32 %v1305_v12, %v334_v34  ;;  %v409_v46 = vmul.f32 %v1029_v39, %v1295_v3  ;;  %v968_v47 = vunpack.c.l.bf16 %v1075_v35  ;;  %v1032_v48 = vunpack.c.l.bf16 %v1090_v36 }
  0x25   : > { %v372_v45 = vadd.f32 %v1305_v12, %v335_v40  ;;  %v1404_v50 = vsel %vm501_vm0, %v474_v41, -1e+30  ;;  %v1408_v51 = vsel %vm501_vm0, %v475_v42, -1e+30  ;;  %v476_v52 = vadd.f32 %v1323_v31, %v439_v43 }
  0x26   : > { %v440_v53 = vadd.f32 %v408_v38, %v371_v44  ;;  %546 = vmax.xlane.f32.xlu0 %v1392_v37  ;;  %548 = vmax.xlane.f32.xlu1 %v1404_v50  ;;  %v336_v59 = vmul.f32 %v968_v47, %v1290_v2  ;;  %v410_v61 = vmul.f32 %v1032_v48, %v1295_v3  ;;  %v969_v62 = vunpack.c.h.bf16 %v1075_v35  ;;  %v1093_v38 = vld [vmem:[%s1285_s20 + $0x48] sm:$0xff]  }
  0x27   : > { %v441_v55 = vadd.f32 %v409_v46, %v372_v45  ;;  %v1418_v63 = vsel %vm501_vm0, %v476_v52, -1e+30  ;;  %v1033_v4 = vunpack.c.h.bf16 %v1090_v36  ;;  %v972_v5 = vunpack.c.l.bf16 %v1076_v49  ;;  %v1078_v36 = vld [vmem:[%s1280_s17 + $0x48] sm:$0xff]  }
  0x28   : > { %v477_v0 = vadd.f32 %v1323_v31, %v440_v53  ;;  %v373_v7 = vadd.f32 %v1305_v12, %v336_v59  ;;  %v337_v8 = vmul.f32 %v969_v62, %v1290_v2  ;;  %v1036_v9 = vunpack.c.l.bf16 %v1091_v54  ;;  %v1079_v53 = vld [vmem:[%s1280_s17 + $0x50] sm:$0xff]  }
  0x29   : > { %v478_v6 = vadd.f32 %v1323_v31, %v441_v55  ;;  %v411_v14 = vmul.f32 %v1033_v4, %v1295_v3  ;;  %v338_v15 = vmul.f32 %v972_v5, %v1290_v2  ;;  %v973_v16 = vunpack.c.h.bf16 %v1076_v49  ;;  %v1094_v62 = vld [vmem:[%s1285_s20 + $0x50] sm:$0xff]  }
  0x2a   : > { %v1427_v11 = vsel %vm501_vm0, %v477_v0, -1e+30  ;;  %550 = vmax.xlane.f32.xlu0 %v1408_v51  ;;  %552 = vmax.xlane.f32.xlu1 %v1418_v63  ;;  %v442_v20 = vadd.f32 %v410_v61, %v373_v7  ;;  %v374_v21 = vadd.f32 %v1305_v12, %v337_v8  ;;  %v412_v22 = vmul.f32 %v1036_v9, %v1295_v3 }
  0x2b   : > { %v1436_v19 = vsel %vm501_vm0, %v478_v6, -1e+30  ;;  %v375_v23 = vadd.f32 %v1305_v12, %v338_v15  ;;  %v1037_v24 = vunpack.c.h.bf16 %v1091_v54  ;;  %v339_v25 = vmul.f32 %v973_v16, %v1290_v2 }
  0x2c   : > { %v976_v26 = vunpack.c.l.bf16 %v1077_v10  ;;  %v479_v27 = vadd.f32 %v1323_v31, %v442_v20  ;;  %v443_v28 = vadd.f32 %v411_v14, %v374_v21  ;;  %v1040_v29 = vunpack.c.l.bf16 %v1092_v17  ;;  %v1080_v20 = vld [vmem:[%s1280_s17 + $0x58] sm:$0xff]  }
  0x2d   : > { %v977_v30 = vunpack.c.h.bf16 %v1077_v10  ;;  %v444_v32 = vadd.f32 %v412_v22, %v375_v23  ;;  %v376_v33 = vadd.f32 %v1305_v12, %v339_v25  ;;  %v413_v34 = vmul.f32 %v1037_v24, %v1295_v3  ;;  %v1095_v25 = vld [vmem:[%s1285_s20 + $0x58] sm:$0xff]  }
  0x2e   : > { %v340_v35 = vmul.f32 %v976_v26, %v1290_v2  ;;  %554 = vmax.xlane.f32.xlu0 %v1427_v11  ;;  %556 = vmax.xlane.f32.xlu1 %v1436_v19  ;;  %v1452_v39 = vsel %vm501_vm0, %v479_v27, -1e+30  ;;  %v480_v40 = vadd.f32 %v1323_v31, %v443_v28  ;;  %v414_v41 = vmul.f32 %v1040_v29, %v1295_v3 }
  0x2f   : > { %v1041_v42 = vunpack.c.h.bf16 %v1092_v17  ;;  %v481_v43 = vadd.f32 %v1323_v31, %v444_v32  ;;  %v445_v44 = vadd.f32 %v413_v34, %v376_v33  ;;  %v341_v46 = vmul.f32 %v977_v30, %v1290_v2 }
  0x30   : > { %v377_v45 = vadd.f32 %v1305_v12, %v340_v35  ;;  %v1461_v47 = vsel %vm501_vm0, %v480_v40, -1e+30  ;;  %v980_v49 = vunpack.c.l.bf16 %v1078_v36  ;;  %v1044_v52 = vunpack.c.l.bf16 %v1093_v38 }
  0x31   : > { %v415_v48 = vmul.f32 %v1041_v42, %v1295_v3  ;;  %v1467_v54 = vsel %vm501_vm0, %v481_v43, -1e+30  ;;  %v482_v55 = vadd.f32 %v1323_v31, %v445_v44  ;;  %v378_v61 = vadd.f32 %v1305_v12, %v341_v46  ;;  %v1096_v46 = vld [vmem:[%s1285_s20 + $0x60] sm:$0xff]  }
  0x32   : > { %v446_v59 = vadd.f32 %v414_v41, %v377_v45  ;;  %558 = vmax.xlane.f32.xlu0 %v1452_v39  ;;  %560 = vmax.xlane.f32.xlu1 %v1461_v47  ;;  %v342_v0 = vmul.f32 %v980_v49, %v1290_v2  ;;  %v416_v4 = vmul.f32 %v1044_v52, %v1295_v3  ;;  %v981_v5 = vunpack.c.h.bf16 %v1078_v36  ;;  %v1081_v45 = vld [vmem:[%s1280_s17 + $0x60] sm:$0xff]  }
  0x33   : > { %v1045_v6 = vunpack.c.h.bf16 %v1093_v38  ;;  %v1478_v7 = vsel %vm501_vm0, %v482_v55, -1e+30  ;;  %v447_v9 = vadd.f32 %v415_v48, %v378_v61  ;;  %v984_v10 = vunpack.c.l.bf16 %v1079_v53 }
  0x34   : > { %v483_v8 = vadd.f32 %v1323_v31, %v446_v59  ;;  %v379_v14 = vadd.f32 %v1305_v12, %v342_v0  ;;  %v343_v15 = vmul.f32 %v981_v5, %v1290_v2  ;;  %v1048_v17 = vunpack.c.l.bf16 %v1094_v62 }
  0x35   : > { %v417_v16 = vmul.f32 %v1045_v6, %v1295_v3  ;;  %v484_v22 = vadd.f32 %v1323_v31, %v447_v9  ;;  %v344_v23 = vmul.f32 %v984_v10, %v1290_v2  ;;  %v985_v24 = vunpack.c.h.bf16 %v1079_v53 }
  0x36   : > { %v1487_v21 = vsel %vm501_vm0, %v483_v8, -1e+30  ;;  %562 = vmax.xlane.f32.xlu0 %v1467_v54  ;;  %564 = vmax.xlane.f32.xlu1 %v1478_v7  ;;  %v448_v26 = vadd.f32 %v416_v4, %v379_v14  ;;  %v380_v27 = vadd.f32 %v1305_v12, %v343_v15  ;;  %v418_v28 = vmul.f32 %v1048_v17, %v1295_v3  ;;  %v1082_v8 = vld [vmem:[%s1280_s17 + $0x68] sm:$0xff]  }
  0x37   : > { %v1049_v29 = vunpack.c.h.bf16 %v1094_v62  ;;  %v1498_v30 = vsel %vm501_vm0, %v484_v22, -1e+30  ;;  %v381_v32 = vadd.f32 %v1305_v12, %v344_v23  ;;  %v345_v33 = vmul.f32 %v985_v24, %v1290_v2 }
  0x38   : > { %v988_v34 = vunpack.c.l.bf16 %v1080_v20  ;;  %v485_v35 = vadd.f32 %v1323_v31, %v448_v26  ;;  %v449_v36 = vadd.f32 %v417_v16, %v380_v27  ;;  %v1052_v40 = vunpack.c.l.bf16 %v1095_v25  ;;  %v1097_v16 = vld [vmem:[%s1285_s20 + $0x68] sm:$0xff]  }
  0x39   : > { %v419_v38 = vmul.f32 %v1049_v29, %v1295_v3  ;;  %v450_v41 = vadd.f32 %v418_v28, %v381_v32  ;;  %v382_v42 = vadd.f32 %v1305_v12, %v345_v33  ;;  %v989_v44 = vunpack.c.h.bf16 %v1080_v20 }
  0x3a   : > { %v346_v43 = vmul.f32 %v988_v34, %v1290_v2  ;;  %566 = vmax.xlane.f32.xlu0 %v1487_v21  ;;  %568 = vmax.xlane.f32.xlu1 %v1498_v30  ;;  %v1512_v48 = vsel %vm501_vm0, %v485_v35, -1e+30  ;;  %v486_v49 = vadd.f32 %v1323_v31, %v449_v36  ;;  %v420_v52 = vmul.f32 %v1052_v40, %v1295_v3  ;;  %v1083_v34 = vld [vmem:[%s1280_s17 + $0x70] sm:$0xff]  }
  0x3b   : > { %v1053_v53 = vunpack.c.h.bf16 %v1095_v25  ;;  %v487_v55 = vadd.f32 %v1323_v31, %v450_v41  ;;  %v451_v59 = vadd.f32 %v419_v38, %v382_v42  ;;  %v347_v62 = vmul.f32 %v989_v44, %v1290_v2  ;;  %v1098_v41 = vld [vmem:[%s1285_s20 + $0x70] sm:$0xff]  }
  0x3c   : > { %v383_v61 = vadd.f32 %v1305_v12, %v346_v43  ;;  %v1521_v0 = vsel %vm501_vm0, %v486_v49, -1e+30  ;;  %v992_v5 = vunpack.c.l.bf16 %v1081_v45  ;;  %v1056_v6 = vunpack.c.l.bf16 %v1096_v46 }
  0x3d   : > { %v421_v4 = vmul.f32 %v1053_v53, %v1295_v3  ;;  %v1527_v9 = vsel %vm501_vm0, %v487_v55, -1e+30  ;;  %v488_v10 = vadd.f32 %v1323_v31, %v451_v59  ;;  %v384_v15 = vadd.f32 %v1305_v12, %v347_v62 }
  0x3e   : > { %v452_v14 = vadd.f32 %v420_v52, %v383_v61  ;;  %570 = vmax.xlane.f32.xlu0 %v1512_v48  ;;  %572 = vmax.xlane.f32.xlu1 %v1521_v0  ;;  %v348_v17 = vmul.f32 %v992_v5, %v1290_v2  ;;  %v422_v20 = vmul.f32 %v1056_v6, %v1295_v3  ;;  %v993_v22 = vunpack.c.h.bf16 %v1081_v45 }
  0x3f   : > { %v1057_v23 = vunpack.c.h.bf16 %v1096_v46  ;;  %v1538_v24 = vsel %vm501_vm0, %v488_v10, -1e+30  ;;  %v453_v26 = vadd.f32 %v421_v4, %v384_v15  ;;  %v996_v27 = vunpack.c.l.bf16 %v1082_v8  ;;  %v1084_v10 = vld [vmem:[%s1280_s17 + $0x78] sm:$0xff]  }
  0x40   : > { %v489_v25 = vadd.f32 %v1323_v31, %v452_v14  ;;  %v385_v28 = vadd.f32 %v1305_v12, %v348_v17  ;;  %v349_v29 = vmul.f32 %v993_v22, %v1290_v2  ;;  %v1060_v33 = vunpack.c.l.bf16 %v1097_v16  ;;  %v1099_v14 = vld [vmem:[%s1285_s20 + $0x78] sm:$0xff]  }
  0x41   : > { %v423_v32 = vmul.f32 %v1057_v23, %v1295_v3  ;;  %v490_v36 = vadd.f32 %v1323_v31, %v453_v26  ;;  %v350_v38 = vmul.f32 %v996_v27, %v1290_v2  ;;  %v997_v40 = vunpack.c.h.bf16 %v1082_v8 }
  0x42   : > { %v1547_v35 = vsel %vm501_vm0, %v489_v25, -1e+30  ;;  %574 = vmax.xlane.f32.xlu0 %v1527_v9  ;;  %576 = vmax.xlane.f32.xlu1 %v1538_v24  ;;  %v454_v42 = vadd.f32 %v422_v20, %v385_v28  ;;  %v386_v43 = vadd.f32 %v1305_v12, %v349_v29  ;;  %v424_v44 = vmul.f32 %v1060_v33, %v1295_v3 }
  0x43   : > { %v1061_v45 = vunpack.c.h.bf16 %v1097_v16  ;;  %v1558_v46 = vsel %vm501_vm0, %v490_v36, -1e+30  ;;  %v387_v49 = vadd.f32 %v1305_v12, %v350_v38  ;;  %v351_v52 = vmul.f32 %v997_v40, %v1290_v2 }
  0x44   : > { %v1000_v53 = vunpack.c.l.bf16 %v1083_v34  ;;  %v491_v55 = vadd.f32 %v1323_v31, %v454_v42  ;;  %v455_v59 = vadd.f32 %v423_v32, %v386_v43  ;;  %v1064_v62 = vunpack.c.l.bf16 %v1098_v41 }
  0x45   : > { %v425_v61 = vmul.f32 %v1061_v45, %v1295_v3  ;;  %v456_v4 = vadd.f32 %v424_v44, %v387_v49  ;;  %v388_v5 = vadd.f32 %v1305_v12, %v351_v52  ;;  %v1001_v8 = vunpack.c.h.bf16 %v1083_v34 }
  0x46   : > { %v352_v6 = vmul.f32 %v1000_v53, %v1290_v2  ;;  %578 = vmax.xlane.f32.xlu0 %v1547_v35  ;;  %580 = vmax.xlane.f32.xlu1 %v1558_v46  ;;  %v1572_v15 = vsel %vm501_vm0, %v491_v55, -1e+30  ;;  %v492_v16 = vadd.f32 %v1323_v31, %v455_v59  ;;  %v426_v17 = vmul.f32 %v1064_v62, %v1295_v3 }
  0x47   : > { %v1065_v20 = vunpack.c.h.bf16 %v1098_v41  ;;  %v493_v22 = vadd.f32 %v1323_v31, %v456_v4  ;;  %v457_v23 = vadd.f32 %v425_v61, %v388_v5  ;;  %v353_v26 = vmul.f32 %v1001_v8, %v1290_v2 }
  0x48   : > { %v389_v25 = vadd.f32 %v1305_v12, %v352_v6  ;;  %v1581_v27 = vsel %vm501_vm0, %v492_v16, -1e+30  ;;  %v1004_v29 = vunpack.c.l.bf16 %v1084_v10  ;;  %v1068_v32 = vunpack.c.l.bf16 %v1099_v14 }
  0x49   : > { %v427_v28 = vmul.f32 %v1065_v20, %v1295_v3  ;;  %v494_v33 = vadd.f32 %v1323_v31, %v457_v23  ;;  %v390_v36 = vadd.f32 %v1305_v12, %v353_v26  ;;  %v1005_v41 = vunpack.c.h.bf16 %v1084_v10 }
  0x4a   : > { %v458_v34 = vadd.f32 %v426_v17, %v389_v25  ;;  %582 = vmax.xlane.f32.xlu0 %v1572_v15  ;;  %584 = vmax.xlane.f32.xlu1 %v1581_v27  ;;  %v354_v38 = vmul.f32 %v1004_v29, %v1290_v2  ;;  %v428_v40 = vmul.f32 %v1068_v32, %v1295_v3  ;;  %v1069_v42 = vunpack.c.h.bf16 %v1099_v14 }
  0x4b   : > { %v1592_v43 = vsel %vm501_vm0, %v493_v22, -1e+30  ;;  %v1596_v44 = vsel %vm501_vm0, %v494_v33, -1e+30  ;;  %v459_v49 = vadd.f32 %v427_v28, %v390_v36  ;;  %v355_v53 = vmul.f32 %v1005_v41, %v1290_v2 }
  0x4c   : > { %v495_v45 = vadd.f32 %v1323_v31, %v458_v34  ;;  %v391_v52 = vadd.f32 %v1305_v12, %v354_v38  ;;  %v429_v55 = vmul.f32 %v1069_v42, %v1295_v3 }
  0x4d   : > { %v496_v59 = vadd.f32 %v1323_v31, %v459_v49  ;;  %v392_v62 = vadd.f32 %v1305_v12, %v355_v53 }
  0x4e   : > { %586 = vmax.xlane.f32.xlu0 %v1592_v43  ;;  %588 = vmax.xlane.f32.xlu1 %v1596_v44  ;;  %v460_v61 = vadd.f32 %v428_v40, %v391_v52  ;;  %v1608_v4 = vsel %vm501_vm0, %v495_v45, -1e+30 }
  0x4f   : > { %v1612_v5 = vsel %vm501_vm0, %v496_v59, -1e+30  ;;  %v461_v3 = vadd.f32 %v429_v55, %v392_v62 }
  0x50   : > { %v497_v2 = vadd.f32 %v1323_v31, %v460_v61 }
  0x51   : > { %v498_v6 = vadd.f32 %v1323_v31, %v461_v3 }
  0x52   : > { %590 = vmax.xlane.f32.xlu0 %v1608_v4  ;;  %592 = vmax.xlane.f32.xlu1 %v1612_v5  ;;  %v1620_v12 = vsel %vm501_vm0, %v497_v2, -1e+30 }
  0x53   : > { %v1624_v8 = vsel %vm501_vm0, %v498_v6, -1e+30 }
  0x56   : > { %594 = vmax.xlane.f32.xlu0 %v1620_v12  ;;  %596 = vmax.xlane.f32.xlu1 %v1624_v8 }
  0xa3   : > { %v535_v10 = vpop.xlane.xlu0 %534  ;;  %v539_v14 = vpop.xlane.xlu1 %538 }
  0xa4   : > { %v598_v16 = vsub.f32 %v1342_v56, %v535_v10  ;;  %v600_v17 = vsub.f32 %v1346_v57, %v539_v14 }
  0xa6   : > { %v630_v20 = vmul.f32 1.442695, %v598_v16  ;;  %v634_v31 = vmul.f32 1.442695, %v600_v17 }
  0xa7   : > { %v537_v22 = vpop.xlane.xlu0 %536  ;;  %v541_v23 = vpop.xlane.xlu1 %540 }
  0xa8   : > { %1108 = vpow2.f32 %v630_v20  ;;  %v599_v25 = vsub.f32 %v1350_v58, %v537_v22  ;;  %v601_v1 = vsub.f32 %v1356_v60, %v541_v23 }
  0xa9   : > { %1110 = vpow2.f32 %v634_v31 }
  0xaa   : > { %v632_v26 = vmul.f32 1.442695, %v599_v25  ;;  %v636_v28 = vmul.f32 1.442695, %v601_v1 }
  0xab   : > { %v543_v29 = vpop.xlane.xlu0 %542  ;;  %v545_v32 = vpop.xlane.xlu1 %544 }
  0xac   : > { %1112 = vpow2.f32 %v632_v26  ;;  %v602_v33 = vsub.f32 %v1366_v13, %v543_v29  ;;  %v603_v56 = vsub.f32 %v1376_v18, %v545_v32 }
  0xad   : > { %1114 = vpow2.f32 %v636_v28 }
  0xae   : > { %v638_v57 = vmul.f32 1.442695, %v602_v33  ;;  %v640_v34 = vmul.f32 1.442695, %v603_v56 }
  0xaf   : > { %v547_v36 = vpop.xlane.xlu0 %546  ;;  %v549_v38 = vpop.xlane.xlu1 %548 }
  0xb0   : > { %1116 = vpow2.f32 %v638_v57  ;;  %v604_v58 = vsub.f32 %v1392_v37, %v547_v36  ;;  %v605_v60 = vsub.f32 %v1404_v50, %v549_v38 }
  0xb1   : > { %1118 = vpow2.f32 %v640_v34 }
  0xb2   : > { %v642_v40 = vmul.f32 1.442695, %v604_v58  ;;  %v644_v41 = vmul.f32 1.442695, %v605_v60 }
  0xb3   : > { %v551_v42 = vpop.xlane.xlu0 %550  ;;  %v553_v45 = vpop.xlane.xlu1 %552 }
  0xb4   : > { %1120 = vpow2.f32 %v642_v40  ;;  %v606_v13 = vsub.f32 %v1408_v51, %v551_v42  ;;  %v607_v18 = vsub.f32 %v1418_v63, %v553_v45 }
  0xb5   : > { %v1638_v49 = vpop.eup %1108  ;;  %1122 = vpow2.f32 %v644_v41 }
  0xb6   : > { %v646_v52 = vmul.f32 1.442695, %v606_v13  ;;  %694 = vadd.xlane.f32.xlu0 %v1638_v49  ;;  %v648_v53 = vmul.f32 1.442695, %v607_v18  ;;  %v1641_v37 = vpop.eup %1110 }
  0xb7   : > { %v555_v50 = vpop.xlane.xlu0 %554  ;;  %v557_v55 = vpop.xlane.xlu1 %556 }
  0xb8   : > { %1124 = vpow2.f32 %v646_v52  ;;  %v608_v59 = vsub.f32 %v1427_v11, %v555_v50  ;;  %v609_v61 = vsub.f32 %v1436_v19, %v557_v55 }
  0xb9   : > { %v1645_v62 = vpop.eup %1112  ;;  %1126 = vpow2.f32 %v648_v53 }
  0xba   : > { %v650_v51 = vmul.f32 1.442695, %v608_v59  ;;  %698 = vadd.xlane.f32.xlu0 %v1641_v37  ;;  %696 = vadd.xlane.f32.xlu1 %v1645_v62  ;;  %v652_v63 = vmul.f32 1.442695, %v609_v61  ;;  %v1649_v2 = vpop.eup %1114 }
  0xbb   : > { %v559_v3 = vpop.xlane.xlu0 %558  ;;  %v561_v6 = vpop.xlane.xlu1 %560 }
  0xbc   : > { %1128 = vpow2.f32 %v650_v51  ;;  %v610_v10 = vsub.f32 %v1452_v39, %v559_v3  ;;  %v611_v11 = vsub.f32 %v1461_v47, %v561_v6 }
  0xbd   : > { %v1653_v14 = vpop.eup %1116  ;;  %1130 = vpow2.f32 %v652_v63 }
  0xbe   : > { %v654_v19 = vmul.f32 1.442695, %v610_v10  ;;  %700 = vadd.xlane.f32.xlu1 %v1649_v2  ;;  %702 = vadd.xlane.f32.xlu0 %v1653_v14  ;;  %v656_v16 = vmul.f32 1.442695, %v611_v11  ;;  %v1657_v17 = vpop.eup %1118 }
  0xbf   : > { %v563_v20 = vpop.xlane.xlu0 %562  ;;  %v565_v31 = vpop.xlane.xlu1 %564 }
  0xc0   : > { %1132 = vpow2.f32 %v654_v19  ;;  %v612_v22 = vsub.f32 %v1467_v54, %v563_v20  ;;  %v613_v39 = vsub.f32 %v1478_v7, %v565_v31 }
  0xc1   : > { %v1661_v23 = vpop.eup %1120  ;;  %1134 = vpow2.f32 %v656_v16 }
  0xc2   : > { %v658_v47 = vmul.f32 1.442695, %v612_v22  ;;  %704 = vadd.xlane.f32.xlu1 %v1657_v17  ;;  %706 = vadd.xlane.f32.xlu0 %v1661_v23  ;;  %v660_v25 = vmul.f32 1.442695, %v613_v39  ;;  %v1665_v1 = vpop.eup %1122 }
  0xc3   : > { %v567_v26 = vpop.xlane.xlu0 %566  ;;  %v569_v28 = vpop.xlane.xlu1 %568 }
  0xc4   : > { %1136 = vpow2.f32 %v658_v47  ;;  %v614_v29 = vsub.f32 %v1487_v21, %v567_v26  ;;  %v615_v54 = vsub.f32 %v1498_v30, %v569_v28 }
  0xc5   : > { %v1669_v32 = vpop.eup %1124  ;;  %1138 = vpow2.f32 %v660_v25 }
  0xc6   : > { %v662_v7 = vmul.f32 1.442695, %v614_v29  ;;  %708 = vadd.xlane.f32.xlu1 %v1665_v1  ;;  %710 = vadd.xlane.f32.xlu0 %v1669_v32  ;;  %v664_v33 = vmul.f32 1.442695, %v615_v54  ;;  %v1673_v56 = vpop.eup %1126 }
  0xc7   : > { %v571_v57 = vpop.xlane.xlu0 %570  ;;  %v573_v34 = vpop.xlane.xlu1 %572 }
  0xc8   : > { %1140 = vpow2.f32 %v662_v7  ;;  %v616_v36 = vsub.f32 %v1512_v48, %v571_v57  ;;  %v617_v21 = vsub.f32 %v1521_v0, %v573_v34 }
  0xc9   : > { %v1677_v38 = vpop.eup %1128  ;;  %1142 = vpow2.f32 %v664_v33 }
  0xca   : > { %v666_v30 = vmul.f32 1.442695, %v616_v36  ;;  %712 = vadd.xlane.f32.xlu1 %v1673_v56  ;;  %714 = vadd.xlane.f32.xlu0 %v1677_v38  ;;  %v668_v58 = vmul.f32 1.442695, %v617_v21  ;;  %v1681_v60 = vpop.eup %1130 }
  0xcb   : > { %v575_v40 = vpop.xlane.xlu0 %574  ;;  %v577_v41 = vpop.xlane.xlu1 %576 }
  0xcc   : > { %1144 = vpow2.f32 %v666_v30  ;;  %v618_v42 = vsub.f32 %v1527_v9, %v575_v40  ;;  %v619_v48 = vsub.f32 %v1538_v24, %v577_v41 }
  0xcd   : > { %v1685_v45 = vpop.eup %1132  ;;  %1146 = vpow2.f32 %v668_v58 }
  0xce   : > { %v670_v0 = vmul.f32 1.442695, %v618_v42  ;;  %716 = vadd.xlane.f32.xlu1 %v1681_v60  ;;  %718 = vadd.xlane.f32.xlu0 %v1685_v45  ;;  %v672_v13 = vmul.f32 1.442695, %v619_v48  ;;  %v1689_v18 = vpop.eup %1134 }
  0xcf   : > { %v579_v52 = vpop.xlane.xlu0 %578  ;;  %v581_v53 = vpop.xlane.xlu1 %580 }
  0xd0   : > { %1148 = vpow2.f32 %v670_v0  ;;  %v620_v50 = vsub.f32 %v1547_v35, %v579_v52  ;;  %v621_v9 = vsub.f32 %v1558_v46, %v581_v53 }
  0xd1   : > { %v1693_v55 = vpop.eup %1136  ;;  %1150 = vpow2.f32 %v672_v13 }
  0xd2   : > { %v674_v24 = vmul.f32 1.442695, %v620_v50  ;;  %720 = vadd.xlane.f32.xlu1 %v1689_v18  ;;  %722 = vadd.xlane.f32.xlu0 %v1693_v55  ;;  %v676_v59 = vmul.f32 1.442695, %v621_v9  ;;  %v1697_v61 = vpop.eup %1138 }
  0xd3   : > { %v583_v51 = vpop.xlane.xlu0 %582  ;;  %v585_v63 = vpop.xlane.xlu1 %584 }
  0xd4   : > { %1152 = vpow2.f32 %v674_v24  ;;  %v622_v3 = vsub.f32 %v1572_v15, %v583_v51  ;;  %v623_v35 = vsub.f32 %v1581_v27, %v585_v63 }
  0xd5   : > { %v1701_v6 = vpop.eup %1140  ;;  %1154 = vpow2.f32 %v676_v59 }
  0xd6   : > { %v678_v46 = vmul.f32 1.442695, %v622_v3  ;;  %724 = vadd.xlane.f32.xlu1 %v1697_v61  ;;  %726 = vadd.xlane.f32.xlu0 %v1701_v6  ;;  %v680_v10 = vmul.f32 1.442695, %v623_v35  ;;  %v1705_v11 = vpop.eup %1142 }
  0xd7   : > { %v587_v19 = vpop.xlane.xlu0 %586  ;;  %v589_v16 = vpop.xlane.xlu1 %588 }
  0xd8   : > { %1156 = vpow2.f32 %v678_v46  ;;  %v624_v20 = vsub.f32 %v1592_v43, %v587_v19  ;;  %v625_v15 = vsub.f32 %v1596_v44, %v589_v16 }
  0xd9   : > { %v1709_v31 = vpop.eup %1144  ;;  %1158 = vpow2.f32 %v680_v10 }
  0xda   : > { %v682_v27 = vmul.f32 1.442695, %v624_v20  ;;  %728 = vadd.xlane.f32.xlu1 %v1705_v11  ;;  %730 = vadd.xlane.f32.xlu0 %v1709_v31  ;;  %v684_v22 = vmul.f32 1.442695, %v625_v15  ;;  %v1713_v39 = vpop.eup %1146 }
  0xdb   : > { %v591_v47 = vpop.xlane.xlu0 %590  ;;  %v593_v25 = vpop.xlane.xlu1 %592 }
  0xdc   : > { %1160 = vpow2.f32 %v682_v27  ;;  %v626_v26 = vsub.f32 %v1608_v4, %v591_v47  ;;  %v627_v43 = vsub.f32 %v1612_v5, %v593_v25 }
  0xdd   : > { %v1717_v28 = vpop.eup %1148  ;;  %1162 = vpow2.f32 %v684_v22 }
  0xde   : > { %v686_v44 = vmul.f32 1.442695, %v626_v26  ;;  %732 = vadd.xlane.f32.xlu1 %v1713_v39  ;;  %734 = vadd.xlane.f32.xlu0 %v1717_v28  ;;  %v688_v29 = vmul.f32 1.442695, %v627_v43  ;;  %v1721_v54 = vpop.eup %1150 }
  0xdf   : > { %v595_v7 = vpop.xlane.xlu0 %594  ;;  %v597_v33 = vpop.xlane.xlu1 %596 }
  0xe0   : > { %1164 = vpow2.f32 %v686_v44  ;;  %v628_v57 = vsub.f32 %v1620_v12, %v595_v7  ;;  %v629_v4 = vsub.f32 %v1624_v8, %v597_v33 }
  0xe1   : > { %v1725_v34 = vpop.eup %1152  ;;  %1166 = vpow2.f32 %v688_v29 }
  0xe2   : > { %v690_v5 = vmul.f32 1.442695, %v628_v57  ;;  %736 = vadd.xlane.f32.xlu1 %v1721_v54  ;;  %738 = vadd.xlane.f32.xlu0 %v1725_v34  ;;  %v692_v36 = vmul.f32 1.442695, %v629_v4  ;;  %v1729_v21 = vpop.eup %1154 }
  0xe4   : > { %1168 = vpow2.f32 %v690_v5 }
  0xe5   : > { %v1731_v30 = vpop.eup %1156  ;;  %1170 = vpow2.f32 %v692_v36 }
  0xe6   : > { %740 = vadd.xlane.f32.xlu1 %v1729_v21  ;;  %742 = vadd.xlane.f32.xlu0 %v1731_v30  ;;  %v1735_v12 = vpop.eup %1158 }
  0xe9   : > { %v1737_v8 = vpop.eup %1160 }
  0xea   : > { %744 = vadd.xlane.f32.xlu1 %v1735_v12  ;;  %746 = vadd.xlane.f32.xlu0 %v1737_v8  ;;  %v1741_v58 = vpop.eup %1162 }
  0xed   : > { %v1743_v40 = vpop.eup %1164 }
  0xee   : > { %748 = vadd.xlane.f32.xlu1 %v1741_v58  ;;  %750 = vadd.xlane.f32.xlu0 %v1743_v40  ;;  %v1747_v41 = vpop.eup %1166 }
  0xf1   : > { %v1749_v42 = vpop.eup %1168 }
  0xf2   : > { %752 = vadd.xlane.f32.xlu1 %v1747_v41  ;;  %754 = vadd.xlane.f32.xlu0 %v1749_v42  ;;  %v1753_v48 = vpop.eup %1170 }
  0xf6   : > { %756 = vadd.xlane.f32.xlu1 %v1753_v48 }
 0x13f   : > { %v695_v0 = vpop.xlane.xlu0 %694 }
 0x140   : > { %1172 = vrcp.f32 %v695_v0 }
 0x143   : > { %v697_v13 = vpop.xlane.xlu1 %696  ;;  %v699_v52 = vpop.xlane.xlu0 %698 }
 0x144   : > { %1174 = vrcp.f32 %v697_v13 }
 0x145   : > { %1176 = vrcp.f32 %v699_v52 }
 0x147   : > { %v701_v53 = vpop.xlane.xlu1 %700  ;;  %v703_v50 = vpop.xlane.xlu0 %702 }
 0x148   : > { %1178 = vrcp.f32 %v701_v53 }
 0x149   : > { %1180 = vrcp.f32 %v703_v50 }
 0x14b   : > { %v705_v9 = vpop.xlane.xlu1 %704  ;;  %v707_v24 = vpop.xlane.xlu0 %706 }
 0x14c   : > { %1182 = vrcp.f32 %v705_v9 }
 0x14d   : > { %v1173_v59 = vpop.eup %1172  ;;  %1184 = vrcp.f32 %v707_v24 }
 0x14e   : > { %v790_v51 = vmul.f32 %v1173_v59, %v1638_v49 }
 0x14f   : > { %v709_v63 = vpop.xlane.xlu1 %708  ;;  %v711_v3 = vpop.xlane.xlu0 %710 }
 0x150   : > { %823 = vst.msk [vmem:[%s1760_s5] sm:$0xff] %vm822_vm1, %v790_v51  ;;  %1186 = vrcp.f32 %v709_v63 }
 0x151   : > { %v1175_v35 = vpop.eup %1174  ;;  %1188 = vrcp.f32 %v711_v3 }
 0x152   : > { %v1177_v46 = vpop.eup %1176  ;;  %v791_v10 = vmul.f32 %v1175_v35, %v1645_v62 }
 0x153   : > { %v792_v19 = vmul.f32 %v1177_v46, %v1641_v37  ;;  %v713_v16 = vpop.xlane.xlu1 %712  ;;  %v715_v20 = vpop.xlane.xlu0 %714 }
 0x154   : > { %824 = vst.msk [vmem:[%s1760_s5 + $0x8] sm:$0xff] %vm822_vm1, %v791_v10  ;;  %1190 = vrcp.f32 %v713_v16 }
 0x155   : > { %v1179_v49 = vpop.eup %1178  ;;  %825 = vst.msk [vmem:[%s1760_s5 + $0x10] sm:$0xff] %vm822_vm1, %v792_v19  ;;  %1192 = vrcp.f32 %v715_v20 }
 0x156   : > { %v1181_v15 = vpop.eup %1180  ;;  %v793_v27 = vmul.f32 %v1179_v49, %v1649_v2 }
 0x157   : > { %v794_v22 = vmul.f32 %v1181_v15, %v1653_v14  ;;  %v717_v62 = vpop.xlane.xlu1 %716  ;;  %v719_v47 = vpop.xlane.xlu0 %718 }
 0x158   : > { %826 = vst.msk [vmem:[%s1760_s5 + $0x18] sm:$0xff] %vm822_vm1, %v793_v27  ;;  %1194 = vrcp.f32 %v717_v62 }
 0x159   : > { %v1183_v37 = vpop.eup %1182  ;;  %827 = vst.msk [vmem:[%s1760_s5 + $0x20] sm:$0xff] %vm822_vm1, %v794_v22  ;;  %1196 = vrcp.f32 %v719_v47 }
 0x15a   : > { %v1185_v25 = vpop.eup %1184  ;;  %v795_v26 = vmul.f32 %v1183_v37, %v1657_v17 }
 0x15b   : > { %v796_v43 = vmul.f32 %v1185_v25, %v1661_v23  ;;  %v721_v2 = vpop.xlane.xlu1 %720  ;;  %v723_v44 = vpop.xlane.xlu0 %722 }
 0x15c   : > { %828 = vst.msk [vmem:[%s1760_s5 + $0x28] sm:$0xff] %vm822_vm1, %v795_v26  ;;  %1198 = vrcp.f32 %v721_v2 }
 0x15d   : > { %v1187_v14 = vpop.eup %1186  ;;  %829 = vst.msk [vmem:[%s1760_s5 + $0x30] sm:$0xff] %vm822_vm1, %v796_v43  ;;  %1200 = vrcp.f32 %v723_v44 }
 0x15e   : > { %v1189_v29 = vpop.eup %1188  ;;  %v797_v7 = vmul.f32 %v1187_v14, %v1665_v1 }
 0x15f   : > { %v798_v33 = vmul.f32 %v1189_v29, %v1669_v32  ;;  %v725_v17 = vpop.xlane.xlu1 %724  ;;  %v727_v57 = vpop.xlane.xlu0 %726 }
 0x160   : > { %830 = vst.msk [vmem:[%s1760_s5 + $0x38] sm:$0xff] %vm822_vm1, %v797_v7  ;;  %1202 = vrcp.f32 %v725_v17 }
 0x161   : > { %v1191_v23 = vpop.eup %1190  ;;  %831 = vst.msk [vmem:[%s1760_s5 + $0x40] sm:$0xff] %vm822_vm1, %v798_v33  ;;  %1204 = vrcp.f32 %v727_v57 }
 0x162   : > { %v1193_v4 = vpop.eup %1192  ;;  %v799_v5 = vmul.f32 %v1191_v23, %v1673_v56 }
 0x163   : > { %v800_v36 = vmul.f32 %v1193_v4, %v1677_v38  ;;  %v729_v1 = vpop.xlane.xlu1 %728  ;;  %v731_v0 = vpop.xlane.xlu0 %730 }
 0x164   : > { %832 = vst.msk [vmem:[%s1760_s5 + $0x48] sm:$0xff] %vm822_vm1, %v799_v5  ;;  %1206 = vrcp.f32 %v729_v1 }
 0x165   : > { %v1195_v32 = vpop.eup %1194  ;;  %833 = vst.msk [vmem:[%s1760_s5 + $0x50] sm:$0xff] %vm822_vm1, %v800_v36  ;;  %1208 = vrcp.f32 %v731_v0 }
 0x166   : > { %v1197_v13 = vpop.eup %1196  ;;  %v801_v52 = vmul.f32 %v1195_v32, %v1681_v60 }
 0x167   : > { %v802_v53 = vmul.f32 %v1197_v13, %v1685_v45  ;;  %v733_v56 = vpop.xlane.xlu1 %732  ;;  %v735_v50 = vpop.xlane.xlu0 %734 }
 0x168   : > { %834 = vst.msk [vmem:[%s1760_s5 + $0x58] sm:$0xff] %vm822_vm1, %v801_v52  ;;  %1210 = vrcp.f32 %v733_v56 }
 0x169   : > { %v1199_v38 = vpop.eup %1198  ;;  %835 = vst.msk [vmem:[%s1760_s5 + $0x60] sm:$0xff] %vm822_vm1, %v802_v53  ;;  %1212 = vrcp.f32 %v735_v50 }
 0x16a   : > { %v1201_v9 = vpop.eup %1200  ;;  %v803_v24 = vmul.f32 %v1199_v38, %v1689_v18 }
 0x16b   : > { %v804_v59 = vmul.f32 %v1201_v9, %v1693_v55  ;;  %v737_v60 = vpop.xlane.xlu1 %736  ;;  %v739_v51 = vpop.xlane.xlu0 %738 }
 0x16c   : > { %836 = vst.msk [vmem:[%s1760_s5 + $0x68] sm:$0xff] %vm822_vm1, %v803_v24  ;;  %1214 = vrcp.f32 %v737_v60 }
 0x16d   : > { %v1203_v45 = vpop.eup %1202  ;;  %837 = vst.msk [vmem:[%s1760_s5 + $0x70] sm:$0xff] %vm822_vm1, %v804_v59  ;;  %1216 = vrcp.f32 %v739_v51 }
 0x16e   : > { %v1205_v63 = vpop.eup %1204  ;;  %v805_v3 = vmul.f32 %v1203_v45, %v1697_v61 }
 0x16f   : > { %v806_v35 = vmul.f32 %v1205_v63, %v1701_v6  ;;  %v741_v18 = vpop.xlane.xlu1 %740  ;;  %v743_v46 = vpop.xlane.xlu0 %742 }
 0x170   : > { %838 = vst.msk [vmem:[%s1760_s5 + $0x78] sm:$0xff] %vm822_vm1, %v805_v3  ;;  %1218 = vrcp.f32 %v741_v18 }
 0x171   : > { %v1207_v55 = vpop.eup %1206  ;;  %839 = vst.msk [vmem:[%s1760_s5 + $0x80] sm:$0xff] %vm822_vm1, %v806_v35  ;;  %1220 = vrcp.f32 %v743_v46 }
 0x172   : > { %v1209_v10 = vpop.eup %1208  ;;  %v807_v19 = vmul.f32 %v1207_v55, %v1705_v11 }
 0x173   : > { %v808_v16 = vmul.f32 %v1209_v10, %v1709_v31  ;;  %v745_v61 = vpop.xlane.xlu1 %744  ;;  %v747_v20 = vpop.xlane.xlu0 %746 }
 0x174   : > { %840 = vst.msk [vmem:[%s1760_s5 + $0x88] sm:$0xff] %vm822_vm1, %v807_v19  ;;  %1222 = vrcp.f32 %v745_v61 }
 0x175   : > { %v1211_v6 = vpop.eup %1210  ;;  %841 = vst.msk [vmem:[%s1760_s5 + $0x90] sm:$0xff] %vm822_vm1, %v808_v16  ;;  %1224 = vrcp.f32 %v747_v20 }
 0x176   : > { %v1213_v49 = vpop.eup %1212  ;;  %v809_v15 = vmul.f32 %v1211_v6, %v1713_v39 }
 0x177   : > { %v810_v27 = vmul.f32 %v1213_v49, %v1717_v28  ;;  %v749_v11 = vpop.xlane.xlu1 %748  ;;  %v751_v22 = vpop.xlane.xlu0 %750 }
 0x178   : > { %842 = vst.msk [vmem:[%s1760_s5 + $0x98] sm:$0xff] %vm822_vm1, %v809_v15  ;;  %1226 = vrcp.f32 %v749_v11 }
 0x179   : > { %v1215_v31 = vpop.eup %1214  ;;  %843 = vst.msk [vmem:[%s1760_s5 + $0xa0] sm:$0xff] %vm822_vm1, %v810_v27  ;;  %1228 = vrcp.f32 %v751_v22 }
 0x17a   : > { %v1217_v62 = vpop.eup %1216  ;;  %v811_v47 = vmul.f32 %v1215_v31, %v1721_v54 }
 0x17b   : > { %v812_v37 = vmul.f32 %v1217_v62, %v1725_v34  ;;  %v753_v39 = vpop.xlane.xlu1 %752  ;;  %v755_v25 = vpop.xlane.xlu0 %754 }
 0x17c   : > { %844 = vst.msk [vmem:[%s1760_s5 + $0xa8] sm:$0xff] %vm822_vm1, %v811_v47  ;;  %1230 = vrcp.f32 %v753_v39 }
 0x17d   : > { %v1219_v28 = vpop.eup %1218  ;;  %845 = vst.msk [vmem:[%s1760_s5 + $0xb0] sm:$0xff] %vm822_vm1, %v812_v37  ;;  %1232 = vrcp.f32 %v755_v25 }
 0x17e   : > { %v1221_v26 = vpop.eup %1220  ;;  %v813_v43 = vmul.f32 %v1219_v28, %v1729_v21 }
 0x17f   : > { %v814_v54 = vmul.f32 %v1221_v26, %v1731_v30  ;;  %v757_v2 = vpop.xlane.xlu1 %756 }
 0x180   : > { %846 = vst.msk [vmem:[%s1760_s5 + $0xb8] sm:$0xff] %vm822_vm1, %v813_v43  ;;  %1234 = vrcp.f32 %v757_v2 }
 0x181   : > { %v1223_v34 = vpop.eup %1222  ;;  %847 = vst.msk [vmem:[%s1760_s5 + $0xc0] sm:$0xff] %vm822_vm1, %v814_v54 }
 0x182   : > { %v1225_v44 = vpop.eup %1224  ;;  %v815_v14 = vmul.f32 %v1223_v34, %v1735_v12 }
 0x183   : > { %v816_v29 = vmul.f32 %v1225_v44, %v1737_v8 }
 0x184   : > { %848 = vst.msk [vmem:[%s1760_s5 + $0xc8] sm:$0xff] %vm822_vm1, %v815_v14 }
 0x185   : > { %v1227_v21 = vpop.eup %1226  ;;  %849 = vst.msk [vmem:[%s1760_s5 + $0xd0] sm:$0xff] %vm822_vm1, %v816_v29 }
 0x186   : > { %v1229_v30 = vpop.eup %1228  ;;  %v817_v7 = vmul.f32 %v1227_v21, %v1741_v58 }
 0x187   : > { %v818_v33 = vmul.f32 %v1229_v30, %v1743_v40 }
 0x188   : > { %850 = vst.msk [vmem:[%s1760_s5 + $0xd8] sm:$0xff] %vm822_vm1, %v817_v7 }
 0x189   : > { %v1231_v17 = vpop.eup %1230  ;;  %851 = vst.msk [vmem:[%s1760_s5 + $0xe0] sm:$0xff] %vm822_vm1, %v818_v33 }
 0x18a   : > { %v1233_v12 = vpop.eup %1232  ;;  %v819_v57 = vmul.f32 %v1231_v17, %v1747_v41 }
 0x18b   : > { %v820_v8 = vmul.f32 %v1233_v12, %v1749_v42 }
 0x18c   : > { %852 = vst.msk [vmem:[%s1760_s5 + $0xe8] sm:$0xff] %vm822_vm1, %v819_v57 }
 0x18d   : > { %v1235_v23 = vpop.eup %1234  ;;  %853 = vst.msk [vmem:[%s1760_s5 + $0xf0] sm:$0xff] %vm822_vm1, %v820_v8 }
 0x18e   : > { %v821_v4 = vmul.f32 %v1235_v23, %v1753_v48 }
 0x190   : > { %854 = vst.msk [vmem:[%s1760_s5 + $0xf8] sm:$0xff] %vm822_vm1, %v821_v4 }
 0x191 PF: > { %s13_s12 = sadd.s32 1, %s1242_s12  }
 0x192   : > { %p10_p4 = scmp.ge.s32.totalorder %s13_s12, 4  }
 0x194   :  { %12 = sbr.rel (!%p10_p4) target bundleno = 1 (0x1), region = 65 }

// kernel: basic_block_forward.3
= control target key start
LH: loop header
LB: loop body
LE: loop exit
PB: predicated region body
PF: predicated region fallthrough
CT: control target
= control target key end

     0   :  { %s7533_s27 = smov 0   ;;  %s10460_s0 = inlined_call_operand.vmem [shape: bf16[2,18,18,8], index: 0, kind: input, shape index: {}]   ;;  %s10461_s1 = inlined_call_operand.vmem [shape: bf16[9,8,128], index: 1, kind: input, shape index: {}]   ;;  %s10462_s2 = inlined_call_operand.vmem [shape: bf16[8,128], index: 2, kind: input, shape index: {}]   ;;  %s10463_s3 = inlined_call_operand.vmem [shape: bf16[2,16,16,128], index: 3, kind: output, shape index: {0}]   ;;  %s10464_s4 = inlined_call_operand.vmem [shape: bf16[2,16,16,128], index: 4, kind: output, shape index: {1}]   ;;  %s10465_s5 = inlined_call_operand.vmem [shape: f32[2,1,128], index: 5, kind: output, shape index: {2}]   ;;  %s10466_s6 = inlined_call_operand.vmem [shape: f32[2,1,128], index: 6, kind: output, shape index: {3}]   ;;  %s10467_s7 = inlined_call_operand.vmem [shape: f32[2,1,128], index: 7, kind: output, shape index: {4}]   ;;  %s10468_s8 = inlined_call_operand.vmem [shape: f32[2,1,128], index: 8, kind: output, shape index: {5}]  }
   0x1 LB: > { %s6011_s28 = sadd.s32 4294967295, %s7486_s27   ;;  %p6015_p0 = scmp.ge.s32.totalorder %s7486_s27, 1  ;;  %s7486_s27 = sphi %s7533_s27, %s19_s27  }
   0x2   : > { %p273_p1 = scmp.lt.s32.totalorder %s7486_s27, 3 }
   0x4   : > { %p274_p2 = pnand %p6015_p0, %p273_p1 }
   0x6   : > { %277 = sbr.rel (%p274_p2) target bundleno = 589 (0x24d), region = 32 }
   0xb   : > { %v376_v0 = vld [vmem:[%s10461_s1] sm:$0xf]  ;;  %vm623_vm0 = vcmask 1043456   ;;  %p324_p3 = scmp.lt.s32.totalorder %s6011_s28, 1  ;;  %v6021_v2 = vld [vmem:[%s10461_s1 + $0x4] sm:$0xf] }
   0xc   : > { %7404 = vmatprep.subr.msk.bf16.mxu1 %vm623_vm0, %v376_v0  ;;  %v789_v1 = vsel %vm623_vm0, %v376_v0, 0  ;;  %7403 = vmatprep.subr.msk.bf16.mxu0 %vm623_vm0, %v6021_v2  ;;  %v625_v3 = vsel %vm623_vm0, %v6021_v2, 0  ;;  %v6062_v4 = vld [vmem:[%s10461_s1 + $0x8] sm:$0xf]  ;;  %v6103_v5 = vld [vmem:[%s10461_s1 + $0xc] sm:$0xf] }
   0xd   : > { %7062 = vmatpush3.bf16.msra.mxu1 %v789_v1  ;;  %s10709_s28 = smov (!%p324_p3, %s6011_s28), 1  ;;  %7044 = vmatpush3.bf16.msra.mxu0 %v625_v3  ;;  %v7562_v6 = vld [vmem:[%s10461_s1 + $0x10] sm:$0xf]  ;;  %vm598_vm1 = vcmask 64512   ;;  %vm377_vm2 = vsmask.f32 3328 }
   0xe   : > { %s7423_s17 = smul.u32 216, %s10709_s28  ;;  %vm378_vm3 = vsmask.f32 7440  ;;  %7405 = vmatprep.subr.msk.bf16.mxu0 %vm623_vm0, %v6062_v4  ;;  %7406 = vmatprep.subr.msk.bf16.mxu1 %vm623_vm0, %v6103_v5  ;;  %v6145_v7 = vld [vmem:[%s10461_s1 + $0x14] sm:$0xf]  ;;  %v7571_v8 = vsel %vm623_vm0, %v6062_v4, 0  ;;  %s347_s20 = scalar_lea.vmem %s10467_s7, %s10709_s28 }
   0xf   : > { %v1213_v9 = vsel %vm623_vm0, %v6103_v5, 0  ;;  %v7577_v10 = vld [vmem:[%s10461_s1 + $0x18] sm:$0xf]  ;;  %v7582_v11 = vld [vmem:[%s10461_s1 + $0x1c] sm:$0xf]  ;;  %v7591_v12 = vsel %vm623_vm0, %v7562_v6, 0  ;;  %vm7673_vm4 = vmor %vm377_vm2, %vm378_vm3  ;;  %s350_s23 = scalar_lea.vmem %s10468_s8, %s10709_s28  ;;  %s341_s29 = scalar_lea.vmem %s10465_s5, %s10709_s28 }
  0x10   : > { %s7587_s26 = scalar_lea.vmem %s10460_s0, %s7423_s17  ;;  %v7594_v13 = vsel %vm623_vm0, %v6145_v7, 0  ;;  %v7598_v14 = vsel %vm623_vm0, %v7577_v10, 0  ;;  %v7602_v15 = vsel %vm623_vm0, %v7582_v11, 0  ;;  %vm896_vm5 = vcmask 1042432   ;;  %s344_s10 = scalar_lea.vmem %s10466_s6, %s10709_s28 }
  0x11   : > { %v7605_v16 = vld [vmem:[%s7587_s26] sm:$0xf]  ;;  %v7608_v17 = vld [vmem:[%s7587_s26 + $0x4] sm:$0xf]  ;;  %v7611_v18 = vld [vmem:[%s7587_s26 + $0xc] sm:$0xf] }
  0x12   : > { %v381_v19 = vshrl.u32 %v7605_v16, 16  ;;  %v384_v20 = vshll.u32 %v7605_v16, 16  ;;  %v394_v21 = vshrl.u32 %v7608_v17, 16  ;;  %v6038_v22 = vcombine.low %v7605_v16, %v7608_v17  ;;  %v7619_v23 = vld [vmem:[%s7587_s26 + $0x10] sm:$0xf] }
  0x13   : > { %v6054_v24 = vrot.slane %v7605_v16, 9  ;;  %v901_v25 = vrot.slane %v7608_v17, 5  ;;  %v405_v26 = vshrl.u32 %v7611_v18, 16  ;;  %v408_v27 = vshll.u32 %v7611_v18, 16  ;;  %v7626_v28 = vld [vmem:[%s7587_s26 + $0x18] sm:$0xf] }
  0x14   : > { %7063 = vmatprep.mubr.msk.bf16.mxu1 %vm598_vm1, %v6038_v22  ;;  %v418_v29 = vshrl.u32 %v7619_v23, 16  ;;  %v6039_v30 = vcombine.low %v7611_v18, %v7619_v23  ;;  %v10469_v32 = vrot.slane %v7619_v23, 5  ;;  %v7635_v33 = vld [vmem:[%s7587_s26 + $0x1c] sm:$0xf]  ;;  %v429_v35 = vshrl.u32 %v7626_v28, 16 }
  0x15   : > { %v7639_v34 = vrot.slane %v901_v25, 4  ;;  %v432_v36 = vshll.u32 %v7626_v28, 16  ;;  %v442_v37 = vshrl.u32 %v7635_v33, 16  ;;  %v7645_v38 = vld [vmem:[%s7587_s26 + $0x8] sm:$0x1]  ;;  %v6040_v40 = vcombine.low %v7626_v28, %v7635_v33 }
  0x16   : > { %7064 = vmatmul.mubr.msk.bf16.vlgmr.msra.gmra.mxu1 %vm598_vm1, %v6039_v30  ;;  %v7650_v39 = vrot.slane %v10469_v32, 4  ;;  %v383_v41 = vrot.slane %v381_v19, 4  ;;  %v386_v42 = vrot.slane %v384_v20, 5  ;;  %v7655_v43 = vld [vmem:[%s7587_s26 + $0x24] sm:$0xf]  ;;  %v390_v44 = vshll.u32 %v7608_v17, 16 }
  0x17   : > { %v396_v45 = vrot.slane %v394_v21, 4  ;;  %v400_v46 = vshll.u32 %v7645_v38, 16  ;;  %v7661_v48 = vld [vmem:[%s7587_s26 + $0x28] sm:$0xf]  ;;  %7098 = vmatpush3.bf16.msra.mxu1 %v1213_v9  ;;  %7067 = vmatprep.mubr.msk.bf16.mxu1 %vm598_vm1, %v6040_v40  ;;  %v453_v50 = vshrl.u32 %v7655_v43, 16  ;;  %v456_v51 = vshll.u32 %v7655_v43, 16 }
  0x18   : > { %v387_v49 = vor.u32 %v386_v42, %v383_v41  ;;  %v466_v52 = vshrl.u32 %v7661_v48, 16  ;;  %v7668_v53 = vld [vmem:[%s7587_s26 + $0x14] sm:$0x1]  ;;  %7408 = vmatprep.subr.msk.bf16.mxu1 %vm623_vm0, %v6145_v7  ;;  %v392_v55 = vrot.slane %v390_v44, 5  ;;  %v6041_v57 = vcombine.low %v7655_v43, %v7661_v48  ;;  %v7680_v59 = vld [vmem:[%s7587_s26 + $0x30] sm:$0xf] }
  0x19   : > { %v402_v56 = vrot.slane %v400_v46, 5  ;;  %v407_v58 = vrot.slane %v405_v26, 4  ;;  %v410_v61 = vrot.slane %v408_v27, 5  ;;  %v414_v62 = vshll.u32 %v7619_v23, 16  ;;  %v7684_v0 = vld [vmem:[%s7587_s26 + $0x34] sm:$0xf] }
  0x1a   : > { %v388_v60 = vrot.slane %v387_v49, 4  ;;  %v420_v63 = vrot.slane %v418_v29, 4  ;;  %v397_v1 = vor.u32 %v396_v45, %v392_v55  ;;  %v424_v2 = vshll.u32 %v7668_v53, 16  ;;  %v7693_v20 = vld [vmem:[%s7587_s26 + $0x20] sm:$0x1] }
  0x1b   : > { %v477_v4 = vshrl.u32 %v7680_v59, 16  ;;  %v411_v7 = vor.u32 %v410_v61, %v407_v58  ;;  %v416_v9 = vrot.slane %v414_v62, 5  ;;  %v480_v19 = vshll.u32 %v7680_v59, 16  ;;  %v7700_v42 = vld [vmem:[%s7587_s26 + $0x3c] sm:$0xf] }
  0x1c   : > { %v393_v5 = vsel %vm7673_vm4, %v388_v60, %v392_v55  ;;  %v398_v21 = vrot.slane %v397_v1, 4  ;;  %v426_v22 = vrot.slane %v424_v2, 5  ;;  %v490_v26 = vshrl.u32 %v7684_v0, 16  ;;  %v7708_v55 = vld [vmem:[%s7587_s26 + $0x40] sm:$0xf] }
  0x1d   : > { %v6042_v27 = vcombine.low %v7680_v59, %v7684_v0  ;;  %v412_v29 = vrot.slane %v411_v7, 4  ;;  %v421_v30 = vor.u32 %v420_v63, %v416_v9  ;;  %v431_v40 = vrot.slane %v429_v35, 4  ;;  %v7715_v63 = vld [vmem:[%s7587_s26 + $0x2c] sm:$0x1]  ;;  %v7724_v7 = vld [vmem:[%s7587_s26 + $0x48] sm:$0xf] }
  0x1e   : > { %7068 = vmatmul.mubr.msk.bf16.gmra.mxu1 %vm598_vm1, %v6041_v57  ;;  %v434_v41 = vrot.slane %v432_v36, 5  ;;  %v403_v44 = vsel %vm7673_vm4, %v398_v21, %v402_v56  ;;  %v438_v45 = vshll.u32 %v7635_v33, 16  ;;  %v444_v46 = vrot.slane %v442_v37, 4 }
  0x1f   : > { %7071 = vmatprep.mubr.msk.bf16.mxu1 %vm598_vm1, %v6042_v27  ;;  %v448_v49 = vshll.u32 %v7693_v20, 16  ;;  %v6022_v57 = vcombine.low %v393_v5, %v403_v44  ;;  %v417_v35 = vsel %vm7673_vm4, %v412_v29, %v416_v9  ;;  %v422_v36 = vrot.slane %v421_v30, 4  ;;  %v7727_v30 = vld [vmem:[%s7587_s26 + $0x4c] sm:$0xf] }
  0x20   : > { %v435_v58 = vor.u32 %v434_v41, %v431_v40  ;;  %v440_v60 = vrot.slane %v438_v45, 5  ;;  %v501_v56 = vshrl.u32 %v7700_v42, 16  ;;  %v504_v62 = vshll.u32 %v7700_v42, 16 }
  0x21   : > { %v450_v61 = vrot.slane %v448_v49, 5  ;;  %7045 = vmatprep.mubr.msk.bf16.mxu0 %vm598_vm1, %v6022_v57  ;;  %v427_v37 = vsel %vm7673_vm4, %v422_v36, %v426_v22  ;;  %v514_v2 = vshrl.u32 %v7708_v55, 16  ;;  %v6043_v5 = vcombine.low %v7700_v42, %v7708_v55 }
  0x22   : > { %v436_v1 = vrot.slane %v435_v58, 4  ;;  %v6023_v9 = vcombine.low %v417_v35, %v427_v37  ;;  %v445_v21 = vor.u32 %v444_v46, %v440_v60  ;;  %v455_v27 = vrot.slane %v453_v50, 4  ;;  %v7745_v58 = vld [vmem:[%s7587_s26 + $0x54] sm:$0xf] }
  0x23   : > { %v458_v29 = vrot.slane %v456_v51, 5  ;;  %v462_v22 = vshll.u32 %v7661_v48, 16  ;;  %v468_v41 = vrot.slane %v466_v52, 4  ;;  %v472_v44 = vshll.u32 %v7715_v63, 16  ;;  %v7737_v51 = vld [vmem:[%s7587_s26 + $0x38] sm:$0x1] }
  0x24   : > { %v441_v40 = vsel %vm7673_vm4, %v436_v1, %v440_v60  ;;  %7046 = vmatmul.mubr.msk.bf16.vlgmr.msra.gmra.mxu0 %vm598_vm1, %v6023_v9  ;;  %v446_v45 = vrot.slane %v445_v21, 4  ;;  %v525_v46 = vshrl.u32 %v7724_v7, 16  ;;  %v528_v50 = vshll.u32 %v7724_v7, 16  ;;  %v7750_v21 = vld [vmem:[%s7587_s26 + $0x58] sm:$0xf] }
  0x25   : > { %v459_v49 = vor.u32 %v458_v29, %v455_v27  ;;  %7080 = vmatpush3.bf16.msra.mxu0 %v7571_v8  ;;  %v464_v57 = vrot.slane %v462_v22, 5  ;;  %v474_v35 = vrot.slane %v472_v44, 5  ;;  %v538_v52 = vshrl.u32 %v7727_v30, 16  ;;  %v7761_v44 = vld [vmem:[%s7587_s26 + $0x44] sm:$0x1] }
  0x26   : > { %7072 = vmatmul.mubr.msk.bf16.gmra.mxu1 %vm598_vm1, %v6043_v5  ;;  %v6044_v36 = vcombine.low %v7724_v7, %v7727_v30  ;;  %v451_v60 = vsel %vm7673_vm4, %v446_v45, %v450_v61  ;;  %v479_v1 = vrot.slane %v477_v4, 4  ;;  %v482_v9 = vrot.slane %v480_v19, 5  ;;  %7407 = vmatprep.subr.msk.bf16.mxu0 %vm623_vm0, %v7562_v6 }
  0x27   : > { %v460_v37 = vrot.slane %v459_v49, 4  ;;  %v6024_v8 = vcombine.low %v441_v40, %v451_v60  ;;  %v469_v5 = vor.u32 %v468_v41, %v464_v57  ;;  %v486_v27 = vshll.u32 %v7684_v0, 16 }
  0x28   : > { %7075 = vmatprep.mubr.msk.bf16.mxu1 %vm598_vm1, %v6044_v36  ;;  %v492_v29 = vrot.slane %v490_v26, 4  ;;  %v483_v22 = vor.u32 %v482_v9, %v479_v1  ;;  %v496_v4 = vshll.u32 %v7737_v51, 16  ;;  %v549_v19 = vshrl.u32 %v7745_v58, 16  ;;  %v7767_v26 = vld [vmem:[%s7587_s26 + $0xc] sm:$0xf] }
  0x29   : > { %v465_v61 = vsel %vm7673_vm4, %v460_v37, %v464_v57  ;;  %7049 = vmatprep.mubr.msk.bf16.mxu0 %vm598_vm1, %v6024_v8  ;;  %v470_v6 = vrot.slane %v469_v5, 4  ;;  %v488_v40 = vrot.slane %v486_v27, 5  ;;  %v552_v41 = vshll.u32 %v7745_v58, 16  ;;  %v7772_v37 = vld [vmem:[%s7587_s26 + $0x10] sm:$0xf] }
  0x2a   : > { %v562_v45 = vshrl.u32 %v7750_v21, 16  ;;  %v484_v49 = vrot.slane %v483_v22, 4  ;;  %v498_v36 = vrot.slane %v496_v4, 5  ;;  %v6045_v57 = vcombine.low %v7745_v58, %v7750_v21 }
  0x2b   : > { %v503_v60 = vrot.slane %v501_v56, 4  ;;  %vm897_vm6 = vcmask 1046532   ;;  %v475_v1 = vsel %vm7673_vm4, %v470_v6, %v474_v35  ;;  %v493_v9 = vor.u32 %v492_v29, %v488_v40  ;;  %v7784_v29 = vld [vmem:[%s7587_s26 + $0x50] sm:$0x1] }
  0x2c   : > { %v506_v8 = vrot.slane %v504_v62, 5  ;;  %v510_v5 = vshll.u32 %v7708_v55, 16  ;;  %v6025_v27 = vcombine.low %v465_v61, %v475_v1  ;;  %v489_v22 = vsel %vm7673_vm4, %v484_v49, %v488_v40  ;;  %v7787_v62 = vld [vmem:[%s7587_s26 + $0x18] sm:$0xf]  ;;  %v7794_v49 = vld [vmem:[%s7587_s26 + $0x1c] sm:$0xf]  ;;  %vm7831_vm7 = vmor %vm896_vm5, %vm897_vm6 }
  0x2d   : > { %v516_v4 = vrot.slane %v514_v2, 4  ;;  %v520_v56 = vshll.u32 %v7761_v44, 16  ;;  %v494_v3 = vrot.slane %v493_v9, 4  ;;  %v6104_v35 = vcombine.low %v7767_v26, %v7772_v37 }
  0x2e   : > { %7076 = vmatmul.mubr.msk.bf16.gmra.mxu1 %vm598_vm1, %v6045_v57  ;;  %v507_v31 = vor.u32 %v506_v8, %v503_v60  ;;  %v512_v32 = vrot.slane %v510_v5, 5  ;;  %7050 = vmatmul.mubr.msk.bf16.gmra.mxu0 %vm598_vm1, %v6025_v27  ;;  %v527_v9 = vrot.slane %v525_v46, 4  ;;  %v530_v5 = vrot.slane %v528_v50, 5  ;;  %v7813_v46 = vld [vmem:[%s7587_s26 + $0x24] sm:$0xf] }
  0x2f   : > { %v522_v61 = vrot.slane %v520_v56, 5  ;;  %v499_v57 = vsel %vm7673_vm4, %v494_v3, %v498_v36  ;;  %7099 = vmatprep.mubr.msk.bf16.mxu1 %vm598_vm1, %v6104_v35  ;;  %v534_v27 = vshll.u32 %v7727_v30, 16  ;;  %v540_v56 = vrot.slane %v538_v52, 4  ;;  %v7810_v36 = vld [vmem:[%s7587_s26 + $0x5c] sm:$0x1] }
  0x30   : > { %v508_v60 = vrot.slane %v507_v31, 4  ;;  %v517_v1 = vor.u32 %v516_v4, %v512_v32  ;;  %v6026_v8 = vcombine.low %v489_v22, %v499_v57  ;;  %v544_v31 = vshll.u32 %v7784_v29, 16  ;;  %v7819_v35 = vld [vmem:[%s7587_s26 + $0x28] sm:$0xf] }
  0x31   : > { %v6105_v3 = vcombine.low %v7787_v62, %v7794_v49  ;;  %v531_v22 = vor.u32 %v530_v5, %v527_v9  ;;  %v536_v50 = vrot.slane %v534_v27, 5  ;;  %v1353_v4 = vshrl.u32 %v7787_v62, 16 }
  0x32   : > { %v513_v40 = vsel %vm7673_vm4, %v508_v60, %v512_v32  ;;  %v518_v2 = vrot.slane %v517_v1, 4  ;;  %7053 = vmatprep.mubr.msk.bf16.mxu0 %vm598_vm1, %v6026_v8  ;;  %v546_v57 = vrot.slane %v544_v31, 5  ;;  %v1366_v60 = vshrl.u32 %v7794_v49, 16  ;;  %v7843_v31 = vld [vmem:[%s7587_s26 + $0x34] sm:$0xf] }
  0x33   : > { %v551_v1 = vrot.slane %v549_v19, 4  ;;  %v532_v47 = vrot.slane %v531_v22, 4  ;;  %v541_v8 = vor.u32 %v540_v56, %v536_v50  ;;  %v554_v9 = vrot.slane %v552_v41, 5  ;;  %v7840_v56 = vld [vmem:[%s7587_s26 + $0x30] sm:$0xf] }
  0x34   : > { %v523_v32 = vsel %vm7673_vm4, %v518_v2, %v522_v61  ;;  %v558_v5 = vshll.u32 %v7750_v21, 16  ;;  %v564_v27 = vrot.slane %v562_v45, 4  ;;  %v568_v52 = vshll.u32 %v7810_v36, 16 }
  0x35   : > { %v6027_v6 = vcombine.low %v513_v40, %v523_v32  ;;  %v6106_v61 = vcombine.low %v7813_v46, %v7819_v35  ;;  %v10495_v19 = vmov 0  ;;  %v537_v41 = vsel %vm7673_vm4, %v532_v47, %v536_v50 }
  0x36   : > { %7100 = vmatmul.mubr.msk.bf16.vlgmr.msra.gmra.mxu1 %vm598_vm1, %v6105_v3  ;;  %v10496_v19 = vsel %vm7831_vm7, 4294967295, %v10495_v19  ;;  %v542_v2 = vrot.slane %v541_v8, 4  ;;  %v555_v40 = vor.u32 %v554_v9, %v551_v1  ;;  %v1377_v45 = vshrl.u32 %v7813_v46, 16  ;;  %v7865_v8 = vld [vmem:[%s7587_s26 + $0x3c] sm:$0xf] }
  0x37   : > { %10497 = vst [vmem:[#allocation2_spill] sm:$0xff] %v10496_v19  ;;  %7054 = vmatmul.mubr.msk.bf16.gmra.mxu0 %vm598_vm1, %v6027_v6  ;;  %7134 = vmatpush3.bf16.msra.mxu1 %v7594_v13  ;;  %v560_v3 = vrot.slane %v558_v5, 5  ;;  %v570_v22 = vrot.slane %v568_v52, 5  ;;  %v1380_v6 = vshll.u32 %v7813_v46, 16  ;;  %v1390_v47 = vshrl.u32 %v7819_v35, 16 }
  0x38   : > { %7103 = vmatprep.mubr.msk.bf16.mxu1 %vm598_vm1, %v6106_v61  ;;  %7410 = vmatprep.subr.msk.bf16.mxu1 %vm623_vm0, %v7582_v11  ;;  %v547_v50 = vsel %vm7673_vm4, %v542_v2, %v546_v57  ;;  %v556_v32 = vrot.slane %v555_v40, 4  ;;  %v902_v13 = vsel %vm7831_vm7, %v6054_v24, %v901_v25  ;;  %v10498_v52 = vrot.slane %v7645_v38, 5  ;;  %v7868_v11 = vld [vmem:[%s7587_s26 + $0x40] sm:$0xf] }
  0x39   : > { %v6028_v57 = vcombine.low %v537_v41, %v547_v50  ;;  %v565_v9 = vor.u32 %v564_v27, %v560_v3  ;;  %v6107_v16 = vcombine.low %v7840_v56, %v7843_v31  ;;  %v1401_v25 = vshrl.u32 %v7840_v56, 16  ;;  %v7896_v50 = vld [vmem:[%s7587_s26 + $0x48] sm:$0xf] }
  0x3a   : > { %v905_v1 = vsel %vm7831_vm7, %v7639_v34, %v10498_v52  ;;  %v561_v24 = vsel %vm7673_vm4, %v556_v32, %v560_v3  ;;  %v1404_v34 = vshll.u32 %v7840_v56, 16  ;;  %v1414_v38 = vshrl.u32 %v7843_v31, 16  ;;  %v7907_v52 = vld [vmem:[%s7587_s26 + $0x54] sm:$0xf] }
  0x3b   : > { %v6063_v17 = vcombine.low %v902_v13, %v905_v1  ;;  %7057 = vmatprep.mubr.msk.bf16.mxu0 %vm598_vm1, %v6028_v57  ;;  %v566_v5 = vrot.slane %v565_v9, 4  ;;  %v10499_v61 = vrot.slane %v7619_v23, 5  ;;  %v10500_v27 = vrot.slane %v7611_v18, 9  ;;  %v7899_v23 = vld [vmem:[%s7587_s26 + $0x4c] sm:$0xf] }
  0x3c   : > { %v10501_v2 = vrot.slane %v7668_v53, 5  ;;  %v6108_v3 = vcombine.low %v7865_v8, %v7868_v11  ;;  %v1425_v32 = vshrl.u32 %v7865_v8, 16  ;;  %v1428_v13 = vshll.u32 %v7865_v8, 16 }
  0x3d   : > { %v7884_v41 = vsel %vm7831_vm7, %v10500_v27, %v10499_v61  ;;  %v1438_v53 = vshrl.u32 %v7868_v11, 16  ;;  %v6056_v1 = vrot.slane %v7626_v28, 9  ;;  %v915_v57 = vrot.slane %v7635_v33, 5  ;;  %v7916_v61 = vld [vmem:[%s7587_s26 + $0x58] sm:$0xf] }
  0x3e   : > { %v7891_v40 = vsel %vm7831_vm7, %v7650_v39, %v10501_v2  ;;  %v571_v39 = vsel %vm7673_vm4, %v566_v5, %v570_v22  ;;  %7104 = vmatmul.mubr.msk.bf16.gmra.mxu1 %vm598_vm1, %v6107_v16  ;;  %v918_v9 = vrot.slane %v7693_v20, 5  ;;  %v6057_v20 = vrot.slane %v7655_v43, 9  ;;  %v7928_v5 = vld [vmem:[%s7587_s26 + $0x60] sm:$0xf] }
  0x3f   : > { %v6064_v18 = vcombine.low %v7884_v41, %v7891_v40  ;;  %v6029_v27 = vcombine.low %v561_v24, %v571_v39  ;;  %7107 = vmatprep.mubr.msk.bf16.mxu1 %vm598_vm1, %v6108_v3  ;;  %v6109_v41 = vcombine.low %v7896_v50, %v7899_v23  ;;  %v916_v28 = vsel %vm7831_vm7, %v6056_v1, %v915_v57  ;;  %v7937_v1 = vld [vmem:[%s7587_s26 + $0x64] sm:$0xf] }
  0x40   : > { %v917_v16 = vrot.slane %v915_v57, 4  ;;  %v922_v24 = vrot.slane %v7661_v48, 5  ;;  %v925_v40 = vrot.slane %v7715_v63, 5  ;;  %v6110_v3 = vcombine.low %v7907_v52, %v7916_v61 }
  0x41   : > { %7058 = vmatmul.mubr.msk.bf16.gmra.mxu0 %vm598_vm1, %v6029_v27  ;;  %v1476_v57 = vshll.u32 %v7907_v52, 16  ;;  %v6058_v48 = vrot.slane %v7680_v59, 9  ;;  %v929_v39 = vrot.slane %v7684_v0, 5  ;;  %v932_v2 = vrot.slane %v7737_v51, 5  ;;  %v7956_v27 = vld [vmem:[%s7587_s26 + $0x14] sm:$0x1] }
  0x42   : > { %7081 = vmatprep.mubr.msk.bf16.mxu0 %vm598_vm1, %v6063_v17  ;;  %v919_v43 = vsel %vm7831_vm7, %v917_v16, %v918_v9  ;;  %v7947_v33 = vsel %vm7831_vm7, %v6057_v20, %v922_v24  ;;  %v924_v22 = vrot.slane %v922_v24, 4  ;;  %v6111_v17 = vcombine.low %v7928_v5, %v7937_v1 }
  0x43   : > { %v6065_v63 = vcombine.low %v916_v28, %v919_v43  ;;  %v1497_v9 = vshrl.u32 %v7928_v5, 16  ;;  %v7962_v28 = vsel %vm7831_vm7, %v6058_v48, %v929_v39  ;;  %v931_v0 = vrot.slane %v929_v39, 4 }
  0x44   : > { %v926_v59 = vsel %vm7831_vm7, %v924_v22, %v925_v40  ;;  %v1510_v51 = vshrl.u32 %v7937_v1, 16  ;;  %v6059_v24 = vrot.slane %v7700_v42, 9  ;;  %v936_v43 = vrot.slane %v7708_v55, 5 }
  0x45   : > { %v6066_v20 = vcombine.low %v7947_v33, %v926_v59  ;;  %v939_v16 = vrot.slane %v7761_v44, 5  ;;  %v933_v22 = vsel %vm7831_vm7, %v931_v0, %v932_v2  ;;  %v6137_v40 = vrot.slane %v7767_v26, 9 }
  0x46   : > { %7108 = vmatmul.mubr.msk.bf16.gmra.mxu1 %vm598_vm1, %v6109_v41  ;;  %v1696_v39 = vrot.slane %v7772_v37, 5  ;;  %v1699_v48 = vrot.slane %v7956_v27, 5  ;;  %v7977_v41 = vld [vmem:[%s7587_s26 + $0x20] sm:$0x1]  ;;  %v6067_v33 = vcombine.low %v7962_v28, %v933_v22  ;;  %v7982_v42 = vsel %vm7831_vm7, %v6059_v24, %v936_v43 }
  0x47   : > { %7111 = vmatprep.mubr.msk.bf16.mxu1 %vm598_vm1, %v6110_v3  ;;  %v938_v55 = vrot.slane %v936_v43, 4  ;;  %v6060_v44 = vrot.slane %v7724_v7, 9  ;;  %v943_v59 = vrot.slane %v7727_v30, 5  ;;  %v946_v0 = vrot.slane %v7784_v29, 5 }
  0x48   : > { %v1697_v2 = vsel %vm7831_vm7, %v6137_v40, %v1696_v39  ;;  %v1698_v3 = vrot.slane %v1696_v39, 4  ;;  %v6138_v7 = vrot.slane %v7787_v62, 9  ;;  %v1706_v24 = vrot.slane %v7977_v41, 5 }
  0x49   : > { %7082 = vmatmul.mubr.msk.bf16.vlgmr.msra.gmra.mxu0 %vm598_vm1, %v6064_v18  ;;  %v7994_v28 = vsel %vm7831_vm7, %v938_v55, %v939_v16  ;;  %v1703_v18 = vrot.slane %v7794_v49, 5  ;;  %v945_v29 = vrot.slane %v943_v59, 4  ;;  %v6061_v39 = vrot.slane %v7745_v58, 9 }
  0x4a   : > { %7116 = vmatpush3.bf16.msra.mxu0 %v7591_v12  ;;  %7085 = vmatprep.mubr.msk.bf16.mxu0 %vm598_vm1, %v6065_v63  ;;  %v6068_v43 = vcombine.low %v7982_v42, %v7994_v28  ;;  %v1700_v30 = vsel %vm7831_vm7, %v1698_v3, %v1699_v48  ;;  %v8005_v12 = vsel %vm7831_vm7, %v6060_v44, %v943_v59  ;;  %v8008_v63 = vld [vmem:[%s7587_s26 + $0x2c] sm:$0x1]  ;;  %v950_v55 = vrot.slane %v7750_v21, 5 }
  0x4b   : > { %7409 = vmatprep.subr.msk.bf16.mxu0 %vm623_vm0, %v7577_v10  ;;  %v6146_v16 = vcombine.low %v1697_v2, %v1700_v30  ;;  %v1704_v22 = vsel %vm7831_vm7, %v6138_v7, %v1703_v18  ;;  %v1705_v40 = vrot.slane %v1703_v18, 4  ;;  %v8017_v48 = vsel %vm7831_vm7, %v945_v29, %v946_v0 }
  0x4c   : > { %v953_v44 = vrot.slane %v7810_v36, 5  ;;  %v6139_v3 = vrot.slane %v7813_v46, 9  ;;  %v6069_v10 = vcombine.low %v8005_v12, %v8017_v48  ;;  %v1710_v58 = vrot.slane %v7819_v35, 5 }
  0x4d   : > { %v1707_v2 = vsel %vm7831_vm7, %v1705_v40, %v1706_v24  ;;  %v1713_v59 = vrot.slane %v8008_v63, 5  ;;  %v8032_v36 = vsel %vm7831_vm7, %v6061_v39, %v950_v55  ;;  %v952_v0 = vrot.slane %v950_v55, 4  ;;  %v8042_v40 = vld [vmem:[%s7587_s26 + $0x38] sm:$0x1] }
  0x4e   : > { %7112 = vmatmul.mubr.msk.bf16.gmra.mxu1 %vm598_vm1, %v6111_v17  ;;  %v6147_v21 = vcombine.low %v1704_v22, %v1707_v2  ;;  %v10502_v17 = vshrl.u32 %v7767_v26, 16  ;;  %v1711_v18 = vsel %vm7831_vm7, %v6139_v3, %v1710_v58  ;;  %v1712_v30 = vrot.slane %v1710_v58, 4 }
  0x4f   : > { %7135 = vmatprep.mubr.msk.bf16.mxu1 %vm598_vm1, %v6146_v16  ;;  %v10503_v24 = vshll.u32 %v7767_v26, 16  ;;  %v1338_v29 = vshll.u32 %v7772_v37, 16  ;;  %v8047_v16 = vsel %vm7831_vm7, %v952_v0, %v953_v44  ;;  %v10504_v22 = vshrl.u32 %v7772_v37, 16 }
  0x50   : > { %v1331_v7 = vrot.slane %v10502_v17, 4  ;;  %v1348_v48 = vshll.u32 %v7956_v27, 16  ;;  %v6140_v55 = vrot.slane %v7840_v56, 9  ;;  %v6070_v26 = vcombine.low %v8032_v36, %v8047_v16 }
  0x51   : > { %v1334_v12 = vrot.slane %v10503_v24, 5  ;;  %7086 = vmatmul.mubr.msk.bf16.gmra.mxu0 %vm598_vm1, %v6066_v20  ;;  %v1344_v39 = vrot.slane %v10504_v22, 4  ;;  %v1714_v3 = vsel %vm7831_vm7, %v1712_v30, %v1713_v59  ;;  %v1340_v2 = vrot.slane %v1338_v29, 5 }
  0x52   : > { %7089 = vmatprep.mubr.msk.bf16.mxu0 %vm598_vm1, %v6067_v33  ;;  %v6148_v58 = vcombine.low %v1711_v18, %v1714_v3  ;;  %v1350_v44 = vrot.slane %v1348_v48, 5  ;;  %v1717_v0 = vrot.slane %v7843_v31, 5  ;;  %v1720_v37 = vrot.slane %v8042_v40, 5  ;;  %v8083_v48 = vld [vmem:[%s7587_s26 + $0x44] sm:$0x1] }
  0x53   : > { %v1335_v20 = vor.u32 %v1334_v12, %v1331_v7  ;;  %v1345_v27 = vor.u32 %v1344_v39, %v1340_v2  ;;  %v1355_v24 = vrot.slane %v1353_v4, 4  ;;  %v10505_v33 = vshll.u32 %v7787_v62, 16  ;;  %v8072_v12 = vld [vmem:[%s10462_s2] sm:$0xf] }
  0x54   : > { %v1718_v59 = vsel %vm7831_vm7, %v6140_v55, %v1717_v0  ;;  %v1719_v7 = vrot.slane %v1717_v0, 4  ;;  %v1362_v18 = vshll.u32 %v7794_v49, 16  ;;  %v1368_v30 = vrot.slane %v1366_v60, 4 }
  0x55   : > { %v1336_v17 = vrot.slane %v1335_v20, 4  ;;  %v1358_v22 = vrot.slane %v10505_v33, 5  ;;  %v1346_v4 = vrot.slane %v1345_v27, 4  ;;  %v1372_v39 = vshll.u32 %v7977_v41, 16 }
  0x56   : > { %7136 = vmatmul.mubr.msk.bf16.vlgmr.msra.gmra.mxu1 %vm598_vm1, %v6147_v21  ;;  %v1721_v49 = vsel %vm7831_vm7, %v1719_v7, %v1720_v37  ;;  %v1364_v60 = vrot.slane %v1362_v18, 5  ;;  %v6141_v55 = vrot.slane %v7865_v8, 9  ;;  %v1724_v21 = vrot.slane %v7868_v11, 5 }
  0x57   : > { %v1341_v62 = vsel %vm7673_vm4, %v1336_v17, %v1340_v2  ;;  %v1359_v29 = vor.u32 %v1358_v22, %v1355_v24  ;;  %7139 = vmatprep.mubr.msk.bf16.mxu1 %vm598_vm1, %v6148_v58  ;;  %7170 = vmatpush3.bf16.msra.mxu1 %v7602_v15  ;;  %v1351_v3 = vsel %vm7673_vm4, %v1346_v4, %v1350_v44  ;;  %v1374_v41 = vrot.slane %v1372_v39, 5 }
  0x58   : > { %v6149_v20 = vcombine.low %v1718_v59, %v1721_v49  ;;  %7412 = vmatprep.subr.msk.bf16.mxu1 %vm623_vm0, %v8072_v12  ;;  %v8095_v15 = vcombine.low %v1341_v62, %v1351_v3  ;;  %v1369_v58 = vor.u32 %v1368_v30, %v1364_v60  ;;  %v1725_v0 = vsel %vm7831_vm7, %v6141_v55, %v1724_v21  ;;  %v8114_v59 = vld [vmem:[%s7587_s26 + $0x50] sm:$0x1] }
  0x59   : > { %v1360_v2 = vrot.slane %v1359_v29, 4  ;;  %7090 = vmatmul.mubr.msk.bf16.gmra.mxu0 %vm598_vm1, %v6068_v43  ;;  %v1726_v37 = vrot.slane %v1724_v21, 4  ;;  %v1727_v17 = vrot.slane %v8083_v48, 5  ;;  %v1379_v42 = vrot.slane %v1377_v45, 4 }
  0x5a   : > { %7093 = vmatprep.mubr.msk.bf16.mxu0 %vm598_vm1, %v6069_v10  ;;  %v1382_v28 = vrot.slane %v1380_v6, 5  ;;  %v1370_v43 = vrot.slane %v1369_v58, 4  ;;  %v1386_v27 = vshll.u32 %v7819_v35, 16  ;;  %v1392_v24 = vrot.slane %v1390_v47, 4 }
  0x5b   : > { %v1365_v44 = vsel %vm7673_vm4, %v1360_v2, %v1364_v60  ;;  %v1396_v33 = vshll.u32 %v8008_v63, 16  ;;  %v1728_v10 = vsel %vm7831_vm7, %v1726_v37, %v1727_v17  ;;  %v6142_v7 = vrot.slane %v7896_v50, 9 }
  0x5c   : > { %v1383_v22 = vor.u32 %v1382_v28, %v1379_v42  ;;  %v1731_v45 = vrot.slane %v7899_v23, 5  ;;  %v1375_v46 = vsel %vm7673_vm4, %v1370_v43, %v1374_v41  ;;  %v6150_v6 = vcombine.low %v1725_v0, %v1728_v10 }
  0x5d   : > { %v1388_v18 = vrot.slane %v1386_v27, 5  ;;  %v1398_v35 = vrot.slane %v1396_v33, 5  ;;  %v8121_v47 = vcombine.low %v1365_v44, %v1375_v46  ;;  %v1734_v29 = vrot.slane %v8114_v59, 5 }
  0x5e   : > { %7140 = vmatmul.mubr.msk.bf16.gmra.mxu1 %vm598_vm1, %v6149_v20  ;;  %v1384_v63 = vrot.slane %v1383_v22, 4  ;;  %v1732_v30 = vsel %vm7831_vm7, %v6142_v7, %v1731_v45  ;;  %v1733_v62 = vrot.slane %v1731_v45, 4  ;;  %v1403_v39 = vrot.slane %v1401_v25, 4  ;;  %v8138_v20 = vld [vmem:[%s7587_s26 + $0x5c] sm:$0x1] }
  0x5f   : > { %7143 = vmatprep.mubr.msk.bf16.mxu1 %vm598_vm1, %v6150_v6  ;;  %v1393_v4 = vor.u32 %v1392_v24, %v1388_v18  ;;  %v1406_v49 = vrot.slane %v1404_v34, 5  ;;  %v1410_v55 = vshll.u32 %v7843_v31, 16  ;;  %v1416_v21 = vrot.slane %v1414_v38, 4 }
  0x60   : > { %v1389_v60 = vsel %vm7673_vm4, %v1384_v63, %v1388_v18  ;;  %v1420_v3 = vshll.u32 %v8042_v40, 16  ;;  %v1735_v56 = vsel %vm7831_vm7, %v1733_v62, %v1734_v29  ;;  %v6143_v2 = vrot.slane %v7907_v52, 9 }
  0x61   : > { %7094 = vmatmul.mubr.msk.bf16.gmra.mxu0 %vm598_vm1, %v6070_v26  ;;  %v1394_v25 = vrot.slane %v1393_v4, 4  ;;  %v1407_v34 = vor.u32 %v1406_v49, %v1403_v39  ;;  %v6151_v31 = vcombine.low %v1732_v30, %v1735_v56  ;;  %v1412_v38 = vrot.slane %v1410_v55, 5 }
  0x62   : > { %7117 = vmatprep.mubr.msk.bf16.mxu0 %vm598_vm1, %v8095_v15  ;;  %v1422_v40 = vrot.slane %v1420_v3, 5  ;;  %v1738_v41 = vrot.slane %v7916_v61, 5  ;;  %v1741_v26 = vrot.slane %v8138_v20, 5  ;;  %v1427_v58 = vrot.slane %v1425_v32, 4  ;;  %v8167_v32 = vld [vmem:[%s7587_s26 + $0x68] sm:$0x1] }
  0x63   : > { %v1399_v36 = vsel %vm7673_vm4, %v1394_v25, %v1398_v35  ;;  %v1408_v16 = vrot.slane %v1407_v34, 4  ;;  %v1417_v37 = vor.u32 %v1416_v21, %v1412_v38  ;;  %v1430_v28 = vrot.slane %v1428_v13, 5  ;;  %v8186_v35 = vld [vmem:[%s7587_s26 + $0x18] sm:$0xf] }
  0x64   : > { %v8155_v0 = vcombine.low %v1389_v60, %v1399_v36  ;;  %v1739_v44 = vsel %vm7831_vm7, %v6143_v2, %v1738_v41  ;;  %v1740_v17 = vrot.slane %v1738_v41, 4  ;;  %v1434_v43 = vshll.u32 %v7868_v11, 16  ;;  %v8178_v11 = vld [vmem:[%s10461_s1 + $0x20] sm:$0xf] }
  0x65   : > { %v1413_v42 = vsel %vm7673_vm4, %v1408_v16, %v1412_v38  ;;  %v1440_v27 = vrot.slane %v1438_v53, 4  ;;  %v1418_v24 = vrot.slane %v1417_v37, 4  ;;  %v1444_v10 = vshll.u32 %v8083_v48, 16 }
  0x66   : > { %7144 = vmatmul.mubr.msk.bf16.gmra.mxu1 %vm598_vm1, %v6151_v31  ;;  %v1742_v33 = vsel %vm7831_vm7, %v1740_v17, %v1741_v26  ;;  %v6144_v22 = vrot.slane %v7928_v5, 9  ;;  %v1431_v13 = vor.u32 %v1430_v28, %v1427_v58  ;;  %v1436_v7 = vrot.slane %v1434_v43, 5  ;;  %v8212_v31 = vld [vmem:[%s7587_s26 + $0x1c] sm:$0xf] }
  0x67   : > { %v6152_v8 = vcombine.low %v1739_v44, %v1742_v33  ;;  %v1745_v45 = vrot.slane %v7937_v1, 5  ;;  %v1423_v53 = vsel %vm7673_vm4, %v1418_v24, %v1422_v40  ;;  %v1446_v46 = vrot.slane %v1444_v10, 5 }
  0x68   : > { %v1748_v6 = vrot.slane %v8167_v32, 5  ;;  %v10506_v48 = vshrl.u32 %v7896_v50, 16  ;;  %v8190_v63 = vcombine.low %v1413_v42, %v1423_v53  ;;  %v1432_v30 = vrot.slane %v1431_v13, 4 }
  0x69   : > { %7118 = vmatmul.mubr.msk.bf16.vlgmr.msra.gmra.mxu0 %vm598_vm1, %v8121_v47  ;;  %7147 = vmatprep.mubr.msk.bf16.mxu1 %vm598_vm1, %v6152_v8  ;;  %v1441_v62 = vor.u32 %v1440_v27, %v1436_v7  ;;  %v1746_v4 = vsel %vm7831_vm7, %v6144_v22, %v1745_v45  ;;  %v1747_v29 = vrot.slane %v1745_v45, 4  ;;  %v10507_v39 = vshll.u32 %v7896_v50, 16  ;;  %v8236_v45 = vld [vmem:[%s7587_s26 + $0x24] sm:$0xf] }
  0x6a   : > { %v1451_v18 = vrot.slane %v10506_v48, 4  ;;  %7152 = vmatpush3.bf16.msra.mxu0 %v7598_v14  ;;  %7121 = vmatprep.mubr.msk.bf16.mxu0 %vm598_vm1, %v8155_v0  ;;  %v1458_v60 = vshll.u32 %v7899_v23, 16  ;;  %v10508_v55 = vshrl.u32 %v7899_v23, 16  ;;  %v1437_v3 = vsel %vm7673_vm4, %v1432_v30, %v1436_v7  ;;  %v8215_v23 = vld [vmem:[%s7587_s26 + $0x20] sm:$0x1] }
  0x6b   : > { %v1454_v49 = vrot.slane %v10507_v39, 5  ;;  %v1442_v25 = vrot.slane %v1441_v62, 4  ;;  %v1468_v56 = vshll.u32 %v8114_v59, 16  ;;  %v2124_v14 = vshrl.u32 %v8186_v35, 16  ;;  %7411 = vmatprep.subr.msk.bf16.mxu0 %vm623_vm0, %v8178_v11  ;;  %v8245_v48 = vld [vmem:[%s7587_s26 + $0x28] sm:$0xf] }
  0x6c   : > { %v1464_v21 = vrot.slane %v10508_v55, 4  ;;  %v1749_v50 = vsel %vm7831_vm7, %v1747_v29, %v1748_v6  ;;  %v1460_v2 = vrot.slane %v1458_v60, 5  ;;  %v2127_v38 = vshll.u32 %v8186_v35, 16 }
  0x6d   : > { %v1455_v34 = vor.u32 %v1454_v49, %v1451_v18  ;;  %v1447_v40 = vsel %vm7673_vm4, %v1442_v25, %v1446_v46  ;;  %v6153_v59 = vcombine.low %v1746_v4, %v1749_v50  ;;  %v1470_v41 = vrot.slane %v1468_v56, 5  ;;  %v8253_v49 = vld [vmem:[%s7587_s26 + $0x2c] sm:$0x1] }
  0x6e   : > { %v2126_v36 = vrot.slane %v2124_v14, 4  ;;  %v8220_v16 = vcombine.low %v1437_v3, %v1447_v40  ;;  %v1465_v58 = vor.u32 %v1464_v21, %v1460_v2  ;;  %v2129_v37 = vrot.slane %v2127_v38, 5 }
  0x6f   : > { %v1456_v26 = vrot.slane %v1455_v34, 4  ;;  %7148 = vmatmul.mubr.msk.bf16.gmra.mxu1 %vm598_vm1, %v6153_v59  ;;  %v2133_v44 = vshll.u32 %v8212_v31, 16  ;;  %v2137_v17 = vshrl.u32 %v8212_v31, 16  ;;  %v2143_v42 = vshll.u32 %v8215_v23, 16 }
  0x70   : > { %v10509_v28 = vshrl.u32 %v7907_v52, 16  ;;  %v1466_v24 = vrot.slane %v1465_v58, 4  ;;  %v2130_v33 = vor.u32 %v2129_v37, %v2126_v36  ;;  %v1478_v10 = vrot.slane %v1476_v57, 5  ;;  %v8267_v58 = vld [vmem:[%s7587_s26 + $0x30] sm:$0xf] }
  0x71   : > { %v1461_v27 = vsel %vm7673_vm4, %v1456_v26, %v1460_v2  ;;  %7122 = vmatmul.mubr.msk.bf16.gmra.mxu0 %vm598_vm1, %v8190_v63  ;;  %v2135_v22 = vrot.slane %v2133_v44, 5  ;;  %v2139_v8 = vrot.slane %v2137_v17, 4  ;;  %v2145_v13 = vrot.slane %v2143_v42, 5 }
  0x72   : > { %v1475_v43 = vrot.slane %v10509_v28, 4  ;;  %v1482_v7 = vshll.u32 %v7916_v61, 16  ;;  %7125 = vmatprep.mubr.msk.bf16.mxu0 %vm598_vm1, %v8220_v16  ;;  %v1471_v53 = vsel %vm7673_vm4, %v1466_v24, %v1470_v41  ;;  %v2131_v46 = vrot.slane %v2130_v33, 4 }
  0x73   : > { %v10510_v57 = vshrl.u32 %v7916_v61, 16  ;;  %v8247_v18 = vcombine.low %v1461_v27, %v1471_v53  ;;  %v2140_v30 = vor.u32 %v2139_v8, %v2135_v22  ;;  %v1492_v4 = vshll.u32 %v8138_v20, 16  ;;  %v8291_v53 = vld [vmem:[%s7587_s26 + $0x38] sm:$0x1] }
  0x74   : > { %v1479_v52 = vor.u32 %v1478_v10, %v1475_v43  ;;  %v1484_v62 = vrot.slane %v1482_v7, 5  ;;  %v2136_v29 = vsel %vm7673_vm4, %v2131_v46, %v2135_v22  ;;  %v2148_v60 = vshrl.u32 %v8236_v45, 16  ;;  %v8277_v43 = vld [vmem:[%s7587_s26 + $0x34] sm:$0xf] }
  0x75   : > { %v1488_v6 = vrot.slane %v10510_v57, 4  ;;  %v2151_v55 = vshll.u32 %v8236_v45, 16  ;;  %v2141_v61 = vrot.slane %v2140_v30, 4  ;;  %v1494_v3 = vrot.slane %v1492_v4, 5 }
  0x76   : > { %v1480_v39 = vrot.slane %v1479_v52, 4  ;;  %v2157_v25 = vshll.u32 %v8245_v48, 16  ;;  %v2150_v20 = vrot.slane %v2148_v60, 4  ;;  %v2161_v50 = vshrl.u32 %v8245_v48, 16 }
  0x77   : > { %v1489_v21 = vor.u32 %v1488_v6, %v1484_v62  ;;  %v2153_v14 = vrot.slane %v2151_v55, 5  ;;  %v2146_v34 = vsel %vm7673_vm4, %v2141_v61, %v2145_v13  ;;  %v2167_v40 = vshll.u32 %v8253_v49, 16  ;;  %v8296_v6 = vld [vmem:[%s7587_s26 + $0x3c] sm:$0xf] }
  0x78   : > { %v1485_v56 = vsel %vm7673_vm4, %v1480_v39, %v1484_v62  ;;  %v2159_v38 = vrot.slane %v2157_v25, 5  ;;  %v6204_v59 = vcombine.low %v2136_v29, %v2146_v34  ;;  %v2163_v36 = vrot.slane %v2161_v50, 4  ;;  %v8302_v39 = vld [vmem:[%s7587_s26 + $0x40] sm:$0xf] }
  0x79   : > { %v1490_v2 = vrot.slane %v1489_v21, 4  ;;  %v2154_v41 = vor.u32 %v2153_v14, %v2150_v20  ;;  %v1499_v26 = vrot.slane %v1497_v9, 4  ;;  %7126 = vmatmul.mubr.msk.bf16.gmra.mxu0 %vm598_vm1, %v8247_v18  ;;  %v2169_v44 = vrot.slane %v2167_v40, 5  ;;  %v8310_v20 = vld [vmem:[%s7587_s26 + $0x44] sm:$0x1] }
  0x7a   : > { %v10511_v17 = vshll.u32 %v7928_v5, 16  ;;  %v1506_v28 = vshll.u32 %v7937_v1, 16  ;;  %7171 = vmatprep.mubr.msk.bf16.mxu1 %vm598_vm1, %v6204_v59  ;;  %v2164_v24 = vor.u32 %v2163_v36, %v2159_v38  ;;  %v1512_v33 = vrot.slane %v1510_v51, 4 }
  0x7b   : > { %v1495_v37 = vsel %vm7673_vm4, %v1490_v2, %v1494_v3  ;;  %v2155_v27 = vrot.slane %v2154_v41, 4  ;;  %v1516_v5 = vshll.u32 %v8167_v32, 16  ;;  %v2172_v8 = vshrl.u32 %v8267_v58, 16 }
  0x7c   : > { %v1502_v42 = vrot.slane %v10511_v17, 5  ;;  %v8280_v9 = vcombine.low %v1485_v56, %v1495_v37  ;;  %v1508_v22 = vrot.slane %v1506_v28, 5  ;;  %v2165_v7 = vrot.slane %v2164_v24, 4  ;;  %v8326_v28 = vld [vmem:[%s7587_s26 + $0x4c] sm:$0xf] }
  0x7d   : > { %v2160_v13 = vsel %vm7673_vm4, %v2155_v27, %v2159_v38  ;;  %v2175_v1 = vshll.u32 %v8267_v58, 16  ;;  %v2181_v51 = vshll.u32 %v8277_v43, 16  ;;  %v1518_v32 = vrot.slane %v1516_v5, 5 }
  0x7e   : > { %v1503_v10 = vor.u32 %v1502_v42, %v1499_v26  ;;  %7129 = vmatprep.mubr.msk.bf16.mxu0 %vm598_vm1, %v8280_v9  ;;  %v1513_v52 = vor.u32 %v1512_v33, %v1508_v22  ;;  %v2174_v57 = vrot.slane %v2172_v8, 4  ;;  %v2170_v30 = vsel %vm7673_vm4, %v2165_v7, %v2169_v44  ;;  %v8321_v26 = vld [vmem:[%s7587_s26 + $0x48] sm:$0xf] }
  0x7f   : > { %v2177_v62 = vrot.slane %v2175_v1, 5  ;;  %v2183_v4 = vrot.slane %v2181_v51, 5  ;;  %v2185_v29 = vshrl.u32 %v8277_v43, 16  ;;  %v6205_v60 = vcombine.low %v2160_v13, %v2170_v30  ;;  %v8345_v1 = vld [vmem:[%s7587_s26 + $0x50] sm:$0x1] }
  0x80   : > { %v1504_v46 = vrot.slane %v1503_v10, 4  ;;  %v1514_v61 = vrot.slane %v1513_v52, 4  ;;  %v2191_v21 = vshll.u32 %v8291_v53, 16  ;;  %v6187_v56 = vcombine.low %v8186_v35, %v8212_v31 }
  0x81   : > { %v2178_v3 = vor.u32 %v2177_v62, %v2174_v57  ;;  %v2187_v25 = vrot.slane %v2185_v29, 4  ;;  %v2196_v14 = vshrl.u32 %v8296_v6, 16  ;;  %7172 = vmatmul.mubr.msk.bf16.vlgmr.msra.gmra.mxu1 %vm598_vm1, %v6205_v60  ;;  %v2199_v2 = vshll.u32 %v8296_v6, 16 }
  0x82   : > { %v1509_v55 = vsel %vm7673_vm4, %v1504_v46, %v1508_v22  ;;  %v1519_v50 = vsel %vm7673_vm4, %v1514_v61, %v1518_v32  ;;  %v2193_v34 = vrot.slane %v2191_v21, 5  ;;  %v2205_v38 = vshll.u32 %v8302_v39, 16  ;;  %v8339_v22 = vld [vmem:[%s10461_s1] sm:$0xf]  ;;  %v8360_v61 = vld [vmem:[%s7587_s26 + $0x58] sm:$0xf] }
  0x83   : > { %v8318_v40 = vcombine.low %v1509_v55, %v1519_v50  ;;  %v2179_v59 = vrot.slane %v2178_v3, 4  ;;  %v2188_v41 = vor.u32 %v2187_v25, %v2183_v4  ;;  %v2198_v36 = vrot.slane %v2196_v14, 4 }
  0x84   : > { %v2201_v37 = vrot.slane %v2199_v2, 5  ;;  %v2207_v44 = vrot.slane %v2205_v38, 5  ;;  %v2209_v17 = vshrl.u32 %v8302_v39, 16  ;;  %v2215_v42 = vshll.u32 %v8310_v20, 16 }
  0x85   : > { %7130 = vmatmul.mubr.msk.bf16.gmra.mxu0 %vm598_vm1, %v8318_v40  ;;  %v2184_v27 = vsel %vm7673_vm4, %v2179_v59, %v2183_v4  ;;  %v2189_v24 = vrot.slane %v2188_v41, 4  ;;  %v6188_v33 = vcombine.low %v8236_v45, %v8245_v48  ;;  %v2596_v10 = vsel %vm623_vm0, %v8178_v11, 0 }
  0x86   : > { %7153 = vmatprep.mubr.msk.bf16.mxu0 %vm598_vm1, %v6187_v56  ;;  %v2202_v5 = vor.u32 %v2201_v37, %v2198_v36  ;;  %v2211_v8 = vrot.slane %v2209_v17, 4  ;;  %v2217_v13 = vrot.slane %v2215_v42, 5  ;;  %v2713_v7 = vsel %vm623_vm0, %v8072_v12, 0  ;;  %v8354_v12 = vld [vmem:[%s7587_s26 + $0x54] sm:$0xf] }
  0x87   : > { %v2194_v11 = vsel %vm7673_vm4, %v2189_v24, %v2193_v34  ;;  %7206 = vmatpush3.bf16.msra.mxu1 %v2713_v7  ;;  %v2220_v51 = vshrl.u32 %v8321_v26, 16  ;;  %v2223_v46 = vshll.u32 %v8321_v26, 16  ;;  %v2229_v52 = vshll.u32 %v8326_v28, 16  ;;  %v8368_v34 = vld [vmem:[%s7587_s26 + $0x5c] sm:$0x1] }
  0x88   : > { %v6206_v32 = vcombine.low %v2184_v27, %v2194_v11  ;;  %v2203_v57 = vrot.slane %v2202_v5, 4  ;;  %v2212_v30 = vor.u32 %v2211_v8, %v2207_v44  ;;  %v2233_v62 = vshrl.u32 %v8326_v28, 16  ;;  %7414 = vmatprep.subr.msk.bf16.mxu1 %vm623_vm0, %v8339_v22  ;;  %v8382_v17 = vld [vmem:[%s10461_s1 + $0x4] sm:$0xf] }
  0x89   : > { %v2222_v4 = vrot.slane %v2220_v51, 4  ;;  %v2225_v29 = vrot.slane %v2223_v46, 5  ;;  %v2231_v60 = vrot.slane %v2229_v52, 5  ;;  %v2239_v55 = vshll.u32 %v8345_v1, 16  ;;  %v8388_v51 = vld [vmem:[%s7587_s26 + $0x64] sm:$0xf] }
  0x8a   : > { %7175 = vmatprep.mubr.msk.bf16.mxu1 %vm598_vm1, %v6206_v32  ;;  %v2208_v21 = vsel %vm7673_vm4, %v2203_v57, %v2207_v44  ;;  %v2213_v3 = vrot.slane %v2212_v30, 4  ;;  %v2235_v25 = vrot.slane %v2233_v62, 4  ;;  %v6189_v56 = vcombine.low %v8267_v58, %v8277_v43  ;;  %v8377_v44 = vld [vmem:[%s7587_s26 + $0x60] sm:$0xf] }
  0x8b   : > { %v2226_v14 = vor.u32 %v2225_v29, %v2222_v4  ;;  %v2241_v50 = vrot.slane %v2239_v55, 5  ;;  %v2244_v2 = vshrl.u32 %v8354_v12, 16  ;;  %v2247_v38 = vshll.u32 %v8354_v12, 16  ;;  %v8405_v29 = vld [vmem:[%s7587_s26 + $0x6c] sm:$0xf] }
  0x8c   : > { %v2218_v59 = vsel %vm7673_vm4, %v2213_v3, %v2217_v13  ;;  %v2236_v41 = vor.u32 %v2235_v25, %v2231_v60  ;;  %v2253_v36 = vshll.u32 %v8360_v61, 16  ;;  %v2257_v37 = vshrl.u32 %v8360_v61, 16 }
  0x8d   : > { %v6207_v42 = vcombine.low %v2208_v21, %v2218_v59  ;;  %7154 = vmatmul.mubr.msk.bf16.vlgmr.msra.gmra.mxu0 %vm598_vm1, %v6188_v33  ;;  %v2227_v27 = vrot.slane %v2226_v14, 4  ;;  %v2246_v24 = vrot.slane %v2244_v2, 4  ;;  %v2249_v5 = vrot.slane %v2247_v38, 5  ;;  %v8411_v38 = vld [vmem:[%s7587_s26 + $0x70] sm:$0xf] }
  0x8e   : > { %7188 = vmatpush3.bf16.msra.mxu0 %v2596_v10  ;;  %v2237_v8 = vrot.slane %v2236_v41, 4  ;;  %7157 = vmatprep.mubr.msk.bf16.mxu0 %vm598_vm1, %v6189_v56  ;;  %v2255_v13 = vrot.slane %v2253_v36, 5  ;;  %v2259_v7 = vrot.slane %v2257_v37, 4  ;;  %v2263_v11 = vshll.u32 %v8368_v34, 16  ;;  %v8396_v10 = vld [vmem:[%s7587_s26 + $0x68] sm:$0x1] }
  0x8f   : > { %7176 = vmatmul.mubr.msk.bf16.gmra.mxu1 %vm598_vm1, %v6207_v42  ;;  %v2232_v46 = vsel %vm7673_vm4, %v2227_v27, %v2231_v60  ;;  %v2250_v33 = vor.u32 %v2249_v5, %v2246_v24  ;;  %v6190_v52 = vcombine.low %v8296_v6, %v8302_v39  ;;  %v2268_v32 = vshrl.u32 %v8377_v44, 16  ;;  %7413 = vmatprep.subr.msk.bf16.mxu0 %vm623_vm0, %v8382_v17  ;;  %v8419_v36 = vld [vmem:[%s7587_s26 + $0x74] sm:$0x1] }
  0x90   : > { %v2242_v57 = vsel %vm7673_vm4, %v2237_v8, %v2241_v50  ;;  %v2260_v30 = vor.u32 %v2259_v7, %v2255_v13  ;;  %v2265_v62 = vrot.slane %v2263_v11, 5  ;;  %v2271_v4 = vshll.u32 %v8377_v44, 16 }
  0x91   : > { %v6208_v60 = vcombine.low %v2232_v46, %v2242_v57  ;;  %v2251_v55 = vrot.slane %v2250_v33, 4  ;;  %v2270_v21 = vrot.slane %v2268_v32, 4  ;;  %v2277_v3 = vshll.u32 %v8388_v51, 16 }
  0x92   : > { %v2261_v25 = vrot.slane %v2260_v30, 4  ;;  %v2273_v56 = vrot.slane %v2271_v4, 5  ;;  %v2281_v14 = vshrl.u32 %v8388_v51, 16  ;;  %v2287_v2 = vshll.u32 %v8396_v10, 16 }
  0x93   : > { %7179 = vmatprep.mubr.msk.bf16.mxu1 %vm598_vm1, %v6208_v60  ;;  %v2256_v50 = vsel %vm7673_vm4, %v2251_v55, %v2255_v13  ;;  %v2279_v59 = vrot.slane %v2277_v3, 5  ;;  %v6191_v41 = vcombine.low %v8321_v26, %v8326_v28  ;;  %v2292_v37 = vshrl.u32 %v8405_v29, 16 }
  0x94   : > { %v2266_v42 = vsel %vm7673_vm4, %v2261_v25, %v2265_v62  ;;  %v2274_v27 = vor.u32 %v2273_v56, %v2270_v21  ;;  %v2283_v24 = vrot.slane %v2281_v14, 4  ;;  %v2289_v5 = vrot.slane %v2287_v2, 5 }
  0x95   : > { %v6209_v8 = vcombine.low %v2256_v50, %v2266_v42  ;;  %7158 = vmatmul.mubr.msk.bf16.gmra.mxu0 %vm598_vm1, %v6190_v52  ;;  %v2294_v7 = vrot.slane %v2292_v37, 4  ;;  %v2295_v13 = vshll.u32 %v8405_v29, 16  ;;  %v2301_v11 = vshll.u32 %v8411_v38, 16 }
  0x96   : > { %v2275_v46 = vrot.slane %v2274_v27, 4  ;;  %v2284_v33 = vor.u32 %v2283_v24, %v2279_v59  ;;  %7161 = vmatprep.mubr.msk.bf16.mxu0 %vm598_vm1, %v6191_v41  ;;  %v2305_v32 = vshrl.u32 %v8411_v38, 16  ;;  %v2311_v57 = vshll.u32 %v8419_v36, 16 }
  0x97   : > { %7180 = vmatmul.mubr.msk.bf16.gmra.mxu1 %vm598_vm1, %v6209_v8  ;;  %v2297_v30 = vrot.slane %v2295_v13, 5  ;;  %v2303_v62 = vrot.slane %v2301_v11, 5  ;;  %v6192_v52 = vcombine.low %v8354_v12, %v8360_v61  ;;  %v6193_v21 = vcombine.low %v8377_v44, %v8388_v51 }
  0x98   : > { %v2280_v4 = vsel %vm7673_vm4, %v2275_v46, %v2279_v59  ;;  %v2285_v60 = vrot.slane %v2284_v33, 4  ;;  %v2307_v55 = vrot.slane %v2305_v32, 4  ;;  %v2313_v25 = vrot.slane %v2311_v57, 5 }
  0x99   : > { %v2298_v3 = vor.u32 %v2297_v30, %v2294_v7  ;;  %v6220_v56 = vrot.slane %v8186_v35, 9  ;;  %v2491_v14 = vrot.slane %v8212_v31, 5  ;;  %v6194_v41 = vcombine.low %v8405_v29, %v8411_v38 }
  0x9a   : > { %v2290_v2 = vsel %vm7673_vm4, %v2285_v60, %v2289_v5  ;;  %v2308_v50 = vor.u32 %v2307_v55, %v2303_v62  ;;  %v2494_v59 = vrot.slane %v8215_v23, 5  ;;  %v6221_v35 = vrot.slane %v8236_v45, 9  ;;  %v8494_v60 = vld [vmem:[%s7587_s26 + $0x60] sm:$0xf] }
  0x9b   : > { %v6210_v37 = vcombine.low %v2280_v4, %v2290_v2  ;;  %v2299_v42 = vrot.slane %v2298_v3, 4  ;;  %v2492_v27 = vsel %vm7831_vm7, %v6220_v56, %v2491_v14  ;;  %v2493_v24 = vrot.slane %v2491_v14, 4  ;;  %v8506_v3 = vld [vmem:[%s7587_s26 + $0x64] sm:$0xf] }
  0x9c   : > { %v2309_v8 = vrot.slane %v2308_v50, 4  ;;  %v2498_v31 = vrot.slane %v8245_v48, 5  ;;  %v2501_v7 = vrot.slane %v8253_v49, 5  ;;  %v8457_v13 = vsel %vm623_vm0, %v8382_v17, 0 }
  0x9d   : > { %7183 = vmatprep.mubr.msk.bf16.mxu1 %vm598_vm1, %v6210_v37  ;;  %v2304_v5 = vsel %vm7673_vm4, %v2299_v42, %v2303_v62  ;;  %7162 = vmatmul.mubr.msk.bf16.gmra.mxu0 %vm598_vm1, %v6192_v52  ;;  %v2495_v23 = vsel %vm7831_vm7, %v2493_v24, %v2494_v59  ;;  %v6222_v45 = vrot.slane %v8267_v58, 9  ;;  %v3524_v46 = vsel %vm623_vm0, %v8339_v22, 0  ;;  %v8528_v59 = vld [vmem:[%s7587_s26 + $0x6c] sm:$0xf] }
  0x9e   : > { %v2314_v48 = vsel %vm7673_vm4, %v2309_v8, %v2313_v25  ;;  %7165 = vmatprep.mubr.msk.bf16.mxu0 %vm598_vm1, %v6193_v21  ;;  %v6229_v49 = vcombine.low %v2492_v27, %v2495_v23  ;;  %v2500_v11 = vrot.slane %v2498_v31, 4  ;;  %v2505_v32 = vrot.slane %v8277_v43, 5  ;;  %v8538_v27 = vld [vmem:[%s7587_s26 + $0x70] sm:$0xf] }
  0x9f   : > { %v6211_v33 = vcombine.low %v2304_v5, %v2314_v48  ;;  %v2508_v57 = vrot.slane %v8291_v53, 5  ;;  %v6223_v17 = vrot.slane %v8296_v6, 9  ;;  %v8470_v58 = vsel %vm7831_vm7, %v6221_v35, %v2498_v31 }
  0xa0   : > { %v2512_v30 = vrot.slane %v8302_v39, 5  ;;  %v2515_v62 = vrot.slane %v8310_v20, 5  ;;  %v6224_v52 = vrot.slane %v8321_v26, 9  ;;  %v8478_v43 = vsel %vm7831_vm7, %v2500_v11, %v2501_v7  ;;  %v8548_v7 = vld [vmem:[%s7587_s26 + $0x78] sm:$0xf] }
  0xa1   : > { %7184 = vmatmul.mubr.msk.bf16.gmra.mxu1 %vm598_vm1, %v6211_v33  ;;  %v8482_v53 = vsel %vm7831_vm7, %v6222_v45, %v2505_v32  ;;  %v2507_v6 = vrot.slane %v2505_v32, 4  ;;  %v2519_v22 = vrot.slane %v8326_v28, 5  ;;  %v2522_v26 = vrot.slane %v8345_v1, 5 }
  0xa2   : > { %7207 = vmatprep.mubr.msk.bf16.mxu1 %vm598_vm1, %v8095_v15  ;;  %v8489_v39 = vsel %vm7831_vm7, %v6223_v17, %v2512_v30  ;;  %v2514_v20 = vrot.slane %v2512_v30, 4  ;;  %v6225_v4 = vrot.slane %v8354_v12, 9  ;;  %v2526_v21 = vrot.slane %v8360_v61, 5 }
  0xa3   : > { %v8498_v55 = vsel %vm7831_vm7, %v2507_v6, %v2508_v57  ;;  %v8502_v28 = vsel %vm7831_vm7, %v6224_v52, %v2519_v22  ;;  %v2521_v15 = vrot.slane %v2519_v22, 4  ;;  %v6230_v1 = vcombine.low %v8470_v58, %v8478_v43  ;;  %v8578_v58 = vld [vmem:[%s7587_s26 + $0x68] sm:$0x1] }
  0xa4   : > { %v6231_v12 = vcombine.low %v8482_v53, %v8498_v55  ;;  %v8514_v25 = vsel %vm7831_vm7, %v2514_v20, %v2515_v62  ;;  %v2529_v56 = vrot.slane %v8368_v34, 5  ;;  %v8524_v14 = vsel %vm7831_vm7, %v6225_v4, %v2526_v21  ;;  %v8587_v62 = vld [vmem:[%s7587_s26 + $0x84] sm:$0xf]  ;;  %v8597_v53 = vld [vmem:[%s7587_s26 + $0x88] sm:$0xf] }
  0xa5   : > { %7166 = vmatmul.mubr.msk.bf16.gmra.mxu0 %vm598_vm1, %v6194_v41  ;;  %v8520_v61 = vsel %vm7831_vm7, %v2521_v15, %v2522_v26  ;;  %v2528_v2 = vrot.slane %v2526_v21, 4  ;;  %v3119_v50 = vshrl.u32 %v8494_v60, 16  ;;  %v6232_v34 = vcombine.low %v8489_v39, %v8514_v25  ;;  %v6350_v6 = vld [vmem:[%s10461_s1 + $0x8] sm:$0xf] }
  0xa6   : > { %7189 = vmatprep.mubr.msk.bf16.mxu0 %vm598_vm1, %v6229_v49  ;;  %v6233_v41 = vcombine.low %v8502_v28, %v8520_v61  ;;  %v3122_v37 = vshll.u32 %v8494_v60, 16  ;;  %v3132_v42 = vshrl.u32 %v8506_v3, 16  ;;  %v6226_v8 = vrot.slane %v8377_v44, 9  ;;  %v8557_v49 = vld [vmem:[%s7587_s26 + $0x7c] sm:$0xf] }
  0xa7   : > { %v8542_v24 = vsel %vm7831_vm7, %v2528_v2, %v2529_v56  ;;  %v2533_v35 = vrot.slane %v8388_v51, 5  ;;  %v2536_v31 = vrot.slane %v8396_v10, 5  ;;  %v6326_v23 = vcombine.low %v8494_v60, %v8506_v3  ;;  %v6391_v44 = vld [vmem:[%s10461_s1 + $0xc] sm:$0xf]  ;;  %v8616_v56 = vld [vmem:[%s7587_s26 + $0x74] sm:$0x1] }
  0xa8   : > { %v6234_v5 = vcombine.low %v8524_v14, %v8542_v24  ;;  %v3143_v45 = vshrl.u32 %v8528_v59, 16  ;;  %v3146_v48 = vshll.u32 %v8528_v59, 16  ;;  %v3156_v11 = vshrl.u32 %v8538_v27, 16 }
  0xa9   : > { %7208 = vmatmul.mubr.msk.bf16.vlgmr.msra.gmra.mxu1 %vm598_vm1, %v8121_v47  ;;  %v8566_v51 = vsel %vm7831_vm7, %v6226_v8, %v2533_v35  ;;  %v2535_v10 = vrot.slane %v2533_v35, 4  ;;  %v6227_v33 = vrot.slane %v8405_v29, 9  ;;  %v6327_v32 = vcombine.low %v8528_v59, %v8538_v27 }
  0xaa   : > { %7211 = vmatprep.mubr.msk.bf16.mxu1 %vm598_vm1, %v8155_v0  ;;  %7242 = vmatpush3.bf16.msra.mxu1 %v3524_v46  ;;  %v2540_v47 = vrot.slane %v8411_v38, 5  ;;  %v2543_v57 = vrot.slane %v8419_v36, 5  ;;  %v3167_v17 = vshrl.u32 %v8548_v7, 16  ;;  %v3170_v29 = vshll.u32 %v8548_v7, 16 }
  0xab   : > { %v8582_v30 = vsel %vm7831_vm7, %v2535_v10, %v2536_v31  ;;  %v3180_v0 = vshrl.u32 %v8557_v49, 16  ;;  %v3121_v46 = vrot.slane %v3119_v50, 4  ;;  %7416 = vmatprep.subr.msk.bf16.mxu1 %vm623_vm0, %v6391_v44  ;;  %v6328_v52 = vcombine.low %v8548_v7, %v8557_v49  ;;  %v8624_v31 = vld [vmem:[%s7587_s26 + $0x90] sm:$0xf] }
  0xac   : > { %v8592_v38 = vsel %vm7831_vm7, %v6227_v33, %v2540_v47  ;;  %v2542_v36 = vrot.slane %v2540_v47, 4  ;;  %v3124_v43 = vrot.slane %v3122_v37, 5  ;;  %v6235_v22 = vcombine.low %v8566_v51, %v8582_v30 }
  0xad   : > { %7190 = vmatmul.mubr.msk.bf16.vlgmr.msra.gmra.mxu0 %vm598_vm1, %v6230_v1  ;;  %v3128_v20 = vshll.u32 %v8506_v3, 16  ;;  %v3134_v26 = vrot.slane %v3132_v42, 4  ;;  %v3138_v4 = vshll.u32 %v8578_v58, 16  ;;  %v3191_v21 = vshrl.u32 %v8587_v62, 16 }
  0xae   : > { %7224 = vmatpush3.bf16.msra.mxu0 %v8457_v13  ;;  %7193 = vmatprep.mubr.msk.bf16.mxu0 %vm598_vm1, %v6231_v12  ;;  %v8611_v55 = vsel %vm7831_vm7, %v2542_v36, %v2543_v57  ;;  %v3125_v15 = vor.u32 %v3124_v43, %v3121_v46  ;;  %v3194_v1 = vshll.u32 %v8587_v62, 16  ;;  %v3204_v37 = vshrl.u32 %v8597_v53, 16  ;;  %v8632_v46 = vld [vmem:[%s7587_s26 + $0x94] sm:$0xf] }
  0xaf   : > { %v6236_v2 = vcombine.low %v8592_v38, %v8611_v55  ;;  %v3130_v50 = vrot.slane %v3128_v20, 5  ;;  %v3140_v13 = vrot.slane %v3138_v4, 5  ;;  %7415 = vmatprep.subr.msk.bf16.mxu0 %vm623_vm0, %v6350_v6  ;;  %v3145_v42 = vrot.slane %v3143_v45, 4  ;;  %v8646_v4 = vld [vmem:[%s7587_s26 + $0x80] sm:$0x1] }
  0xb0   : > { %v3126_v12 = vrot.slane %v3125_v15, 4  ;;  %v3148_v8 = vrot.slane %v3146_v48, 5  ;;  %v3152_v35 = vshll.u32 %v8538_v27, 16  ;;  %v3158_v47 = vrot.slane %v3156_v11, 4 }
  0xb1   : > { %7212 = vmatmul.mubr.msk.bf16.gmra.mxu1 %vm598_vm1, %v8190_v63  ;;  %v3135_v10 = vor.u32 %v3134_v26, %v3130_v50  ;;  %v3162_v57 = vshll.u32 %v8616_v56, 16  ;;  %v8639_v63 = vsel %vm623_vm0, %v6350_v6, 0  ;;  %v8642_v11 = vsel %vm623_vm0, %v6391_v44, 0 }
  0xb2   : > { %7215 = vmatprep.mubr.msk.bf16.mxu1 %vm598_vm1, %v8220_v16  ;;  %v3131_v45 = vsel %vm7673_vm4, %v3126_v12, %v3130_v50  ;;  %v3149_v48 = vor.u32 %v3148_v8, %v3145_v42  ;;  %v3154_v36 = vrot.slane %v3152_v35, 5  ;;  %v3215_v26 = vshrl.u32 %v8624_v31, 16  ;;  %v8651_v12 = vld [vmem:[%s7587_s26 + $0x9c] sm:$0xf]  ;;  %v8661_v35 = vld [vmem:[%s7587_s26 + $0xa0] sm:$0xf] }
  0xb3   : > { %v3136_v43 = vrot.slane %v3135_v10, 4  ;;  %v3164_v20 = vrot.slane %v3162_v57, 5  ;;  %v3218_v33 = vshll.u32 %v8624_v31, 16  ;;  %v3228_v50 = vshrl.u32 %v8632_v46, 16 }
  0xb4   : > { %v3150_v15 = vrot.slane %v3149_v48, 4  ;;  %v3159_v16 = vor.u32 %v3158_v47, %v3154_v36  ;;  %v3169_v6 = vrot.slane %v3167_v17, 4  ;;  %v3172_v42 = vrot.slane %v3170_v29, 5 }
  0xb5   : > { %7194 = vmatmul.mubr.msk.bf16.gmra.mxu0 %vm598_vm1, %v6232_v34  ;;  %v3141_v44 = vsel %vm7673_vm4, %v3136_v43, %v3140_v13  ;;  %v3176_v8 = vshll.u32 %v8557_v49, 16  ;;  %v6330_v25 = vcombine.low %v8624_v31, %v8632_v46  ;;  %v3182_v34 = vrot.slane %v3180_v0, 4 }
  0xb6   : > { %7197 = vmatprep.mubr.msk.bf16.mxu0 %vm598_vm1, %v6233_v41  ;;  %v8667_v10 = vcombine.low %v3131_v45, %v3141_v44  ;;  %v3160_v39 = vrot.slane %v3159_v16, 4  ;;  %v3155_v17 = vsel %vm7673_vm4, %v3150_v15, %v3154_v36  ;;  %v3173_v29 = vor.u32 %v3172_v42, %v3169_v6  ;;  %v8682_v45 = vld [vmem:[%s7587_s26 + $0x8c] sm:$0x1] }
  0xb7   : > { %v3178_v13 = vrot.slane %v3176_v8, 5  ;;  %v3186_v47 = vshll.u32 %v8646_v4, 16  ;;  %v3239_v61 = vshrl.u32 %v8651_v12, 16  ;;  %v3242_v41 = vshll.u32 %v8651_v12, 16  ;;  %v8695_v42 = vld [vmem:[%s7587_s26 + $0xac] sm:$0xf] }
  0xb8   : > { %v3165_v28 = vsel %vm7673_vm4, %v3160_v39, %v3164_v20  ;;  %v3252_v57 = vshrl.u32 %v8661_v35, 16  ;;  %v3174_v0 = vrot.slane %v3173_v29, 4  ;;  %v8689_v20 = vld [vmem:[%s7587_s26 + $0xa8] sm:$0xf]  ;;  %v3193_v15 = vrot.slane %v3191_v21, 4 }
  0xb9   : > { %7216 = vmatmul.mubr.msk.bf16.gmra.mxu1 %vm598_vm1, %v8247_v18  ;;  %v3183_v48 = vor.u32 %v3182_v34, %v3178_v13  ;;  %v3188_v36 = vrot.slane %v3186_v47, 5  ;;  %v3196_v16 = vrot.slane %v3194_v1, 5  ;;  %v3200_v44 = vshll.u32 %v8597_v53, 16  ;;  %v8705_v1 = vld [vmem:[%s7587_s26 + $0x98] sm:$0x1] }
  0xba   : > { %7219 = vmatprep.mubr.msk.bf16.mxu1 %vm598_vm1, %v8280_v9  ;;  %v3206_v6 = vrot.slane %v3204_v37, 4  ;;  %v8697_v18 = vcombine.low %v3155_v17, %v3165_v28  ;;  %v3179_v8 = vsel %vm7673_vm4, %v3174_v0, %v3178_v13  ;;  %v3210_v34 = vshll.u32 %v8682_v45, 16  ;;  %v8715_v0 = vld [vmem:[%s7587_s26 + $0xb4] sm:$0xf] }
  0xbb   : > { %v3184_v39 = vrot.slane %v3183_v48, 4  ;;  %v3197_v29 = vor.u32 %v3196_v16, %v3193_v15  ;;  %v3202_v47 = vrot.slane %v3200_v44, 5  ;;  %v3263_v9 = vshrl.u32 %v8689_v20, 16 }
  0xbc   : > { %v3266_v21 = vshll.u32 %v8689_v20, 16  ;;  %v3212_v17 = vrot.slane %v3210_v34, 5  ;;  %v3276_v13 = vshrl.u32 %v8695_v42, 16  ;;  %v3217_v28 = vrot.slane %v3215_v26, 4 }
  0xbd   : > { %7198 = vmatmul.mubr.msk.bf16.gmra.mxu0 %vm598_vm1, %v6234_v5  ;;  %v3189_v37 = vsel %vm7673_vm4, %v3184_v39, %v3188_v36  ;;  %v3198_v48 = vrot.slane %v3197_v29, 4  ;;  %v3207_v15 = vor.u32 %v3206_v6, %v3202_v47  ;;  %v3220_v24 = vrot.slane %v3218_v33, 5  ;;  %v8724_v5 = vld [vmem:[%s7587_s26 + $0xb8] sm:$0xf]  ;;  %v8734_v39 = vld [vmem:[%s7587_s26 + $0xa4] sm:$0x1] }
  0xbe   : > { %7201 = vmatprep.mubr.msk.bf16.mxu0 %vm598_vm1, %v6235_v22  ;;  %v8726_v36 = vcombine.low %v3179_v8, %v3189_v37  ;;  %v3224_v26 = vshll.u32 %v8632_v46, 16  ;;  %v3230_v16 = vrot.slane %v3228_v50, 4  ;;  %v3234_v44 = vshll.u32 %v8705_v1, 16  ;;  %v8741_v29 = vld [vmem:[%s7587_s26 + $0x6c] sm:$0xf] }
  0xbf   : > { %v3203_v51 = vsel %vm7673_vm4, %v3198_v48, %v3202_v47  ;;  %v3208_v30 = vrot.slane %v3207_v15, 4  ;;  %v3221_v22 = vor.u32 %v3220_v24, %v3217_v28  ;;  %v3287_v6 = vshrl.u32 %v8715_v0, 16  ;;  %v8750_v48 = vld [vmem:[%s7587_s26 + $0x70] sm:$0xf] }
  0xc0   : > { %v3226_v33 = vrot.slane %v3224_v26, 5  ;;  %v3236_v8 = vrot.slane %v3234_v44, 5  ;;  %v3290_v34 = vshll.u32 %v8715_v0, 16  ;;  %v3300_v50 = vshrl.u32 %v8724_v5, 16 }
  0xc1   : > { %7220 = vmatmul.mubr.msk.bf16.gmra.mxu1 %vm598_vm1, %v8318_v40  ;;  %v3213_v47 = vsel %vm7673_vm4, %v3208_v30, %v3212_v17  ;;  %v3222_v37 = vrot.slane %v3221_v22, 4  ;;  %v3241_v28 = vrot.slane %v3239_v61, 4  ;;  %v3244_v40 = vrot.slane %v3242_v41, 5 }
  0xc2   : > { %7243 = vmatprep.mubr.msk.bf16.mxu1 %vm598_vm1, %v6326_v23  ;;  %v3231_v15 = vor.u32 %v3230_v16, %v3226_v33  ;;  %v3248_v26 = vshll.u32 %v8661_v35, 16  ;;  %v3254_v44 = vrot.slane %v3252_v57, 4  ;;  %v8755_v14 = vcombine.low %v3203_v51, %v3213_v47  ;;  %v8768_v51 = vld [vmem:[%s7587_s26 + $0xb0] sm:$0x1] }
  0xc3   : > { %v3227_v23 = vsel %vm7673_vm4, %v3222_v37, %v3226_v33  ;;  %v3245_v43 = vor.u32 %v3244_v40, %v3241_v28  ;;  %v3258_v17 = vshll.u32 %v8734_v39, 16  ;;  %v3265_v38 = vrot.slane %v3263_v9, 4  ;;  %v8880_v40 = vld [vmem:[%s7587_s26 + $0x94] sm:$0xf] }
  0xc4   : > { %v3232_v61 = vrot.slane %v3231_v15, 4  ;;  %v3250_v41 = vrot.slane %v3248_v26, 5  ;;  %v3268_v47 = vrot.slane %v3266_v21, 5  ;;  %v3272_v37 = vshll.u32 %v8695_v42, 16 }
  0xc5   : > { %7202 = vmatmul.mubr.msk.bf16.gmra.mxu0 %vm598_vm1, %v6236_v2  ;;  %v3246_v30 = vrot.slane %v3245_v43, 4  ;;  %v3260_v22 = vrot.slane %v3258_v17, 5  ;;  %v3278_v15 = vrot.slane %v3276_v13, 4  ;;  %v8783_v43 = vld [vmem:[%s10461_s1 + $0x14] sm:$0xf]  ;;  %v3636_v33 = vrot.slane %v8578_v58, 5 }
  0xc6   : > { %7225 = vmatprep.mubr.msk.bf16.mxu0 %vm598_vm1, %v8667_v10  ;;  %v3237_v55 = vsel %vm7673_vm4, %v3232_v61, %v3236_v8  ;;  %v3255_v2 = vor.u32 %v3254_v44, %v3250_v41  ;;  %v3282_v10 = vshll.u32 %v8768_v51, 16  ;;  %v3269_v8 = vor.u32 %v3268_v47, %v3265_v38  ;;  %v8792_v44 = vld [vmem:[%s7587_s26 + $0x78] sm:$0xf]  ;;  %v8795_v13 = vld [vmem:[%s7587_s26 + $0x7c] sm:$0xf] }
  0xc7   : > { %v8776_v28 = vcombine.low %v3227_v23, %v3237_v55  ;;  %v3251_v9 = vsel %vm7673_vm4, %v3246_v30, %v3250_v41  ;;  %v3274_v26 = vrot.slane %v3272_v37, 5  ;;  %v4086_v17 = vshll.u32 %v8792_v44, 16  ;;  %v8817_v37 = vld [vmem:[%s10461_s1 + $0x10] sm:$0xf]  ;;  %v8995_v58 = vld [vmem:[%s7587_s26 + $0xb8] sm:$0xf] }
  0xc8   : > { %v3256_v21 = vrot.slane %v3255_v2, 4  ;;  %v3284_v23 = vrot.slane %v3282_v10, 5  ;;  %v4092_v61 = vshll.u32 %v8795_v13, 16  ;;  %v3270_v30 = vrot.slane %v3269_v8, 4  ;;  %10520 = vst [vmem:[#allocation8_spill] sm:$0xff] %v8995_v58 }
  0xc9   : > { %7244 = vmatmul.mubr.msk.bf16.vlgmr.msra.gmra.mxu1 %vm598_vm1, %v6327_v32  ;;  %v4083_v32 = vshrl.u32 %v8792_v44, 16  ;;  %v3279_v38 = vor.u32 %v3278_v15, %v3274_v26  ;;  %v4096_v55 = vshrl.u32 %v8795_v13, 16  ;;  %v4088_v2 = vrot.slane %v4086_v17, 5  ;;  %v8830_v17 = vld [vmem:[%s7587_s26 + $0xbc] sm:$0x1] }
  0xca   : > { %7247 = vmatprep.mubr.msk.bf16.mxu1 %vm598_vm1, %v6328_v52  ;;  %7278 = vmatpush3.bf16.msra.mxu1 %v8642_v11  ;;  %v3261_v41 = vsel %vm7673_vm4, %v3256_v21, %v3260_v22  ;;  %v8812_v47 = vrot.slane %v4092_v61, 5  ;;  %v3275_v15 = vsel %vm7673_vm4, %v3270_v30, %v3274_v26  ;;  %v8846_v30 = vld [vmem:[%s7587_s26 + $0x88] sm:$0xf] }
  0xcb   : > { %7418 = vmatprep.subr.msk.bf16.mxu1 %vm623_vm0, %v8783_v43  ;;  %v4085_v11 = vrot.slane %v4083_v32, 4  ;;  %v8821_v22 = vcombine.low %v3251_v9, %v3261_v41  ;;  %v3280_v10 = vrot.slane %v3279_v38, 4  ;;  %v4098_v21 = vrot.slane %v4096_v55, 4  ;;  %v8843_v41 = vld [vmem:[%s7587_s26 + $0x84] sm:$0xf] }
  0xcc   : > { %v10470_v32 = vrot.slane %v8795_v13, 5  ;;  %v3292_v9 = vrot.slane %v3290_v34, 5  ;;  %v10512_v55 = vcombine.low %v8587_v62, %v8597_v53 }
  0xcd   : > { %7226 = vmatmul.mubr.msk.bf16.vlgmr.msra.gmra.mxu0 %vm598_vm1, %v8697_v18  ;;  %v4089_v8 = vor.u32 %v4088_v2, %v4085_v11  ;;  %v3289_v18 = vrot.slane %v3287_v6, 4  ;;  %v3285_v26 = vsel %vm7673_vm4, %v3280_v10, %v3284_v23  ;;  %v4099_v61 = vor.u32 %v4098_v21, %v8812_v47 }
  0xce   : > { %7260 = vmatpush3.bf16.msra.mxu0 %v8639_v63  ;;  %7229 = vmatprep.mubr.msk.bf16.mxu0 %vm598_vm1, %v8726_v36  ;;  %v3296_v63 = vshll.u32 %v8724_v5, 16  ;;  %v3302_v36 = vrot.slane %v3300_v50, 4  ;;  %v8850_v6 = vcombine.low %v3275_v15, %v3285_v26  ;;  %v8863_v11 = vrot.slane %v10470_v32, 4 }
  0xcf   : > { %7417 = vmatprep.subr.msk.bf16.mxu0 %vm623_vm0, %v8817_v37  ;;  %v8852_v34 = vrot.slane %v4089_v8, 4  ;;  %v3293_v38 = vor.u32 %v3292_v9, %v3289_v18  ;;  %v8859_v50 = vrot.slane %v4099_v61, 4  ;;  %v3306_v15 = vshll.u32 %v8830_v17, 16  ;;  %v8875_v9 = vld [vmem:[%s7587_s26 + $0x90] sm:$0xf] }
  0xd0   : > { %v3298_v2 = vrot.slane %v3296_v63, 5  ;;  %v6342_v63 = vrot.slane %v8494_v60, 9  ;;  %v4131_v8 = vshrl.u32 %v8875_v9, 16  ;;  %v8914_v18 = vld [vmem:[%s7587_s26 + $0x9c] sm:$0xf]  ;;  %v6344_v32 = vrot.slane %v8548_v7, 9 }
  0xd1   : > { %7248 = vmatmul.mubr.msk.bf16.gmra.mxu1 %vm598_vm1, %v10512_v55  ;;  %10513 = vst [vmem:[#allocation3_spill] sm:$0xff] %v8859_v50  ;;  %v3294_v10 = vrot.slane %v3293_v38, 4  ;;  %v3308_v61 = vrot.slane %v3306_v15, 5  ;;  %v3633_v55 = vrot.slane %v8506_v3, 5  ;;  %v4134_v15 = vshll.u32 %v8875_v9, 16 }
  0xd2   : > { %7251 = vmatprep.mubr.msk.bf16.mxu1 %vm598_vm1, %v6330_v25  ;;  %v3303_v26 = vor.u32 %v3302_v36, %v3298_v2  ;;  %v3650_v21 = vrot.slane %v8646_v4, 5  ;;  %v9079_v50 = vld [vmem:[%s7587_s26 + $0x74] sm:$0x1] }
  0xd3   : > { %v3299_v25 = vsel %vm7673_vm4, %v3294_v10, %v3298_v2  ;;  %v8891_v60 = vsel %vm7831_vm7, %v6342_v63, %v3633_v55  ;;  %v3635_v3 = vrot.slane %v3633_v55, 4  ;;  %v8898_v2 = vrot.slane %v4131_v8, 4  ;;  %v8917_v8 = vld [vmem:[%s7587_s26 + $0xa0] sm:$0xf] }
  0xd4   : > { %v3304_v36 = vrot.slane %v3303_v26, 4  ;;  %v4140_v10 = vshll.u32 %v8880_v40, 16  ;;  %v8910_v38 = vrot.slane %v4134_v15, 5  ;;  %v3640_v15 = vrot.slane %v8538_v27, 5 }
  0xd5   : > { %7230 = vmatmul.mubr.msk.bf16.gmra.mxu0 %vm598_vm1, %v8755_v14  ;;  %10514 = vst [vmem:[#allocation4_spill] sm:$0xff] %v8898_v2  ;;  %v4144_v14 = vshrl.u32 %v8880_v40, 16  ;;  %v8908_v55 = vsel %vm7831_vm7, %v3635_v3, %v3636_v33  ;;  %v10517_v33 = vcombine.low %v8651_v12, %v8661_v35  ;;  %v3647_v27 = vrot.slane %v8557_v49, 5 }
  0xd6   : > { %7233 = vmatprep.mubr.msk.bf16.mxu0 %vm598_vm1, %v8776_v28  ;;  %v8902_v26 = vpop.f32.mrf.mxu1  ;;  %v3309_v63 = vsel %vm7673_vm4, %v3304_v36, %v3308_v61  ;;  %10515 = vst [vmem:[#allocation5_spill] sm:$0xff] %v8910_v38  ;;  %v8923_v23 = vrot.slane %v4140_v10, 5  ;;  %v10519_v10 = vcombine.low %v8689_v20, %v8695_v42  ;;  %v8943_v28 = vsel %vm623_vm0, %v8817_v37, 0 }
  0xd7   : > { %v8919_v57 = vcombine.low %v3299_v25, %v3309_v63  ;;  %v8932_v3 = vrot.slane %v4144_v14, 4  ;;  %v6343_v25 = vrot.slane %v8528_v59, 9  ;;  %v3643_v63 = vrot.slane %v8616_v56, 5  ;;  %v8953_v14 = vld [vmem:[%s7587_s26 + $0xa8] sm:$0xf] }
  0xd8   : > { %10516 = vst [vmem:[#allocation6_spill] sm:$0xff] %v8923_v23  ;;  %v8930_v36 = vpop.f32.mrf.mxu1  ;;  %v3642_v61 = vrot.slane %v3640_v15, 4  ;;  %v4179_v52 = vshrl.u32 %v8953_v14, 16  ;;  %v8987_v4 = vsel %vm7831_vm7, %v6344_v32, %v3647_v27  ;;  %v3654_v23 = vrot.slane %v8597_v53, 5 }
  0xd9   : > { %7252 = vmatmul.mubr.msk.bf16.gmra.mxu1 %vm598_vm1, %v10517_v33  ;;  %10518 = vst [vmem:[#allocation7_spill] sm:$0xff] %v8932_v3  ;;  %v8947_v33 = vsel %vm623_vm0, %v8783_v43, 0  ;;  %v8964_v43 = vld [vmem:[%s7587_s26 + $0xac] sm:$0xf]  ;;  %v10526_v53 = vcombine.low %v8741_v29, %v8750_v48 }
  0xda   : > { %7255 = vmatprep.mubr.msk.bf16.mxu1 %vm598_vm1, %v10519_v10  ;;  %v8955_v56 = vpop.f32.mrf.mxu1  ;;  %v8959_v10 = vsel %vm7831_vm7, %v6343_v25, %v3640_v15  ;;  %v8976_v7 = vsel %vm7831_vm7, %v3642_v61, %v3643_v63  ;;  %v4182_v15 = vshll.u32 %v8953_v14, 16  ;;  %v4188_v59 = vshll.u32 %v8964_v43, 16  ;;  %v8992_v63 = vld [vmem:[%s7587_s26 + $0xb4] sm:$0xf] }
  0xdb   : > { %v4192_v37 = vshrl.u32 %v8964_v43, 16  ;;  %v8999_v24 = vrot.slane %v4179_v52, 4  ;;  %v6345_v61 = vrot.slane %v8587_v62, 9  ;;  %v10525_v52 = vcombine.low %v8715_v0, %v8724_v5  ;;  %v9027_v62 = vld [vmem:[%s7587_s26 + $0xc0] sm:$0xf] }
  0xdc   : > { %v8972_v25 = vpop.f32.mrf.mxu1  ;;  %v9003_v49 = vrot.slane %v4188_v59, 5 }
  0xdd   : > { %7234 = vmatmul.mubr.msk.bf16.gmra.mxu0 %vm598_vm1, %v8821_v22  ;;  %v3649_v22 = vrot.slane %v3647_v27, 4  ;;  %10521 = vst [vmem:[#allocation9_spill] sm:$0xff] %v8999_v24  ;;  %v9005_v3 = vrot.slane %v4192_v37, 4  ;;  %v3656_v27 = vrot.slane %v3654_v23, 4 }
  0xde   : > { %7237 = vmatprep.mubr.msk.bf16.mxu0 %vm598_vm1, %v8850_v6  ;;  %v8997_v16 = vpop.f32.mrf.mxu1  ;;  %v9001_v6 = vrot.slane %v4182_v15, 5  ;;  %10523 = vst [vmem:[#allocation11_spill] sm:$0xff] %v9003_v49  ;;  %v3657_v15 = vrot.slane %v8682_v45, 5  ;;  %v9040_v45 = vld [vmem:[%s7587_s26 + $0xc4] sm:$0xf]  ;;  %v6346_v49 = vrot.slane %v8624_v31, 9 }
  0xdf   : > { %10524 = vst [vmem:[#allocation12_spill] sm:$0xff] %v9005_v3  ;;  %v9009_v32 = vsel %vm7831_vm7, %v3649_v22, %v3650_v21  ;;  %v4230_v21 = vshll.u32 %v9027_v62, 16  ;;  %v4236_v37 = vshll.u32 %v9040_v45, 16 }
  0xe0   : > { %10522 = vst [vmem:[#allocation10_spill] sm:$0xff] %v9001_v6  ;;  %v9018_v59 = vpop.f32.mrf.mxu1  ;;  %v3661_v6 = vrot.slane %v8632_v46, 5 }
  0xe1   : > { %7256 = vmatmul.mubr.msk.bf16.gmra.mxu1 %vm598_vm1, %v10525_v52  ;;  %v9035_v52 = vsel %vm7831_vm7, %v6345_v61, %v3654_v23  ;;  %v9050_v61 = vsel %vm7831_vm7, %v3656_v27, %v3657_v15  ;;  %v4227_v23 = vshrl.u32 %v9027_v62, 16  ;;  %v4240_v27 = vshrl.u32 %v9040_v45, 16 }
  0xe2   : > { %7279 = vmatprep.mubr.msk.bf16.mxu1 %vm598_vm1, %v10526_v53  ;;  %v9042_v3 = vpop.f32.mrf.mxu1  ;;  %v3664_v53 = vrot.slane %v8705_v1, 5  ;;  %v3663_v46 = vrot.slane %v3661_v6, 4  ;;  %v10527_v15 = vcombine.low %v8891_v60, %v8908_v55  ;;  %v9074_v2 = vrot.slane %v4230_v21, 5 }
  0xe3   : > { %v9072_v38 = vrot.slane %v4227_v23, 4  ;;  %v9076_v31 = vrot.slane %v4236_v37, 5  ;;  %v9090_v55 = vrot.slane %v4240_v27, 4  ;;  %v6347_v37 = vrot.slane %v8651_v12, 9 }
  0xe4   : > { %v9057_v22 = vpop.f32.mrf.mxu1  ;;  %v7047_v24 = vpop.f32.mrf.mxu0  ;;  %10529 = vst [vmem:[#allocation14_spill] sm:$0xff] %v9074_v2  ;;  %v9088_v60 = vsel %vm7831_vm7, %v3663_v46, %v3664_v53  ;;  %v3668_v23 = vrot.slane %v8661_v35, 5  ;;  %v10532_v53 = vcombine.low %v8792_v44, %v8795_v13  ;;  %v6425_v12 = vrot.slane %v8741_v29, 9 }
  0xe5   : > { %7238 = vmatmul.mubr.msk.bf16.gmra.mxu0 %vm598_vm1, %v8919_v57  ;;  %v9070_v57 = vsel %vm7831_vm7, %v6346_v49, %v3661_v6  ;;  %10528 = vst [vmem:[#allocation13_spill] sm:$0xff] %v9072_v38  ;;  %10530 = vst [vmem:[#allocation15_spill] sm:$0xff] %v9076_v31  ;;  %v9082_v1 = vadd.f32 %v8902_v26, %v7047_v24  ;;  %v3671_v24 = vrot.slane %v8734_v39, 5  ;;  %v9100_v26 = vld [vmem:[%s10461_s1 + $0x1c] sm:$0xf]  ;;  %v4425_v35 = vrot.slane %v8750_v48, 5 }
  0xe6   : > { %7261 = vmatprep.mubr.msk.bf16.mxu0 %vm598_vm1, %v10527_v15  ;;  %v9084_v58 = vpop.f32.mrf.mxu1  ;;  %10531 = vst [vmem:[#allocation16_spill] sm:$0xff] %v9090_v55  ;;  %v661_v6 = vpop.f32.mrf.mxu0  ;;  %v4428_v39 = vrot.slane %v9079_v50, 5  ;;  %v10533_v15 = vcombine.low %v8843_v41, %v8846_v30  ;;  %v3675_v21 = vrot.slane %v8695_v42, 5  ;;  %v9124_v55 = vld [vmem:[%s7587_s26 + $0x80] sm:$0x1]  ;;  %v3678_v38 = vrot.slane %v8768_v51, 5 }
  0xe7   : > { %v9107_v46 = vadd.f32 %v8930_v36, %v661_v6  ;;  %v3670_v6 = vrot.slane %v3668_v23, 4  ;;  %v9153_v51 = vld [vmem:[%s10461_s1 + $0x18] sm:$0xf]  ;;  %v4068_v36 = vshll.u32 %v8750_v48, 16 }
  0xe8   : > { %v9109_v27 = vpop.f32.mrf.mxu1  ;;  %v7048_v49 = vpop.f32.mrf.mxu0 }
  0xe9   : > { %7280 = vmatmul.mubr.msk.bf16.vlgmr.msra.gmra.mxu1 %vm598_vm1, %v10532_v53  ;;  %v6348_v53 = vrot.slane %v8689_v20, 9  ;;  %v9127_v31 = vadd.f32 %v8955_v56, %v7048_v49  ;;  %v9140_v42 = vsel %vm7831_vm7, %v3670_v6, %v3671_v24  ;;  %v9144_v56 = vsel %vm7831_vm7, %v6425_v12, %v4425_v35 }
  0xea   : > { %7283 = vmatprep.mubr.msk.bf16.mxu1 %vm598_vm1, %v10533_v15  ;;  %7314 = vmatpush3.bf16.msra.mxu1 %v8947_v33  ;;  %v9129_v2 = vpop.f32.mrf.mxu1  ;;  %v9133_v15 = vsel %vm7831_vm7, %v6347_v37, %v3668_v23  ;;  %v4427_v33 = vrot.slane %v4425_v35, 4  ;;  %v664_v20 = vpop.f32.mrf.mxu0  ;;  %v3677_v37 = vrot.slane %v3675_v21, 4  ;;  %v10534_v23 = vcombine.low %v8959_v10, %v8976_v7 }
  0xeb   : > { %7420 = vmatprep.subr.msk.bf16.mxu1 %vm623_vm0, %v9100_v26  ;;  %v9148_v49 = vsel %vm7831_vm7, %v6348_v53, %v3675_v21  ;;  %v9160_v24 = vadd.f32 %v8972_v25, %v664_v20  ;;  %v10536_v21 = vrot.slane %v8795_v13, 5  ;;  %v10537_v6 = vrot.slane %v8792_v44, 9 }
  0xec   : > { %v9162_v12 = vpop.f32.mrf.mxu1  ;;  %v9166_v35 = vsel %vm7831_vm7, %v4427_v33, %v4428_v39  ;;  %v4435_v10 = vrot.slane %v9124_v55, 5  ;;  %v10538_v25 = vcombine.low %v8987_v4, %v9009_v32  ;;  %v9186_v13 = vsel %vm7831_vm7, %v3677_v37, %v3678_v38  ;;  %v9191_v33 = vld [vmem:[%s7587_s26 + $0x8c] sm:$0x1] }
  0xed   : > { %7262 = vmatmul.mubr.msk.bf16.vlgmr.msra.gmra.mxu0 %vm598_vm1, %v10534_v23  ;;  %10535 = vst [vmem:[#allocation17_spill] sm:$0xff] %v9160_v24  ;;  %v9174_v53 = vsel %vm7831_vm7, %v10537_v6, %v10536_v21  ;;  %v6349_v44 = vrot.slane %v8715_v0, 9  ;;  %v3682_v39 = vrot.slane %v8724_v5, 5  ;;  %v3685_v32 = vrot.slane %v8830_v17, 5  ;;  %v9250_v24 = vld [vmem:[%s7587_s26 + $0x98] sm:$0x1] }
  0xee   : > { %7296 = vmatpush3.bf16.msra.mxu0 %v8943_v28  ;;  %7265 = vmatprep.mubr.msk.bf16.mxu0 %vm598_vm1, %v10538_v25  ;;  %v9193_v20 = vpop.f32.mrf.mxu1  ;;  %v9200_v4 = vsel %vm7831_vm7, %v8863_v11, %v4435_v10  ;;  %v6427_v38 = vrot.slane %v8843_v41, 9  ;;  %v7051_v0 = vpop.f32.mrf.mxu0  ;;  %v4439_v21 = vrot.slane %v8846_v30, 5  ;;  %v10539_v11 = vcombine.low %v8875_v9, %v8880_v40 }
  0xef   : > { %7419 = vmatprep.subr.msk.bf16.mxu0 %vm623_vm0, %v9153_v51  ;;  %v9210_v37 = vsel %vm7831_vm7, %v6349_v44, %v3682_v39  ;;  %v3684_v23 = vrot.slane %v3682_v39, 4  ;;  %v9218_v17 = vadd.f32 %v8997_v16, %v7051_v0  ;;  %v4442_v10 = vrot.slane %v9191_v33, 5 }
  0xf0   : > { %v9220_v6 = vpop.f32.mrf.mxu1  ;;  %v10541_v25 = vshrl.u32 %v8741_v29, 16  ;;  %v10542_v39 = vshll.u32 %v8741_v29, 16  ;;  %v10543_v5 = vcombine.low %v8914_v18, %v8917_v8  ;;  %v4441_v7 = vrot.slane %v4439_v21, 4 }
  0xf1   : > { %7284 = vmatmul.mubr.msk.bf16.gmra.mxu1 %vm598_vm1, %v10539_v11  ;;  %10540 = vst [vmem:[#allocation18_spill] sm:$0xff] %v9218_v17  ;;  %v677_v11 = vpop.f32.mrf.mxu0  ;;  %v9235_v0 = vsel %vm7831_vm7, %v3684_v23, %v3685_v32  ;;  %v10545_v17 = vshrl.u32 %v8750_v48, 16 }
  0xf2   : > { %v4061_v44 = vrot.slane %v10541_v25, 4  ;;  %v4064_v28 = vrot.slane %v10542_v39, 5  ;;  %7287 = vmatprep.mubr.msk.bf16.mxu1 %vm598_vm1, %v10543_v5  ;;  %v9239_v25 = vadd.f32 %v9018_v59, %v677_v11  ;;  %v9241_v29 = vpop.f32.mrf.mxu1  ;;  %v9245_v39 = vsel %vm7831_vm7, %v6427_v38, %v4439_v21 }
  0xf3   : > { %v4074_v16 = vrot.slane %v10545_v17, 4  ;;  %v7052_v32 = vpop.f32.mrf.mxu0  ;;  %v9256_v59 = vsel %vm7831_vm7, %v4441_v7, %v4442_v10  ;;  %v4070_v11 = vrot.slane %v4068_v36, 5  ;;  %v10546_v38 = vcombine.low %v9035_v52, %v9050_v61 }
  0xf4   : > { %10544 = vst [vmem:[#allocation19_spill] sm:$0xff] %v9239_v25  ;;  %v4065_v5 = vor.u32 %v4064_v28, %v4061_v44  ;;  %v4078_v25 = vshll.u32 %v9079_v50, 16  ;;  %v9264_v48 = vadd.f32 %v9042_v3, %v7052_v32  ;;  %v9266_v28 = vpop.f32.mrf.mxu1  ;;  %v10547_v17 = vrot.slane %v8880_v40, 5 }
  0xf5   : > { %7266 = vmatmul.mubr.msk.bf16.gmra.mxu0 %vm598_vm1, %v10546_v38  ;;  %v10548_v7 = vrot.slane %v8875_v9, 9  ;;  %v680_v61 = vpop.f32.mrf.mxu0  ;;  %v10550_v3 = vcombine.low %v9070_v57, %v9088_v60  ;;  %v4075_v44 = vor.u32 %v4074_v16, %v4070_v11  ;;  %v4449_v9 = vrot.slane %v9250_v24, 5 }
  0xf6   : > { %v4066_v21 = vrot.slane %v4065_v5, 4  ;;  %v10549_v50 = vmov %v10547_v17  ;;  %v4080_v5 = vrot.slane %v4078_v25, 5  ;;  %v9286_v32 = vadd.f32 %v9057_v22, %v680_v61  ;;  %v9288_v38 = vpop.f32.mrf.mxu1 }
  0xf7   : > { %v9274_v36 = vsel %vm7831_vm7, %v10548_v7, %v10547_v17  ;;  %v4448_v52 = vrot.slane %v10549_v50, 4  ;;  %7269 = vmatprep.mubr.msk.bf16.mxu0 %vm598_vm1, %v10550_v3  ;;  %v4095_v57 = vsel %vm7673_vm4, %v8852_v34, %v8812_v47  ;;  %v4102_v60 = vshll.u32 %v9124_v55, 16  ;;  %v9298_v17 = vld [vmem:[%s7587_s26 + $0xa4] sm:$0x1]  ;;  %v7055_v16 = vpop.f32.mrf.mxu0 }
  0xf8   : > { %v4071_v40 = vsel %vm7673_vm4, %v4066_v21, %v4070_v11  ;;  %v4076_v25 = vrot.slane %v4075_v44, 4  ;;  %v9306_v7 = vsel %vm623_vm0, %v9153_v51, 0  ;;  %v6429_v11 = vrot.slane %v8914_v18, 9  ;;  %v9316_v34 = vpop.f32.mrf.mxu1 }
  0xf9   : > { %v9302_v22 = vsel %vm7831_vm7, %v4448_v52, %v4449_v9  ;;  %v10551_v21 = vcombine.low %v8953_v14, %v8964_v43  ;;  %v9314_v47 = vadd.f32 %v9084_v58, %v7055_v16  ;;  %10552 = vst [vmem:[#allocation20_spill] sm:$0xff] %v9316_v34  ;;  %v4104_v55 = vrot.slane %v4102_v60, 5  ;;  %v10553_v52 = vld [vmem:[#allocation8_spill] sm:$0xff]  ;;  %v693_v3 = vpop.f32.mrf.mxu0  ;;  %v10558_v34 = vld [vmem:[#allocation3_spill] sm:$0xff] }
  0xfa   : > { %v9320_v50 = vsel %vm623_vm0, %v9100_v26, 0  ;;  %v4453_v51 = vrot.slane %v8917_v8, 5  ;;  %v10554_v61 = vcombine.low %v8992_v63, %v10553_v52  ;;  %v4081_v58 = vsel %vm7673_vm4, %v4076_v25, %v4080_v5  ;;  %v9337_v10 = vpop.f32.mrf.mxu1 }
  0xfb   : > { %7288 = vmatmul.mubr.msk.bf16.gmra.mxu1 %vm598_vm1, %v10551_v21  ;;  %v4456_v44 = vrot.slane %v9298_v17, 5  ;;  %v10555_v9 = vshrl.u32 %v8843_v41, 16  ;;  %v10556_v26 = vshll.u32 %v8843_v41, 16  ;;  %v9335_v21 = vadd.f32 %v9109_v27, %v693_v3  ;;  %v7056_v25 = vpop.f32.mrf.mxu0  ;;  %v9352_v3 = vld [vmem:[%s7587_s26 + $0xb0] sm:$0x1] }
  0xfc   : > { %7291 = vmatprep.mubr.msk.bf16.mxu1 %vm598_vm1, %v10554_v61  ;;  %v9339_v23 = vcombine.low %v4071_v40, %v4081_v58  ;;  %v4105_v5 = vsel %vm7673_vm4, %v10558_v34, %v4104_v55  ;;  %v4455_v41 = vrot.slane %v4453_v51, 4  ;;  %v4116_v27 = vshll.u32 %v8846_v30, 16  ;;  %v9361_v34 = vpop.f32.mrf.mxu1 }
  0xfd   : > { %v4109_v60 = vrot.slane %v10555_v9, 4  ;;  %v4112_v16 = vrot.slane %v10556_v26, 5  ;;  %v9348_v9 = vsel %vm7831_vm7, %v6429_v11, %v4453_v51  ;;  %v10559_v40 = vcombine.low %v9133_v15, %v9140_v42  ;;  %10560 = vst [vmem:[#allocation3_spill] sm:$0xff] %v9361_v34 }
  0xfe   : > { %10557 = vst [vmem:[#allocation8_spill] sm:$0xff] %v9339_v23  ;;  %v9359_v58 = vadd.f32 %v9129_v2, %v7056_v25  ;;  %v9363_v55 = vcombine.low %v4095_v57, %v4105_v5  ;;  %v10562_v11 = vshrl.u32 %v8846_v30, 16  ;;  %v10563_v61 = vcombine.low %v9148_v49, %v9186_v13 }
  0xff   : > { %v4113_v26 = vor.u32 %v4112_v16, %v4109_v60  ;;  %7270 = vmatmul.mubr.msk.bf16.gmra.mxu0 %vm598_vm1, %v10559_v40  ;;  %v4126_v60 = vshll.u32 %v9191_v33, 16  ;;  %v696_v16 = vpop.f32.mrf.mxu0  ;;  %v9374_v15 = vsel %vm7831_vm7, %v4455_v41, %v4456_v44  ;;  %v4118_v42 = vrot.slane %v4116_v27, 5  ;;  %v9381_v33 = vpop.f32.mrf.mxu1  ;;  %v10568_v27 = vld [vmem:[#allocation4_spill] sm:$0xff] }
 0x100   : > { %10561 = vst [vmem:[#allocation21_spill] sm:$0xff] %v9363_v55  ;;  %v4122_v51 = vrot.slane %v10562_v11, 4  ;;  %7273 = vmatprep.mubr.msk.bf16.mxu0 %vm598_vm1, %v10563_v61  ;;  %v10564_v57 = vrot.slane %v8964_v43, 5  ;;  %v9379_v30 = vadd.f32 %v9162_v12, %v696_v16  ;;  %10565 = vst [vmem:[#allocation22_spill] sm:$0xff] %v9381_v33  ;;  %v10567_v61 = vrot.slane %v8953_v14, 9  ;;  %v10569_v12 = vld [vmem:[#allocation5_spill] sm:$0xff] }
 0x101   : > { %v4114_v2 = vrot.slane %v4113_v26, 4  ;;  %v4463_v25 = vrot.slane %v9352_v3, 5  ;;  %v4128_v26 = vrot.slane %v4126_v60, 5  ;;  %v4137_v40 = vor.u32 %v10569_v12, %v10568_v27  ;;  %v10570_v11 = vld [vmem:[#allocation6_spill] sm:$0xff]  ;;  %v10571_v16 = vld [vmem:[#allocation7_spill] sm:$0xff]  ;;  %v9402_v14 = vpop.f32.mrf.mxu1 }
 0x102   : > { %v4462_v5 = vrot.slane %v10564_v57, 4  ;;  %v10566_v13 = vmov %v10564_v57  ;;  %v4123_v41 = vor.u32 %v4122_v51, %v4118_v42  ;;  %v4147_v57 = vor.u32 %v10571_v16, %v10570_v11  ;;  %10573 = vst [vmem:[#allocation4_spill] sm:$0xff] %v9402_v14  ;;  %v9410_v60 = vld [vmem:[%s7587_s26 + $0xbc] sm:$0x1] }
 0x103   : > { %v9391_v44 = vsel %vm7831_vm7, %v10567_v61, %v10566_v13  ;;  %v10572_v49 = vcombine.low %v9027_v62, %v9040_v45  ;;  %v4150_v51 = vshll.u32 %v9250_v24, 16  ;;  %v6431_v13 = vrot.slane %v8992_v63, 9  ;;  %v9423_v14 = vpop.f32.mrf.mxu1 }
 0x104   : > { %v9406_v43 = vsel %vm7831_vm7, %v4462_v5, %v4463_v25  ;;  %v4467_v61 = vrot.slane %v10553_v52, 5  ;;  %v10574_v27 = vcombine.low %v9144_v56, %v9166_v35  ;;  %v4119_v12 = vsel %vm7673_vm4, %v4114_v2, %v4118_v42 }
 0x105   : > { %7292 = vmatmul.mubr.msk.bf16.gmra.mxu1 %vm598_vm1, %v10572_v49  ;;  %v7059_v49 = vpop.f32.mrf.mxu0  ;;  %v4124_v16 = vrot.slane %v4123_v41, 4  ;;  %v4138_v5 = vrot.slane %v4137_v40, 4  ;;  %v4148_v25 = vrot.slane %v4147_v57, 4  ;;  %v4152_v34 = vrot.slane %v4150_v51, 5  ;;  %v9442_v51 = vpop.f32.mrf.mxu1 }
 0x106   : > { %7315 = vmatprep.mubr.msk.bf16.mxu1 %vm598_vm1, %v10574_v27  ;;  %v9421_v24 = vadd.f32 %v9193_v20, %v7059_v49  ;;  %v4469_v56 = vrot.slane %v4467_v61, 4  ;;  %v4470_v42 = vrot.slane %v9410_v60, 5  ;;  %v10575_v20 = vshrl.u32 %v8914_v18, 16 }
 0x107   : > { %v709_v35 = vpop.f32.mrf.mxu0  ;;  %v4129_v27 = vsel %vm7673_vm4, %v4124_v16, %v4128_v26  ;;  %v4143_v2 = vsel %vm7673_vm4, %v4138_v5, %v10570_v11  ;;  %v10576_v40 = vcombine.low %v9210_v37, %v9235_v0  ;;  %v4153_v26 = vsel %vm7673_vm4, %v4148_v25, %v4152_v34  ;;  %v9453_v5 = vld [vmem:[%s7587_s26 + $0xc8] sm:$0x1] }
 0x108   : > { %v4157_v41 = vrot.slane %v10575_v20, 4  ;;  %v9440_v57 = vadd.f32 %v9220_v6, %v709_v35  ;;  %v9448_v11 = vsel %vm7831_vm7, %v6431_v13, %v4467_v61  ;;  %v10577_v49 = vshll.u32 %v8914_v18, 16  ;;  %v9467_v18 = vpop.f32.mrf.mxu1 }
 0x109   : > { %7274 = vmatmul.mubr.msk.bf16.gmra.mxu0 %vm598_vm1, %v10576_v40  ;;  %v7060_v37 = vpop.f32.mrf.mxu0  ;;  %v9457_v6 = vcombine.low %v4119_v12, %v4129_v27  ;;  %v9459_v0 = vcombine.low %v4143_v2, %v4153_v26  ;;  %v4164_v35 = vshll.u32 %v8917_v8, 16  ;;  %v10580_v34 = vshrl.u32 %v8917_v8, 16 }
 0x10a   : > { %v4160_v16 = vrot.slane %v10577_v49, 5  ;;  %7297 = vmatprep.mubr.msk.bf16.mxu0 %vm598_vm1, %v9339_v23  ;;  %v9465_v13 = vadd.f32 %v9241_v29, %v7060_v37  ;;  %v9471_v61 = vsel %vm7831_vm7, %v4469_v56, %v4470_v42  ;;  %v4174_v12 = vshll.u32 %v9298_v17, 16  ;;  %v9488_v17 = vld [vmem:[%s10462_s2] sm:$0xf]  ;;  %v9497_v42 = vpop.f32.mrf.mxu1  ;;  %v9586_v23 = vld [vmem:[%s7587_s26 + $0x84] sm:$0xf] }
 0x10b   : > { %10578 = vst [vmem:[#allocation5_spill] sm:$0xff] %v9457_v6  ;;  %10579 = vst [vmem:[#allocation6_spill] sm:$0xff] %v9459_v0  ;;  %v4170_v25 = vrot.slane %v10580_v34, 4  ;;  %v712_v27 = vpop.f32.mrf.mxu0  ;;  %v4166_v2 = vrot.slane %v4164_v35, 5  ;;  %v10581_v40 = vrot.slane %v9040_v45, 5  ;;  %v10582_v8 = vrot.slane %v9027_v62, 9 }
 0x10c   : > { %v4161_v20 = vor.u32 %v4160_v16, %v4157_v41  ;;  %v4477_v37 = vrot.slane %v9453_v5, 5  ;;  %v10584_v56 = vcombine.low %v9174_v53, %v9200_v4  ;;  %v9495_v62 = vadd.f32 %v9266_v28, %v712_v27  ;;  %v10585_v16 = vld [vmem:[#allocation9_spill] sm:$0xff]  ;;  %v10586_v35 = vld [vmem:[#allocation10_spill] sm:$0xff] }
 0x10d   : > { %v9480_v29 = vsel %vm7831_vm7, %v10582_v8, %v10581_v40  ;;  %v10583_v26 = vmov %v10581_v40  ;;  %v4176_v41 = vrot.slane %v4174_v12, 5  ;;  %v4185_v34 = vor.u32 %v10586_v35, %v10585_v16  ;;  %v9502_v40 = vld [vmem:[%s7587_s26 + $0x78] sm:$0xf]  ;;  %v7083_v53 = vpop.f32.mrf.mxu0  ;;  %v10589_v12 = vld [vmem:[#allocation12_spill] sm:$0xff] }
 0x10e   : > { %v4476_v49 = vrot.slane %v10583_v26, 4  ;;  %7316 = vmatmul.mubr.msk.bf16.vlgmr.msra.gmra.mxu1 %vm598_vm1, %v10584_v56  ;;  %v4162_v45 = vrot.slane %v4161_v20, 4  ;;  %v10587_v8 = vcombine.low %v9245_v39, %v9256_v59  ;;  %v4171_v4 = vor.u32 %v4170_v25, %v4166_v2  ;;  %v10588_v20 = vld [vmem:[#allocation11_spill] sm:$0xff]  ;;  %v9517_v56 = vld [vmem:[%s7587_s26 + $0x7c] sm:$0xf]  ;;  %v9522_v39 = vpop.f32.mrf.mxu1 }
 0x10f   : > { %7350 = vmatpush3.bf16.msra.mxu1 %v9320_v50  ;;  %v4195_v27 = vor.u32 %v10589_v12, %v10588_v20  ;;  %v4198_v26 = vshll.u32 %v9352_v3, 16  ;;  %v9520_v16 = vadd.f32 %v7083_v53, %v9082_v1  ;;  %v4186_v25 = vrot.slane %v4185_v34, 4  ;;  %v9546_v53 = vld [vmem:[%s7587_s26 + $0x80] sm:$0x1] }
 0x110   : > { %7319 = vmatprep.mubr.msk.bf16.mxu1 %vm598_vm1, %v10587_v8  ;;  %v9511_v28 = vsel %vm7831_vm7, %v4476_v49, %v4477_v37  ;;  %v4167_v50 = vsel %vm7673_vm4, %v4162_v45, %v4166_v2  ;;  %7422 = vmatprep.subr.msk.bf16.mxu1 %vm623_vm0, %v9488_v17  ;;  %v1042_v49 = vpop.f32.mrf.mxu0  ;;  %v4172_v3 = vrot.slane %v4171_v4, 4  ;;  %v4851_v1 = vshrl.u32 %v9502_v40, 16  ;;  %v9534_v8 = vld [vmem:[%s10461_s1 + $0x20] sm:$0xf]  ;;  %v9541_v45 = vpop.f32.mrf.mxu1  ;;  %10590 = vst [vmem:[#allocation7_spill] sm:$0xff] %v9546_v53 }
 0x111   : > { %v4196_v37 = vrot.slane %v4195_v27, 4  ;;  %v4200_v35 = vrot.slane %v4198_v26, 5  ;;  %7298 = vmatmul.mubr.msk.bf16.vlgmr.msra.gmra.mxu0 %vm598_vm1, %v9363_v55  ;;  %v9539_v2 = vadd.f32 %v1042_v49, %v9107_v46  ;;  %v4854_v4 = vshll.u32 %v9502_v40, 16 }
 0x112   : > { %v4860_v12 = vshll.u32 %v9517_v56, 16  ;;  %7332 = vmatpush3.bf16.msra.mxu0 %v9306_v7  ;;  %v7084_v27 = vpop.f32.mrf.mxu0  ;;  %7301 = vmatprep.mubr.msk.bf16.mxu0 %vm598_vm1, %v9457_v6  ;;  %v4177_v46 = vsel %vm7673_vm4, %v4172_v3, %v4176_v41  ;;  %v4191_v26 = vsel %vm7673_vm4, %v4186_v25, %v10588_v20  ;;  %v4853_v49 = vrot.slane %v4851_v1, 4  ;;  %v9562_v33 = vpop.f32.mrf.mxu1 }
 0x113   : > { %v4864_v34 = vshrl.u32 %v9517_v56, 16  ;;  %v9560_v59 = vadd.f32 %v7084_v27, %v9127_v31  ;;  %v9564_v7 = vcombine.low %v4167_v50, %v4177_v46  ;;  %v4201_v6 = vsel %vm7673_vm4, %v4196_v37, %v4200_v35  ;;  %7421 = vmatprep.subr.msk.bf16.mxu0 %vm623_vm0, %v9534_v8  ;;  %v10594_v50 = vld [vmem:[#allocation17_spill] sm:$0xff] }
 0x114   : > { %v4856_v55 = vrot.slane %v4854_v4, 5  ;;  %v1045_v41 = vpop.f32.mrf.mxu0  ;;  %v4862_v20 = vrot.slane %v4860_v12, 5  ;;  %v4870_v3 = vshll.u32 %v9546_v53, 16  ;;  %v10592_v31 = vshrl.u32 %v8992_v63, 16  ;;  %v9580_v37 = vpop.f32.mrf.mxu1 }
 0x115   : > { %10591 = vst [vmem:[#allocation9_spill] sm:$0xff] %v9564_v7  ;;  %v4866_v25 = vrot.slane %v4864_v34, 4  ;;  %v10593_v27 = vcombine.low %v9274_v36, %v9302_v22  ;;  %v9578_v46 = vadd.f32 %v1045_v41, %v10594_v50  ;;  %10595 = vst [vmem:[#allocation10_spill] sm:$0xff] %v9580_v37  ;;  %v10596_v4 = vshll.u32 %v8992_v63, 16 }
 0x116   : > { %v4205_v1 = vrot.slane %v10592_v31, 4  ;;  %v4857_v35 = vor.u32 %v4856_v55, %v4853_v49  ;;  %v4212_v12 = vshll.u32 %v10553_v52, 16  ;;  %v10597_v31 = vcombine.low %v9348_v9, %v9374_v15  ;;  %v7087_v36 = vpop.f32.mrf.mxu0  ;;  %v10599_v49 = vld [vmem:[#allocation18_spill] sm:$0xff]  ;;  %v9601_v9 = vld [vmem:[%s7587_s26 + $0x88] sm:$0xf] }
 0x117   : > { %7320 = vmatmul.mubr.msk.bf16.gmra.mxu1 %vm598_vm1, %v10593_v27  ;;  %v4208_v34 = vrot.slane %v10596_v4, 5  ;;  %v4867_v22 = vor.u32 %v4866_v25, %v4862_v20  ;;  %v4872_v41 = vrot.slane %v4870_v3, 5  ;;  %v10598_v27 = vshrl.u32 %v10553_v52, 16  ;;  %v9598_v4 = vpop.f32.mrf.mxu1 }
 0x118   : > { %7323 = vmatprep.mubr.msk.bf16.mxu1 %vm598_vm1, %v10597_v31  ;;  %v4222_v55 = vshll.u32 %v9410_v60, 16  ;;  %v9596_v63 = vadd.f32 %v7087_v36, %v10599_v49  ;;  %v4858_v19 = vrot.slane %v4857_v35, 4  ;;  %v4214_v37 = vrot.slane %v4212_v12, 5  ;;  %v1058_v15 = vpop.f32.mrf.mxu0  ;;  %v10601_v60 = vld [vmem:[#allocation19_spill] sm:$0xff] }
 0x119   : > { %v4218_v50 = vrot.slane %v10598_v27, 4  ;;  %v4209_v53 = vor.u32 %v4208_v34, %v4205_v1  ;;  %v9603_v31 = vcombine.low %v4191_v26, %v4201_v6  ;;  %v4868_v25 = vrot.slane %v4867_v22, 4  ;;  %7302 = vmatmul.mubr.msk.bf16.gmra.mxu0 %vm598_vm1, %v9459_v0  ;;  %v9612_v27 = vpop.f32.mrf.mxu1  ;;  %v9615_v12 = vld [vmem:[%s7587_s26 + $0x8c] sm:$0x1] }
 0x11a   : > { %v4875_v52 = vshrl.u32 %v9586_v23, 16  ;;  %v4878_v3 = vshll.u32 %v9586_v23, 16  ;;  %v9610_v36 = vadd.f32 %v1058_v15, %v10601_v60  ;;  %10602 = vst [vmem:[#allocation12_spill] sm:$0xff] %v9612_v27  ;;  %v4224_v34 = vrot.slane %v4222_v55, 5  ;;  %10603 = vst [vmem:[#allocation17_spill] sm:$0xff] %v9615_v12  ;;  %v7088_v6 = vpop.f32.mrf.mxu0  ;;  %7305 = vmatprep.mubr.msk.bf16.mxu0 %vm598_vm1, %v9564_v7 }
 0x11b   : > { %10600 = vst [vmem:[#allocation11_spill] sm:$0xff] %v9603_v31  ;;  %v4210_v1 = vrot.slane %v4209_v53, 4  ;;  %v4219_v35 = vor.u32 %v4218_v50, %v4214_v37  ;;  %v4863_v26 = vsel %vm7673_vm4, %v4858_v19, %v4862_v20  ;;  %v4884_v0 = vshll.u32 %v9601_v9, 16  ;;  %v9627_v50 = vpop.f32.mrf.mxu1 }
 0x11c   : > { %v4877_v22 = vrot.slane %v4875_v52, 4  ;;  %v4880_v49 = vrot.slane %v4878_v3, 5  ;;  %v9623_v15 = vadd.f32 %v7088_v6, %v9264_v48  ;;  %v4873_v53 = vsel %vm7673_vm4, %v4868_v25, %v4872_v41  ;;  %v1061_v7 = vpop.f32.mrf.mxu0  ;;  %v10605_v25 = vld [vmem:[#allocation13_spill] sm:$0xff]  ;;  %v10606_v3 = vld [vmem:[#allocation14_spill] sm:$0xff] }
 0x11d   : > { %v4215_v55 = vsel %vm7673_vm4, %v4210_v1, %v4214_v37  ;;  %v4220_v60 = vrot.slane %v4219_v35, 4  ;;  %v9631_v19 = vrot.slane %v4884_v0, 5  ;;  %v4888_v20 = vshrl.u32 %v9601_v9, 16  ;;  %v10607_v1 = vld [vmem:[#allocation15_spill] sm:$0xff]  ;;  %v10608_v35 = vld [vmem:[#allocation16_spill] sm:$0xff] }
 0x11e   : > { %v4881_v27 = vor.u32 %v4880_v49, %v4877_v22  ;;  %v4894_v48 = vshll.u32 %v9615_v12, 16  ;;  %v10604_v52 = vcombine.low %v9391_v44, %v9406_v43  ;;  %v9640_v41 = vadd.f32 %v1061_v7, %v9286_v32  ;;  %v9648_v22 = vpop.f32.mrf.mxu1  ;;  %v9651_v49 = vld [vmem:[%s7587_s26 + $0x90] sm:$0xf]  ;;  %v7091_v32 = vpop.f32.mrf.mxu0 }
 0x11f   : > { %v4225_v37 = vsel %vm7673_vm4, %v4220_v60, %v4224_v34  ;;  %v4233_v0 = vor.u32 %v10606_v3, %v10605_v25  ;;  %v4243_v6 = vor.u32 %v10608_v35, %v10607_v1  ;;  %10609 = vst [vmem:[#allocation18_spill] sm:$0xff] %v9648_v22  ;;  %v10610_v44 = vcombine.low %v9448_v11, %v9471_v61 }
 0x120   : > { %7324 = vmatmul.mubr.msk.bf16.gmra.mxu1 %vm598_vm1, %v10604_v52  ;;  %v6492_v43 = vcombine.low %v4863_v26, %v4873_v53  ;;  %v9657_v7 = vcombine.low %v4215_v55, %v4225_v37  ;;  %v4882_v34 = vrot.slane %v4881_v27, 4  ;;  %v4890_v60 = vrot.slane %v4888_v20, 4  ;;  %v9660_v52 = vld [vmem:[%s7587_s26 + $0x94] sm:$0xf]  ;;  %v9666_v12 = vpop.f32.mrf.mxu1  ;;  %v1074_v11 = vpop.f32.mrf.mxu0  ;;  %v9670_v26 = vld [vmem:[%s7587_s26 + $0x98] sm:$0x1] }
 0x121   : > { %7327 = vmatprep.mubr.msk.bf16.mxu1 %vm598_vm1, %v10610_v44  ;;  %v9663_v25 = vadd.f32 %v7091_v32, %v9314_v47  ;;  %v4234_v3 = vrot.slane %v4233_v0, 4  ;;  %v4244_v35 = vrot.slane %v4243_v6, 4  ;;  %v4246_v22 = vshll.u32 %v9453_v5, 16  ;;  %10612 = vst [vmem:[#allocation13_spill] sm:$0xff] %v9666_v12  ;;  %7306 = vmatmul.mubr.msk.bf16.gmra.mxu0 %vm598_vm1, %v9603_v31 }
 0x122   : > { %10611 = vst [vmem:[#allocation19_spill] sm:$0xff] %v9657_v7  ;;  %v4891_v61 = vor.u32 %v4890_v60, %v9631_v19  ;;  %v4896_v44 = vrot.slane %v4894_v48, 5  ;;  %v4899_v27 = vshrl.u32 %v9651_v49, 16  ;;  %v4902_v53 = vshll.u32 %v9651_v49, 16  ;;  %v9682_v20 = vpop.f32.mrf.mxu1  ;;  %v7092_v37 = vpop.f32.mrf.mxu0  ;;  %7309 = vmatprep.mubr.msk.bf16.mxu0 %vm598_vm1, %v9657_v7 }
 0x123   : > { %v9677_v47 = vadd.f32 %v1074_v11, %v9335_v21  ;;  %v4239_v5 = vsel %vm7673_vm4, %v4234_v3, %v10607_v1  ;;  %v4248_v55 = vrot.slane %v4246_v22, 5  ;;  %10613 = vst [vmem:[#allocation14_spill] sm:$0xff] %v9682_v20  ;;  %v4908_v48 = vshll.u32 %v9660_v52, 16  ;;  %v9697_v20 = vld [vmem:[%s7587_s26 + $0x9c] sm:$0xf] }
 0x124   : > { %v4892_v0 = vrot.slane %v4891_v61, 4  ;;  %v4901_v6 = vrot.slane %v4899_v27, 4  ;;  %v4904_v21 = vrot.slane %v4902_v53, 5  ;;  %v4912_v32 = vshrl.u32 %v9660_v52, 16  ;;  %v9694_v11 = vpop.f32.mrf.mxu1  ;;  %v1077_v12 = vpop.f32.mrf.mxu0 }
 0x125   : > { %v9689_v60 = vadd.f32 %v7092_v37, %v9359_v58  ;;  %v4249_v1 = vsel %vm7673_vm4, %v4244_v35, %v4248_v55  ;;  %v4910_v22 = vrot.slane %v4908_v48, 5  ;;  %v4918_v3 = vshll.u32 %v9670_v26, 16  ;;  %v9705_v37 = vld [vmem:[%s7587_s26 + $0xa0] sm:$0xf]  ;;  %v9708_v35 = vld [vmem:[%s7587_s26 + $0xa4] sm:$0x1] }
 0x126   : > { %v4887_v61 = vsel %vm7673_vm4, %v4882_v34, %v9631_v19  ;;  %v4897_v27 = vsel %vm7673_vm4, %v4892_v0, %v4896_v44  ;;  %v4905_v58 = vor.u32 %v4904_v21, %v4901_v6  ;;  %v4914_v53 = vrot.slane %v4912_v32, 4  ;;  %10614 = vst [vmem:[#allocation15_spill] sm:$0xff] %v9708_v35  ;;  %v9721_v44 = vpop.f32.mrf.mxu1  ;;  %v7095_v0 = vpop.f32.mrf.mxu0 }
 0x127   : > { %v10615_v55 = vcombine.low %v9480_v29, %v9511_v28  ;;  %v9715_v48 = vadd.f32 %v1077_v12, %v9379_v30  ;;  %v9717_v7 = vcombine.low %v4239_v5, %v4249_v1  ;;  %v4920_v19 = vrot.slane %v4918_v3, 5  ;;  %10617 = vst [vmem:[#allocation23_spill] sm:$0xff] %v9721_v44 }
 0x128   : > { %v6475_v34 = vcombine.low %v9502_v40, %v9517_v56  ;;  %v4906_v6 = vrot.slane %v4905_v58, 4  ;;  %v4915_v21 = vor.u32 %v4914_v53, %v4910_v22  ;;  %v4923_v29 = vshrl.u32 %v9697_v20, 16  ;;  %v9732_v1 = vpop.f32.mrf.mxu1  ;;  %v1090_v3 = vpop.f32.mrf.mxu0 }
 0x129   : > { %7328 = vmatmul.mubr.msk.bf16.gmra.mxu1 %vm598_vm1, %v10615_v55  ;;  %10616 = vst [vmem:[#allocation16_spill] sm:$0xff] %v9717_v7  ;;  %v4926_v28 = vshll.u32 %v9697_v20, 16  ;;  %v9727_v30 = vadd.f32 %v7095_v0, %v9421_v24  ;;  %v4932_v12 = vshll.u32 %v9705_v37, 16  ;;  %v4936_v5 = vshrl.u32 %v9705_v37, 16  ;;  %10618 = vst [vmem:[#allocation24_spill] sm:$0xff] %v9732_v1  ;;  %7310 = vmatmul.mubr.msk.bf16.gmra.mxu0 %vm598_vm1, %v9717_v7 }
 0x12a   : > { %7351 = vmatprep.mubr.msk.bf16.mxu1 %vm598_vm1, %v6492_v43  ;;  %v4942_v32 = vshll.u32 %v9708_v35, 16  ;;  %v4911_v43 = vsel %vm7673_vm4, %v4906_v6, %v4910_v22  ;;  %v4916_v58 = vrot.slane %v4915_v21, 4  ;;  %v4925_v53 = vrot.slane %v4923_v29, 4  ;;  %v9741_v44 = vpop.f32.mrf.mxu1  ;;  %v7096_v1 = vpop.f32.mrf.mxu0  ;;  %7333 = vmatprep.mubr.msk.bf16.mxu0 %vm598_vm1, %v6475_v34  ;;  %v9751_v21 = vld [vmem:[%s7587_s26 + $0xa8] sm:$0xf] }
 0x12b   : > { %v4928_v55 = vrot.slane %v4926_v28, 5  ;;  %v6493_v31 = vcombine.low %v4887_v61, %v4897_v27  ;;  %v9739_v24 = vadd.f32 %v1090_v3, %v9440_v57  ;;  %v4934_v0 = vrot.slane %v4932_v12, 5  ;;  %10619 = vst [vmem:[#allocation25_spill] sm:$0xff] %v9741_v44  ;;  %v10621_v3 = vld [vmem:[#allocation20_spill] sm:$0xff]  ;;  %v9811_v44 = vld [vmem:[%s7587_s26 + $0xbc] sm:$0x1] }
 0x12c   : > { %v4938_v35 = vrot.slane %v4936_v5, 4  ;;  %v4921_v22 = vsel %vm7673_vm4, %v4916_v58, %v4920_v19  ;;  %v4944_v61 = vrot.slane %v4942_v32, 5  ;;  %v9748_v27 = vadd.f32 %v9288_v38, %v9520_v16  ;;  %v9759_v19 = vld [vmem:[%s7587_s26 + $0xac] sm:$0xf]  ;;  %v9761_v34 = vpop.f32.mrf.mxu1  ;;  %v1093_v5 = vpop.f32.mrf.mxu0  ;;  %10628 = vst [vmem:[#allocation30_spill] sm:$0xff] %v9811_v44 }
 0x12d   : > { %v4929_v6 = vor.u32 %v4928_v55, %v4925_v53  ;;  %v9754_v57 = vadd.f32 %v7096_v1, %v9465_v13  ;;  %v6494_v29 = vcombine.low %v4911_v43, %v4921_v22  ;;  %v6476_v12 = vcombine.low %v9586_v23, %v9601_v9  ;;  %10620 = vst [vmem:[#allocation26_spill] sm:$0xff] %v9761_v34  ;;  %v10624_v58 = vld [vmem:[#allocation3_spill] sm:$0xff]  ;;  %v9796_v55 = vld [vmem:[%s7587_s26 + $0xb4] sm:$0xf] }
 0x12e   : > { %v4939_v28 = vor.u32 %v4938_v35, %v4934_v0  ;;  %v9765_v38 = vadd.f32 %v10621_v3, %v9539_v2  ;;  %v5438_v16 = vsel %vm623_vm0, %v9488_v17, 0  ;;  %v9771_v13 = vadd.f32 %v9337_v10, %v9560_v59  ;;  %v9774_v35 = vld [vmem:[%s7587_s26 + $0xb0] sm:$0x1]  ;;  %v9785_v53 = vpop.f32.mrf.mxu1  ;;  %v9790_v59 = vpop.f32.mrf.mxu0 }
 0x12f   : > { %v4930_v32 = vrot.slane %v4929_v6, 4  ;;  %10623 = vst [vmem:[#allocation27_spill] sm:$0xff] %v9774_v35  ;;  %v9778_v1 = vadd.f32 %v1093_v5, %v9495_v62  ;;  %v9782_v2 = vadd.f32 %v10624_v58, %v9578_v46  ;;  %v4947_v17 = vshrl.u32 %v9751_v21, 16  ;;  %10626 = vst [vmem:[#allocation28_spill] sm:$0xff] %v9785_v53 }
 0x130   : > { %10622 = vst [vmem:[#allocation20_spill] sm:$0xff] %v9771_v13  ;;  %v4940_v43 = vrot.slane %v4939_v28, 4  ;;  %v4950_v62 = vshll.u32 %v9751_v21, 16  ;;  %v4960_v46 = vshrl.u32 %v9759_v19, 16  ;;  %v5321_v6 = vsel %vm623_vm0, %v9534_v8, 0  ;;  %v9806_v5 = vpop.f32.mrf.mxu1 }
 0x131   : > { %7352 = vmatmul.mubr.msk.bf16.vlgmr.msra.gmra.mxu1 %vm598_vm1, %v6493_v31  ;;  %10625 = vst [vmem:[#allocation3_spill] sm:$0xff] %v9782_v2  ;;  %v4935_v10 = vsel %vm7673_vm4, %v4930_v32, %v4934_v0  ;;  %v4956_v31 = vshll.u32 %v9759_v19, 16  ;;  %v4966_v0 = vshll.u32 %v9774_v35, 16  ;;  %v9804_v28 = vld [vmem:[%s7587_s26 + $0xb8] sm:$0xf]  ;;  %10627 = vst [vmem:[#allocation29_spill] sm:$0xff] %v9806_v5  ;;  %v9808_v32 = vpop.f32.mrf.mxu0  ;;  %7334 = vmatmul.mubr.msk.bf16.vlgmr.msra.gmra.mxu0 %vm598_vm1, %v6476_v12 }
 0x132   : > { %7355 = vmatprep.mubr.msk.bf16.mxu1 %vm598_vm1, %v6494_v29  ;;  %7386 = vmatpush3.bf16.msra.mxu1 %v5438_v16  ;;  %v4945_v22 = vsel %vm7673_vm4, %v4940_v43, %v4944_v61  ;;  %v4949_v29 = vrot.slane %v4947_v17, 4  ;;  %v4952_v3 = vrot.slane %v4950_v62, 5  ;;  %v4962_v58 = vrot.slane %v4960_v46, 4  ;;  %v9821_v46 = vpop.f32.mrf.mxu1 }
 0x133   : > { %v4958_v16 = vrot.slane %v4956_v31, 5  ;;  %v6495_v7 = vcombine.low %v4935_v10, %v4945_v22  ;;  %v4968_v61 = vrot.slane %v4966_v0, 5  ;;  %v6477_v8 = vcombine.low %v9651_v49, %v9660_v52  ;;  %7368 = vmatpush3.bf16.msra.mxu0 %v5321_v6  ;;  %v9817_v17 = vpop.f32.mrf.mxu0  ;;  %10630 = vst [vmem:[#allocation32_spill] sm:$0xff] %v9821_v46  ;;  %v10632_v46 = vld [vmem:[#allocation22_spill] sm:$0xff] }
 0x134   : > { %v4971_v43 = vshrl.u32 %v9796_v55, 16  ;;  %10629 = vst [vmem:[#allocation31_spill] sm:$0xff] %v9817_v17  ;;  %v4953_v5 = vor.u32 %v4952_v3, %v4949_v29  ;;  %v4974_v62 = vshll.u32 %v9796_v55, 16  ;;  %v4980_v31 = vshll.u32 %v9804_v28, 16 }
 0x135   : > { %v4963_v2 = vor.u32 %v4962_v58, %v4958_v16  ;;  %7337 = vmatprep.mubr.msk.bf16.mxu0 %vm598_vm1, %v6477_v8  ;;  %v4984_v10 = vshrl.u32 %v9804_v28, 16  ;;  %v4990_v22 = vshll.u32 %v9811_v44, 16  ;;  %v9826_v6 = vpop.f32.mrf.mxu0  ;;  %v9831_v13 = vadd.f32 %v10632_v46, %v9596_v63  ;;  %v9834_v8 = vld [vmem:[%s7587_s26 + $0xc0] sm:$0xf]  ;;  %v10634_v44 = vld [vmem:[#allocation4_spill] sm:$0xff] }
 0x136   : > { %v4973_v12 = vrot.slane %v4971_v43, 4  ;;  %10631 = vst [vmem:[#allocation33_spill] sm:$0xff] %v9826_v6  ;;  %v4954_v0 = vrot.slane %v4953_v5, 4  ;;  %v4976_v3 = vrot.slane %v4974_v62, 5  ;;  %v4982_v58 = vrot.slane %v4980_v31, 5  ;;  %v9847_v31 = vpop.f32.mrf.mxu1 }
 0x137   : > { %v4964_v29 = vrot.slane %v4963_v2, 4  ;;  %v4986_v17 = vrot.slane %v4984_v10, 4  ;;  %v9840_v2 = vpop.f32.mrf.mxu0  ;;  %v6478_v62 = vcombine.low %v9697_v20, %v9705_v37  ;;  %10633 = vst [vmem:[#allocation22_spill] sm:$0xff] %v9847_v31  ;;  %v4992_v10 = vrot.slane %v4990_v22, 5 }
 0x138   : > { %v4959_v43 = vsel %vm7673_vm4, %v4954_v0, %v4958_v16  ;;  %v4977_v5 = vor.u32 %v4976_v3, %v4973_v12  ;;  %v9851_v53 = vadd.f32 %v10634_v44, %v9610_v36  ;;  %v9854_v16 = vld [vmem:[%s7587_s26 + $0xc8] sm:$0x1]  ;;  %v9860_v0 = vadd.f32 %v9423_v14, %v9623_v15  ;;  %v9878_v3 = vld [vmem:[%s7587_s26 + $0xcc] sm:$0xf] }
 0x139   : > { %7356 = vmatmul.mubr.msk.bf16.gmra.mxu1 %vm598_vm1, %v6495_v7  ;;  %v4969_v6 = vsel %vm7673_vm4, %v4964_v29, %v4968_v61  ;;  %v9845_v7 = vld [vmem:[%s7587_s26 + $0xc4] sm:$0xf]  ;;  %v4987_v46 = vor.u32 %v4986_v17, %v4982_v58  ;;  %10635 = vst [vmem:[#allocation4_spill] sm:$0xff] %v9854_v16  ;;  %v9856_v12 = vpop.f32.mrf.mxu0  ;;  %v9864_v29 = vadd.f32 %v9442_v51, %v9640_v41  ;;  %v4995_v17 = vshrl.u32 %v9834_v8, 16 }
 0x13a   : > { %v6496_v63 = vcombine.low %v4959_v43, %v4969_v6  ;;  %v4978_v61 = vrot.slane %v4977_v5, 4  ;;  %10636 = vst [vmem:[#allocation34_spill] sm:$0xff] %v9860_v0  ;;  %7338 = vmatmul.mubr.msk.bf16.gmra.mxu0 %vm598_vm1, %v6478_v62  ;;  %v4998_v44 = vshll.u32 %v9834_v8, 16  ;;  %v5004_v22 = vshll.u32 %v9845_v7, 16  ;;  %v9880_v43 = vpop.f32.mrf.mxu1 }
 0x13b   : > { %10637 = vst [vmem:[#allocation35_spill] sm:$0xff] %v9864_v29  ;;  %v4988_v36 = vrot.slane %v4987_v46, 4  ;;  %v9873_v15 = vpop.f32.mrf.mxu0  ;;  %v4997_v51 = vrot.slane %v4995_v17, 4  ;;  %v5008_v41 = vshrl.u32 %v9845_v7, 16  ;;  %v5014_v6 = vshll.u32 %v9854_v16, 16  ;;  %10639 = vst [vmem:[#allocation37_spill] sm:$0xff] %v9880_v43 }
 0x13c   : > { %7359 = vmatprep.mubr.msk.bf16.mxu1 %vm598_vm1, %v6496_v63  ;;  %v4983_v14 = vsel %vm7673_vm4, %v4978_v61, %v4982_v58  ;;  %10638 = vst [vmem:[#allocation36_spill] sm:$0xff] %v9873_v15  ;;  %v5000_v62 = vrot.slane %v4998_v44, 5  ;;  %v5006_v63 = vrot.slane %v5004_v22, 5  ;;  %v9885_v46 = vld [vmem:[%s7587_s26 + $0xd0] sm:$0xf]  ;;  %v6479_v15 = vcombine.low %v9751_v21, %v9759_v19 }
 0x13d   : > { %v4993_v5 = vsel %vm7673_vm4, %v4988_v36, %v4992_v10  ;;  %v9888_v29 = vld [vmem:[%s7587_s26 + $0xd4] sm:$0x1]  ;;  %v9890_v61 = vpop.f32.mrf.mxu0  ;;  %v5010_v17 = vrot.slane %v5008_v41, 4  ;;  %v5016_v16 = vrot.slane %v5014_v6, 5  ;;  %v5019_v43 = vshrl.u32 %v9878_v3, 16  ;;  %v9903_v41 = vpop.f32.mrf.mxu1  ;;  %s6607_s26 = sshll.u32 %s10709_s28, 7 }
 0x13e   : > { %10640 = vst [vmem:[#allocation38_spill] sm:$0xff] %v9888_v29  ;;  %v6497_v58 = vcombine.low %v4983_v14, %v4993_v5  ;;  %10641 = vst [vmem:[#allocation39_spill] sm:$0xff] %v9890_v61  ;;  %v5001_v0 = vor.u32 %v5000_v62, %v4997_v51  ;;  %v5022_v31 = vshll.u32 %v9878_v3, 16  ;;  %7341 = vmatprep.mubr.msk.bf16.mxu0 %vm598_vm1, %v6479_v15  ;;  %v5028_v36 = vshll.u32 %v9885_v46, 16  ;;  %s10161_s14 = scalar_lea.vmem %s10464_s4, %s6607_s26  ;;  %s10202_s17 = scalar_lea.vmem %s10463_s3, %s6607_s26 }
 0x13f   : > { %v5011_v10 = vor.u32 %v5010_v17, %v5006_v63  ;;  %v5032_v44 = vshrl.u32 %v9885_v46, 16  ;;  %v5038_v22 = vshll.u32 %v9888_v29, 16  ;;  %v9901_v14 = vpop.f32.mrf.mxu0  ;;  %10642 = vst [vmem:[#allocation40_spill] sm:$0xff] %v9903_v41  ;;  %v5021_v6 = vrot.slane %v5019_v43, 4  ;;  %v9927_v43 = vpop.f32.mrf.mxu1 }
 0x140   : > { %v5002_v51 = vrot.slane %v5001_v0, 4  ;;  %v5024_v5 = vrot.slane %v5022_v31, 5  ;;  %v9907_v62 = vadd.f32 %v9467_v18, %v9663_v25  ;;  %v1672_v15 = vadd.f32 %v9790_v59, %v9748_v27 }
 0x141   : > { %7360 = vmatmul.mubr.msk.bf16.gmra.mxu1 %vm598_vm1, %v6497_v58  ;;  %v5012_v58 = vrot.slane %v5011_v10, 4  ;;  %v5030_v17 = vrot.slane %v5028_v36, 5  ;;  %v5034_v61 = vrot.slane %v5032_v44, 4  ;;  %v9911_v34 = vpop.f32.mrf.mxu0  ;;  %v5040_v41 = vrot.slane %v5038_v22, 5 }
 0x142   : > { %v5007_v29 = vsel %vm7673_vm4, %v5002_v51, %v5006_v63  ;;  %v5025_v35 = vor.u32 %v5024_v5, %v5021_v6  ;;  %v6480_v31 = vcombine.low %v9796_v55, %v9804_v28  ;;  %v1320_v27 = vadd.f32 %v9497_v42, %v9677_v47  ;;  %v10647_v5 = vld [vmem:[#allocation18_spill] sm:$0xff] }
 0x143   : > { %v5017_v18 = vsel %vm7673_vm4, %v5012_v58, %v5016_v16  ;;  %v5035_v25 = vor.u32 %v5034_v61, %v5030_v17  ;;  %v9923_v59 = vadd.f32 %v9522_v39, %v9689_v60  ;;  %v9925_v0 = vpop.f32.mrf.mxu0  ;;  %v9932_v36 = vadd.f32 %v9541_v45, %v9715_v48 }
 0x144   : > { %v6498_v63 = vcombine.low %v5007_v29, %v5017_v18  ;;  %v5026_v10 = vrot.slane %v5025_v35, 4  ;;  %7342 = vmatmul.mubr.msk.bf16.gmra.mxu0 %vm598_vm1, %v6480_v31  ;;  %v6481_v16 = vcombine.low %v9834_v8, %v9845_v7  ;;  %v1670_v42 = vadd.f32 %v9808_v32, %v9765_v38  ;;  %v10644_v29 = vld [vmem:[#allocation12_spill] sm:$0xff] }
 0x145   : > { %v5036_v39 = vrot.slane %v5035_v25, 4  ;;  %v1326_v47 = vadd.f32 %v9562_v33, %v9727_v30  ;;  %v1676_v60 = vadd.f32 %v9840_v2, %v9831_v13  ;;  %v9945_v45 = vpop.f32.mrf.mxu0  ;;  %v6482_v48 = vcombine.low %v9878_v3, %v9885_v46  ;;  %v9953_v30 = vpop.f32.mrf.mxu1  ;;  %v10643_v13 = vld [vmem:[#allocation10_spill] sm:$0xff] }
 0x146   : > { %7363 = vmatprep.mubr.msk.bf16.mxu1 %vm598_vm1, %v6498_v63  ;;  %v5031_v35 = vsel %vm7673_vm4, %v5026_v10, %v5030_v17  ;;  %7345 = vmatprep.mubr.msk.bf16.mxu0 %vm598_vm1, %v6481_v16  ;;  %v6508_v38 = vrot.slane %v9502_v40, 9  ;;  %v1324_v32 = vadd.f32 %v10643_v13, %v9739_v24  ;;  %v9959_v2 = vadd.f32 %v9598_v4, %v9754_v57  ;;  %v10645_v40 = vld [vmem:[#allocation7_spill] sm:$0xff]  ;;  %v10646_v4 = vld [vmem:[#allocation17_spill] sm:$0xff] }
 0x147   : > { %v5041_v33 = vsel %vm7673_vm4, %v5036_v39, %v5040_v41  ;;  %v9963_v61 = vadd.f32 %v10644_v29, %v9778_v1  ;;  %v5217_v22 = vrot.slane %v9517_v56, 5  ;;  %v5220_v51 = vrot.slane %v10645_v40, 5  ;;  %v9970_v41 = vpop.f32.mrf.mxu1  ;;  %v7131_v1 = vpop.f32.mrf.mxu0 }
 0x148   : > { %v6499_v44 = vcombine.low %v5031_v35, %v5041_v33  ;;  %v9968_v54 = vadd.f32 %v9627_v50, %v1672_v15  ;;  %v6509_v24 = vrot.slane %v9586_v23, 9  ;;  %v5224_v6 = vrot.slane %v9601_v9, 5  ;;  %v10649_v15 = vld [vmem:[#allocation8_spill] sm:$0xff] }
 0x149   : > { %v5227_v57 = vrot.slane %v10646_v4, 5  ;;  %v9976_v58 = vadd.f32 %v10647_v5, %v1670_v42  ;;  %v5218_v17 = vsel %vm7831_vm7, %v6508_v38, %v5217_v22  ;;  %v5219_v31 = vrot.slane %v5217_v22, 4  ;;  %v1655_v18 = vpop.f32.mrf.mxu0  ;;  %v9987_v25 = vpop.f32.mrf.mxu1 }
 0x14a   : > { %7364 = vmatmul.mubr.msk.bf16.gmra.mxu1 %vm598_vm1, %v6499_v44  ;;  %v1674_v50 = vadd.f32 %v9856_v12, %v9851_v53  ;;  %v5226_v23 = vrot.slane %v5224_v6, 4  ;;  %v6510_v9 = vrot.slane %v9651_v49, 9  ;;  %v5231_v10 = vrot.slane %v9660_v52, 5 }
 0x14b   : > { %7387 = vmatprep.mubr.msk.bf16.mxu1 %vm598_vm1, %v10649_v15  ;;  %v5221_v63 = vsel %vm7831_vm7, %v5219_v31, %v5220_v51  ;;  %v5234_v16 = vrot.slane %v9670_v26, 5  ;;  %v9994_v53 = vadd.f32 %v9694_v11, %v1676_v60  ;;  %v5225_v42 = vsel %vm7831_vm7, %v6509_v24, %v5224_v6  ;;  %v10002_v35 = vpop.f32.mrf.mxu0  ;;  %v10650_v11 = vld [vmem:[#allocation23_spill] sm:$0xff]  ;;  %v10012_v33 = vpop.f32.mrf.mxu1  ;;  %v10652_v24 = vld [vmem:[#allocation21_spill] sm:$0xff]  ;;  %v10656_v15 = vld [vmem:[#allocation28_spill] sm:$0xff] }
 0x14c   : > { %7346 = vmatmul.mubr.msk.bf16.gmra.mxu0 %vm598_vm1, %v6482_v48  ;;  %v6517_v12 = vcombine.low %v5218_v17, %v5221_v63  ;;  %v5228_v49 = vsel %vm7831_vm7, %v5226_v23, %v5227_v57  ;;  %v1680_v39 = vadd.f32 %v9901_v14, %v9907_v62  ;;  %v5232_v52 = vsel %vm7831_vm7, %v6510_v9, %v5231_v10  ;;  %v10653_v6 = vld [vmem:[#allocation27_spill] sm:$0xff]  ;;  %v10654_v57 = vld [vmem:[#allocation26_spill] sm:$0xff] }
 0x14d   : > { %v5233_v48 = vrot.slane %v5231_v10, 4  ;;  %v5238_v26 = vrot.slane %v9705_v37, 5  ;;  %v10009_v60 = vadd.f32 %v10650_v11, %v1674_v50  ;;  %v1678_v38 = vadd.f32 %v9911_v34, %v1320_v27  ;;  %v10014_v13 = vpop.f32.mrf.mxu0  ;;  %v10651_v37 = vld [vmem:[#allocation15_spill] sm:$0xff]  ;;  %v10658_v11 = vld [vmem:[#allocation30_spill] sm:$0xff] }
 0x14e   : > { %7369 = vmatprep.mubr.msk.bf16.mxu0 %vm598_vm1, %v6517_v12  ;;  %v6518_v14 = vcombine.low %v5225_v42, %v5228_v49  ;;  %v6511_v29 = vrot.slane %v9697_v20, 9  ;;  %v5241_v40 = vrot.slane %v10651_v37, 5  ;;  %v5245_v51 = vrot.slane %v9759_v19, 5  ;;  %v10655_v20 = vld [vmem:[#allocation5_spill] sm:$0xff]  ;;  %v10657_v12 = vld [vmem:[#allocation22_spill] sm:$0xff] }
 0x14f   : > { %v5235_v62 = vsel %vm7831_vm7, %v5233_v48, %v5234_v16  ;;  %v5240_v22 = vrot.slane %v5238_v26, 4  ;;  %v10023_v34 = vpop.f32.mrf.mxu0  ;;  %v6512_v27 = vrot.slane %v9751_v21, 9  ;;  %v5248_v4 = vrot.slane %v10653_v6, 5  ;;  %v10032_v50 = vpop.f32.mrf.mxu1 }
 0x150   : > { %v6519_v44 = vcombine.low %v5232_v52, %v5235_v62  ;;  %v10028_v5 = vadd.f32 %v10654_v57, %v1680_v39  ;;  %v1684_v17 = vadd.f32 %v7131_v1, %v1326_v47  ;;  %v5247_v31 = vrot.slane %v5245_v51, 4 }
 0x151   : > { %v10035_v19 = vpop.f32.mrf.mxu0  ;;  %v10038_v23 = vadd.f32 %v10656_v15, %v1678_v38  ;;  %v1682_v21 = vadd.f32 %v1655_v18, %v1324_v32  ;;  %v5239_v9 = vsel %vm7831_vm7, %v6511_v29, %v5238_v26  ;;  %v5242_v47 = vsel %vm7831_vm7, %v5240_v22, %v5241_v40  ;;  %v10046_v63 = vpop.f32.mrf.mxu1  ;;  %v10660_v29 = vld [vmem:[#allocation6_spill] sm:$0xff]  ;;  %v10661_v40 = vld [vmem:[#allocation4_spill] sm:$0xff] }
 0x152   : > { %7388 = vmatmul.mubr.msk.bf16.vlgmr.msra.gmra.mxu1 %vm598_vm1, %v10652_v24  ;;  %v5252_v1 = vrot.slane %v9804_v28, 5  ;;  %v5246_v16 = vsel %vm7831_vm7, %v6512_v27, %v5245_v51  ;;  %v5249_v32 = vsel %vm7831_vm7, %v5247_v31, %v5248_v4  ;;  %v5259_v18 = vrot.slane %v9845_v7, 5  ;;  %v10662_v24 = vld [vmem:[#allocation9_spill] sm:$0xff] }
 0x153   : > { %7391 = vmatprep.mubr.msk.bf16.mxu1 %vm598_vm1, %v10655_v20  ;;  %v10048_v10 = vpop.f32.mrf.mxu0  ;;  %v10056_v42 = vadd.f32 %v10657_v12, %v1684_v17  ;;  %v10058_v49 = vpop.f32.mrf.mxu1  ;;  %v6520_v28 = vcombine.low %v5239_v9, %v5242_v47  ;;  %v6513_v52 = vrot.slane %v9796_v55, 9  ;;  %v6521_v48 = vcombine.low %v5246_v16, %v5249_v32  ;;  %v10663_v32 = vld [vmem:[#allocation38_spill] sm:$0xff] }
 0x154   : > { %7370 = vmatmul.mubr.msk.bf16.vlgmr.msra.gmra.mxu0 %vm598_vm1, %v6518_v14  ;;  %v5254_v26 = vrot.slane %v5252_v1, 4  ;;  %v5255_v38 = vrot.slane %v10658_v11, 5  ;;  %v10659_v14 = vld [vmem:[#allocation37_spill] sm:$0xff]  ;;  %v6514_v22 = vrot.slane %v9834_v8, 9  ;;  %v5261_v37 = vrot.slane %v5259_v18, 4 }
 0x155   : > { %7373 = vmatprep.mubr.msk.bf16.mxu0 %vm598_vm1, %v6519_v44  ;;  %v10060_v39 = vpop.f32.mrf.mxu0  ;;  %v10065_v62 = vadd.f32 %v10659_v14, %v1682_v21  ;;  %v10069_v7 = vpop.f32.mrf.mxu1  ;;  %v5262_v51 = vrot.slane %v10661_v40, 5  ;;  %v5253_v6 = vsel %vm7831_vm7, %v6513_v52, %v5252_v1  ;;  %v5266_v8 = vrot.slane %v9885_v46, 5  ;;  %v10664_v46 = vld [vmem:[#allocation11_spill] sm:$0xff]  ;;  %v10666_v14 = vld [vmem:[#allocation20_spill] sm:$0xff]  ;;  %v10669_v40 = vld [vmem:[#allocation33_spill] sm:$0xff] }
 0x156   : > { %v5256_v4 = vsel %vm7831_vm7, %v5254_v26, %v5255_v38  ;;  %v5260_v20 = vsel %vm7831_vm7, %v6514_v22, %v5259_v18  ;;  %v6515_v1 = vrot.slane %v9878_v3, 9  ;;  %v5269_v12 = vrot.slane %v10663_v32, 5  ;;  %v10665_v18 = vld [vmem:[#allocation19_spill] sm:$0xff] }
 0x157   : > { %v7159_v44 = vpop.f32.mrf.mxu0  ;;  %v10075_v55 = vpop.f32.mrf.mxu1  ;;  %v5263_v31 = vsel %vm7831_vm7, %v5261_v37, %v5262_v51  ;;  %v6522_v9 = vcombine.low %v5253_v6, %v5256_v4  ;;  %v5268_v16 = vrot.slane %v5266_v8, 4  ;;  %v10668_v37 = vld [vmem:[#allocation3_spill] sm:$0xff]  ;;  %v10671_v6 = vld [vmem:[#allocation36_spill] sm:$0xff] }
 0x158   : > { %v6523_v47 = vcombine.low %v5260_v20, %v5263_v31  ;;  %v5267_v3 = vsel %vm7831_vm7, %v6515_v1, %v5266_v8  ;;  %v1671_v51 = vadd.f32 %v10669_v40, %v10668_v37  ;;  %v10672_v20 = vld [vmem:[#allocation35_spill] sm:$0xff]  ;;  %v10674_v1 = vld [vmem:[#allocation16_spill] sm:$0xff]  ;;  %v1685_v40 = vadd.f32 %v10002_v35, %v9959_v2 }
 0x159   : > { %v2060_v27 = vpop.f32.mrf.mxu0  ;;  %v10084_v57 = vpop.f32.mrf.mxu1  ;;  %v5270_v26 = vsel %vm7831_vm7, %v5268_v16, %v5269_v12  ;;  %v10673_v31 = vld [vmem:[#allocation39_spill] sm:$0xff]  ;;  %v1681_v12 = vadd.f32 %v9925_v0, %v9923_v59  ;;  %v2109_v0 = vadd.f32 %v10023_v34, %v9968_v54  ;;  %v10680_v34 = vld [vmem:[#allocation32_spill] sm:$0xff] }
 0x15a   : > { %7392 = vmatmul.mubr.msk.bf16.gmra.mxu1 %vm598_vm1, %v10660_v29  ;;  %v10667_v29 = vld [vmem:[#allocation31_spill] sm:$0xff]  ;;  %v6524_v56 = vcombine.low %v5267_v3, %v5270_v26  ;;  %v1683_v3 = vadd.f32 %v10014_v13, %v9963_v61  ;;  %v10677_v26 = vld [vmem:[#allocation24_spill] sm:$0xff]  ;;  %v2113_v61 = vadd.f32 %v7159_v44, %v9994_v53  ;;  %v2111_v35 = vadd.f32 %v2060_v27, %v10009_v60 }
 0x15b   : > { %7395 = vmatprep.mubr.msk.bf16.mxu1 %vm598_vm1, %v10662_v24  ;;  %v7160_v17 = vpop.f32.mrf.mxu0  ;;  %v10090_v15 = vpop.f32.mrf.mxu1  ;;  %v1673_v22 = vadd.f32 %v10667_v29, %v10666_v14  ;;  %v10670_v24 = vld [vmem:[#allocation34_spill] sm:$0xff]  ;;  %v2467_v60 = vadd.f32 %v9953_v30, %v2109_v0 }
 0x15c   : > { %7374 = vmatmul.mubr.msk.bf16.gmra.mxu0 %vm598_vm1, %v6520_v28  ;;  %v1677_v4 = vadd.f32 %v10671_v6, %v10670_v24  ;;  %v10676_v29 = vld [vmem:[#allocation14_spill] sm:$0xff]  ;;  %v10678_v6 = vld [vmem:[#allocation25_spill] sm:$0xff]  ;;  %v2471_v30 = vadd.f32 %v10032_v50, %v2113_v61 }
 0x15d   : > { %7377 = vmatprep.mubr.msk.bf16.mxu0 %vm598_vm1, %v6521_v48  ;;  %v2063_v21 = vpop.f32.mrf.mxu0  ;;  %v10096_v28 = vpop.f32.mrf.mxu1  ;;  %v1901_v37 = vadd.f32 %v10676_v29, %v1671_v51 }
 0x15e   : > { %v1907_v24 = vadd.f32 %v10677_v26, %v1677_v4 }
 0x15f   : > { %v7163_v52 = vpop.f32.mrf.mxu0  ;;  %v2108_v2 = vadd.f32 %v10060_v39, %v1901_v37  ;;  %v1913_v39 = vadd.f32 %v9927_v43, %v1683_v3 }
 0x160   : > { %v2114_v51 = vadd.f32 %v7160_v17, %v1907_v24  ;;  %v2117_v54 = vadd.f32 %v7163_v52, %v10028_v5 }
 0x161   : > { %v2076_v48 = vpop.f32.mrf.mxu0  ;;  %v10106_v11 = vpop.f32.mrf.mxu1  ;;  %v2466_v17 = vadd.f32 %v10012_v33, %v2108_v2 }
 0x162   : > { %7396 = vmatmul.mubr.msk.bf16.gmra.mxu1 %vm598_vm1, %v10664_v46  ;;  %v1679_v46 = vadd.f32 %v9945_v45, %v9932_v36  ;;  %v2107_v36 = vadd.f32 %v10035_v19, %v9976_v58  ;;  %v10168_v33 = vadd.f32 %v10058_v49, %v2114_v51  ;;  %v10176_v50 = vadd.f32 %v10075_v55, %v2117_v54 }
 0x163   : > { %7399 = vmatprep.mubr.msk.bf16.mxu1 %vm598_vm1, %v10665_v18  ;;  %v7164_v38 = vpop.f32.mrf.mxu0  ;;  %v10675_v18 = vld [vmem:[#allocation13_spill] sm:$0xff] }
 0x164   : > { %7378 = vmatmul.mubr.msk.bf16.gmra.mxu0 %vm598_vm1, %v6522_v9  ;;  %v1675_v9 = vadd.f32 %v10673_v31, %v10672_v20  ;;  %v1903_v14 = vadd.f32 %v10675_v18, %v1673_v22  ;;  %v1909_v58 = vadd.f32 %v10680_v34, %v1679_v46  ;;  %v2465_v44 = vadd.f32 %v9970_v41, %v2107_v36 }
 0x165   : > { %7381 = vmatprep.mubr.msk.bf16.mxu0 %vm598_vm1, %v6523_v47  ;;  %v10116_v47 = vpop.f32.mrf.mxu1  ;;  %v2079_v8 = vpop.f32.mrf.mxu0  ;;  %v10165_v41 = vadd.f32 %v10046_v63, %v2111_v35 }
 0x166   : > { %v1905_v20 = vadd.f32 %v10678_v6, %v1675_v9  ;;  %v2110_v45 = vadd.f32 %v10048_v10, %v1903_v14  ;;  %v10679_v9 = vld [vmem:[#allocation29_spill] sm:$0xff]  ;;  %v10681_v10 = vld [vmem:[#allocation40_spill] sm:$0xff] }
 0x167   : > { %v10120_v16 = vpop.f32.mrf.mxu1  ;;  %v7167_v32 = vpop.f32.mrf.mxu0 }
 0x168   : > { %v2112_v4 = vadd.f32 %v2063_v21, %v1905_v20  ;;  %v2468_v27 = vadd.f32 %v9987_v25, %v2110_v45  ;;  %v2115_v21 = vadd.f32 %v2076_v48, %v10038_v23  ;;  %v2116_v48 = vadd.f32 %v2079_v8, %v1909_v58 }
 0x169   : > { %v10134_v31 = vpop.f32.mrf.mxu1  ;;  %v2092_v59 = vpop.f32.mrf.mxu0 }
 0x16a   : > { %7400 = vmatmul.mubr.msk.bf16.gmra.mxu1 %vm598_vm1, %v10674_v1  ;;  %v1915_v1 = vadd.f32 %v10681_v10, %v1685_v40  ;;  %v10171_v23 = vadd.f32 %v10069_v7, %v2112_v4  ;;  %v2119_v46 = vadd.f32 %v2092_v59, %v10065_v62  ;;  %v10180_v8 = vadd.f32 %v10084_v57, %v2115_v21 }
 0x16b   : > { %v7209_v13 = vpop.f32.mrf.mxu1  ;;  %v7168_v22 = vpop.f32.mrf.mxu0  ;;  %v10187_v0 = vadd.f32 %v10096_v28, %v2116_v48 }
 0x16c   : > { %7382 = vmatmul.mubr.msk.bf16.gmra.mxu0 %vm598_vm1, %v6524_v56  ;;  %v1911_v56 = vadd.f32 %v10679_v9, %v1681_v12  ;;  %v2896_v63 = vmul.f32 %v7209_v13, %v7209_v13  ;;  %v2122_v3 = vadd.f32 %v7168_v22, %v1915_v1  ;;  %v10193_v57 = vadd.f32 %v10116_v47, %v2119_v46 }
 0x16d   : > { %v2749_v19 = vpop.f32.mrf.mxu1  ;;  %v2095_v53 = vpop.f32.mrf.mxu0 }
 0x16e   : > { %v2118_v12 = vadd.f32 %v7164_v38, %v1911_v56  ;;  %v2894_v25 = vmul.f32 %v2749_v19, %v2749_v19  ;;  %v2121_v38 = vadd.f32 %v7167_v32, %v10056_v42  ;;  %v10195_v45 = vadd.f32 %v2095_v53, %v1913_v39 }
 0x16f   : > { %v7210_v43 = vpop.f32.mrf.mxu1  ;;  %v7191_v5 = vpop.f32.mrf.mxu0  ;;  %v10205_v47 = vadd.f32 %v10120_v16, %v2122_v3 }
 0x170   : > { %v6721_v52 = vpack.c.bf16 %v7210_v43, %v7209_v13  ;;  %v2897_v40 = vmul.f32 %v7210_v43, %v7210_v43  ;;  %v10183_v42 = vadd.f32 %v10090_v15, %v2118_v12  ;;  %v2697_v6 = vadd.f32 %v7191_v5, %v2467_v60 }
 0x171   : > { %v2752_v18 = vpop.f32.mrf.mxu1  ;;  %v2632_v14 = vpop.f32.mrf.mxu0  ;;  %v10190_v36 = vadd.f32 %v10106_v11, %v2121_v38 }
 0x172   : > { %6840 = vst [vmem:[%s10161_s14 + $0x8] sm:$0xff] %v6721_v52   ;;  %v2872_v29 = vadd.f32 %v2752_v18, %v2749_v19  ;;  %v2895_v37 = vmul.f32 %v2752_v18, %v2752_v18  ;;  %v6716_v49 = vpack.c.bf16 %v2752_v18, %v2749_v19  ;;  %v2695_v55 = vadd.f32 %v2632_v14, %v2465_v44 }
 0x173   : > { %v7213_v7 = vpop.f32.mrf.mxu1  ;;  %v7192_v26 = vpop.f32.mrf.mxu0  ;;  %v2836_v16 = vmul.f32 %v2697_v6, %v2697_v6 }
 0x174   : > { %v2873_v62 = vadd.f32 %v7209_v13, %v2872_v29  ;;  %v2910_v32 = vadd.f32 %v2895_v37, %v2894_v25  ;;  %6717 = vst [vmem:[%s10161_s14] sm:$0xff] %v6716_v49   ;;  %v2698_v24 = vadd.f32 %v7192_v26, %v2468_v27  ;;  %v2900_v28 = vmul.f32 %v7213_v7, %v7213_v7 }
 0x175   : > { %v2765_v20 = vpop.f32.mrf.mxu1  ;;  %v2635_v59 = vpop.f32.mrf.mxu0  ;;  %v2834_v9 = vmul.f32 %v2695_v55, %v2695_v55 }
 0x176   : > { %v2911_v15 = vadd.f32 %v2910_v32, %v2896_v63  ;;  %v2874_v2 = vadd.f32 %v7210_v43, %v2873_v62  ;;  %v2898_v61 = vmul.f32 %v2765_v20, %v2765_v20  ;;  %v6681_v13 = vpack.c.bf16 %v2698_v24, %v2697_v6 }
 0x177   : > { %v7214_v35 = vpop.f32.mrf.mxu1  ;;  %v2696_v11 = vadd.f32 %v2635_v59, %v2466_v17  ;;  %v7195_v22 = vpop.f32.mrf.mxu0  ;;  %v2837_v48 = vmul.f32 %v2698_v24, %v2698_v24 }
 0x178   : > { %v2875_v51 = vadd.f32 %v2874_v2, %v2765_v20  ;;  %v2912_v4 = vadd.f32 %v2911_v15, %v2897_v40  ;;  %v6731_v56 = vpack.c.bf16 %v7214_v35, %v7213_v7  ;;  %6833 = vst [vmem:[%s10202_s17 + $0x8] sm:$0xff] %v6681_v13   ;;  %v2701_v10 = vadd.f32 %v7195_v22, %v2471_v30 }
 0x179   : > { %v2768_v54 = vpop.f32.mrf.mxu1  ;;  %v2812_v34 = vadd.f32 %v2696_v11, %v2695_v55  ;;  %v2835_v58 = vmul.f32 %v2696_v11, %v2696_v11  ;;  %v6676_v19 = vpack.c.bf16 %v2696_v11, %v2695_v55  ;;  %v2648_v1 = vpop.f32.mrf.mxu0  ;;  %v2901_v5 = vmul.f32 %v7214_v35, %v7214_v35 }
 0x17a   : > { %v2913_v39 = vadd.f32 %v2912_v4, %v2898_v61  ;;  %6842 = vst [vmem:[%s10161_s14 + $0x18] sm:$0xff] %v6731_v56   ;;  %v2876_v53 = vadd.f32 %v2875_v51, %v2768_v54  ;;  %v2899_v60 = vmul.f32 %v2768_v54, %v2768_v54  ;;  %v6726_v44 = vpack.c.bf16 %v2768_v54, %v2765_v20 }
 0x17b   : > { %v2813_v27 = vadd.f32 %v2812_v34, %v2697_v6  ;;  %v2850_v17 = vadd.f32 %v2835_v58, %v2834_v9  ;;  %6677 = vst [vmem:[%s10202_s17] sm:$0xff] %v6676_v19   ;;  %v7217_v21 = vpop.f32.mrf.mxu1  ;;  %v2699_v12 = vadd.f32 %v2648_v1, %v10165_v41  ;;  %v7196_v43 = vpop.f32.mrf.mxu0  ;;  %v2840_v46 = vmul.f32 %v2701_v10, %v2701_v10 }
 0x17c   : > { %v2877_v25 = vadd.f32 %v7213_v7, %v2876_v53  ;;  %v2914_v52 = vadd.f32 %v2913_v39, %v2899_v60  ;;  %6841 = vst [vmem:[%s10161_s14 + $0x10] sm:$0xff] %v6726_v44   ;;  %v2702_v30 = vadd.f32 %v7196_v43, %v10168_v33  ;;  %v2904_v33 = vmul.f32 %v7217_v21, %v7217_v21 }
 0x17d   : > { %v2851_v38 = vadd.f32 %v2850_v17, %v2836_v16  ;;  %v2781_v18 = vpop.f32.mrf.mxu1  ;;  %v2814_v14 = vadd.f32 %v2813_v27, %v2698_v24  ;;  %v2651_v63 = vpop.f32.mrf.mxu0  ;;  %v2838_v40 = vmul.f32 %v2699_v12, %v2699_v12 }
 0x17e   : > { %v2915_v29 = vadd.f32 %v2914_v52, %v2900_v28  ;;  %v2878_v37 = vadd.f32 %v7214_v35, %v2877_v25  ;;  %v2902_v49 = vmul.f32 %v2781_v18, %v2781_v18  ;;  %v6691_v7 = vpack.c.bf16 %v2702_v30, %v2701_v10 }
 0x17f   : > { %v2815_v3 = vadd.f32 %v2814_v14, %v2699_v12  ;;  %v2852_v41 = vadd.f32 %v2851_v38, %v2837_v48  ;;  %v7218_v26 = vpop.f32.mrf.mxu1  ;;  %v2700_v62 = vadd.f32 %v2651_v63, %v10171_v23  ;;  %v7199_v32 = vpop.f32.mrf.mxu0  ;;  %v2841_v39 = vmul.f32 %v2702_v30, %v2702_v30 }
 0x180   : > { %v2879_v55 = vadd.f32 %v2878_v37, %v2781_v18  ;;  %v2916_v6 = vadd.f32 %v2915_v29, %v2901_v5  ;;  %v6741_v20 = vpack.c.bf16 %v7218_v26, %v7217_v21  ;;  %6835 = vst [vmem:[%s10202_s17 + $0x18] sm:$0xff] %v6691_v7   ;;  %v2905_v23 = vmul.f32 %v7218_v26, %v7218_v26 }
 0x181   : > { %v2853_v24 = vadd.f32 %v2852_v41, %v2838_v40  ;;  %v2784_v59 = vpop.f32.mrf.mxu1  ;;  %v2816_v15 = vadd.f32 %v2815_v3, %v2700_v62  ;;  %v2839_v2 = vmul.f32 %v2700_v62, %v2700_v62  ;;  %v6686_v61 = vpack.c.bf16 %v2700_v62, %v2699_v12  ;;  %v2664_v28 = vpop.f32.mrf.mxu0 }
 0x182   : > { %v2917_v35 = vadd.f32 %v2916_v6, %v2902_v49  ;;  %6844 = vst [vmem:[%s10161_s14 + $0x28] sm:$0xff] %v6741_v20   ;;  %v2880_v13 = vadd.f32 %v2879_v55, %v2784_v59  ;;  %v2903_v11 = vmul.f32 %v2784_v59, %v2784_v59  ;;  %v6736_v22 = vpack.c.bf16 %v2784_v59, %v2781_v18 }
 0x183   : > { %v2817_v51 = vadd.f32 %v2816_v15, %v2701_v10  ;;  %v2854_v4 = vadd.f32 %v2853_v24, %v2839_v2  ;;  %6834 = vst [vmem:[%s10202_s17 + $0x10] sm:$0xff] %v6686_v61   ;;  %v7221_v9 = vpop.f32.mrf.mxu1  ;;  %v2703_v56 = vadd.f32 %v2664_v28, %v10180_v8  ;;  %v7200_v54 = vpop.f32.mrf.mxu0  ;;  %v2705_v19 = vadd.f32 %v7199_v32, %v10176_v50 }
 0x184   : > { %v2881_v34 = vadd.f32 %v7217_v21, %v2880_v13  ;;  %v2918_v58 = vadd.f32 %v2917_v35, %v2903_v11  ;;  %6843 = vst [vmem:[%s10161_s14 + $0x20] sm:$0xff] %v6736_v22   ;;  %v2706_v1 = vadd.f32 %v7200_v54, %v10183_v42  ;;  %v2908_v60 = vmul.f32 %v7221_v9, %v7221_v9 }
 0x185   : > { %v2855_v53 = vadd.f32 %v2854_v4, %v2840_v46  ;;  %v2797_v44 = vpop.f32.mrf.mxu1  ;;  %v2818_v16 = vadd.f32 %v2817_v51, %v2702_v30  ;;  %v2667_v27 = vpop.f32.mrf.mxu0  ;;  %v2842_v43 = vmul.f32 %v2703_v56, %v2703_v56  ;;  %v2844_v42 = vmul.f32 %v2705_v19, %v2705_v19 }
 0x186   : > { %v2919_v10 = vadd.f32 %v2918_v58, %v2904_v33  ;;  %v2882_v17 = vadd.f32 %v7218_v26, %v2881_v34  ;;  %v2906_v12 = vmul.f32 %v2797_v44, %v2797_v44  ;;  %v6701_v25 = vpack.c.bf16 %v2706_v1, %v2705_v19 }
 0x187   : > { %v2819_v8 = vadd.f32 %v2818_v16, %v2703_v56  ;;  %v2856_v5 = vadd.f32 %v2855_v53, %v2841_v39  ;;  %v7222_v21 = vpop.f32.mrf.mxu1  ;;  %v2704_v50 = vadd.f32 %v2667_v27, %v10187_v0  ;;  %v7203_v52 = vpop.f32.mrf.mxu0  ;;  %v2845_v59 = vmul.f32 %v2706_v1, %v2706_v1 }
 0x188   : > { %v2883_v48 = vadd.f32 %v2882_v17, %v2797_v44  ;;  %v2920_v38 = vadd.f32 %v2919_v10, %v2905_v23  ;;  %v6751_v46 = vpack.c.bf16 %v7222_v21, %v7221_v9  ;;  %6837 = vst [vmem:[%s10202_s17 + $0x28] sm:$0xff] %v6701_v25   ;;  %v2909_v0 = vmul.f32 %v7222_v21, %v7222_v21 }
 0x189   : > { %v2857_v30 = vadd.f32 %v2856_v5, %v2842_v43  ;;  %v2800_v18 = vpop.f32.mrf.mxu1  ;;  %v2820_v14 = vadd.f32 %v2819_v8, %v2704_v50  ;;  %v2843_v63 = vmul.f32 %v2704_v50, %v2704_v50  ;;  %v6696_v29 = vpack.c.bf16 %v2704_v50, %v2703_v56  ;;  %v2680_v37 = vpop.f32.mrf.mxu0 }
 0x18a   : > { %v2921_v49 = vadd.f32 %v2920_v38, %v2906_v12  ;;  %6846 = vst [vmem:[%s10161_s14 + $0x38] sm:$0xff] %v6751_v46   ;;  %v2884_v40 = vadd.f32 %v2883_v48, %v2800_v18  ;;  %v2907_v3 = vmul.f32 %v2800_v18, %v2800_v18  ;;  %v6746_v41 = vpack.c.bf16 %v2800_v18, %v2797_v44 }
 0x18b   : > { %v2821_v26 = vadd.f32 %v2820_v14, %v2705_v19  ;;  %v2858_v7 = vadd.f32 %v2857_v30, %v2843_v63  ;;  %6836 = vst [vmem:[%s10202_s17 + $0x20] sm:$0xff] %v6696_v29   ;;  %v7245_v62 = vpop.f32.mrf.mxu1  ;;  %v2707_v32 = vadd.f32 %v2680_v37, %v10193_v57  ;;  %v7204_v33 = vpop.f32.mrf.mxu0  ;;  %v2709_v20 = vadd.f32 %v7203_v52, %v10190_v36 }
 0x18c   : > { %v2885_v55 = vadd.f32 %v7221_v9, %v2884_v40  ;;  %v2922_v6 = vadd.f32 %v2921_v49, %v2907_v3  ;;  %6845 = vst [vmem:[%s10161_s14 + $0x30] sm:$0xff] %v6746_v41   ;;  %v2710_v24 = vadd.f32 %v7204_v33, %v10205_v47  ;;  %v2478_v28 = vadd.f32 %v10134_v31, %v10195_v45 }
 0x18d   : > { %v2859_v15 = vadd.f32 %v2858_v7, %v2844_v42  ;;  %v3560_v2 = vpop.f32.mrf.mxu1  ;;  %v2822_v61 = vadd.f32 %v2821_v26, %v2706_v1  ;;  %v2683_v35 = vpop.f32.mrf.mxu0  ;;  %v2846_v23 = vmul.f32 %v2707_v32, %v2707_v32  ;;  %v2848_v39 = vmul.f32 %v2709_v20, %v2709_v20 }
 0x18e   : > { %v10231_v13 = vadd.f32 %v7222_v21, %v2885_v55  ;;  %v2923_v57 = vadd.f32 %v2922_v6, %v2908_v60  ;;  %v6711_v11 = vpack.c.bf16 %v2710_v24, %v2709_v20  ;;  %v2708_v36 = vadd.f32 %v2683_v35, %v2478_v28 }
 0x18f   : > { %v2823_v22 = vadd.f32 %v2822_v61, %v2707_v32  ;;  %v2860_v51 = vadd.f32 %v2859_v15, %v2845_v59  ;;  %v7246_v4 = vpop.f32.mrf.mxu1  ;;  %v7227_v47 = vpop.f32.mrf.mxu0  ;;  %v2849_v10 = vmul.f32 %v2710_v24, %v2710_v24 }
 0x190   : > { %v10233_v9 = vadd.f32 %v2923_v57, %v2909_v0  ;;  %6839 = vst [vmem:[%s10202_s17 + $0x38] sm:$0xff] %v6711_v11   ;;  %v3569_v56 = vadd.f32 %v7245_v62, %v7227_v47  ;;  %v2847_v31 = vmul.f32 %v2708_v36, %v2708_v36  ;;  %v6706_v45 = vpack.c.bf16 %v2708_v36, %v2707_v32 }
 0x191   : > { %v2861_v54 = vadd.f32 %v2860_v51, %v2846_v23  ;;  %v3563_v34 = vpop.f32.mrf.mxu1  ;;  %v2824_v58 = vadd.f32 %v2823_v22, %v2708_v36  ;;  %v3396_v19 = vpop.f32.mrf.mxu0 }
 0x192   : > { %v3561_v1 = vadd.f32 %v3560_v2, %v3396_v19  ;;  %6838 = vst [vmem:[%s10202_s17 + $0x30] sm:$0xff] %v6706_v45  }
 0x193   : > { %v2825_v53 = vadd.f32 %v2824_v58, %v2709_v20  ;;  %v2862_v60 = vadd.f32 %v2861_v54, %v2847_v31  ;;  %v7249_v44 = vpop.f32.mrf.mxu1  ;;  %v7228_v16 = vpop.f32.mrf.mxu0 }
 0x194   : > { %v3572_v27 = vadd.f32 %v7246_v4, %v7228_v16 }
 0x195   : > { %v10237_v17 = vadd.f32 %v2825_v53, %v2710_v24  ;;  %v2863_v12 = vadd.f32 %v2862_v60, %v2848_v39  ;;  %v3576_v43 = vpop.f32.mrf.mxu1  ;;  %v3399_v8 = vpop.f32.mrf.mxu0 }
 0x196   : > { %v3564_v5 = vadd.f32 %v3563_v34, %v3399_v8 }
 0x197   : > { %v10239_v21 = vadd.f32 %v2863_v12, %v2849_v10  ;;  %v7250_v25 = vpop.f32.mrf.mxu1  ;;  %v7231_v50 = vpop.f32.mrf.mxu0 }
 0x198   : > { %v3585_v52 = vadd.f32 %v7249_v44, %v7231_v50 }
 0x199   : > { %v3579_v42 = vpop.f32.mrf.mxu1  ;;  %v3412_v48 = vpop.f32.mrf.mxu0 }
 0x19a   : > { %v3577_v38 = vadd.f32 %v3576_v43, %v3412_v48 }
 0x19b   : > { %v7253_v46 = vpop.f32.mrf.mxu1  ;;  %v7232_v30 = vpop.f32.mrf.mxu0 }
 0x19c   : > { %v3588_v18 = vadd.f32 %v7250_v25, %v7232_v30 }
 0x19d   : > { %v3592_v14 = vpop.f32.mrf.mxu1  ;;  %v3415_v63 = vpop.f32.mrf.mxu0 }
 0x19e   : > { %v3580_v29 = vadd.f32 %v3579_v42, %v3415_v63 }
 0x19f   : > { %v7254_v37 = vpop.f32.mrf.mxu1  ;;  %v7235_v49 = vpop.f32.mrf.mxu0 }
 0x1a0   : > { %v3601_v40 = vadd.f32 %v7253_v46, %v7235_v49 }
 0x1a1   : > { %v3595_v3 = vpop.f32.mrf.mxu1  ;;  %v3428_v41 = vpop.f32.mrf.mxu0 }
 0x1a2   : > { %v3593_v0 = vadd.f32 %v3592_v14, %v3428_v41 }
 0x1a3   : > { %v7257_v26 = vpop.f32.mrf.mxu1  ;;  %v7236_v7 = vpop.f32.mrf.mxu0 }
 0x1a4   : > { %v3604_v62 = vadd.f32 %v7254_v37, %v7236_v7 }
 0x1a5   : > { %v3608_v32 = vpop.f32.mrf.mxu1  ;;  %v3431_v33 = vpop.f32.mrf.mxu0 }
 0x1a6   : > { %v3596_v55 = vadd.f32 %v3595_v3, %v3431_v33 }
 0x1a7   : > { %v7258_v6 = vpop.f32.mrf.mxu1  ;;  %v7239_v20 = vpop.f32.mrf.mxu0 }
 0x1a8   : > { %v3617_v24 = vadd.f32 %v7257_v26, %v7239_v20 }
 0x1a9   : > { %v3611_v59 = vpop.f32.mrf.mxu1  ;;  %v3444_v15 = vpop.f32.mrf.mxu0 }
 0x1aa   : > { %v3609_v2 = vadd.f32 %v3608_v32, %v3444_v15 }
 0x1ab   : > { %v7281_v61 = vpop.f32.mrf.mxu1  ;;  %v7240_v28 = vpop.f32.mrf.mxu0 }
 0x1ac   : > { %v3620_v35 = vadd.f32 %v7258_v6, %v7240_v28 }
 0x1ad   : > { %v3979_v57 = vpop.f32.mrf.mxu1  ;;  %v3447_v11 = vpop.f32.mrf.mxu0 }
 0x1ae   : > { %v3612_v22 = vadd.f32 %v3611_v59, %v3447_v11 }
 0x1af   : > { %v7282_v23 = vpop.f32.mrf.mxu1  ;;  %v7263_v51 = vpop.f32.mrf.mxu0 }
 0x1b0   : > { %v3838_v4 = vadd.f32 %v7263_v51, %v3569_v56 }
 0x1b1   : > { %v3982_v36 = vpop.f32.mrf.mxu1  ;;  %v3773_v47 = vpop.f32.mrf.mxu0 }
 0x1b2   : > { %v3836_v54 = vadd.f32 %v3773_v47, %v3561_v1  ;;  %v4044_v34 = vadd.f32 %v7281_v61, %v3838_v4 }
 0x1b3   : > { %v7285_v58 = vpop.f32.mrf.mxu1  ;;  %v7264_v31 = vpop.f32.mrf.mxu0 }
 0x1b4   : > { %v3839_v45 = vadd.f32 %v7264_v31, %v3572_v27  ;;  %v4042_v19 = vadd.f32 %v3979_v57, %v3836_v54 }
 0x1b5   : > { %v3995_v39 = vpop.f32.mrf.mxu1  ;;  %v3776_v53 = vpop.f32.mrf.mxu0 }
 0x1b6   : > { %v3837_v60 = vadd.f32 %v3776_v53, %v3564_v5  ;;  %v10241_v44 = vadd.f32 %v7282_v23, %v3839_v45 }
 0x1b7   : > { %v7286_v16 = vpop.f32.mrf.mxu1  ;;  %v7267_v10 = vpop.f32.mrf.mxu0 }
 0x1b8   : > { %v3842_v12 = vadd.f32 %v7267_v10, %v3585_v52  ;;  %v10243_v43 = vadd.f32 %v3982_v36, %v3837_v60 }
 0x1b9   : > { %v3998_v8 = vpop.f32.mrf.mxu1  ;;  %v3789_v56 = vpop.f32.mrf.mxu0 }
 0x1ba   : > { %v3840_v25 = vadd.f32 %v3789_v56, %v3577_v38  ;;  %v4048_v50 = vadd.f32 %v7285_v58, %v3842_v12 }
 0x1bb   : > { %v7289_v1 = vpop.f32.mrf.mxu1  ;;  %v7268_v42 = vpop.f32.mrf.mxu0 }
 0x1bc   : > { %v3843_v48 = vadd.f32 %v7268_v42, %v3588_v18  ;;  %v10245_v46 = vadd.f32 %v3995_v39, %v3840_v25 }
 0x1bd   : > { %v4011_v27 = vpop.f32.mrf.mxu1  ;;  %v3792_v30 = vpop.f32.mrf.mxu0 }
 0x1be   : > { %v3841_v14 = vadd.f32 %v3792_v30, %v3580_v29  ;;  %v10247_v5 = vadd.f32 %v7286_v16, %v3843_v48 }
 0x1bf   : > { %v7290_v63 = vpop.f32.mrf.mxu1  ;;  %v7271_v37 = vpop.f32.mrf.mxu0 }
 0x1c0   : > { %v3846_v49 = vadd.f32 %v7271_v37, %v3601_v40  ;;  %v10249_v52 = vadd.f32 %v3998_v8, %v3841_v14 }
 0x1c1   : > { %v4014_v3 = vpop.f32.mrf.mxu1  ;;  %v3805_v41 = vpop.f32.mrf.mxu0 }
 0x1c2   : > { %v3844_v26 = vadd.f32 %v3805_v41, %v3593_v0  ;;  %v4052_v38 = vadd.f32 %v7289_v1, %v3846_v49 }
 0x1c3   : > { %v7272_v32 = vpop.f32.mrf.mxu0 }
 0x1c4   : > { %v3847_v33 = vadd.f32 %v7272_v32, %v3604_v62  ;;  %v10251_v18 = vadd.f32 %v4011_v27, %v3844_v26 }
 0x1c5   : > { %v7293_v7 = vpop.f32.mrf.mxu1  ;;  %v3808_v20 = vpop.f32.mrf.mxu0 }
 0x1c6   : > { %v3845_v59 = vadd.f32 %v3808_v20, %v3596_v55  ;;  %v10253_v29 = vadd.f32 %v7290_v63, %v3847_v33 }
 0x1c7   : > { %v4027_v6 = vpop.f32.mrf.mxu1 }
 0x1c8   : > { %v10255_v40 = vadd.f32 %v4014_v3, %v3845_v59 }
 0x1c9   : > { %v7294_v15 = vpop.f32.mrf.mxu1  ;;  %v7275_v61 = vpop.f32.mrf.mxu0 }
 0x1ca   : > { %v3850_v28 = vadd.f32 %v7275_v61, %v3617_v24 }
 0x1cb   : > { %v4030_v57 = vpop.f32.mrf.mxu1  ;;  %v3821_v11 = vpop.f32.mrf.mxu0 }
 0x1cc   : > { %v3848_v23 = vadd.f32 %v3821_v11, %v3609_v2  ;;  %v4056_v0 = vadd.f32 %v7293_v7, %v3850_v28 }
 0x1cd   : > { %v7276_v4 = vpop.f32.mrf.mxu0 }
 0x1ce   : > { %v7317_v51 = vpop.f32.mrf.mxu1  ;;  %v3851_v36 = vadd.f32 %v7276_v4, %v3620_v35  ;;  %v10257_v62 = vadd.f32 %v4027_v6, %v3848_v23 }
 0x1cf   : > { %v3824_v54 = vpop.f32.mrf.mxu0 }
 0x1d0   : > { %v4565_v47 = vpop.f32.mrf.mxu1  ;;  %v3849_v58 = vadd.f32 %v3824_v54, %v3612_v22  ;;  %v10259_v55 = vadd.f32 %v7294_v15, %v3851_v36 }
 0x1d1   : > { %v7299_v45 = vpop.f32.mrf.mxu0 }
 0x1d2   : > { %v10261_v31 = vpop.f32.mrf.mxu1  ;;  %v4401_v24 = vadd.f32 %v7299_v45, %v4044_v34  ;;  %v10263_v39 = vadd.f32 %v4030_v57, %v3849_v58 }
 0x1d3   : > { %v4336_v2 = vpop.f32.mrf.mxu0 }
 0x1d4   : > { %v10265_v53 = vpop.f32.mrf.mxu1  ;;  %v4399_v60 = vadd.f32 %v4336_v2, %v4042_v19  ;;  %v10267_v16 = vadd.f32 %v7317_v51, %v4401_v24 }
 0x1d5   : > { %v7300_v10 = vpop.f32.mrf.mxu0 }
 0x1d6   : > { %v10269_v12 = vadd.f32 %v4565_v47, %v4399_v60 }
 0x1d7   : > { %v7321_v35 = vpop.f32.mrf.mxu1  ;;  %v4339_v22 = vpop.f32.mrf.mxu0 }
 0x1d9   : > { %v10271_v8 = vpop.f32.mrf.mxu1  ;;  %v7303_v25 = vpop.f32.mrf.mxu0 }
 0x1da   : > { %v4405_v1 = vadd.f32 %v7303_v25, %v4048_v50 }
 0x1db   : > { %v10273_v56 = vpop.f32.mrf.mxu1  ;;  %v4352_v42 = vpop.f32.mrf.mxu0 }
 0x1dc   : > { %v10277_v48 = vadd.f32 %v7321_v35, %v4405_v1 }
 0x1dd   : > { %v10275_v34 = vpop.f32.mrf.mxu1  ;;  %v7304_v19 = vpop.f32.mrf.mxu0 }
 0x1df   : > { %v4355_v14 = vpop.f32.mrf.mxu0 }
 0x1e0   : > { %v7325_v27 = vpop.f32.mrf.mxu1 }
 0x1e1   : > { %v7307_v37 = vpop.f32.mrf.mxu0 }
 0x1e2   : > { %v10279_v30 = vpop.f32.mrf.mxu1  ;;  %v4409_v49 = vadd.f32 %v7307_v37, %v4052_v38 }
 0x1e3   : > { %v4368_v41 = vpop.f32.mrf.mxu0 }
 0x1e4   : > { %v10281_v63 = vpop.f32.mrf.mxu1  ;;  %v10285_v26 = vadd.f32 %v7325_v27, %v4409_v49 }
 0x1e5   : > { %v7308_v7 = vpop.f32.mrf.mxu0 }
 0x1e6   : > { %v10283_v3 = vpop.f32.mrf.mxu1 }
 0x1e7   : > { %v4371_v33 = vpop.f32.mrf.mxu0 }
 0x1e9   : > { %v7329_v50 = vpop.f32.mrf.mxu1  ;;  %v7311_v20 = vpop.f32.mrf.mxu0 }
 0x1ea   : > { %v4413_v59 = vadd.f32 %v7311_v20, %v4056_v0 }
 0x1eb   : > { %v10287_v32 = vpop.f32.mrf.mxu1  ;;  %v4384_v61 = vpop.f32.mrf.mxu0 }
 0x1ec   : > { %v10293_v28 = vadd.f32 %v7329_v50, %v4413_v59  ;;  %v2887_v50 = vrot.slane %v10231_v13, 4 }
 0x1ed   : > { %v10289_v6 = vpop.f32.mrf.mxu1  ;;  %v7312_v57 = vpop.f32.mrf.mxu0 }
 0x1ee   : > { %10682 = vst [vmem:[#allocation10_spill] sm:$0xff] %v10293_v28 }
 0x1ef   : > { %v10291_v15 = vpop.f32.mrf.mxu1  ;;  %v4387_v23 = vpop.f32.mrf.mxu0 }
 0x1f1   : > { %v10295_v38 = vpop.f32.mrf.mxu1  ;;  %v7335_v4 = vpop.f32.mrf.mxu0 }
 0x1f2   : > { %10683 = vst [vmem:[#allocation12_spill] sm:$0xff] %v10295_v38 }
 0x1f3   : > { %v10297_v11 = vpop.f32.mrf.mxu1  ;;  %v4771_v47 = vpop.f32.mrf.mxu0 }
 0x1f4   : > { %10684 = vst [vmem:[#allocation7_spill] sm:$0xff] %v10297_v11  ;;  %v4407_v11 = vadd.f32 %v4368_v41, %v10251_v18 }
 0x1f5   : > { %v10299_v51 = vpop.f32.mrf.mxu1  ;;  %v7336_v0 = vpop.f32.mrf.mxu0 }
 0x1f6   : > { %10685 = vst [vmem:[#allocation17_spill] sm:$0xff] %v10299_v51 }
 0x1f7   : > { %v10301_v36 = vpop.f32.mrf.mxu1  ;;  %v4774_v45 = vpop.f32.mrf.mxu0 }
 0x1f8   : > { %10686 = vst [vmem:[#allocation18_spill] sm:$0xff] %v10301_v36 }
 0x1f9   : > { %v10303_v54 = vpop.f32.mrf.mxu1 }
 0x1fa   : > { %10687 = vst [vmem:[#allocation2_spill] sm:$0xff] %v10303_v54  ;;  %v7339_v2 = vpop.f32.mrf.mxu0  ;;  %v4402_v54 = vadd.f32 %v7300_v10, %v10241_v44 }
 0x1fb   : > { %v10305_v58 = vpop.f32.mrf.mxu1 }
 0x1fc   : > { %10688 = vst [vmem:[#allocation8_spill] sm:$0xff] %v10305_v58  ;;  %v4787_v35 = vpop.f32.mrf.mxu0  ;;  %v4631_v10 = vadd.f32 %v10261_v31, %v4402_v54  ;;  %v4412_v31 = vadd.f32 %v4387_v23, %v10263_v39 }
 0x1fd   : > { %v10307_v24 = vpop.f32.mrf.mxu1 }
 0x1fe   : > { %10689 = vst [vmem:[#allocation23_spill] sm:$0xff] %v10307_v24  ;;  %v7340_v25 = vpop.f32.mrf.mxu0  ;;  %v10321_v24 = vadd.f32 %v2887_v50, %v10231_v13  ;;  %v4410_v50 = vadd.f32 %v7308_v7, %v10253_v29  ;;  %v4636_v7 = vadd.f32 %v10279_v30, %v4407_v11  ;;  %v4837_v54 = vadd.f32 %v7336_v0, %v4631_v10 }
 0x1ff   : > { %v10309_v60 = vpop.f32.mrf.mxu1  ;;  %v4641_v0 = vadd.f32 %v10291_v15, %v4412_v31 }
 0x200   : > { %10690 = vst [vmem:[#allocation15_spill] sm:$0xff] %v10309_v60  ;;  %v4790_v27 = vpop.f32.mrf.mxu0  ;;  %v2925_v60 = vrot.slane %v10233_v9, 4  ;;  %v2889_v13 = vrot.slane %v10321_v24, 2 }
 0x201   : > { %v10311_v1 = vpop.f32.mrf.mxu1 }
 0x202   : > { %10691 = vst [vmem:[#allocation21_spill] sm:$0xff] %v10311_v1  ;;  %v4400_v1 = vadd.f32 %v4339_v22, %v10243_v43  ;;  %v10337_v43 = vadd.f32 %v2925_v60, %v10233_v9  ;;  %v4411_v9 = vadd.f32 %v4384_v61, %v10257_v62  ;;  %v4840_v62 = vadd.f32 %v7339_v2, %v10277_v48  ;;  %v10695_v48 = vld [vmem:[#allocation12_spill] sm:$0xff] }
 0x203   : > { %v10313_v37 = vpop.f32.mrf.mxu1 }
 0x204   : > { %10692 = vst [vmem:[#allocation27_spill] sm:$0xff] %v10313_v37  ;;  %v7343_v20 = vpop.f32.mrf.mxu0  ;;  %v4403_v37 = vadd.f32 %v4352_v42, %v10245_v46  ;;  %v2827_v46 = vrot.slane %v10237_v17, 4  ;;  %v4629_v18 = vadd.f32 %v10265_v53, %v4400_v1  ;;  %v4834_v53 = vadd.f32 %v4771_v47, %v10269_v12 }
 0x205   : > { %v10315_v49 = vpop.f32.mrf.mxu1  ;;  %v4844_v30 = vadd.f32 %v7343_v20, %v10285_v26  ;;  %v10697_v26 = vld [vmem:[#allocation17_spill] sm:$0xff]  ;;  %v10702_v15 = vld [vmem:[#allocation23_spill] sm:$0xff] }
 0x206   : > { %10693 = vst [vmem:[#allocation26_spill] sm:$0xff] %v10315_v49  ;;  %v4803_v28 = vpop.f32.mrf.mxu0  ;;  %v4406_v49 = vadd.f32 %v7304_v19, %v10247_v5  ;;  %v2865_v5 = vrot.slane %v10239_v21, 4  ;;  %v4632_v22 = vadd.f32 %v10271_v8, %v4403_v37  ;;  %v4639_v8 = vadd.f32 %v10281_v63, %v4410_v50  ;;  %v10699_v37 = vld [vmem:[#allocation2_spill] sm:$0xff] }
 0x207   : > { %v10318_v59 = vpop.f32.mrf.mxu1  ;;  %v4835_v60 = vadd.f32 %v4774_v45, %v4629_v18  ;;  %v4842_v11 = vadd.f32 %v4803_v28, %v4636_v7  ;;  %v4640_v63 = vadd.f32 %v10287_v32, %v4411_v9  ;;  %v5194_v1 = vadd.f32 %v10697_v26, %v4837_v54  ;;  %v10703_v50 = vld [vmem:[#allocation15_spill] sm:$0xff] }
 0x208   : > { %10694 = vst [vmem:[#allocation5_spill] sm:$0xff] %v10318_v59  ;;  %v7344_v58 = vpop.f32.mrf.mxu0  ;;  %v4404_v59 = vadd.f32 %v4355_v14, %v10249_v52  ;;  %v4408_v52 = vadd.f32 %v4371_v33, %v10255_v40  ;;  %v4635_v29 = vadd.f32 %v10273_v56, %v4406_v49  ;;  %v4414_v14 = vadd.f32 %v7312_v57, %v10259_v55  ;;  %v10701_v49 = vld [vmem:[#allocation10_spill] sm:$0xff] }
 0x209   : > { %v4836_v40 = vadd.f32 %v7335_v4, %v10267_v16  ;;  %v4838_v55 = vadd.f32 %v4787_v35, %v4632_v22  ;;  %v4845_v12 = vadd.f32 %v7344_v58, %v4639_v8  ;;  %v10696_v35 = vld [vmem:[#allocation7_spill] sm:$0xff]  ;;  %v10369_v28 = vadd.f32 %v10699_v37, %v4840_v62  ;;  %v10700_v58 = vld [vmem:[#allocation8_spill] sm:$0xff] }
 0x20a   : > { %v10328_v36 = vpop.f32.mrf.mxu1  ;;  %v4806_v51 = vpop.f32.mrf.mxu0  ;;  %v4633_v41 = vadd.f32 %v10275_v34, %v4404_v59  ;;  %v4841_v61 = vadd.f32 %v7340_v25, %v4635_v29  ;;  %v4637_v39 = vadd.f32 %v10283_v3, %v4408_v52  ;;  %v4643_v23 = vadd.f32 %v10289_v6, %v4414_v14  ;;  %v10698_v3 = vld [vmem:[#allocation18_spill] sm:$0xff]  ;;  %v10704_v52 = vld [vmem:[#allocation21_spill] sm:$0xff] }
 0x20b   : > { %v5193_v45 = vadd.f32 %v10695_v48, %v4836_v40  ;;  %v5191_v25 = vadd.f32 %v10696_v35, %v4834_v53  ;;  %v5195_v32 = vadd.f32 %v10700_v58, %v4838_v55  ;;  %v10380_v18 = vadd.f32 %v10704_v52, %v4844_v30  ;;  %v10705_v9 = vld [vmem:[#allocation27_spill] sm:$0xff] }
 0x20c   : > { %v10334_v38 = vpop.f32.mrf.mxu1  ;;  %v7347_v44 = vpop.f32.mrf.mxu0  ;;  %v4839_v34 = vadd.f32 %v4790_v27, %v4633_v41  ;;  %v4843_v4 = vadd.f32 %v4806_v51, %v4637_v39  ;;  %v5192_v27 = vadd.f32 %v10698_v3, %v4835_v60  ;;  %v10374_v59 = vadd.f32 %v10702_v15, %v4841_v61 }
 0x20d   : > { %v4848_v6 = vadd.f32 %v7347_v44, %v10701_v49  ;;  %v10383_v14 = vadd.f32 %v10705_v9, %v4842_v11  ;;  %v10706_v41 = vld [vmem:[#allocation26_spill] sm:$0xff] }
 0x20e   : > { %v10346_v42 = vpop.f32.mrf.mxu1  ;;  %v4819_v19 = vpop.f32.mrf.mxu0  ;;  %v10377_v10 = vadd.f32 %v10703_v50, %v4839_v34  ;;  %v10386_v7 = vadd.f32 %v10706_v41, %v4845_v12 }
 0x20f   : > { %v4846_v44 = vadd.f32 %v4819_v19, %v4640_v63  ;;  %v10707_v54 = vld [vmem:[#allocation5_spill] sm:$0xff]  ;;  %v10393_v19 = vadd.f32 %v10328_v36, %v4848_v6 }
 0x210   : > { %v10356_v56 = vpop.f32.mrf.mxu1  ;;  %v7348_v33 = vpop.f32.mrf.mxu0  ;;  %v10389_v60 = vadd.f32 %v10707_v54, %v4843_v4 }
 0x211   : > { %v4849_v31 = vadd.f32 %v7348_v33, %v4643_v23  ;;  %v10397_v26 = vadd.f32 %v10334_v38, %v4846_v44 }
 0x212   : > { %v7389_v57 = vpop.f32.mrf.mxu1  ;;  %v4822_v16 = vpop.f32.mrf.mxu0 }
 0x213   : > { %v4847_v53 = vadd.f32 %v4822_v16, %v4641_v0  ;;  %v5621_v62 = vmul.f32 %v7389_v57, %v7389_v57 }
 0x214   : > { %v5474_v47 = vpop.f32.mrf.mxu1  ;;  %v7371_v2 = vpop.f32.mrf.mxu0 }
 0x215   : > { %v5619_v22 = vmul.f32 %v5474_v47, %v5474_v47  ;;  %v5422_v39 = vadd.f32 %v7371_v2, %v5193_v45  ;;  %v10403_v45 = vadd.f32 %v10356_v56, %v4847_v53 }
 0x216   : > { %v7390_v51 = vpop.f32.mrf.mxu1  ;;  %v5357_v20 = vpop.f32.mrf.mxu0 }
 0x217   : > { %v6801_v29 = vpack.c.bf16 %v7390_v51, %v7389_v57  ;;  %v5420_v11 = vadd.f32 %v5357_v20, %v5191_v25  ;;  %v5622_v33 = vmul.f32 %v7390_v51, %v7390_v51 }
 0x218   : > { %v5477_v40 = vpop.f32.mrf.mxu1  ;;  %v7372_v8 = vpop.f32.mrf.mxu0 }
 0x219   : > { %6856 = vst [vmem:[%s10161_s14 + $0x48] sm:$0xff] %v6801_v29   ;;  %v5597_v55 = vadd.f32 %v5477_v40, %v5474_v47  ;;  %v5620_v61 = vmul.f32 %v5477_v40, %v5477_v40  ;;  %v6796_v34 = vpack.c.bf16 %v5477_v40, %v5474_v47  ;;  %v5423_v48 = vadd.f32 %v7372_v8, %v5194_v1 }
 0x21a   : > { %v7393_v30 = vpop.f32.mrf.mxu1  ;;  %v5360_v12 = vpop.f32.mrf.mxu0  ;;  %v10400_v47 = vadd.f32 %v10346_v42, %v4849_v31  ;;  %v5561_v1 = vmul.f32 %v5422_v39, %v5422_v39  ;;  %v5559_v3 = vmul.f32 %v5420_v11, %v5420_v11 }
 0x21b   : > { %v5598_v16 = vadd.f32 %v7389_v57, %v5597_v55  ;;  %v5635_v63 = vadd.f32 %v5620_v61, %v5619_v22  ;;  %6855 = vst [vmem:[%s10161_s14 + $0x40] sm:$0xff] %v6796_v34   ;;  %v5421_v23 = vadd.f32 %v5360_v12, %v5192_v27  ;;  %v6761_v0 = vpack.c.bf16 %v5423_v48, %v5422_v39 }
 0x21c   : > { %v5490_v4 = vpop.f32.mrf.mxu1  ;;  %v7375_v35 = vpop.f32.mrf.mxu0  ;;  %v5625_v49 = vmul.f32 %v7393_v30, %v7393_v30  ;;  %v5562_v15 = vmul.f32 %v5423_v48, %v5423_v48 }
 0x21d   : > { %v5636_v36 = vadd.f32 %v5635_v63, %v5621_v62  ;;  %v5599_v2 = vadd.f32 %v7390_v51, %v5598_v16  ;;  %v5623_v25 = vmul.f32 %v5490_v4, %v5490_v4  ;;  %v5537_v57 = vadd.f32 %v5421_v23, %v5420_v11  ;;  %6848 = vst [vmem:[%s10202_s17 + $0x48] sm:$0xff] %v6761_v0  }
 0x21e   : > { %v7394_v27 = vpop.f32.mrf.mxu1  ;;  %v5560_v37 = vmul.f32 %v5421_v23, %v5421_v23  ;;  %v6756_v58 = vpack.c.bf16 %v5421_v23, %v5420_v11  ;;  %v5373_v38 = vpop.f32.mrf.mxu0  ;;  %v5426_v53 = vadd.f32 %v7375_v35, %v10369_v28 }
 0x21f   : > { %v5600_v6 = vadd.f32 %v5599_v2, %v5490_v4  ;;  %v5637_v42 = vadd.f32 %v5636_v36, %v5622_v33  ;;  %v6811_v20 = vpack.c.bf16 %v7394_v27, %v7393_v30  ;;  %v5538_v50 = vadd.f32 %v5537_v57, %v5422_v39 }
 0x220   : > { %v5493_v56 = vpop.f32.mrf.mxu1  ;;  %v5575_v52 = vadd.f32 %v5560_v37, %v5559_v3  ;;  %6847 = vst [vmem:[%s10202_s17 + $0x40] sm:$0xff] %v6756_v58   ;;  %v5424_v51 = vadd.f32 %v5373_v38, %v5195_v32  ;;  %v7376_v22 = vpop.f32.mrf.mxu0  ;;  %v5626_v55 = vmul.f32 %v7394_v27, %v7394_v27 }
 0x221   : > { %v5638_v29 = vadd.f32 %v5637_v42, %v5623_v25  ;;  %6858 = vst [vmem:[%s10161_s14 + $0x58] sm:$0xff] %v6811_v20   ;;  %v5601_v9 = vadd.f32 %v5600_v6, %v5493_v56  ;;  %v5624_v41 = vmul.f32 %v5493_v56, %v5493_v56  ;;  %v6806_v44 = vpack.c.bf16 %v5493_v56, %v5490_v4 }
 0x222   : > { %v5576_v31 = vadd.f32 %v5575_v52, %v5561_v1  ;;  %v7397_v40 = vpop.f32.mrf.mxu1  ;;  %v5539_v8 = vadd.f32 %v5538_v50, %v5423_v48  ;;  %v5427_v54 = vadd.f32 %v7376_v22, %v10374_v59  ;;  %v5376_v62 = vpop.f32.mrf.mxu0  ;;  %v5563_v12 = vmul.f32 %v5424_v51, %v5424_v51 }
 0x223   : > { %v5602_v61 = vadd.f32 %v7393_v30, %v5601_v9  ;;  %v5639_v34 = vadd.f32 %v5638_v29, %v5624_v41  ;;  %6857 = vst [vmem:[%s10161_s14 + $0x50] sm:$0xff] %v6806_v44   ;;  %v5425_v32 = vadd.f32 %v5376_v62, %v10377_v10  ;;  %v5565_v59 = vmul.f32 %v5426_v53, %v5426_v53 }
 0x224   : > { %v5506_v39 = vpop.f32.mrf.mxu1  ;;  %v5540_v11 = vadd.f32 %v5539_v8, %v5424_v51  ;;  %v5577_v33 = vadd.f32 %v5576_v31, %v5562_v15  ;;  %v6771_v16 = vpack.c.bf16 %v5427_v54, %v5426_v53  ;;  %v7379_v63 = vpop.f32.mrf.mxu0  ;;  %v5629_v10 = vmul.f32 %v7397_v40, %v7397_v40 }
 0x225   : > { %v5640_v23 = vadd.f32 %v5639_v34, %v5625_v49  ;;  %v5603_v4 = vadd.f32 %v7394_v27, %v5602_v61  ;;  %v5627_v28 = vmul.f32 %v5506_v39, %v5506_v39  ;;  %v5564_v48 = vmul.f32 %v5425_v32, %v5425_v32 }
 0x226   : > { %v5578_v0 = vadd.f32 %v5577_v33, %v5563_v12  ;;  %v7398_v35 = vpop.f32.mrf.mxu1  ;;  %6850 = vst [vmem:[%s10202_s17 + $0x58] sm:$0xff] %v6771_v16   ;;  %v5541_v30 = vadd.f32 %v5540_v11, %v5425_v32  ;;  %v6766_v36 = vpack.c.bf16 %v5425_v32, %v5424_v51  ;;  %v5389_v2 = vpop.f32.mrf.mxu0  ;;  %v5566_v3 = vmul.f32 %v5427_v54, %v5427_v54 }
 0x227   : > { %v5604_v25 = vadd.f32 %v5603_v4, %v5506_v39  ;;  %v5641_v57 = vadd.f32 %v5640_v23, %v5626_v55  ;;  %v6821_v1 = vpack.c.bf16 %v7398_v35, %v7397_v40  ;;  %v5428_v27 = vadd.f32 %v5389_v2, %v10383_v14 }
 0x228   : > { %v5509_v37 = vpop.f32.mrf.mxu1  ;;  %v5542_v58 = vadd.f32 %v5541_v30, %v5426_v53  ;;  %v5579_v38 = vadd.f32 %v5578_v0, %v5564_v48  ;;  %6849 = vst [vmem:[%s10202_s17 + $0x50] sm:$0xff] %v6766_v36   ;;  %v7380_v49 = vpop.f32.mrf.mxu0  ;;  %v5430_v52 = vadd.f32 %v7379_v63, %v10380_v18  ;;  %v5630_v9 = vmul.f32 %v7398_v35, %v7398_v35 }
 0x229   : > { %v5642_v6 = vadd.f32 %v5641_v57, %v5627_v28  ;;  %6860 = vst [vmem:[%s10161_s14 + $0x68] sm:$0xff] %v6821_v1   ;;  %v5605_v42 = vadd.f32 %v5604_v25, %v5509_v37  ;;  %v5628_v20 = vmul.f32 %v5509_v37, %v5509_v37  ;;  %v6816_v15 = vpack.c.bf16 %v5509_v37, %v5506_v39 }
 0x22a   : > { %v5580_v56 = vadd.f32 %v5579_v38, %v5565_v59  ;;  %v7401_v50 = vpop.f32.mrf.mxu1  ;;  %v5543_v51 = vadd.f32 %v5542_v58, %v5427_v54  ;;  %v5431_v22 = vadd.f32 %v7380_v49, %v10386_v7  ;;  %v5392_v29 = vpop.f32.mrf.mxu0  ;;  %v5567_v8 = vmul.f32 %v5428_v27, %v5428_v27 }
 0x22b   : > { %v5606_v41 = vadd.f32 %v7397_v40, %v5605_v42  ;;  %v5643_v44 = vadd.f32 %v5642_v6, %v5628_v20  ;;  %6859 = vst [vmem:[%s10161_s14 + $0x60] sm:$0xff] %v6816_v15   ;;  %v5429_v14 = vadd.f32 %v5392_v29, %v10389_v60  ;;  %v5569_v7 = vmul.f32 %v5430_v52, %v5430_v52 }
 0x22c   : > { %v5522_v31 = vpop.f32.mrf.mxu1  ;;  %v5544_v53 = vadd.f32 %v5543_v51, %v5428_v27  ;;  %v5581_v62 = vadd.f32 %v5580_v56, %v5566_v3  ;;  %v6781_v55 = vpack.c.bf16 %v5431_v22, %v5430_v52  ;;  %v7383_v61 = vpop.f32.mrf.mxu0  ;;  %v5633_v60 = vmul.f32 %v7401_v50, %v7401_v50 }
 0x22d   : > { %v5644_v34 = vadd.f32 %v5643_v44, %v5629_v10  ;;  %v5607_v32 = vadd.f32 %v7398_v35, %v5606_v41  ;;  %v5631_v18 = vmul.f32 %v5522_v31, %v5522_v31  ;;  %v5568_v54 = vmul.f32 %v5429_v14, %v5429_v14 }
 0x22e   : > { %v5582_v39 = vadd.f32 %v5581_v62, %v5567_v8  ;;  %v7402_v11 = vpop.f32.mrf.mxu1  ;;  %6852 = vst [vmem:[%s10202_s17 + $0x68] sm:$0xff] %v6781_v55   ;;  %v5545_v40 = vadd.f32 %v5544_v53, %v5429_v14  ;;  %v6776_v12 = vpack.c.bf16 %v5429_v14, %v5428_v27  ;;  %v5405_v33 = vpop.f32.mrf.mxu0  ;;  %v5570_v4 = vmul.f32 %v5431_v22, %v5431_v22 }
 0x22f   : > { %v5608_v16 = vadd.f32 %v5607_v32, %v5522_v31  ;;  %v5645_v63 = vadd.f32 %v5644_v34, %v5630_v9  ;;  %v6831_v23 = vpack.c.bf16 %v7402_v11, %v7401_v50  ;;  %v5432_v0 = vadd.f32 %v5405_v33, %v10397_v26 }
 0x230   : > { %v5525_v28 = vpop.f32.mrf.mxu1  ;;  %v5546_v48 = vadd.f32 %v5545_v40, %v5430_v52  ;;  %v5583_v59 = vadd.f32 %v5582_v39, %v5568_v54  ;;  %6851 = vst [vmem:[%s10202_s17 + $0x60] sm:$0xff] %v6776_v12   ;;  %v7384_v35 = vpop.f32.mrf.mxu0  ;;  %v5434_v57 = vadd.f32 %v7383_v61, %v10393_v19  ;;  %v5634_v58 = vmul.f32 %v7402_v11, %v7402_v11 }
 0x231   : > { %v5646_v30 = vadd.f32 %v5645_v63, %v5631_v18  ;;  %6862 = vst [vmem:[%s10161_s14 + $0x78] sm:$0xff] %v6831_v23   ;;  %v5609_v36 = vadd.f32 %v5608_v16, %v5525_v28  ;;  %v5632_v2 = vmul.f32 %v5525_v28, %v5525_v28  ;;  %v6826_v10 = vpack.c.bf16 %v5525_v28, %v5522_v31 }
 0x232   : > { %v5584_v25 = vadd.f32 %v5583_v59, %v5569_v7  ;;  %v5547_v1 = vadd.f32 %v5546_v48, %v5431_v22  ;;  %v5435_v3 = vadd.f32 %v7384_v35, %v10400_v47  ;;  %v5408_v37 = vpop.f32.mrf.mxu0  ;;  %v5571_v6 = vmul.f32 %v5432_v0, %v5432_v0 }
 0x233   : > { %v5610_v38 = vadd.f32 %v7401_v50, %v5609_v36  ;;  %v5647_v27 = vadd.f32 %v5646_v30, %v5632_v2  ;;  %6861 = vst [vmem:[%s10161_s14 + $0x70] sm:$0xff] %v6826_v10   ;;  %v5433_v26 = vadd.f32 %v5408_v37, %v10403_v45  ;;  %v2828_v47 = vadd.f32 %v2827_v46, %v10237_v17 }
 0x234   : > { %v5548_v49 = vadd.f32 %v5547_v1, %v5432_v0  ;;  %v5585_v42 = vadd.f32 %v5584_v25, %v5570_v4  ;;  %v6791_v20 = vpack.c.bf16 %v5435_v3, %v5434_v57  ;;  %v2927_v22 = vrot.slane %v10337_v43, 2 }
 0x235   : > { %v5611_v15 = vadd.f32 %v7402_v11, %v5610_v38  ;;  %v5648_v56 = vadd.f32 %v5647_v27, %v5633_v60  ;;  %v5572_v52 = vmul.f32 %v5433_v26, %v5433_v26  ;;  %v6786_v19 = vpack.c.bf16 %v5433_v26, %v5432_v0 }
 0x236   : > { %v5586_v51 = vadd.f32 %v5585_v42, %v5571_v6  ;;  %6854 = vst [vmem:[%s10202_s17 + $0x78] sm:$0xff] %v6791_v20   ;;  %v5549_v50 = vadd.f32 %v5548_v49, %v5433_v26  ;;  %v2866_v9 = vadd.f32 %v2865_v5, %v10239_v21  ;;  %v5573_v41 = vmul.f32 %v5434_v57, %v5434_v57 }
 0x237   : > { %v5612_v29 = vrot.slane %v5611_v15, 4  ;;  %v5649_v45 = vadd.f32 %v5648_v56, %v5634_v58  ;;  %6853 = vst [vmem:[%s10202_s17 + $0x70] sm:$0xff] %v6786_v19   ;;  %v2890_v31 = vadd.f32 %v2889_v13, %v10321_v24  ;;  %v2829_v53 = vrot.slane %v2828_v47, 2 }
 0x238   : > { %v5550_v44 = vadd.f32 %v5549_v50, %v5434_v57  ;;  %v5587_v14 = vadd.f32 %v5586_v51, %v5572_v52  ;;  %v5574_v8 = vmul.f32 %v5435_v3, %v5435_v3  ;;  %v2928_v61 = vadd.f32 %v2927_v22, %v10337_v43 }
 0x239   : > { %v5613_v17 = vadd.f32 %v5612_v29, %v5611_v15  ;;  %v5650_v46 = vrot.slane %v5649_v45, 4  ;;  %v2867_v18 = vrot.slane %v2866_v9, 2  ;;  %v2891_v5 = vrot.slane %v2890_v31, 1 }
 0x23a   : > { %v5551_v62 = vadd.f32 %v5550_v44, %v5435_v3  ;;  %v5588_v55 = vadd.f32 %v5587_v14, %v5573_v41  ;;  %v2830_v11 = vadd.f32 %v2829_v53, %v2828_v47  ;;  %v2929_v13 = vrot.slane %v2928_v61, 1 }
 0x23b   : > { %v5614_v34 = vrot.slane %v5613_v17, 2  ;;  %v5651_v32 = vadd.f32 %v5650_v46, %v5649_v45  ;;  %v2868_v60 = vadd.f32 %v2867_v18, %v2866_v9  ;;  %v2892_v43 = vadd.f32 %v2891_v5, %v2890_v31 }
 0x23c   : > { %v5552_v54 = vrot.slane %v5551_v62, 4  ;;  %v5589_v21 = vadd.f32 %v5588_v55, %v5574_v8  ;;  %v2831_v28 = vrot.slane %v2830_v11, 1  ;;  %v2930_v0 = vadd.f32 %v2929_v13, %v2928_v61 }
 0x23d   : > { %v5615_v7 = vadd.f32 %v5614_v34, %v5613_v17  ;;  %v5652_v39 = vrot.slane %v5651_v32, 2  ;;  %v2869_v36 = vrot.slane %v2868_v60, 1 }
 0x23e   : > { %v5553_v40 = vadd.f32 %v5552_v54, %v5551_v62  ;;  %v5590_v24 = vrot.slane %v5589_v21, 4  ;;  %v2832_v57 = vadd.f32 %v2831_v28, %v2830_v11 }
 0x23f   : > { %v5616_v12 = vrot.slane %v5615_v7, 1  ;;  %v5653_v33 = vadd.f32 %v5652_v39, %v5651_v32  ;;  %v2870_v37 = vadd.f32 %v2869_v36, %v2868_v60 }
 0x240   : > { %v5554_v16 = vrot.slane %v5553_v40, 2  ;;  %v5591_v63 = vadd.f32 %v5590_v24, %v5589_v21 }
 0x241   : > { %v5617_v23 = vadd.f32 %v5616_v12, %v5615_v7  ;;  %v5654_v4 = vrot.slane %v5653_v33, 1 }
 0x242   : > { %v5555_v48 = vadd.f32 %v5554_v16, %v5553_v40  ;;  %v5592_v59 = vrot.slane %v5591_v63, 2 }
 0x243   : > { %v5618_v35 = vadd.f32 %v5617_v23, %v2892_v43  ;;  %v5655_v30 = vadd.f32 %v5654_v4, %v5653_v33 }
 0x244   : > { %v5556_v2 = vrot.slane %v5555_v48, 1  ;;  %v5593_v10 = vadd.f32 %v5592_v59, %v5591_v63 }
 0x245   : > { %v5656_v25 = vadd.f32 %v5655_v30, %v2930_v0  ;;  %5821 = vst [vmem:[%s347_s20] sm:$0x1] %v5618_v35 }
 0x246   : > { %v5557_v1 = vadd.f32 %v5556_v2, %v5555_v48  ;;  %v5594_v3 = vrot.slane %v5593_v10, 1 }
 0x247   : > { %5822 = vst [vmem:[%s350_s23] sm:$0x1] %v5656_v25 }
 0x248   : > { %v5558_v58 = vadd.f32 %v5557_v1, %v2832_v57  ;;  %v5595_v38 = vadd.f32 %v5594_v3, %v5593_v10 }
 0x24a   : > { %v5596_v27 = vadd.f32 %v5595_v38, %v2870_v37  ;;  %5819 = vst [vmem:[%s341_s29] sm:$0x1] %v5558_v58 }
 0x24c   : > { %5820 = vst [vmem:[%s344_s10] sm:$0x1] %v5596_v27 }
 0x24d PF: > { %s19_s27 = sadd.s32 1, %s7486_s27  }
 0x24e   : > { %p16_p4 = scmp.ge.s32.totalorder %s19_s27, 4  }
 0x250   :  { %18 = sbr.rel (!%p16_p4) target bundleno = 1 (0x1), region = 137 }

// kernel: basic_block_forward.4
= control target key start
LH: loop header
LB: loop body
LE: loop exit
PB: predicated region body
PF: predicated region fallthrough
CT: control target
= control target key end

     0   :  { %s6795_s18 = smov 0   ;;  %s8279_s0 = inlined_call_operand.vmem [shape: bf16[2,16,16,128], index: 0, kind: input, shape index: {}]   ;;  %s8280_s1 = inlined_call_operand.vmem [shape: f32[2,128], index: 1, kind: input, shape index: {}]   ;;  %s8281_s2 = inlined_call_operand.vmem [shape: bf16[3,384,128], index: 2, kind: input, shape index: {}]   ;;  %s8282_s3 = inlined_call_operand.vmem [shape: bf16[2,16,16,128], index: 3, kind: output, shape index: {0}]   ;;  %s8283_s4 = inlined_call_operand.vmem [shape: f32[2,1,128], index: 4, kind: output, shape index: {1}]   ;;  %s8284_s5 = inlined_call_operand.vmem [shape: f32[2,1,128], index: 5, kind: output, shape index: {2}]  }
   0x1 LB: > { %s4988_s19 = sadd.s32 4294967295, %s6762_s18   ;;  %p4992_p0 = scmp.ge.s32.totalorder %s6762_s18, 1  ;;  %s6762_s18 = sphi %s6795_s18, %s16_s18  }
   0x2   : > { %p192_p1 = scmp.lt.s32.totalorder %s6762_s18, 3 }
   0x4   : > { %p193_p2 = pnand %p4992_p0, %p192_p1 }
   0x6   : > { %196 = sbr.rel (%p193_p2) target bundleno = 590 (0x24e), region = 32 }
   0xb   : > { %v6482_v0 = vld [vmem:[%s8281_s2 + $0x138] sm:$0xff]   ;;  %v6485_v3 = vld [vmem:[%s8281_s2 + $0x130] sm:$0xff]   ;;  %v6488_v6 = vld [vmem:[%s8281_s2 + $0x128] sm:$0xff]   ;;  %v6764_v8 = vmov 0   ;;  %p226_p3 = scmp.lt.s32.totalorder %s4988_s19, 1  ;;  %vm865_vm1 = vcmask 1043456  }
   0xc   : > { %v6483_v1 = vld [vmem:[%s8281_s2 + $0xf8] sm:$0xff]   ;;  %5801 = vmatprep.subr.bf16.mxu0 %v6482_v0  ;;  %v6486_v4 = vld [vmem:[%s8281_s2 + $0xf0] sm:$0xff]   ;;  %v6489_v7 = vld [vmem:[%s8281_s2 + $0xe8] sm:$0xff]   ;;  %1277 = vst [vmem:[#allocation2] sm:$0xff] %v6764_v8  ;;  %vm574_vm0 = vsmask.f32 256 }
   0xd   : > { %v6484_v2 = vld [vmem:[%s8281_s2 + $0x178] sm:$0xff]   ;;  %5802 = vmatpush3.bf16.msra.mxu0 %v6483_v1  ;;  %v6487_v5 = vld [vmem:[%s8281_s2 + $0x170] sm:$0xff]   ;;  %1278 = vst [vmem:[#allocation2 + $0x8] sm:$0xf] %v6764_v8  ;;  %1280 = vst [vmem:[#allocation2 + $0x14] sm:$0xf] %v6764_v8 }
   0xe   : > { %6281 = vmatprep.subr.bf16.mxu1 %v6484_v2  ;;  %5803 = vmatprep.subr.bf16.mxu0 %v6485_v3  ;;  %1283 = vst [vmem:[#allocation2 + $0x1a0] sm:$0xf] %v6764_v8  ;;  %1285 = vst [vmem:[#allocation2 + $0x1ac] sm:$0xf] %v6764_v8  ;;  %v6490_v9 = vld [vmem:[%s8281_s2 + $0x168] sm:$0xff]   ;;  %v6491_v10 = vld [vmem:[%s8281_s2 + $0x120] sm:$0xff]  }
   0xf   : > { %6282 = vmatpush3.bf16.msra.mxu1 %v6484_v2  ;;  %v6492_v11 = vld [vmem:[%s8281_s2 + $0xe0] sm:$0xff]   ;;  %v6494_v13 = vld [vmem:[%s8281_s2 + $0x118] sm:$0xff]   ;;  %s8358_s19 = smov (!%p226_p3, %s4988_s19), 1  ;;  %v6497_v16 = vld [vmem:[%s8281_s2 + $0x110] sm:$0xff]   ;;  %vm575_vm2 = vsmask.f32 4368 }
  0x10   : > { %6283 = vmatprep.subr.bf16.mxu1 %v6487_v5  ;;  %v6493_v12 = vld [vmem:[%s8281_s2 + $0x160] sm:$0xff]   ;;  %v6496_v14 = vld [vmem:[%s8281_s2 + $0x158] sm:$0xff]   ;;  %v6499_v17 = vld [vmem:[%s8281_s2 + $0x150] sm:$0xff]   ;;  %s5561_s6 = sshll.u32 %s8358_s19, 7  ;;  %vm866_vm3 = vsmask.f32 7938  ;;  %s238_s21 = scalar_lea.vmem %s8283_s4, %s8358_s19 }
  0x11   : > { %5804 = vmatpush3.bf16.msra.mxu0 %v6486_v4  ;;  %v6495_v15 = vld [vmem:[%s8281_s2 + $0xd8] sm:$0xff]   ;;  %v6498_v18 = vld [vmem:[%s8281_s2 + $0xd0] sm:$0xff]   ;;  %v6500_v19 = vld [vmem:[%s8281_s2 + $0x108] sm:$0xff]   ;;  %s6872_s13 = scalar_lea.vmem %s8279_s0, %s5561_s6  ;;  %vm932_vm4 = vsmask.f32 3328  ;;  %vm1176_vm6 = vcmask 1040384   ;;  %s8065_s17 = scalar_lea.vmem %s8282_s3, %s5561_s6 }
  0x12   : > { %5805 = vmatprep.subr.bf16.mxu0 %v6488_v6  ;;  %v6502_v20 = vld [vmem:[%s8281_s2 + $0x148] sm:$0xff]   ;;  %v6503_v22 = vld [vmem:[%s8281_s2 + $0x100] sm:$0xff]   ;;  %v6905_v32 = vld [vmem:[%s8281_s2 + $0xb8] sm:$0xff]   ;;  %vm933_vm5 = vsmask.f32 7440  ;;  %vm1226_vm8 = vcmask 1043459   ;;  %s241_s24 = scalar_lea.vmem %s8284_s5, %s8358_s19 }
  0x13   : > { %6284 = vmatpush3.bf16.msra.mxu1 %v6487_v5  ;;  %v6501_v21 = vld [vmem:[%s8281_s2 + $0xc8] sm:$0xff]   ;;  %v6886_v23 = vld [vmem:[%s8280_s1] ss:$0 sm:$0xff]  ;;  %v6895_v28 = vld [vmem:[%s8280_s1 + $0x1] ss:$0 sm:$0xff] }
  0x14   : > { %6285 = vmatprep.subr.bf16.mxu1 %v6490_v9  ;;  %v5628_v24 = vld [vmem:[%s6872_s13] sm:$0xff]   ;;  %v5771_v35 = vld [vmem:[%s6872_s13 + $0x8] sm:$0xff]   ;;  %v6511_v36 = vld [vmem:[%s8281_s2 + $0x78] sm:$0xff]   ;;  %vm1227_vm9 = vsmask.f32 7950 }
  0x15   : > { %5806 = vmatpush3.bf16.msra.mxu0 %v6489_v7  ;;  %v6505_v25 = vld [vmem:[%s8281_s2 + $0x140] sm:$0xff]   ;;  %v5629_v26 = vunpack.c.l.bf16 %v5628_v24  ;;  %v5630_v27 = vunpack.c.h.bf16 %v5628_v24  ;;  %v5633_v37 = vunpack.c.l.bf16 %v5771_v35  ;;  %v5634_v38 = vunpack.c.h.bf16 %v5771_v35  ;;  %v5772_v51 = vld [vmem:[%s6872_s13 + $0x10] sm:$0xff]   ;;  %vm6921_vm7 = vmor %vm574_vm0, %vm575_vm2 }
  0x16   : > { %5807 = vmatprep.subr.bf16.mxu0 %v6491_v10  ;;  %v6504_v29 = vld [vmem:[%s8281_s2 + $0xc0] sm:$0xff]   ;;  %v5637_v54 = vunpack.c.l.bf16 %v5772_v51  ;;  %v5638_v55 = vunpack.c.h.bf16 %v5772_v51  ;;  %vm6927_vm10 = vmand %vm865_vm1, %vm866_vm3  ;;  %v868_v62 = vld [vmem:[#allocation2 + $0x18] sm:$0xf] }
  0x17   : > { %6286 = vmatpush3.bf16.msra.mxu1 %v6490_v9  ;;  %v313_v30 = vmul.f32 %v5629_v26, %v6886_v23  ;;  %v314_v31 = vmul.f32 %v5630_v27, %v6886_v23  ;;  %v315_v41 = vmul.f32 %v5633_v37, %v6886_v23  ;;  %v316_v42 = vmul.f32 %v5634_v38, %v6886_v23  ;;  %v1113_v7 = vld [vmem:[#allocation2 + $0x2c] sm:$0xf]  ;;  %vm6933_vm11 = vmor %vm932_vm4, %vm933_vm5  ;;  %v872_v27 = vld [vmem:[#allocation2 + $0x30] sm:$0xf] }
  0x18   : > { %6287 = vmatprep.subr.bf16.mxu1 %v6493_v12  ;;  %vm6943_vm12 = vmand %vm865_vm1, %vm932_vm4  ;;  %v6667_v8 = vld [vmem:[%s8281_s2 + $0x20] sm:$0xff]  }
  0x19   : > { %5808 = vmatpush3.bf16.msra.mxu0 %v6492_v11  ;;  %v349_v33 = vadd.f32 %v6895_v28, %v313_v30  ;;  %v350_v34 = vadd.f32 %v6895_v28, %v314_v31  ;;  %v351_v45 = vadd.f32 %v6895_v28, %v315_v41  ;;  %v352_v46 = vadd.f32 %v6895_v28, %v316_v42  ;;  %vm6959_vm13 = vmand %vm1176_vm6, %vm574_vm0 }
  0x1a   : > { %5809 = vmatprep.subr.bf16.mxu0 %v6494_v13  ;;  %v317_v31 = vmul.f32 %v5637_v54, %v6886_v23  ;;  %vm6969_vm14 = vmand %vm1226_vm8, %vm1227_vm9 }
  0x1b   : > { %6288 = vmatpush3.bf16.msra.mxu1 %v6493_v12  ;;  %v381_v39 = vmax.f32 %v349_v33, 0.0  ;;  %v382_v40 = vmax.f32 %v350_v34, 0.0  ;;  %v383_v52 = vmax.f32 %v351_v45, 0.0  ;;  %v384_v53 = vmax.f32 %v352_v46, 0.0  ;;  %v5773_v34 = vld [vmem:[%s6872_s13 + $0x18] sm:$0xff]   ;;  %v6677_v45 = vld [vmem:[%s8281_s2 + $0x10] sm:$0xff]  }
  0x1c   : > { %6289 = vmatprep.subr.bf16.mxu1 %v6496_v14  ;;  %v318_v33 = vmul.f32 %v5638_v55, %v6886_v23  ;;  %v353_v41 = vadd.f32 %v6895_v28, %v317_v31 }
  0x1d   : > { %5810 = vmatpush3.bf16.msra.mxu0 %v6495_v15  ;;  %v5563_v43 = vpack.c.bf16 %v381_v39, %v381_v39  ;;  %v5564_v44 = vpack.c.bf16 %v382_v40, %v382_v40  ;;  %v5565_v1 = vpack.c.bf16 %v383_v52, %v383_v52  ;;  %v5566_v2 = vpack.c.bf16 %v384_v53, %v384_v53  ;;  %v1117_v40 = vld [vmem:[#allocation2 + $0x44] sm:$0xf] }
  0x1e   : > { %5811 = vmatprep.subr.bf16.mxu0 %v6497_v16  ;;  %v354_v42 = vadd.f32 %v6895_v28, %v318_v33  ;;  %v385_v52 = vmax.f32 %v353_v41, 0.0  ;;  %v1121_v33 = vld [vmem:[#allocation2 + $0x5c] sm:$0xf]  ;;  %v6684_v16 = vld [vmem:[%s8281_s2 + $0x80] sm:$0xff]  }
  0x1f   : > { %6290 = vmatpush3.bf16.msra.mxu1 %v6496_v14  ;;  %542 = vst [vmem:[#allocation2 + $0x1c] sm:$0xf] %v5563_v43  ;;  %543 = vst [vmem:[#allocation2 + $0x28] sm:$0xf] %v5564_v44  ;;  %v578_v47 = vshrl.u32 %v5563_v43, 16  ;;  %v581_v48 = vshll.u32 %v5563_v43, 16  ;;  %v5641_v43 = vunpack.c.l.bf16 %v5773_v34 }
  0x20   : > { %6291 = vmatprep.subr.bf16.mxu1 %v6499_v17  ;;  %v586_v49 = vshrl.u32 %v5564_v44, 16  ;;  %v589_v50 = vshll.u32 %v5564_v44, 16  ;;  %v594_v10 = vshrl.u32 %v5565_v1, 16  ;;  %v597_v11 = vshll.u32 %v5565_v1, 16  ;;  %544 = vst [vmem:[#allocation2 + $0x34] sm:$0xf] %v5565_v1 }
  0x21   : > { %5812 = vmatpush3.bf16.msra.mxu0 %v6498_v18  ;;  %v580_v57 = vrot.slane %v578_v47, 7  ;;  %v935_v59 = vrot.slane %v578_v47, 4  ;;  %v936_v60 = vrot.slane %v581_v48, 5  ;;  %v602_v12 = vshrl.u32 %v5566_v2, 16  ;;  %545 = vst [vmem:[#allocation2 + $0x40] sm:$0xf] %v5566_v2 }
  0x22   : > { %5813 = vmatprep.subr.bf16.mxu0 %v6500_v19  ;;  %v588_v58 = vrot.slane %v586_v49, 7  ;;  %v939_v63 = vrot.slane %v589_v50, 5  ;;  %v941_v0 = vrot.slane %v586_v49, 4  ;;  %v944_v19 = vrot.slane %v594_v10, 4  ;;  %v5774_v44 = vld [vmem:[%s6872_s13 + $0x20] sm:$0xff]  }
  0x23   : > { %6292 = vmatpush3.bf16.msra.mxu1 %v6499_v17  ;;  %v583_v3 = vor.u32 %v581_v48, %v580_v57  ;;  %v584_v4 = vrot.slane %v580_v57, 4  ;;  %v937_v6 = vor.u32 %v936_v60, %v935_v59  ;;  %v605_v17 = vshll.u32 %v5566_v2, 16  ;;  %v6983_v2 = vld [vmem:[%s6872_s13 + $0x28] sm:$0xff]  }
  0x24   : > { %6293 = vmatprep.subr.bf16.mxu1 %v6502_v20  ;;  %v591_v5 = vor.u32 %v589_v50, %v588_v58  ;;  %v942_v9 = vor.u32 %v941_v0, %v939_v63  ;;  %v604_v26 = vrot.slane %v602_v12, 7  ;;  %v5642_v49 = vunpack.c.h.bf16 %v5773_v34  ;;  %v876_v34 = vld [vmem:[#allocation2 + $0x48] sm:$0xf] }
  0x25   : > { %5814 = vmatpush3.bf16.msra.mxu0 %v6501_v21  ;;  %v869_v14 = vsel %vm6927_vm10, %v583_v3, %v868_v62  ;;  %v938_v15 = vrot.slane %v937_v6, 4  ;;  %v950_v21 = vrot.slane %v602_v12, 4  ;;  %v948_v24 = vrot.slane %v605_v17, 5  ;;  %v6679_v50 = vld [vmem:[%s8281_s2 + $0x48] sm:$0xff]  }
  0x26   : > { %5815 = vmatprep.subr.bf16.mxu0 %v6503_v22  ;;  %v592_v13 = vsel %vm6921_vm7, %v584_v4, %v591_v5  ;;  %870 = vst [vmem:[#allocation2 + $0x18] sm:$0xf] %v869_v14  ;;  %v943_v18 = vrot.slane %v942_v9, 4  ;;  %v607_v38 = vor.u32 %v605_v17, %v604_v26  ;;  %v386_v53 = vmax.f32 %v354_v42, 0.0 }
  0x27   : > { %6294 = vmatpush3.bf16.msra.mxu1 %v6502_v20  ;;  %871 = vst [vmem:[#allocation2 + $0x24] sm:$0xf] %v592_v13  ;;  %v945_v20 = vrot.slane %v597_v11, 5  ;;  %v940_v22 = vsel %vm6933_vm11, %v938_v15, %v939_v63  ;;  %v951_v35 = vor.u32 %v950_v21, %v948_v24  ;;  %v319_v54 = vmul.f32 %v5641_v43, %v6886_v23  ;;  %v7014_v43 = vld [vmem:[#allocation2 + $0x1c] ss:$12 sps:$4 sm:$0xff]  }
  0x28   : > { %6295 = vmatprep.subr.bf16.mxu1 %v6505_v25  ;;  %1111 = vst [vmem:[#allocation2 + $0x20] sm:$0xf] %v940_v22  ;;  %v320_v58 = vmul.f32 %v5642_v49, %v6886_v23  ;;  %v5645_v59 = vunpack.c.l.bf16 %v5774_v44  ;;  %v5646_v60 = vunpack.c.h.bf16 %v5774_v44  ;;  %v5567_v63 = vpack.c.bf16 %v385_v52, %v385_v52  ;;  %1751 = vmatprep.mubr.bf16.mxu0 %v7014_v43 }
  0x29   : > { %5816 = vmatpush3.bf16.msra.mxu0 %v6504_v29  ;;  %v1114_v29 = vsel %vm6943_vm12, %v943_v18, %v1113_v7  ;;  %v946_v30 = vor.u32 %v945_v20, %v944_v19  ;;  %v952_v46 = vrot.slane %v951_v35, 4  ;;  %v5568_v0 = vpack.c.bf16 %v386_v53, %v386_v53 }
  0x2a   : > { %6313 = vmatprep.subr.bf16.mxu0 %v6905_v32  ;;  %1115 = vst [vmem:[#allocation2 + $0x2c] sm:$0xf] %v1114_v29  ;;  %v355_v1 = vadd.f32 %v6895_v28, %v319_v54  ;;  %v356_v3 = vadd.f32 %v6895_v28, %v320_v58  ;;  %v321_v4 = vmul.f32 %v5645_v59, %v6886_v23  ;;  %v5649_v6 = vunpack.c.l.bf16 %v6983_v2 }
  0x2b   : > { %6296 = vmatpush3.bf16.msra.mxu1 %v6505_v25  ;;  %v596_v25 = vrot.slane %v594_v10, 7  ;;  %v947_v39 = vrot.slane %v946_v30, 4  ;;  %v1118_v57 = vsel %vm6943_vm12, %v952_v46, %v1117_v40  ;;  %v322_v5 = vmul.f32 %v5646_v60, %v6886_v23  ;;  %546 = vst [vmem:[#allocation2 + $0x4c] sm:$0xf] %v5567_v63  ;;  %547 = vst [vmem:[#allocation2 + $0x58] sm:$0xf] %v5568_v0 }
  0x2c   : > { %5881 = vmatprep.subr.bf16.mxu1 %v6511_v36  ;;  %1119 = vst [vmem:[#allocation2 + $0x44] sm:$0xf] %v1118_v57  ;;  %v610_v9 = vshrl.u32 %v5567_v63, 16  ;;  %v613_v10 = vshll.u32 %v5567_v63, 16  ;;  %v621_v12 = vshll.u32 %v5568_v0, 16  ;;  %v387_v14 = vmax.f32 %v355_v1, 0.0 }
  0x2d   : > { %v599_v36 = vor.u32 %v597_v11, %v596_v25  ;;  %v600_v37 = vrot.slane %v596_v25, 4  ;;  %v949_v51 = vsel %vm6933_vm11, %v947_v39, %v948_v24  ;;  %v1178_v55 = vld [vmem:[#allocation2 + $0x18] sm:$0x1]  ;;  %v618_v11 = vshrl.u32 %v5568_v0, 16  ;;  %v1125_v0 = vld [vmem:[#allocation2 + $0x74] sm:$0xf] }
  0x2e   : > { %1116 = vst [vmem:[#allocation2 + $0x38] sm:$0xf] %v949_v51  ;;  %v1179_v62 = vsel %vm6959_vm13, 0, %v1178_v55  ;;  %v388_v15 = vmax.f32 %v356_v3, 0.0  ;;  %v6992_v17 = vadd.f32 %v6895_v28, %v321_v4  ;;  %v953_v18 = vrot.slane %v610_v9, 4 }
  0x2f   : > { %v608_v47 = vsel %vm6921_vm7, %v600_v37, %v607_v38  ;;  %v873_v48 = vsel %vm6927_vm10, %v599_v36, %v872_v27  ;;  %1180 = vst [vmem:[#allocation2 + $0x18] sm:$0x1] %v1179_v62  ;;  %v954_v19 = vrot.slane %v613_v10, 5  ;;  %v957_v20 = vrot.slane %v621_v12, 5  ;;  %v7004_v37 = vld [vmem:[%s8281_s2 + $0xb0] sm:$0xff]  }
  0x30   : > { %874 = vst [vmem:[#allocation2 + $0x30] sm:$0xf] %v873_v48  ;;  %875 = vst [vmem:[#allocation2 + $0x3c] sm:$0xf] %v608_v47  ;;  %v959_v21 = vrot.slane %v618_v11, 4  ;;  %v6994_v24 = vpack.c.bf16 %v387_v14, %v387_v14  ;;  %v6996_v25 = vpack.c.bf16 %v388_v15, %v388_v15  ;;  %v612_v26 = vrot.slane %v610_v9, 7 }
  0x31   : > { %v1229_v7 = vld [vmem:[#allocation2 + $0x2c] sm:$0x8]  ;;  %v620_v27 = vrot.slane %v618_v11, 7  ;;  %v955_v30 = vor.u32 %v954_v19, %v953_v18  ;;  %v358_v35 = vadd.f32 %v6895_v28, %v322_v5  ;;  %v5650_v48 = vunpack.c.h.bf16 %v6983_v2  ;;  %v6514_v2 = vld [vmem:[%s8281_s2 + $0x70] sm:$0xff]  }
  0x32   : > { %v1230_v13 = vsel %vm6969_vm14, 0, %v1229_v7  ;;  %v960_v31 = vor.u32 %v959_v21, %v957_v20  ;;  %v626_v38 = vshrl.u32 %v6994_v24, 16  ;;  %v629_v39 = vshll.u32 %v6994_v24, 16  ;;  %548 = vst [vmem:[#allocation2 + $0x64] sm:$0xf] %v6994_v24  ;;  %v6528_v5 = vld [vmem:[%s8281_s2 + $0xa8] sm:$0xff]  }
  0x33   : > { %1231 = vst [vmem:[#allocation2 + $0x2c] sm:$0x8] %v1230_v13  ;;  %v1232_v36 = vld [vmem:[#allocation2 + $0x44] sm:$0x8]  ;;  %v634_v40 = vshrl.u32 %v6996_v25, 16  ;;  %v637_v41 = vshll.u32 %v6996_v25, 16  ;;  %v615_v46 = vor.u32 %v613_v10, %v612_v26  ;;  %v623_v47 = vor.u32 %v621_v12, %v620_v27 }
  0x34   : > { %549 = vst [vmem:[#allocation2 + $0x70] sm:$0xf] %v6996_v25  ;;  %v1233_v44 = vsel %vm6969_vm14, 0, %v1232_v36  ;;  %v956_v49 = vrot.slane %v955_v30, 4  ;;  %v961_v51 = vrot.slane %v960_v31, 4  ;;  %v962_v52 = vrot.slane %v626_v38, 4 }
  0x35   : > { %1234 = vst [vmem:[#allocation2 + $0x44] sm:$0x8] %v1233_v44  ;;  %v963_v53 = vrot.slane %v629_v39, 5  ;;  %v966_v54 = vrot.slane %v637_v41, 5  ;;  %v968_v55 = vrot.slane %v634_v40, 4  ;;  %v616_v57 = vrot.slane %v612_v26, 4 }
  0x36   : > { %v7012_v42 = vld [vmem:[#allocation2 + $0x18] ss:$12 sps:$4 sm:$0xff]   ;;  %v877_v58 = vsel %vm6927_vm10, %v615_v46, %v876_v34  ;;  %v958_v60 = vsel %vm6933_vm11, %v956_v49, %v957_v20  ;;  %v1122_v62 = vsel %vm6943_vm12, %v961_v51, %v1121_v33  ;;  %v389_v1 = vmax.f32 %v6992_v17, 0.0  ;;  %v7044_v10 = vld [vmem:[%s6872_s13 + $0x30] sm:$0xff]  }
  0x37   : > { %v1181_v22 = vld [vmem:[#allocation2 + $0x30] sm:$0x1]  ;;  %1752 = vmatmul.mubr.bf16.vlgmr.msra.gmra.mxu0 %v7012_v42  ;;  %v964_v63 = vor.u32 %v963_v53, %v962_v52  ;;  %878 = vst [vmem:[#allocation2 + $0x48] sm:$0xf] %v877_v58  ;;  %1120 = vst [vmem:[#allocation2 + $0x50] sm:$0xf] %v958_v60  ;;  %v969_v3 = vor.u32 %v968_v55, %v966_v54  ;;  %v624_v4 = vsel %vm6921_vm7, %v616_v57, %v623_v47 }
  0x38   : > { %v1182_v29 = vsel %vm6959_vm13, 0, %v1181_v22  ;;  %6314 = vmatpush3.bf16.msra.mxu0 %v6905_v32  ;;  %1123 = vst [vmem:[#allocation2 + $0x5c] sm:$0xf] %v1122_v62  ;;  %v390_v7 = vmax.f32 %v358_v35, 0.0  ;;  %v323_v9 = vmul.f32 %v5649_v6, %v6886_v23  ;;  %v6513_v32 = vld [vmem:[%s8281_s2 + $0x38] sm:$0xff]   ;;  %v7050_v12 = vpack.c.bf16 %v389_v1, %v389_v1  ;;  %v7075_v30 = vld [vmem:[%s8281_s2 + $0xa0] sm:$0xff]  }
  0x39   : > { %1183 = vst [vmem:[#allocation2 + $0x30] sm:$0x1] %v1182_v29  ;;  %6315 = vmatprep.subr.bf16.mxu0 %v7004_v37  ;;  %v965_v11 = vrot.slane %v964_v63, 4  ;;  %879 = vst [vmem:[#allocation2 + $0x54] sm:$0xf] %v624_v4  ;;  %v324_v13 = vmul.f32 %v5650_v48, %v6886_v23  ;;  %v7053_v14 = vrot.slane %v626_v38, 7  ;;  %v5653_v20 = vunpack.c.l.bf16 %v7044_v10 }
  0x3a   : > { %v6510_v59 = vld [vmem:[#allocation2 + $0x20] ss:$12 sps:$4 sm:$0xff]   ;;  %v970_v17 = vrot.slane %v969_v3, 4  ;;  %v7062_v18 = vpack.c.bf16 %v390_v7, %v390_v7  ;;  %v359_v19 = vadd.f32 %v6895_v28, %v323_v9  ;;  %v642_v22 = vshrl.u32 %v7050_v12, 16  ;;  %550 = vst [vmem:[#allocation2 + $0x7c] sm:$0xf] %v7050_v12 }
  0x3b   : > { %6297 = vmatprep.mubr.bf16.mxu1 %v6510_v59  ;;  %v7058_v6 = vld [vmem:[#allocation2 + $0x34] ss:$12 sps:$4 sm:$0xff]   ;;  %v967_v21 = vsel %vm6933_vm11, %v965_v11, %v966_v54  ;;  %v645_v26 = vshll.u32 %v7050_v12, 16  ;;  %v360_v27 = vadd.f32 %v6895_v28, %v324_v13  ;;  %v631_v36 = vor.u32 %v629_v39, %v7053_v14  ;;  %v6521_v53 = vld [vmem:[%s8281_s2 + $0x68] sm:$0xff]   ;;  %v5777_v9 = vld [vmem:[%s6872_s13 + $0x38] sm:$0xff]  }
  0x3c   : > { %v880_v29 = vld [vmem:[#allocation2 + $0x60] sm:$0xf]  ;;  %v6512_v31 = vld [vmem:[#allocation2 + $0x38] ss:$12 sps:$4 sm:$0xff]   ;;  %1759 = vmatprep.mubr.bf16.mxu0 %v7058_v6  ;;  %6316 = vmatpush3.bf16.msra.mxu0 %v7004_v37  ;;  %1124 = vst [vmem:[#allocation2 + $0x68] sm:$0xf] %v967_v21  ;;  %v1126_v33 = vsel %vm6943_vm12, %v970_v17, %v1125_v0  ;;  %v5654_v7 = vunpack.c.h.bf16 %v7044_v10 }
  0x3d   : > { %v650_v34 = vshrl.u32 %v7062_v18, 16  ;;  %v653_v35 = vshll.u32 %v7062_v18, 16  ;;  %551 = vst [vmem:[#allocation2 + $0x88] sm:$0xf] %v7062_v18  ;;  %v6515_v38 = vld [vmem:[%s8281_s2 + $0x30] sm:$0xff]   ;;  %6317 = vmatprep.subr.bf16.mxu0 %v6528_v5  ;;  %v971_v37 = vrot.slane %v642_v22, 4  ;;  %6298 = vmatmul.mubr.bf16.vlgmr.msra.gmra.mxu1 %v6512_v31  ;;  %v881_v63 = vsel %vm6927_vm10, %v631_v36, %v880_v29 }
  0x3e   : > { %1127 = vst [vmem:[#allocation2 + $0x74] sm:$0xf] %v1126_v33  ;;  %v972_v44 = vrot.slane %v645_v26, 5  ;;  %v391_v46 = vmax.f32 %v359_v19, 0.0  ;;  %v392_v47 = vmax.f32 %v360_v27, 0.0  ;;  %v632_v49 = vrot.slane %v7053_v14, 4  ;;  %5882 = vmatpush3.bf16.msra.mxu1 %v6513_v32 }
  0x3f   : > { %v1184_v48 = vld [vmem:[#allocation2 + $0x48] sm:$0x1]  ;;  %v975_v24 = vrot.slane %v653_v35, 5  ;;  %v977_v39 = vrot.slane %v650_v34, 4  ;;  %v636_v51 = vrot.slane %v634_v40, 7  ;;  %5883 = vmatprep.subr.bf16.mxu1 %v6514_v2  ;;  %v6548_v32 = vld [vmem:[%s8281_s2 + $0x98] sm:$0xff]   ;;  %v325_v31 = vmul.f32 %v5653_v20, %v6886_v23 }
  0x40   : > { %v7060_v15 = vld [vmem:[#allocation2 + $0x30] ss:$12 sps:$4 sm:$0xff]   ;;  %v1185_v54 = vsel %vm6959_vm13, 0, %v1184_v48  ;;  %v973_v55 = vor.u32 %v972_v44, %v971_v37  ;;  %v7107_v57 = vpack.c.bf16 %v391_v46, %v391_v46  ;;  %v7109_v58 = vpack.c.bf16 %v392_v47, %v392_v47  ;;  %6318 = vmatpush3.bf16.msra.mxu0 %v6528_v5  ;;  %v1129_v60 = vld [vmem:[#allocation2 + $0x8c] sm:$0xf]  ;;  %v6524_v21 = vld [vmem:[%s8281_s2 + $0x60] sm:$0xff]  }
  0x41   : > { %1760 = vmatmul.mubr.bf16.gmra.mxu0 %v7060_v15  ;;  %v1235_v52 = vld [vmem:[#allocation2 + $0x5c] sm:$0x8]  ;;  %1186 = vst [vmem:[#allocation2 + $0x48] sm:$0x1] %v1185_v54  ;;  %v978_v59 = vor.u32 %v977_v39, %v975_v24  ;;  %v639_v62 = vor.u32 %v637_v41, %v636_v51  ;;  %882 = vst [vmem:[#allocation2 + $0x60] sm:$0xf] %v881_v63  ;;  %6319 = vmatprep.subr.bf16.mxu0 %v7075_v30  ;;  %v5657_v46 = vunpack.c.l.bf16 %v5777_v9 }
  0x42   : > { %v1236_v40 = vsel %vm6969_vm14, 0, %v1235_v52  ;;  %v974_v0 = vrot.slane %v973_v55, 4  ;;  %v658_v1 = vshrl.u32 %v7107_v57, 16  ;;  %v661_v3 = vshll.u32 %v7107_v57, 16  ;;  %552 = vst [vmem:[#allocation2 + $0x94] sm:$0xf] %v7107_v57  ;;  %5884 = vmatpush3.bf16.msra.mxu1 %v6515_v38 }
  0x43   : > { %1237 = vst [vmem:[#allocation2 + $0x5c] sm:$0x8] %v1236_v40  ;;  %v666_v4 = vshrl.u32 %v7109_v58, 16  ;;  %553 = vst [vmem:[#allocation2 + $0xa0] sm:$0xf] %v7109_v58  ;;  %v979_v25 = vrot.slane %v978_v59, 4  ;;  %v640_v5 = vsel %vm6921_vm7, %v632_v49, %v639_v62  ;;  %5885 = vmatprep.subr.bf16.mxu1 %v6521_v53  ;;  %v326_v33 = vmul.f32 %v5654_v7, %v6886_v23 }
  0x44   : > { %v669_v41 = vshll.u32 %v7109_v58, 16  ;;  %v6523_v11 = vld [vmem:[%s8281_s2 + $0x28] sm:$0xff]   ;;  %v976_v13 = vsel %vm6933_vm11, %v974_v0, %v975_v24  ;;  %v980_v14 = vrot.slane %v658_v1, 4  ;;  %v981_v2 = vrot.slane %v661_v3, 5  ;;  %883 = vst [vmem:[#allocation2 + $0x6c] sm:$0xf] %v640_v5  ;;  %6320 = vmatpush3.bf16.msra.mxu0 %v7075_v30 }
  0x45   : > { %v986_v17 = vrot.slane %v666_v4, 4  ;;  %v1238_v19 = vld [vmem:[#allocation2 + $0x74] sm:$0x8]  ;;  %1128 = vst [vmem:[#allocation2 + $0x80] sm:$0xf] %v976_v13  ;;  %v1130_v27 = vsel %vm6943_vm12, %v979_v25, %v1129_v60  ;;  %v6525_v38 = vld [vmem:[%s8281_s2 + $0x20] sm:$0xff]   ;;  %v5658_v47 = vunpack.c.h.bf16 %v5777_v9  ;;  %6321 = vmatprep.subr.bf16.mxu0 %v6548_v32  ;;  %v361_v48 = vadd.f32 %v6895_v28, %v325_v31 }
  0x46   : > { %v984_v29 = vrot.slane %v669_v41, 5  ;;  %v1239_v36 = vsel %vm6969_vm14, 0, %v1238_v19  ;;  %1131 = vst [vmem:[#allocation2 + $0x8c] sm:$0xf] %v1130_v27  ;;  %v982_v37 = vor.u32 %v981_v2, %v980_v14  ;;  %v1133_v44 = vld [vmem:[#allocation2 + $0xa4] sm:$0xf]  ;;  %v362_v24 = vadd.f32 %v6895_v28, %v326_v33  ;;  %5886 = vmatpush3.bf16.msra.mxu1 %v6523_v11 }
  0x47   : > { %v6553_v10 = vld [vmem:[%s8281_s2 + $0x90] sm:$0xff]   ;;  %1240 = vst [vmem:[#allocation2 + $0x74] sm:$0x8] %v1239_v36  ;;  %v6531_v20 = vld [vmem:[%s8281_s2 + $0x58] sm:$0xff]   ;;  %v7169_v39 = vrot.slane %v642_v22, 7  ;;  %v327_v53 = vmul.f32 %v5657_v46, %v6886_v23  ;;  %v328_v54 = vmul.f32 %v5658_v47, %v6886_v23  ;;  %5887 = vmatprep.subr.bf16.mxu1 %v6524_v21  ;;  %v393_v60 = vmax.f32 %v361_v48, 0.0 }
  0x48   : > { %v987_v30 = vor.u32 %v986_v17, %v984_v29  ;;  %v7171_v49 = vld [vmem:[#allocation2 + $0x4c] ss:$12 sps:$4 sm:$0xff]   ;;  %v7173_v51 = vld [vmem:[#allocation2 + $0x48] ss:$12 sps:$4 sm:$0xff]   ;;  %v983_v52 = vrot.slane %v982_v37, 4  ;;  %6322 = vmatpush3.bf16.msra.mxu0 %v6548_v32  ;;  %v394_v0 = vmax.f32 %v362_v24, 0.0 }
  0x49   : > { %v884_v55 = vld [vmem:[#allocation2 + $0x78] sm:$0xf]  ;;  %v647_v22 = vor.u32 %v645_v26, %v7169_v39  ;;  %1767 = vmatprep.mubr.bf16.mxu0 %v7171_v49  ;;  %v1187_v63 = vld [vmem:[#allocation2 + $0x60] sm:$0x1]  ;;  %v363_v25 = vadd.f32 %v6895_v28, %v327_v53  ;;  %v364_v23 = vadd.f32 %v6895_v28, %v328_v54  ;;  %6323 = vmatprep.subr.bf16.mxu0 %v6553_v10  ;;  %v6558_v5 = vld [vmem:[%s8281_s2 + $0x88] sm:$0xff]   ;;  %v648_v9 = vrot.slane %v7169_v39, 4 }
  0x4a   : > { %v6520_v40 = vld [vmem:[#allocation2 + $0x50] ss:$12 sps:$4 sm:$0xff]   ;;  %v988_v59 = vrot.slane %v987_v30, 4  ;;  %v985_v62 = vsel %vm6933_vm11, %v983_v52, %v984_v29  ;;  %1768 = vmatmul.mubr.bf16.gmra.mxu0 %v7173_v51  ;;  %v1188_v7 = vsel %vm6959_vm13, 0, %v1187_v63  ;;  %v7196_v28 = vpack.c.bf16 %v393_v60, %v393_v60  ;;  %5888 = vmatpush3.bf16.msra.mxu1 %v6525_v38  ;;  %v6545_v58 = vld [vmem:[%s8281_s2] sm:$0xff]  }
  0x4b   : > { %6301 = vmatprep.mubr.bf16.mxu1 %v6520_v40  ;;  %1132 = vst [vmem:[#allocation2 + $0x98] sm:$0xf] %v985_v62  ;;  %v6533_v26 = vld [vmem:[%s8281_s2 + $0x18] sm:$0xff]   ;;  %v6534_v32 = vld [vmem:[%s8281_s2 + $0x50] sm:$0xff]   ;;  %1189 = vst [vmem:[#allocation2 + $0x60] sm:$0x1] %v1188_v7  ;;  %v7202_v11 = vpack.c.bf16 %v394_v0, %v394_v0  ;;  %5889 = vmatprep.subr.bf16.mxu1 %v6531_v20  ;;  %v885_v27 = vsel %vm6927_vm10, %v647_v22, %v884_v55 }
  0x4c   : > { %v1134_v12 = vsel %vm6943_vm12, %v988_v59, %v1133_v44  ;;  %v395_v13 = vmax.f32 %v363_v25, 0.0  ;;  %v396_v14 = vmax.f32 %v364_v23, 0.0  ;;  %v652_v2 = vrot.slane %v650_v34, 7  ;;  %554 = vst [vmem:[#allocation2 + $0xac] sm:$0xf] %v7196_v28  ;;  %6324 = vmatpush3.bf16.msra.mxu0 %v6553_v10  ;;  %v7218_v34 = vld [vmem:[%s8281_s2 + $0x80] sm:$0xff]  }
  0x4d   : > { %1135 = vst [vmem:[#allocation2 + $0xa4] sm:$0xf] %v1134_v12  ;;  %v1241_v17 = vld [vmem:[#allocation2 + $0x8c] sm:$0x8]  ;;  %v674_v19 = vshrl.u32 %v7196_v28, 16  ;;  %v677_v21 = vshll.u32 %v7196_v28, 16  ;;  %6325 = vmatprep.subr.bf16.mxu0 %v6558_v5 }
  0x4e   : > { %v7213_v29 = vrot.slane %v658_v1, 7  ;;  %v6522_v31 = vld [vmem:[#allocation2 + $0x68] ss:$12 sps:$4 sm:$0xff]   ;;  %v1242_v33 = vsel %vm6969_vm14, 0, %v1241_v17  ;;  %v682_v36 = vshrl.u32 %v7202_v11, 16  ;;  %v7224_v38 = vpack.c.bf16 %v395_v13, %v395_v13  ;;  %5890 = vmatpush3.bf16.msra.mxu1 %v6533_v26  ;;  %v6567_v57 = vld [vmem:[%s8281_s2 + $0x1f8] sm:$0xff]  }
  0x4f   : > { %555 = vst [vmem:[#allocation2 + $0xb8] sm:$0xf] %v7202_v11  ;;  %v7226_v37 = vpack.c.bf16 %v396_v14, %v396_v14  ;;  %886 = vst [vmem:[#allocation2 + $0x78] sm:$0xf] %v885_v27  ;;  %v6535_v1 = vld [vmem:[%s8281_s2 + $0x10] sm:$0xff]   ;;  %v685_v44 = vshll.u32 %v7202_v11, 16  ;;  %v655_v10 = vor.u32 %v653_v35, %v652_v2  ;;  %6302 = vmatmul.mubr.bf16.gmra.mxu1 %v6522_v31  ;;  %5891 = vmatprep.subr.bf16.mxu1 %v6534_v32 }
  0x50   : > { %1243 = vst [vmem:[#allocation2 + $0x8c] sm:$0x8] %v1242_v33  ;;  %v989_v46 = vrot.slane %v674_v19, 4  ;;  %v990_v47 = vrot.slane %v677_v21, 5  ;;  %v995_v20 = vrot.slane %v682_v36, 4  ;;  %v690_v30 = vshrl.u32 %v7224_v38, 16  ;;  %6326 = vmatpush3.bf16.msra.mxu0 %v6558_v5 }
  0x51   : > { %v693_v48 = vshll.u32 %v7224_v38, 16  ;;  %v698_v24 = vshrl.u32 %v7226_v37, 16  ;;  %556 = vst [vmem:[#allocation2 + $0xc4] sm:$0xf] %v7224_v38  ;;  %557 = vst [vmem:[#allocation2 + $0xd0] sm:$0xf] %v7226_v37  ;;  %v656_v53 = vsel %vm6921_vm7, %v648_v9, %v655_v10  ;;  %v663_v22 = vor.u32 %v661_v3, %v7213_v29  ;;  %6327 = vmatprep.subr.bf16.mxu0 %v7218_v34 }
  0x52   : > { %v888_v39 = vld [vmem:[#allocation2 + $0x90] sm:$0xf]  ;;  %v991_v52 = vor.u32 %v990_v47, %v989_v46  ;;  %v993_v18 = vrot.slane %v685_v44, 5  ;;  %v701_v35 = vshll.u32 %v7226_v37, 16  ;;  %v1137_v54 = vld [vmem:[#allocation2 + $0xbc] sm:$0xf]  ;;  %5892 = vmatpush3.bf16.msra.mxu1 %v6535_v1 }
  0x53   : > { %v6541_v55 = vld [vmem:[%s8281_s2 + $0x48] sm:$0xff]   ;;  %v998_v40 = vrot.slane %v690_v30, 4  ;;  %v999_v59 = vrot.slane %v693_v48, 5  ;;  %v1004_v60 = vrot.slane %v698_v24, 4  ;;  %887 = vst [vmem:[#allocation2 + $0x84] sm:$0xf] %v656_v53  ;;  %v889_v27 = vsel %vm6927_vm10, %v663_v22, %v888_v39 }
  0x54   : > { %v1244_v62 = vld [vmem:[#allocation2 + $0xa4] sm:$0x8]  ;;  %v992_v0 = vrot.slane %v991_v52, 4  ;;  %v996_v25 = vor.u32 %v995_v20, %v993_v18  ;;  %v7263_v5 = vld [vmem:[#allocation2 + $0x60] ss:$12 sps:$4 sm:$0xff]   ;;  %v1002_v26 = vrot.slane %v701_v35, 5  ;;  %5893 = vmatprep.subr.bf16.mxu1 %v6541_v55  ;;  %6328 = vmatpush3.bf16.msra.mxu0 %v7218_v34 }
  0x55   : > { %v7259_v63 = vld [vmem:[#allocation2 + $0x64] ss:$12 sps:$4 sm:$0xff]   ;;  %v1245_v23 = vsel %vm6969_vm14, 0, %v1244_v62  ;;  %v1000_v12 = vor.u32 %v999_v59, %v998_v40  ;;  %v664_v7 = vrot.slane %v7213_v29, 4  ;;  %v1141_v32 = vld [vmem:[#allocation2 + $0xd4] sm:$0xf]  ;;  %5961 = vmatprep.subr.bf16.mxu0 %v6567_v57 }
  0x56   : > { %1246 = vst [vmem:[#allocation2 + $0xa4] sm:$0x8] %v1245_v23  ;;  %1775 = vmatprep.mubr.bf16.mxu0 %v7259_v63  ;;  %v994_v3 = vsel %vm6933_vm11, %v992_v0, %v993_v18  ;;  %v997_v9 = vrot.slane %v996_v25, 4  ;;  %v6543_v13 = vld [vmem:[%s8281_s2 + $0x8] sm:$0xff]   ;;  %v6544_v14 = vld [vmem:[%s8281_s2 + $0x40] sm:$0xff]   ;;  %v668_v17 = vrot.slane %v666_v4, 7  ;;  %v1005_v33 = vor.u32 %v1004_v60, %v1002_v26 }
  0x57   : > { %v1190_v2 = vld [vmem:[#allocation2 + $0x78] sm:$0x1]  ;;  %v6530_v29 = vld [vmem:[#allocation2 + $0x80] ss:$12 sps:$4 sm:$0xff]   ;;  %1776 = vmatmul.mubr.bf16.gmra.mxu0 %v7263_v5  ;;  %1136 = vst [vmem:[#allocation2 + $0xb0] sm:$0xf] %v994_v3  ;;  %5894 = vmatpush3.bf16.msra.mxu1 %v6543_v13 }
  0x58   : > { %v1001_v31 = vrot.slane %v1000_v12, 4  ;;  %v1191_v1 = vsel %vm6959_vm13, 0, %v1190_v2  ;;  %890 = vst [vmem:[#allocation2 + $0x90] sm:$0xf] %v889_v27  ;;  %v892_v46 = vld [vmem:[#allocation2 + $0xa8] sm:$0xf]  ;;  %v1138_v47 = vsel %vm6943_vm12, %v997_v9, %v1137_v54  ;;  %v671_v4 = vor.u32 %v669_v41, %v668_v17  ;;  %6305 = vmatprep.mubr.bf16.mxu1 %v6530_v29  ;;  %5895 = vmatprep.subr.bf16.mxu1 %v6544_v14 }
  0x59   : > { %1192 = vst [vmem:[#allocation2 + $0x78] sm:$0x1] %v1191_v1  ;;  %v676_v10 = vrot.slane %v674_v19, 7  ;;  %v684_v20 = vrot.slane %v682_v36, 7  ;;  %v896_v39 = vld [vmem:[#allocation2 + $0xc0] sm:$0xf] }
  0x5a   : > { %1139 = vst [vmem:[#allocation2 + $0xbc] sm:$0xf] %v1138_v47  ;;  %v1003_v52 = vsel %vm6933_vm11, %v1001_v31, %v1002_v26  ;;  %v1006_v18 = vrot.slane %v1005_v33, 4  ;;  %v692_v41 = vrot.slane %v690_v30, 7  ;;  %v700_v53 = vrot.slane %v698_v24, 7  ;;  %v6550_v30 = vld [vmem:[%s8281_s2 + $0x238] sm:$0xff]  }
  0x5b   : > { %1140 = vst [vmem:[#allocation2 + $0xc8] sm:$0xf] %v1003_v52  ;;  %v672_v19 = vsel %vm6921_vm7, %v664_v7, %v671_v4  ;;  %v679_v34 = vor.u32 %v677_v21, %v676_v10  ;;  %v680_v36 = vrot.slane %v676_v10, 4  ;;  %v687_v54 = vor.u32 %v685_v44, %v684_v20  ;;  %5896 = vmatpush3.bf16.msra.mxu1 %v6545_v58  ;;  %v7324_v37 = vld [vmem:[#allocation2 + $0x7c] ss:$12 sps:$4 sm:$0xff]   ;;  %v6555_v31 = vld [vmem:[%s8281_s2 + $0x230] sm:$0xff]  }
  0x5c   : > { %v1142_v55 = vsel %vm6943_vm12, %v1006_v18, %v1141_v32  ;;  %891 = vst [vmem:[#allocation2 + $0x9c] sm:$0xf] %v672_v19  ;;  %v695_v24 = vor.u32 %v693_v48, %v692_v41  ;;  %v696_v40 = vrot.slane %v692_v41, 4  ;;  %v703_v28 = vor.u32 %v701_v35, %v700_v53  ;;  %6345 = vmatprep.subr.bf16.mxu1 %v6550_v30  ;;  %v7340_v57 = vld [vmem:[#allocation2 + $0x94] ss:$12 sps:$4 sm:$0xff]   ;;  %v6569_v4 = vld [vmem:[%s8281_s2 + $0x1b8] sm:$0xff]  }
  0x5d   : > { %1143 = vst [vmem:[#allocation2 + $0xd4] sm:$0xf] %v1142_v55  ;;  %v688_v11 = vsel %vm6921_vm7, %v680_v36, %v687_v54  ;;  %v893_v21 = vsel %vm6927_vm10, %v679_v34, %v892_v46  ;;  %v6532_v44 = vld [vmem:[#allocation2 + $0x98] ss:$12 sps:$4 sm:$0xff]   ;;  %1783 = vmatprep.mubr.bf16.mxu0 %v7324_v37  ;;  %v6566_v1 = vld [vmem:[#allocation2 + $0x8] ss:$12 sps:$4 sm:$0xff]  }
  0x5e   : > { %894 = vst [vmem:[#allocation2 + $0xa8] sm:$0xf] %v893_v21  ;;  %895 = vst [vmem:[#allocation2 + $0xb4] sm:$0xf] %v688_v11  ;;  %v704_v59 = vsel %vm6921_vm7, %v696_v40, %v703_v28  ;;  %v897_v38 = vsel %vm6927_vm10, %v695_v24, %v896_v39  ;;  %6306 = vmatmul.mubr.bf16.gmra.mxu1 %v6532_v44  ;;  %v6749_v32 = vld [vmem:[#allocation2] sm:$0xff]  ;;  %v6560_v46 = vld [vmem:[%s8281_s2 + $0x228] sm:$0xff]  }
  0x5f   : > { %v1193_v48 = vld [vmem:[#allocation2 + $0x90] sm:$0x1]  ;;  %898 = vst [vmem:[#allocation2 + $0xc0] sm:$0xf] %v897_v38  ;;  %899 = vst [vmem:[#allocation2 + $0xcc] sm:$0xf] %v704_v59  ;;  %v5128_v13 = vcombine.high %v6749_v32, %v6749_v32  ;;  %v5127_v29 = vcombine.low %v6749_v32, %v6749_v32 }
  0x60   : > { %v7326_v35 = vld [vmem:[#allocation2 + $0x78] ss:$12 sps:$4 sm:$0xff]   ;;  %v1194_v60 = vsel %vm6959_vm13, 0, %v1193_v48  ;;  %v6571_v20 = vld [vmem:[%s8281_s2 + $0x1f0] sm:$0xff]   ;;  %v6574_v52 = vld [vmem:[%s8281_s2 + $0x1e8] sm:$0xff]  }
  0x61   : > { %v1247_v22 = vld [vmem:[#allocation2 + $0xbc] sm:$0x8]  ;;  %1195 = vst [vmem:[#allocation2 + $0x90] sm:$0x1] %v1194_v60  ;;  %1784 = vmatmul.mubr.bf16.gmra.mxu0 %v7326_v35  ;;  %v7346_v2 = vld [vmem:[#allocation2 + $0xac] ss:$12 sps:$4 sm:$0xff]  }
  0x62   : > { %v1248_v62 = vsel %vm6969_vm14, 0, %v1247_v22  ;;  %1791 = vmatprep.mubr.bf16.mxu0 %v7340_v57  ;;  %v6561_v27 = vld [vmem:[#allocation2 + $0xc4] ss:$12 sps:$4 sm:$0xff]   ;;  %v6570_v10 = vld [vmem:[%s8281_s2 + $0x218] sm:$0xff]   ;;  %v6580_v58 = vld [vmem:[#allocation2 + $0x68] ss:$12 sps:$4 sm:$0xff]  }
  0x63   : > { %1249 = vst [vmem:[#allocation2 + $0xbc] sm:$0x8] %v1248_v62  ;;  %v6565_v47 = vld [vmem:[%s8281_s2 + $0x220] sm:$0xff]   ;;  %v6575_v18 = vld [vmem:[#allocation2 + $0x50] ss:$12 sps:$4 sm:$0xff]   ;;  %v6576_v41 = vld [vmem:[%s8281_s2 + $0x1a8] sm:$0xff]  }
  0x64   : > { %v1250_v0 = vld [vmem:[#allocation2 + $0xd4] sm:$0x8]  ;;  %v6573_v39 = vld [vmem:[#allocation2 + $0x38] ss:$12 sps:$4 sm:$0xff]   ;;  %v6584_v53 = vld [vmem:[%s8281_s2 + $0x208] sm:$0xff]  }
  0x65   : > { %v1251_v25 = vsel %vm6969_vm14, 0, %v1250_v0  ;;  %v1196_v23 = vld [vmem:[#allocation2 + $0xa8] sm:$0x1]  ;;  %v6581_v19 = vld [vmem:[%s8281_s2 + $0x1d8] sm:$0xff]   ;;  %v6591_v34 = vld [vmem:[%s8281_s2 + $0x200] sm:$0xff]  }
  0x66   : > { %1252 = vst [vmem:[#allocation2 + $0xd4] sm:$0x8] %v1251_v25  ;;  %v1197_v12 = vsel %vm6959_vm13, 0, %v1196_v23  ;;  %v1199_v26 = vld [vmem:[#allocation2 + $0xc0] sm:$0x1]  ;;  %v6583_v54 = vld [vmem:[%s8281_s2 + $0x198] sm:$0xff]  }
  0x67   : > { %1198 = vst [vmem:[#allocation2 + $0xa8] sm:$0x1] %v1197_v12  ;;  %v1200_v7 = vsel %vm6959_vm13, 0, %v1199_v26  ;;  %v6582_v36 = vld [vmem:[#allocation2 + $0x80] ss:$12 sps:$4 sm:$0xff]   ;;  %v6586_v24 = vld [vmem:[%s8281_s2 + $0x190] sm:$0xff]  }
  0x68   : > { %v7342_v3 = vld [vmem:[#allocation2 + $0x90] ss:$12 sps:$4 sm:$0xff]   ;;  %1201 = vst [vmem:[#allocation2 + $0xc0] sm:$0x1] %v1200_v7  ;;  %v6587_v55 = vld [vmem:[#allocation2 + $0x98] ss:$12 sps:$4 sm:$0xff]  }
  0x69   : > { %1792 = vmatmul.mubr.bf16.gmra.mxu0 %v7342_v3  ;;  %v6588_v40 = vld [vmem:[%s8281_s2 + $0x1c8] sm:$0xff]   ;;  %v6596_v11 = vld [vmem:[#allocation2 + $0x34] ss:$12 sps:$4 sm:$0xff]   ;;  %v6597_v25 = vld [vmem:[%s8281_s2 + $0x178] sm:$0xff]  }
  0x6a   : > { %v6540_v9 = vld [vmem:[#allocation2 + $0xb0] ss:$12 sps:$4 sm:$0xff]   ;;  %1799 = vmatprep.mubr.bf16.mxu0 %v7346_v2  ;;  %v6590_v21 = vld [vmem:[%s8281_s2 + $0x188] sm:$0xff]   ;;  %v5778_v44 = vld [vmem:[%s6872_s13 + $0x40] sm:$0xff]  }
  0x6b   : > { %6309 = vmatprep.mubr.bf16.mxu1 %v6540_v9  ;;  %v6589_v28 = vld [vmem:[#allocation2 + $0xb0] ss:$12 sps:$4 sm:$0xff]   ;;  %v6592_v59 = vld [vmem:[%s8281_s2 + $0x1c0] sm:$0xff]   ;;  %v5661_v38 = vunpack.c.l.bf16 %v5778_v44  ;;  %v5662_v48 = vunpack.c.h.bf16 %v5778_v44 }
  0x6c   : > { %v7431_v60 = vld [vmem:[%s8280_s1] ss:$0 sm:$0xff]  ;;  %v7444_v23 = vld [vmem:[%s8280_s1 + $0x1] ss:$0 sm:$0xff]  ;;  %v6594_v7 = vld [vmem:[#allocation2 + $0x30] ss:$12 sps:$4 sm:$0xff]  }
  0x6d   : > { %v6542_v14 = vld [vmem:[#allocation2 + $0xc8] ss:$12 sps:$4 sm:$0xff]   ;;  %v329_v22 = vmul.f32 %v7431_v60, %v5661_v38  ;;  %v330_v62 = vmul.f32 %v7431_v60, %v5662_v48  ;;  %v6593_v0 = vld [vmem:[%s8281_s2 + $0x180] sm:$0xff]  }
  0x6e   : > { %6310 = vmatmul.mubr.bf16.gmra.mxu1 %v6542_v14  ;;  %v7348_v17 = vld [vmem:[#allocation2 + $0xa8] ss:$12 sps:$4 sm:$0xff]   ;;  %v6604_v14 = vld [vmem:[#allocation2 + $0x4c] ss:$12 sps:$4 sm:$0xff]  }
  0x6f   : > { %2217 = vmatprep.mubr.bf16.mxu1 %v5128_v13  ;;  %v6564_v33 = vld [vmem:[#allocation2 + $0xc0] ss:$12 sps:$4 sm:$0xff]   ;;  %v365_v12 = vadd.f32 %v7444_v23, %v329_v22  ;;  %v366_v26 = vadd.f32 %v7444_v23, %v330_v62  ;;  %v6598_v48 = vld [vmem:[#allocation2 + $0x38] ss:$12 sps:$4 sm:$0xff]  }
  0x70   : > { %v5779_v13 = vld [vmem:[%s6872_s13 + $0x48] sm:$0xff]   ;;  %v6621_v22 = vld [vmem:[%s8281_s2 + $0x160] sm:$0xff]  }
  0x71   : > { %1800 = vmatmul.mubr.bf16.gmra.mxu0 %v7348_v17  ;;  %v397_v9 = vmax.f32 %v365_v12, 0.0  ;;  %v398_v32 = vmax.f32 %v366_v26, 0.0 }
  0x72   : > { %1807 = vmatprep.mubr.bf16.mxu0 %v6561_v27  ;;  %v5665_v27 = vunpack.c.l.bf16 %v5779_v13 }
  0x76   : > { %2218 = vmatmul.mubr.bf16.vlgmr.msra.gmra.mxu1 %v5127_v29  ;;  %v5666_v29 = vunpack.c.h.bf16 %v5779_v13 }
  0x77   : > { %6346 = vmatpush3.bf16.msra.mxu1 %v6550_v30  ;;  %2225 = vmatprep.mubr.bf16.mxu1 %v7014_v43  ;;  %v6568_v43 = vld [vmem:[#allocation2 + $0x20] ss:$12 sps:$4 sm:$0xff]   ;;  %v6599_v30 = vld [vmem:[%s8281_s2 + $0x138] sm:$0xff]  }
  0x78   : > { %6347 = vmatprep.subr.bf16.mxu1 %v6555_v31 }
  0x79   : > { %1808 = vmatmul.mubr.bf16.gmra.mxu0 %v6564_v33  ;;  %v5579_v33 = vpack.c.bf16 %v397_v9, %v397_v9 }
  0x7a   : > { %6329 = vmatprep.mubr.bf16.mxu0 %v6566_v1  ;;  %v5580_v1 = vpack.c.bf16 %v398_v32, %v398_v32 }
  0x7b   : > { %6348 = vmatpush3.bf16.msra.mxu1 %v6555_v31  ;;  %v6606_v31 = vld [vmem:[%s8281_s2 + $0x170] sm:$0xff]   ;;  %558 = vst [vmem:[#allocation2 + $0xdc] sm:$0xf] %v5579_v33 }
  0x7c   : > { %6349 = vmatprep.subr.bf16.mxu1 %v6560_v46  ;;  %559 = vst [vmem:[#allocation2 + $0xe8] sm:$0xf] %v5580_v1 }
  0x7e   : > { %2226 = vmatmul.mubr.bf16.gmra.mxu1 %v7012_v42  ;;  %v6572_v42 = vld [vmem:[%s8281_s2 + $0x1b0] sm:$0xff]  }
  0x7f   : > { %2233 = vmatprep.mubr.bf16.mxu1 %v7058_v6  ;;  %6350 = vmatpush3.bf16.msra.mxu1 %v6560_v46  ;;  %v6577_v6 = vld [vmem:[%s8281_s2 + $0x210] sm:$0xff]   ;;  %v331_v46 = vmul.f32 %v7431_v60, %v5665_v27  ;;  %v7481_v27 = vld [vmem:[%s8281_s2 + $0x158] sm:$0xff]  }
  0x80   : > { %6351 = vmatprep.subr.bf16.mxu1 %v6565_v47 }
  0x81   : > { %6330 = vmatmul.mubr.bf16.vlgmr.msra.gmra.mxu0 %v6568_v43  ;;  %v706_v43 = vshrl.u32 %v5579_v33, 16 }
  0x82   : > { %5962 = vmatpush3.bf16.msra.mxu0 %v6569_v4  ;;  %6333 = vmatprep.mubr.bf16.mxu0 %v6573_v39  ;;  %v5780_v4 = vld [vmem:[%s6872_s13 + $0x50] sm:$0xff]   ;;  %v717_v39 = vshll.u32 %v5580_v1, 16 }
  0x83   : > { %6352 = vmatpush3.bf16.msra.mxu1 %v6565_v47  ;;  %5963 = vmatprep.subr.bf16.mxu0 %v6571_v20  ;;  %v332_v47 = vmul.f32 %v7431_v60, %v5666_v29  ;;  %v714_v20 = vshrl.u32 %v5580_v1, 16 }
  0x84   : > { %6353 = vmatprep.subr.bf16.mxu1 %v6570_v10 }
  0x86   : > { %2234 = vmatmul.mubr.bf16.gmra.mxu1 %v7060_v15  ;;  %5964 = vmatpush3.bf16.msra.mxu0 %v6572_v42  ;;  %v6578_v15 = vld [vmem:[%s8281_s2 + $0x1e0] sm:$0xff]   ;;  %v6614_v42 = vld [vmem:[%s8281_s2 + $0x168] sm:$0xff]  }
  0x87   : > { %2241 = vmatprep.mubr.bf16.mxu1 %v7171_v49  ;;  %6354 = vmatpush3.bf16.msra.mxu1 %v6570_v10  ;;  %v6579_v49 = vld [vmem:[%s8281_s2 + $0x1a0] sm:$0xff]   ;;  %v709_v10 = vshll.u32 %v5579_v33, 16  ;;  %v904_v33 = vld [vmem:[#allocation2 + $0xf0] sm:$0xf] }
  0x88   : > { %6355 = vmatprep.subr.bf16.mxu1 %v6577_v6  ;;  %5965 = vmatprep.subr.bf16.mxu0 %v6574_v52  ;;  %v368_v52 = vadd.f32 %v7444_v23, %v332_v47 }
  0x89   : > { %6334 = vmatmul.mubr.bf16.gmra.mxu0 %v6575_v18  ;;  %v5669_v18 = vunpack.c.l.bf16 %v5780_v4 }
  0x8a   : > { %6337 = vmatprep.mubr.bf16.mxu0 %v6580_v58  ;;  %5966 = vmatpush3.bf16.msra.mxu0 %v6576_v41  ;;  %v5670_v58 = vunpack.c.h.bf16 %v5780_v4  ;;  %v6607_v41 = vld [vmem:[#allocation2 + $0x48] ss:$12 sps:$4 sm:$0xff]  }
  0x8b   : > { %6356 = vmatpush3.bf16.msra.mxu1 %v6577_v6  ;;  %5967 = vmatprep.subr.bf16.mxu0 %v6578_v15  ;;  %v367_v6 = vadd.f32 %v7444_v23, %v331_v46  ;;  %v1008_v15 = vrot.slane %v709_v10, 5 }
  0x8c   : > { %6357 = vmatprep.subr.bf16.mxu1 %v6584_v53 }
  0x8e   : > { %2242 = vmatmul.mubr.bf16.gmra.mxu1 %v7173_v51  ;;  %5968 = vmatpush3.bf16.msra.mxu0 %v6579_v49  ;;  %v6585_v51 = vld [vmem:[%s8281_s2 + $0x1d0] sm:$0xff]   ;;  %v1011_v49 = vrot.slane %v717_v39, 5 }
  0x8f   : > { %2249 = vmatprep.mubr.bf16.mxu1 %v7259_v63  ;;  %6358 = vmatpush3.bf16.msra.mxu1 %v6584_v53  ;;  %v1007_v53 = vrot.slane %v706_v43, 4 }
  0x90   : > { %6359 = vmatprep.subr.bf16.mxu1 %v6591_v34  ;;  %5969 = vmatprep.subr.bf16.mxu0 %v6581_v19  ;;  %v1013_v19 = vrot.slane %v714_v20, 4 }
  0x91   : > { %6338 = vmatmul.mubr.bf16.gmra.mxu0 %v6582_v36  ;;  %v708_v36 = vrot.slane %v706_v43, 7  ;;  %v5781_v43 = vld [vmem:[%s6872_s13 + $0x58] sm:$0xff]  }
  0x92   : > { %6341 = vmatprep.mubr.bf16.mxu0 %v6587_v55  ;;  %5970 = vmatpush3.bf16.msra.mxu0 %v6583_v54  ;;  %v716_v54 = vrot.slane %v714_v20, 7  ;;  %v399_v55 = vmax.f32 %v367_v6, 0.0 }
  0x93   : > { %6360 = vmatpush3.bf16.msra.mxu1 %v6591_v34  ;;  %5971 = vmatprep.subr.bf16.mxu0 %v6585_v51  ;;  %v1145_v34 = vld [vmem:[#allocation2 + $0xec] sm:$0xf]  ;;  %v1009_v51 = vor.u32 %v1008_v15, %v1007_v53  ;;  %v712_v44 = vrot.slane %v708_v36, 4  ;;  %v5673_v15 = vunpack.c.l.bf16 %v5781_v43 }
  0x94   : > { %6041 = vmatprep.subr.bf16.mxu1 %v6599_v30  ;;  %v400_v30 = vmax.f32 %v368_v52, 0.0  ;;  %v5581_v38 = vpack.c.bf16 %v399_v55, %v399_v55  ;;  %v6601_v55 = vld [vmem:[%s8281_s2 + $0xf8] sm:$0xff]  }
  0x95   : > { %v1010_v62 = vrot.slane %v1009_v51, 4  ;;  %v6633_v51 = vld [vmem:[%s8281_s2 + $0x150] sm:$0xff]  }
  0x96   : > { %2250 = vmatmul.mubr.bf16.gmra.mxu1 %v7263_v5  ;;  %5972 = vmatpush3.bf16.msra.mxu0 %v6586_v24  ;;  %v1014_v24 = vor.u32 %v1013_v19, %v1011_v49  ;;  %560 = vst [vmem:[#allocation2 + $0xf4] sm:$0xf] %v5581_v38  ;;  %v722_v9 = vshrl.u32 %v5581_v38, 16  ;;  %v725_v32 = vshll.u32 %v5581_v38, 16 }
  0x97   : > { %2257 = vmatprep.mubr.bf16.mxu1 %v7324_v37  ;;  %5973 = vmatprep.subr.bf16.mxu0 %v6588_v40  ;;  %v900_v40 = vld [vmem:[#allocation2 + $0xd8] sm:$0xf]  ;;  %v1012_v13 = vsel %vm6933_vm11, %v1010_v62, %v1011_v49  ;;  %v6600_v49 = vld [vmem:[#allocation2 + $0x50] ss:$12 sps:$4 sm:$0xff]   ;;  %v5782_v62 = vld [vmem:[%s6872_s13 + $0x60] sm:$0xff]  }
  0x98   : > { %1144 = vst [vmem:[#allocation2 + $0xe0] sm:$0xf] %v1012_v13  ;;  %v724_v1 = vrot.slane %v722_v9, 7  ;;  %v1016_v46 = vrot.slane %v722_v9, 4  ;;  %v1017_v47 = vrot.slane %v725_v32, 5 }
  0x99   : > { %6342 = vmatmul.mubr.bf16.gmra.mxu0 %v6589_v28  ;;  %v333_v28 = vmul.f32 %v7431_v60, %v5669_v18 }
  0x9a   : > { %2765 = vmatprep.mubr.bf16.mxu0 %v6596_v11  ;;  %5974 = vmatpush3.bf16.msra.mxu0 %v6590_v21  ;;  %v334_v11 = vmul.f32 %v7431_v60, %v5670_v58  ;;  %v711_v21 = vor.u32 %v709_v10, %v708_v36  ;;  %v727_v52 = vor.u32 %v725_v32, %v724_v1  ;;  %v728_v18 = vrot.slane %v724_v1, 4  ;;  %v908_v32 = vld [vmem:[#allocation2 + $0x108] sm:$0xf]  ;;  %v6603_v1 = vld [vmem:[%s8281_s2 + $0xf0] sm:$0xff]  }
  0x9b   : > { %5975 = vmatprep.subr.bf16.mxu0 %v6592_v59  ;;  %v719_v59 = vor.u32 %v717_v39, %v716_v54  ;;  %v369_v12 = vadd.f32 %v7444_v23, %v333_v28  ;;  %v1018_v58 = vor.u32 %v1017_v47, %v1016_v46  ;;  %v5674_v54 = vunpack.c.h.bf16 %v5781_v43 }
  0x9c   : > { %v370_v4 = vadd.f32 %v7444_v23, %v334_v11  ;;  %v905_v19 = vsel %vm6927_vm10, %v727_v52, %v904_v33  ;;  %v5678_v33 = vunpack.c.h.bf16 %v5782_v62 }
  0x9d   : > { %v720_v26 = vsel %vm6921_vm7, %v712_v44, %v719_v59  ;;  %v401_v6 = vmax.f32 %v369_v12, 0.0  ;;  %906 = vst [vmem:[#allocation2 + $0xf0] sm:$0xf] %v905_v19 }
  0x9e   : > { %2258 = vmatmul.mubr.bf16.gmra.mxu1 %v7326_v35  ;;  %5976 = vmatpush3.bf16.msra.mxu0 %v6593_v0  ;;  %v1015_v0 = vrot.slane %v1014_v24, 4  ;;  %903 = vst [vmem:[#allocation2 + $0xe4] sm:$0xf] %v720_v26 }
  0x9f   : > { %2265 = vmatprep.mubr.bf16.mxu1 %v7340_v57  ;;  %6377 = vmatprep.subr.bf16.mxu0 %v6597_v25  ;;  %v7487_v53 = vpack.c.bf16 %v401_v6, %v401_v6  ;;  %v338_v6 = vmul.f32 %v7431_v60, %v5678_v33  ;;  %v6617_v33 = vld [vmem:[#allocation2 + $0xb0] ss:$12 sps:$4 sm:$0xff]  }
  0xa1   : > { %2766 = vmatmul.mubr.bf16.vlgmr.msra.gmra.mxu0 %v6594_v7  ;;  %v901_v7 = vsel %vm6927_vm10, %v711_v21, %v900_v40  ;;  %562 = vst [vmem:[#allocation2 + $0x10c] sm:$0xf] %v7487_v53  ;;  %v738_v28 = vshrl.u32 %v7487_v53, 16  ;;  %v741_v11 = vshll.u32 %v7487_v53, 16  ;;  %v6602_v21 = vld [vmem:[%s8281_s2 + $0x130] sm:$0xff]  }
  0xa2   : > { %6378 = vmatpush3.bf16.msra.mxu0 %v6597_v25  ;;  %2773 = vmatprep.mubr.bf16.mxu0 %v6604_v14  ;;  %v5582_v25 = vpack.c.bf16 %v400_v30, %v400_v30  ;;  %v1146_v14 = vsel %vm6943_vm12, %v1015_v0, %v1145_v34  ;;  %902 = vst [vmem:[#allocation2 + $0xd8] sm:$0xf] %v901_v7  ;;  %v1019_v34 = vrot.slane %v1018_v58, 4  ;;  %v6608_v30 = vld [vmem:[#allocation2 + $0x68] ss:$12 sps:$4 sm:$0xff]  }
  0xa3   : > { %6379 = vmatprep.subr.bf16.mxu0 %v6606_v31  ;;  %1147 = vst [vmem:[#allocation2 + $0xec] sm:$0xf] %v1146_v14  ;;  %v740_v12 = vrot.slane %v738_v28, 7  ;;  %v7537_v43 = vrot.slane %v738_v28, 4  ;;  %v1026_v52 = vrot.slane %v741_v11, 5 }
  0xa4   : > { %561 = vst [vmem:[#allocation2 + $0x100] sm:$0xf] %v5582_v25  ;;  %v730_v29 = vshrl.u32 %v5582_v25, 16  ;;  %v1205_v58 = vld [vmem:[#allocation2 + $0xf0] sm:$0x1] }
  0xa5   : > { %v1206_v19 = vsel %vm6959_vm13, 0, %v1205_v58 }
  0xa6   : > { %2266 = vmatmul.mubr.bf16.gmra.mxu1 %v7342_v3  ;;  %6380 = vmatpush3.bf16.msra.mxu0 %v6606_v31  ;;  %v733_v31 = vshll.u32 %v5582_v25, 16  ;;  %v732_v10 = vrot.slane %v730_v29, 7  ;;  %v1022_v39 = vrot.slane %v730_v29, 4  ;;  %v743_v29 = vor.u32 %v741_v11, %v740_v12  ;;  %1207 = vst [vmem:[#allocation2 + $0xf0] sm:$0x1] %v1206_v19 }
  0xa7   : > { %2273 = vmatprep.mubr.bf16.mxu1 %v7346_v2  ;;  %6381 = vmatprep.subr.bf16.mxu0 %v6614_v42  ;;  %v1027_v11 = vor.u32 %v1026_v52, %v7537_v43  ;;  %v6622_v43 = vld [vmem:[#allocation2 + $0xc8] ss:$12 sps:$4 sm:$0xff]  }
  0xa8   : > { %v1020_v20 = vrot.slane %v733_v31, 5 }
  0xa9   : > { %2774 = vmatmul.mubr.bf16.gmra.mxu0 %v6607_v41  ;;  %v1202_v44 = vld [vmem:[#allocation2 + $0xd8] sm:$0x1] }
  0xaa   : > { %2781 = vmatprep.mubr.bf16.mxu0 %v7259_v63  ;;  %6382 = vmatpush3.bf16.msra.mxu0 %v6614_v42  ;;  %v402_v63 = vmax.f32 %v370_v4, 0.0  ;;  %v735_v42 = vor.u32 %v733_v31, %v732_v10  ;;  %v1023_v41 = vor.u32 %v1022_v39, %v1020_v20  ;;  %v1253_v0 = vld [vmem:[#allocation2 + $0xec] sm:$0x8]  ;;  %v1203_v25 = vsel %vm6959_vm13, 0, %v1202_v44 }
  0xab   : > { %6383 = vmatprep.subr.bf16.mxu0 %v6621_v22  ;;  %v1021_v26 = vsel %vm6933_vm11, %v1019_v34, %v1020_v20  ;;  %v1254_v9 = vsel %vm6969_vm14, 0, %v1253_v0  ;;  %1204 = vst [vmem:[#allocation2 + $0xd8] sm:$0x1] %v1203_v25  ;;  %v744_v31 = vrot.slane %v740_v12, 4  ;;  %v6609_v10 = vld [vmem:[%s8281_s2 + $0x128] sm:$0xff]   ;;  %v909_v20 = vsel %vm6927_vm10, %v743_v29, %v908_v32  ;;  %v6649_v32 = vld [vmem:[%s8281_s2 + $0x78] sm:$0xff]  }
  0xac   : > { %v7491_v36 = vpack.c.bf16 %v402_v63, %v402_v63  ;;  %v736_v24 = vsel %vm6921_vm7, %v728_v18, %v735_v42  ;;  %v1024_v40 = vrot.slane %v1023_v41, 4  ;;  %1148 = vst [vmem:[#allocation2 + $0xf8] sm:$0xf] %v1021_v26  ;;  %1255 = vst [vmem:[#allocation2 + $0xec] sm:$0x8] %v1254_v9  ;;  %v6643_v42 = vld [vmem:[%s8281_s2 + $0x140] sm:$0xff]  }
  0xad   : > { %907 = vst [vmem:[#allocation2 + $0xfc] sm:$0xf] %v736_v24  ;;  %v6610_v18 = vld [vmem:[#allocation2 + $0x80] ss:$12 sps:$4 sm:$0xff]   ;;  %910 = vst [vmem:[#allocation2 + $0x108] sm:$0xf] %v909_v20 }
  0xae   : > { %2274 = vmatmul.mubr.bf16.gmra.mxu1 %v7348_v17  ;;  %6384 = vmatpush3.bf16.msra.mxu0 %v6621_v22  ;;  %v1149_v17 = vld [vmem:[#allocation2 + $0x104] sm:$0xf]  ;;  %563 = vst [vmem:[#allocation2 + $0x118] sm:$0xf] %v7491_v36  ;;  %v746_v59 = vshrl.u32 %v7491_v36, 16  ;;  %v749_v38 = vshll.u32 %v7491_v36, 16  ;;  %v336_v22 = vmul.f32 %v7431_v60, %v5674_v54  ;;  %v374_v54 = vadd.f32 %v7444_v23, %v338_v6 }
  0xaf   : > { %6361 = vmatprep.mubr.bf16.mxu1 %v6598_v48  ;;  %6385 = vmatprep.subr.bf16.mxu0 %v7481_v27  ;;  %v335_v48 = vmul.f32 %v7431_v60, %v5673_v15  ;;  %v1150_v7 = vsel %vm6943_vm12, %v1024_v40, %v1149_v17  ;;  %v5783_v15 = vld [vmem:[%s6872_s13 + $0x68] sm:$0xff]   ;;  %v6612_v24 = vld [vmem:[%s8281_s2 + $0x120] sm:$0xff]  }
  0xb0   : > { %v372_v14 = vadd.f32 %v7444_v23, %v336_v22  ;;  %1151 = vst [vmem:[#allocation2 + $0x104] sm:$0xf] %v1150_v7  ;;  %v6615_v40 = vld [vmem:[#allocation2 + $0x98] ss:$12 sps:$4 sm:$0xff]   ;;  %v5682_v44 = vunpack.c.h.bf16 %v5783_v15 }
  0xb1   : > { %2782 = vmatmul.mubr.bf16.gmra.mxu0 %v7263_v5  ;;  %v748_v5 = vrot.slane %v746_v59, 7  ;;  %v371_v13 = vadd.f32 %v7444_v23, %v335_v48 }
  0xb2   : > { %2789 = vmatprep.mubr.bf16.mxu0 %v7324_v37  ;;  %6386 = vmatpush3.bf16.msra.mxu0 %v7481_v27  ;;  %v6638_v37 = vld [vmem:[%s8281_s2 + $0x148] sm:$0xff]   ;;  %v5677_v27 = vunpack.c.l.bf16 %v5782_v62  ;;  %v404_v4 = vmax.f32 %v372_v14, 0.0  ;;  %v912_v62 = vld [vmem:[#allocation2 + $0x120] sm:$0xf]  ;;  %v340_v26 = vmul.f32 %v7431_v60, %v5682_v44  ;;  %v406_v14 = vmax.f32 %v374_v54, 0.0 }
  0xb3   : > { %6387 = vmatprep.subr.bf16.mxu0 %v6633_v51  ;;  %v751_v46 = vor.u32 %v749_v38, %v748_v5  ;;  %v403_v47 = vmax.f32 %v371_v13, 0.0  ;;  %v1157_v44 = vld [vmem:[#allocation2 + $0x134] sm:$0xf] }
  0xb4   : > { %v337_v39 = vmul.f32 %v7431_v60, %v5677_v27  ;;  %v7553_v53 = vpack.c.bf16 %v404_v4, %v404_v4  ;;  %v1208_v13 = vld [vmem:[#allocation2 + $0x108] sm:$0x1]  ;;  %v6616_v27 = vld [vmem:[%s8281_s2 + $0x118] sm:$0xff]   ;;  %v1031_v4 = vrot.slane %v746_v59, 4 }
  0xb5   : > { %v752_v63 = vsel %vm6921_vm7, %v744_v31, %v751_v46  ;;  %v7551_v41 = vpack.c.bf16 %v403_v47, %v403_v47  ;;  %v1028_v31 = vrot.slane %v1027_v11, 4 }
  0xb6   : > { %6362 = vmatmul.mubr.bf16.vlgmr.msra.gmra.mxu1 %v6600_v49  ;;  %6388 = vmatpush3.bf16.msra.mxu0 %v6633_v51  ;;  %v6611_v49 = vld [vmem:[%s8281_s2 + $0xe8] sm:$0xff]   ;;  %911 = vst [vmem:[#allocation2 + $0x114] sm:$0xf] %v752_v63  ;;  %v373_v34 = vadd.f32 %v7444_v23, %v337_v39  ;;  %565 = vst [vmem:[#allocation2 + $0x130] sm:$0xf] %v7553_v53  ;;  %v765_v51 = vshll.u32 %v7553_v53, 16 }
  0xb7   : > { %6042 = vmatpush3.bf16.msra.mxu1 %v6601_v55  ;;  %6365 = vmatprep.mubr.bf16.mxu1 %v6608_v30  ;;  %564 = vst [vmem:[#allocation2 + $0x124] sm:$0xf] %v7551_v41  ;;  %v754_v17 = vshrl.u32 %v7551_v41, 16  ;;  %v757_v55 = vshll.u32 %v7551_v41, 16  ;;  %v762_v30 = vshrl.u32 %v7553_v53, 16 }
  0xb8   : > { %6043 = vmatprep.subr.bf16.mxu1 %v6602_v21  ;;  %6389 = vmatprep.subr.bf16.mxu0 %v6638_v37  ;;  %v405_v28 = vmax.f32 %v373_v34, 0.0  ;;  %v5681_v21 = vunpack.c.l.bf16 %v5783_v15  ;;  %v1256_v0 = vld [vmem:[#allocation2 + $0x104] sm:$0x8]  ;;  %v916_v39 = vld [vmem:[#allocation2 + $0x138] sm:$0xf]  ;;  %v1038_v63 = vrot.slane %v765_v51, 5 }
  0xb9   : > { %2790 = vmatmul.mubr.bf16.gmra.mxu0 %v7326_v35  ;;  %v756_v48 = vrot.slane %v754_v17, 7  ;;  %v764_v22 = vrot.slane %v762_v30, 7  ;;  %v1029_v35 = vrot.slane %v749_v38, 5  ;;  %v1257_v38 = vsel %vm6969_vm14, 0, %v1256_v0  ;;  %v1153_v34 = vld [vmem:[#allocation2 + $0x11c] sm:$0xf] }
  0xba   : > { %2797 = vmatprep.mubr.bf16.mxu0 %v7340_v57  ;;  %6390 = vmatpush3.bf16.msra.mxu0 %v6638_v37  ;;  %v7577_v25 = vpack.c.bf16 %v405_v28, %v405_v28  ;;  %v339_v12 = vmul.f32 %v7431_v60, %v5681_v21  ;;  %v6613_v57 = vld [vmem:[%s8281_s2 + $0xe0] sm:$0xff]   ;;  %1258 = vst [vmem:[#allocation2 + $0x104] sm:$0x8] %v1257_v38  ;;  %v1034_v59 = vrot.slane %v754_v17, 4  ;;  %v1035_v58 = vrot.slane %v757_v55, 5  ;;  %v7630_v21 = vld [vmem:[%s6872_s13 + $0x70] sm:$0xff]  }
  0xbb   : > { %6044 = vmatpush3.bf16.msra.mxu1 %v6603_v1  ;;  %6391 = vmatprep.subr.bf16.mxu0 %v6643_v42  ;;  %v759_v7 = vor.u32 %v757_v55, %v756_v48  ;;  %v760_v9 = vrot.slane %v756_v48, 4  ;;  %v767_v5 = vor.u32 %v765_v51, %v764_v22  ;;  %v1209_v1 = vsel %vm6959_vm13, 0, %v1208_v13  ;;  %v6620_v51 = vld [vmem:[%s8281_s2 + $0xd0] sm:$0xff]  }
  0xbc   : > { %6045 = vmatprep.subr.bf16.mxu1 %v6609_v10  ;;  %566 = vst [vmem:[#allocation2 + $0x13c] sm:$0xf] %v7577_v25  ;;  %v770_v37 = vshrl.u32 %v7577_v25, 16  ;;  %v773_v29 = vshll.u32 %v7577_v25, 16  ;;  %1210 = vst [vmem:[#allocation2 + $0x108] sm:$0x1] %v1209_v1  ;;  %v7605_v10 = vpack.c.bf16 %v406_v14, %v406_v14  ;;  %v1030_v6 = vsel %vm6933_vm11, %v1028_v31, %v1029_v35 }
  0xbd   : > { %v768_v46 = vsel %vm6921_vm7, %v760_v9, %v767_v5  ;;  %v913_v47 = vsel %vm6927_vm10, %v759_v7, %v912_v62  ;;  %v375_v52 = vadd.f32 %v7444_v23, %v339_v12  ;;  %v1032_v36 = vor.u32 %v1031_v4, %v1029_v35  ;;  %1152 = vst [vmem:[#allocation2 + $0x110] sm:$0xf] %v1030_v6  ;;  %v6623_v35 = vld [vmem:[%s8281_s2 + $0x108] sm:$0xff]   ;;  %v6626_v31 = vld [vmem:[%s8281_s2 + $0x100] sm:$0xff]  }
  0xbe   : > { %6366 = vmatmul.mubr.bf16.gmra.mxu1 %v6610_v18  ;;  %6392 = vmatpush3.bf16.msra.mxu0 %v6643_v42  ;;  %914 = vst [vmem:[#allocation2 + $0x120] sm:$0xf] %v913_v47  ;;  %915 = vst [vmem:[#allocation2 + $0x12c] sm:$0xf] %v768_v46  ;;  %v772_v20 = vrot.slane %v770_v37, 7  ;;  %v6618_v18 = vld [vmem:[%s8281_s2 + $0xd8] sm:$0xff]   ;;  %v1036_v17 = vor.u32 %v1035_v58, %v1034_v59  ;;  %v5685_v9 = vunpack.c.l.bf16 %v7630_v21 }
  0xbf   : > { %6046 = vmatpush3.bf16.msra.mxu1 %v6611_v49  ;;  %6369 = vmatprep.mubr.bf16.mxu1 %v6615_v40  ;;  %v6619_v42 = vld [vmem:[%s8281_s2 + $0x110] sm:$0xff]   ;;  %567 = vst [vmem:[#allocation2 + $0x148] sm:$0xf] %v7605_v10  ;;  %v778_v49 = vshrl.u32 %v7605_v10, 16  ;;  %v781_v19 = vshll.u32 %v7605_v10, 16  ;;  %v1033_v54 = vrot.slane %v1032_v36, 4 }
  0xc0   : > { %6047 = vmatprep.subr.bf16.mxu1 %v6612_v24  ;;  %6121 = vmatprep.subr.bf16.mxu0 %v6649_v32  ;;  %v775_v41 = vor.u32 %v773_v29, %v772_v20  ;;  %v776_v15 = vrot.slane %v772_v20, 4  ;;  %v1040_v55 = vrot.slane %v762_v30, 4  ;;  %v407_v28 = vmax.f32 %v375_v52, 0.0  ;;  %v6624_v12 = vld [vmem:[#allocation2 + $0xe0] ss:$12 sps:$4 sm:$0xff]  }
  0xc1   : > { %2798 = vmatmul.mubr.bf16.gmra.mxu0 %v7342_v3  ;;  %v376_v3 = vadd.f32 %v7444_v23, %v340_v26  ;;  %v780_v24 = vrot.slane %v778_v49, 7  ;;  %v1043_v11 = vrot.slane %v770_v37, 4  ;;  %v1037_v53 = vrot.slane %v1036_v17, 4  ;;  %v6625_v5 = vld [vmem:[%s8281_s2 + $0xc8] sm:$0xff]   ;;  %v920_v47 = vld [vmem:[#allocation2 + $0x150] sm:$0xf] }
  0xc2   : > { %2805 = vmatprep.mubr.bf16.mxu0 %v7346_v2  ;;  %v917_v40 = vsel %vm6927_vm10, %v775_v41, %v916_v39  ;;  %v1154_v2 = vsel %vm6943_vm12, %v1033_v54, %v1153_v34  ;;  %v1041_v30 = vor.u32 %v1040_v55, %v1038_v63  ;;  %v5589_v62 = vpack.c.bf16 %v407_v28, %v407_v28  ;;  %v7643_v32 = vld [vmem:[#allocation2 + $0xdc] ss:$12 sps:$4 sm:$0xff]   ;;  %v6753_v6 = vld [vmem:[#allocation2 + $0xc4] ss:$12 sps:$4 sm:$0xff]   ;;  %v1161_v55 = vld [vmem:[#allocation2 + $0x14c] sm:$0xf] }
  0xc3   : > { %6048 = vmatpush3.bf16.msra.mxu1 %v6613_v57  ;;  %918 = vst [vmem:[#allocation2 + $0x138] sm:$0xf] %v917_v40  ;;  %v408_v48 = vmax.f32 %v376_v3, 0.0  ;;  %v783_v22 = vor.u32 %v781_v19, %v780_v24  ;;  %1155 = vst [vmem:[#allocation2 + $0x11c] sm:$0xf] %v1154_v2  ;;  %v1044_v0 = vrot.slane %v773_v29, 5  ;;  %v1039_v26 = vsel %vm6933_vm11, %v1037_v53, %v1038_v63 }
  0xc4   : > { %6049 = vmatprep.subr.bf16.mxu1 %v6616_v27  ;;  %v1047_v25 = vrot.slane %v781_v19, 5  ;;  %v1042_v57 = vrot.slane %v1041_v30, 4  ;;  %1156 = vst [vmem:[#allocation2 + $0x128] sm:$0xf] %v1039_v26  ;;  %568 = vst [vmem:[#allocation2 + $0x154] sm:$0xf] %v5589_v62  ;;  %v5686_v29 = vunpack.c.h.bf16 %v7630_v21 }
  0xc5   : > { %v5590_v7 = vpack.c.bf16 %v408_v48, %v408_v48  ;;  %v1211_v38 = vld [vmem:[#allocation2 + $0x120] sm:$0x1]  ;;  %v784_v13 = vsel %vm6921_vm7, %v776_v15, %v783_v22  ;;  %v786_v14 = vshrl.u32 %v5589_v62, 16  ;;  %v1045_v37 = vor.u32 %v1044_v0, %v1043_v11  ;;  %v6752_v4 = vld [vmem:[#allocation2 + $0xa8] ss:$12 sps:$4 sm:$0xff]   ;;  %v5785_v48 = vld [vmem:[%s6872_s13 + $0x78] sm:$0xff]  }
  0xc6   : > { %6370 = vmatmul.mubr.bf16.gmra.mxu1 %v6617_v33  ;;  %v1212_v27 = vsel %vm6959_vm13, 0, %v1211_v38  ;;  %919 = vst [vmem:[#allocation2 + $0x144] sm:$0xf] %v784_v13  ;;  %v1158_v33 = vsel %vm6943_vm12, %v1042_v57, %v1157_v44  ;;  %v789_v1 = vshll.u32 %v5589_v62, 16  ;;  %v1049_v39 = vrot.slane %v778_v49, 4  ;;  %v6627_v58 = vld [vmem:[%s8281_s2 + $0xc0] sm:$0xff]  }
  0xc7   : > { %6050 = vmatpush3.bf16.msra.mxu1 %v6618_v18  ;;  %6373 = vmatprep.mubr.bf16.mxu1 %v6622_v43  ;;  %569 = vst [vmem:[#allocation2 + $0x160] sm:$0xf] %v5590_v7  ;;  %v794_v46 = vshrl.u32 %v5590_v7, 16  ;;  %1213 = vst [vmem:[#allocation2 + $0x120] sm:$0x1] %v1212_v27  ;;  %v788_v43 = vrot.slane %v786_v14, 7  ;;  %v341_v11 = vmul.f32 %v7431_v60, %v5685_v9  ;;  %v5689_v0 = vunpack.c.l.bf16 %v5785_v48 }
  0xc8   : > { %6051 = vmatprep.subr.bf16.mxu1 %v6619_v42  ;;  %1159 = vst [vmem:[#allocation2 + $0x134] sm:$0xf] %v1158_v33  ;;  %v797_v10 = vshll.u32 %v5590_v7, 16  ;;  %v1046_v20 = vrot.slane %v1045_v37, 4  ;;  %v1052_v18 = vrot.slane %v786_v14, 4  ;;  %v1053_v36 = vrot.slane %v789_v1, 5 }
  0xc9   : > { %2806 = vmatmul.mubr.bf16.gmra.mxu0 %v6752_v4  ;;  %v796_v52 = vrot.slane %v794_v46, 7  ;;  %v1058_v59 = vrot.slane %v794_v46, 4  ;;  %v791_v42 = vor.u32 %v789_v1, %v788_v43  ;;  %v792_v41 = vrot.slane %v788_v43, 4  ;;  %v6632_v49 = vld [vmem:[%s8281_s2 + $0xb8] sm:$0xff]   ;;  %v1165_v30 = vld [vmem:[#allocation2 + $0x164] sm:$0xf] }
  0xca   : > { %2813 = vmatprep.mubr.bf16.mxu0 %v6753_v6  ;;  %v1214_v63 = vld [vmem:[#allocation2 + $0x138] sm:$0x1]  ;;  %v1048_v15 = vsel %vm6933_vm11, %v1046_v20, %v1047_v25  ;;  %v1050_v19 = vor.u32 %v1049_v39, %v1047_v25  ;;  %v1259_v54 = vld [vmem:[#allocation2 + $0x11c] sm:$0x8]  ;;  %v1054_v3 = vor.u32 %v1053_v36, %v1052_v18  ;;  %v342_v44 = vmul.f32 %v7431_v60, %v5686_v29  ;;  %v6634_v7 = vld [vmem:[#allocation2 + $0xf4] ss:$12 sps:$4 sm:$0xff]  }
  0xcb   : > { %6052 = vmatpush3.bf16.msra.mxu1 %v6620_v51  ;;  %v1215_v34 = vsel %vm6959_vm13, 0, %v1214_v63  ;;  %v799_v17 = vor.u32 %v797_v10, %v796_v52  ;;  %1160 = vst [vmem:[#allocation2 + $0x140] sm:$0xf] %v1048_v15  ;;  %v1056_v51 = vrot.slane %v797_v10, 5  ;;  %v1260_v24 = vsel %vm6969_vm14, 0, %v1259_v54  ;;  %v6636_v9 = vld [vmem:[%s8281_s2 + $0xb0] sm:$0xff]  }
  0xcc   : > { %6053 = vmatprep.subr.bf16.mxu1 %v6623_v35  ;;  %1216 = vst [vmem:[#allocation2 + $0x138] sm:$0x1] %v1215_v34  ;;  %v921_v40 = vsel %vm6927_vm10, %v791_v42, %v920_v47  ;;  %v1051_v28 = vrot.slane %v1050_v19, 4  ;;  %1261 = vst [vmem:[#allocation2 + $0x11c] sm:$0x8] %v1260_v24  ;;  %v1055_v2 = vrot.slane %v1054_v3, 4  ;;  %v377_v62 = vadd.f32 %v7444_v23, %v341_v11 }
  0xcd   : > { %v800_v21 = vsel %vm6921_vm7, %v792_v41, %v799_v17  ;;  %922 = vst [vmem:[#allocation2 + $0x150] sm:$0xf] %v921_v40  ;;  %v1059_v53 = vor.u32 %v1058_v59, %v1056_v51  ;;  %v5690_v25 = vunpack.c.h.bf16 %v5785_v48  ;;  %v6629_v35 = vld [vmem:[#allocation2 + $0xd8] ss:$12 sps:$4 sm:$0xff]   ;;  %v378_v57 = vadd.f32 %v7444_v23, %v342_v44  ;;  %v6637_v4 = vld [vmem:[#allocation2 + $0xf0] ss:$12 sps:$4 sm:$0xff]  }
  0xce   : > { %6374 = vmatmul.mubr.bf16.gmra.mxu1 %v6624_v12  ;;  %923 = vst [vmem:[#allocation2 + $0x15c] sm:$0xf] %v800_v21  ;;  %v1162_v22 = vsel %vm6943_vm12, %v1051_v28, %v1161_v55  ;;  %v1057_v12 = vsel %vm6933_vm11, %v1055_v2, %v1056_v51  ;;  %v409_v13 = vmax.f32 %v377_v62, 0.0  ;;  %v343_v14 = vmul.f32 %v7431_v60, %v5689_v0  ;;  %v6641_v43 = vld [vmem:[%s8281_s2 + $0xa8] sm:$0xff]   ;;  %v6646_v17 = vld [vmem:[%s8281_s2 + $0xa0] sm:$0xff]   ;;  %v6651_v2 = vld [vmem:[%s8281_s2 + $0x38] sm:$0xff]  }
  0xcf   : > { %6054 = vmatpush3.bf16.msra.mxu1 %v6625_v5  ;;  %3549 = vmatprep.mubr.bf16.mxu1 %v7643_v32  ;;  %1163 = vst [vmem:[#allocation2 + $0x14c] sm:$0xf] %v1162_v22  ;;  %v1060_v26 = vrot.slane %v1059_v53, 4  ;;  %v6754_v5 = vld [vmem:[#allocation2 + $0xc0] ss:$12 sps:$4 sm:$0xff]   ;;  %v344_v37 = vmul.f32 %v7431_v60, %v5690_v25  ;;  %v410_v27 = vmax.f32 %v378_v57, 0.0 }
  0xd0   : > { %6055 = vmatprep.subr.bf16.mxu1 %v6626_v31  ;;  %v1262_v38 = vld [vmem:[#allocation2 + $0x134] sm:$0x8]  ;;  %1164 = vst [vmem:[#allocation2 + $0x158] sm:$0xf] %v1057_v12  ;;  %v5591_v33 = vpack.c.bf16 %v409_v13, %v409_v13  ;;  %v379_v1 = vadd.f32 %v7444_v23, %v343_v14  ;;  %v6648_v60 = vld [vmem:[#allocation2 + $0xe0] ss:$12 sps:$4 sm:$0xff]  }
  0xd1   : > { %2814 = vmatmul.mubr.bf16.gmra.mxu0 %v6754_v5  ;;  %v1263_v29 = vsel %vm6969_vm14, 0, %v1262_v38  ;;  %v1166_v31 = vsel %vm6943_vm12, %v1060_v26, %v1165_v30  ;;  %v380_v46 = vadd.f32 %v7444_v23, %v344_v37  ;;  %v5592_v47 = vpack.c.bf16 %v410_v27, %v410_v27  ;;  %v6639_v6 = vld [vmem:[#allocation2 + $0x10c] ss:$12 sps:$4 sm:$0xff]   ;;  %v924_v36 = vld [vmem:[#allocation2 + $0x168] sm:$0xf]  ;;  %v6656_v25 = vld [vmem:[%s8281_s2 + $0x70] sm:$0xff]  }
  0xd2   : > { %2821 = vmatprep.mubr.bf16.mxu0 %v7643_v32  ;;  %1264 = vst [vmem:[#allocation2 + $0x134] sm:$0x8] %v1263_v29  ;;  %1167 = vst [vmem:[#allocation2 + $0x164] sm:$0xf] %v1166_v31  ;;  %v802_v20 = vshrl.u32 %v5591_v33, 16  ;;  %v805_v39 = vshll.u32 %v5591_v33, 16 }
  0xd3   : > { %6056 = vmatpush3.bf16.msra.mxu1 %v6627_v58  ;;  %570 = vst [vmem:[#allocation2 + $0x16c] sm:$0xf] %v5591_v33  ;;  %571 = vst [vmem:[#allocation2 + $0x178] sm:$0xf] %v5592_v47  ;;  %v810_v23 = vshrl.u32 %v5592_v47, 16  ;;  %v813_v18 = vshll.u32 %v5592_v47, 16 }
  0xd4   : > { %6409 = vmatprep.subr.bf16.mxu1 %v6632_v49  ;;  %v1217_v32 = vld [vmem:[#allocation2 + $0x150] sm:$0x1]  ;;  %v411_v59 = vmax.f32 %v379_v1, 0.0  ;;  %v412_v58 = vmax.f32 %v380_v46, 0.0  ;;  %v804_v42 = vrot.slane %v802_v20, 7  ;;  %v1061_v15 = vrot.slane %v802_v20, 4 }
  0xd5   : > { %v1218_v10 = vsel %vm6959_vm13, 0, %v1217_v32  ;;  %v812_v41 = vrot.slane %v810_v23, 7  ;;  %v1062_v19 = vrot.slane %v805_v39, 5  ;;  %v1067_v34 = vrot.slane %v810_v23, 4  ;;  %v6654_v53 = vld [vmem:[%s8281_s2 + $0x98] sm:$0xff]   ;;  %v6657_v1 = vld [vmem:[%s8281_s2 + $0x30] sm:$0xff]  }
  0xd6   : > { %3550 = vmatmul.mubr.bf16.vlgmr.msra.gmra.mxu1 %v6629_v35  ;;  %1219 = vst [vmem:[#allocation2 + $0x150] sm:$0x1] %v1218_v10  ;;  %v1265_v52 = vld [vmem:[#allocation2 + $0x14c] sm:$0x8]  ;;  %v5593_v54 = vpack.c.bf16 %v411_v59, %v411_v59  ;;  %v807_v3 = vor.u32 %v805_v39, %v804_v42  ;;  %v5594_v24 = vpack.c.bf16 %v412_v58, %v412_v58  ;;  %v808_v28 = vrot.slane %v804_v42, 4  ;;  %v6666_v58 = vld [vmem:[%s8281_s2 + $0x60] sm:$0xff]  }
  0xd7   : > { %6410 = vmatpush3.bf16.msra.mxu1 %v6632_v49  ;;  %3557 = vmatprep.mubr.bf16.mxu1 %v6634_v7  ;;  %v1266_v63 = vsel %vm6969_vm14, 0, %v1265_v52  ;;  %v1065_v49 = vrot.slane %v813_v18, 5  ;;  %v815_v51 = vor.u32 %v813_v18, %v812_v41  ;;  %v1063_v11 = vor.u32 %v1062_v19, %v1061_v15  ;;  %v1169_v44 = vld [vmem:[#allocation2 + $0x17c] sm:$0xf]  ;;  %v6650_v0 = vld [vmem:[#allocation2 + $0xf8] ss:$12 sps:$4 sm:$0xff]  }
  0xd8   : > { %6411 = vmatprep.subr.bf16.mxu1 %v6636_v9  ;;  %1267 = vst [vmem:[#allocation2 + $0x14c] sm:$0x8] %v1266_v63  ;;  %572 = vst [vmem:[#allocation2 + $0x184] sm:$0xf] %v5593_v54  ;;  %v925_v30 = vsel %vm6927_vm10, %v807_v3, %v924_v36  ;;  %v818_v48 = vshrl.u32 %v5593_v54, 16  ;;  %v821_v22 = vshll.u32 %v5593_v54, 16 }
  0xd9   : > { %2822 = vmatmul.mubr.bf16.gmra.mxu0 %v6629_v35  ;;  %v1268_v55 = vld [vmem:[#allocation2 + $0x164] sm:$0x8]  ;;  %v1068_v21 = vor.u32 %v1067_v34, %v1065_v49  ;;  %v826_v62 = vshrl.u32 %v5594_v24, 16  ;;  %573 = vst [vmem:[#allocation2 + $0x190] sm:$0xf] %v5594_v24  ;;  %v816_v35 = vsel %vm6921_vm7, %v808_v28, %v815_v51  ;;  %v1064_v12 = vrot.slane %v1063_v11, 4 }
  0xda   : > { %6393 = vmatprep.mubr.bf16.mxu0 %v6648_v60  ;;  %v1269_v40 = vsel %vm6969_vm14, 0, %v1268_v55  ;;  %926 = vst [vmem:[#allocation2 + $0x168] sm:$0xf] %v925_v30  ;;  %v829_v57 = vshll.u32 %v5594_v24, 16  ;;  %v6642_v7 = vld [vmem:[#allocation2 + $0x108] ss:$12 sps:$4 sm:$0xff]  }
  0xdb   : > { %6412 = vmatpush3.bf16.msra.mxu1 %v6636_v9  ;;  %1270 = vst [vmem:[#allocation2 + $0x164] sm:$0x8] %v1269_v40  ;;  %v1069_v26 = vrot.slane %v1068_v21, 4  ;;  %v6658_v9 = vld [vmem:[#allocation2 + $0x110] ss:$12 sps:$4 sm:$0xff]   ;;  %v1070_v5 = vrot.slane %v818_v48, 4  ;;  %v1066_v13 = vsel %vm6933_vm11, %v1064_v12, %v1065_v49 }
  0xdc   : > { %6413 = vmatprep.subr.bf16.mxu1 %v6641_v43  ;;  %927 = vst [vmem:[#allocation2 + $0x174] sm:$0xf] %v816_v35  ;;  %v6644_v38 = vld [vmem:[#allocation2 + $0x124] ss:$12 sps:$4 sm:$0xff]   ;;  %v1071_v37 = vrot.slane %v821_v22, 5  ;;  %v1074_v29 = vrot.slane %v829_v57, 5 }
  0xdd   : > { %v1170_v14 = vsel %vm6943_vm12, %v1069_v26, %v1169_v44  ;;  %1168 = vst [vmem:[#allocation2 + $0x170] sm:$0xf] %v1066_v13  ;;  %v1076_v31 = vrot.slane %v826_v62, 4  ;;  %v820_v27 = vrot.slane %v818_v48, 7  ;;  %v928_v33 = vld [vmem:[#allocation2 + $0x180] sm:$0xf] }
  0xde   : > { %3558 = vmatmul.mubr.bf16.gmra.mxu1 %v6637_v4  ;;  %1171 = vst [vmem:[#allocation2 + $0x17c] sm:$0xf] %v1170_v14  ;;  %v1072_v46 = vor.u32 %v1071_v37, %v1070_v5  ;;  %v828_v47 = vrot.slane %v826_v62, 7  ;;  %v6664_v60 = vld [vmem:[%s8281_s2 + $0x90] sm:$0xff]   ;;  %v6659_v20 = vld [vmem:[%s8281_s2 + $0x68] sm:$0xff]   ;;  %v6671_v55 = vld [vmem:[%s8281_s2 + $0x18] sm:$0xff]  }
  0xdf   : > { %3565 = vmatprep.mubr.bf16.mxu1 %v6639_v6  ;;  %6414 = vmatpush3.bf16.msra.mxu1 %v6641_v43  ;;  %v1077_v32 = vor.u32 %v1076_v31, %v1074_v29  ;;  %v1173_v4 = vld [vmem:[#allocation2 + $0x194] sm:$0xf]  ;;  %v823_v43 = vor.u32 %v821_v22, %v820_v27  ;;  %v824_v10 = vrot.slane %v820_v27, 4  ;;  %v6661_v52 = vld [vmem:[%s8281_s2 + $0x28] sm:$0xff]   ;;  %v6655_v28 = vld [vmem:[#allocation2 + $0x138] ss:$12 sps:$4 sm:$0xff]  }
  0xe0   : > { %6415 = vmatprep.subr.bf16.mxu1 %v6646_v17  ;;  %v6660_v39 = vld [vmem:[#allocation2 + $0x128] ss:$12 sps:$4 sm:$0xff]   ;;  %v1073_v23 = vrot.slane %v1072_v46, 4  ;;  %v831_v6 = vor.u32 %v829_v57, %v828_v47  ;;  %v6647_v15 = vld [vmem:[#allocation2 + $0x120] ss:$12 sps:$4 sm:$0xff]  }
  0xe1   : > { %6394 = vmatmul.mubr.bf16.vlgmr.msra.gmra.mxu0 %v6650_v0  ;;  %v1220_v18 = vld [vmem:[#allocation2 + $0x168] sm:$0x1]  ;;  %v1078_v36 = vrot.slane %v1077_v32, 4  ;;  %v929_v59 = vsel %vm6927_vm10, %v823_v43, %v928_v33  ;;  %v6668_v19 = vld [vmem:[#allocation2 + $0x140] ss:$12 sps:$4 sm:$0xff]   ;;  %v6676_v24 = vld [vmem:[%s8281_s2 + $0x50] sm:$0xff]  }
  0xe2   : > { %6122 = vmatpush3.bf16.msra.mxu0 %v6651_v2  ;;  %6397 = vmatprep.mubr.bf16.mxu0 %v6658_v9  ;;  %v1221_v63 = vsel %vm6959_vm13, 0, %v1220_v18  ;;  %v6674_v42 = vld [vmem:[%s8281_s2 + $0x88] sm:$0xff]   ;;  %v1075_v41 = vsel %vm6933_vm11, %v1073_v23, %v1074_v29  ;;  %v832_v61 = vsel %vm6921_vm7, %v824_v10, %v831_v6  ;;  %930 = vst [vmem:[#allocation2 + $0x180] sm:$0xf] %v929_v59  ;;  %v6670_v51 = vld [vmem:[#allocation2 + $0x158] ss:$12 sps:$4 sm:$0xff]  }
  0xe3   : > { %6416 = vmatpush3.bf16.msra.mxu1 %v6646_v17  ;;  %6123 = vmatprep.subr.bf16.mxu0 %v6656_v25  ;;  %1222 = vst [vmem:[#allocation2 + $0x168] sm:$0x1] %v1221_v63  ;;  %1172 = vst [vmem:[#allocation2 + $0x188] sm:$0xf] %v1075_v41  ;;  %v1174_v49 = vsel %vm6943_vm12, %v1078_v36, %v1173_v4  ;;  %v6652_v54 = vld [vmem:[#allocation2 + $0x13c] ss:$12 sps:$4 sm:$0xff]  }
  0xe4   : > { %6417 = vmatprep.subr.bf16.mxu1 %v6654_v53  ;;  %931 = vst [vmem:[#allocation2 + $0x18c] sm:$0xf] %v832_v61  ;;  %1175 = vst [vmem:[#allocation2 + $0x194] sm:$0xf] %v1174_v49  ;;  %v6669_v17 = vld [vmem:[%s8281_s2 + $0x58] sm:$0xff]   ;;  %v6681_v44 = vld [vmem:[%s8281_s2 + $0x8] sm:$0xff]  }
  0xe5   : > { %v1271_v34 = vld [vmem:[#allocation2 + $0x17c] sm:$0x8]  ;;  %v7774_v30 = vld [vmem:[#allocation2 + $0x154] ss:$12 sps:$4 sm:$0xff]   ;;  %v6690_v48 = vld [vmem:[#allocation2 + $0xc4] ss:$12 sps:$4 sm:$0xff]  }
  0xe6   : > { %3566 = vmatmul.mubr.bf16.gmra.mxu1 %v6642_v7  ;;  %6124 = vmatpush3.bf16.msra.mxu0 %v6657_v1  ;;  %v1272_v56 = vsel %vm6969_vm14, 0, %v1271_v34  ;;  %v6693_v2 = vld [vmem:[%s8281_s2 + $0x1f8] sm:$0xff]   ;;  %v6686_v62 = vld [vmem:[%s8281_s2 + $0x40] sm:$0xff]   ;;  %v6700_v29 = vld [vmem:[%s8281_s2 + $0x230] sm:$0xff]  }
  0xe7   : > { %3573 = vmatprep.mubr.bf16.mxu1 %v6644_v38  ;;  %6418 = vmatpush3.bf16.msra.mxu1 %v6654_v53  ;;  %1273 = vst [vmem:[#allocation2 + $0x17c] sm:$0x8] %v1272_v56  ;;  %v7789_v25 = vld [vmem:[#allocation2 + $0x150] ss:$12 sps:$4 sm:$0xff]   ;;  %v7791_v35 = vld [vmem:[#allocation2 + $0x16c] ss:$12 sps:$4 sm:$0xff]  }
  0xe8   : > { %6419 = vmatprep.subr.bf16.mxu1 %v6664_v60  ;;  %6125 = vmatprep.subr.bf16.mxu0 %v6659_v20  ;;  %v6687_v26 = vld [vmem:[%s8281_s2] sm:$0xff]   ;;  %v6691_v7 = vld [vmem:[%s8281_s2 + $0x238] sm:$0xff]   ;;  %v6710_v43 = vld [vmem:[%s8281_s2 + $0x228] sm:$0xff]  }
  0xe9   : > { %6398 = vmatmul.mubr.bf16.gmra.mxu0 %v6660_v39  ;;  %v1223_v3 = vld [vmem:[#allocation2 + $0x180] sm:$0x1]  ;;  %v6698_v37 = vld [vmem:[#allocation2 + $0xdc] ss:$12 sps:$4 sm:$0xff]   ;;  %v7806_v1 = vld [vmem:[#allocation2 + $0x184] ss:$12 sps:$4 sm:$0xff]  }
  0xea   : > { %6126 = vmatpush3.bf16.msra.mxu0 %v6661_v52  ;;  %6401 = vmatprep.mubr.bf16.mxu0 %v6668_v19  ;;  %v1224_v40 = vsel %vm6959_vm13, 0, %v1223_v3  ;;  %v6688_v5 = vld [vmem:[#allocation2 + $0xc0] ss:$12 sps:$4 sm:$0xff]   ;;  %v7804_v27 = vld [vmem:[#allocation2 + $0x168] ss:$12 sps:$4 sm:$0xff]   ;;  %v6731_v41 = vld [vmem:[%s8281_s2 + $0x218] sm:$0xff]  }
  0xeb   : > { %6420 = vmatpush3.bf16.msra.mxu1 %v6664_v60  ;;  %6127 = vmatprep.subr.bf16.mxu0 %v6666_v58  ;;  %v1274_v11 = vld [vmem:[#allocation2 + $0x194] sm:$0x8]  ;;  %1225 = vst [vmem:[#allocation2 + $0x180] sm:$0x1] %v1224_v40  ;;  %v6701_v23 = vld [vmem:[#allocation2 + $0xd8] ss:$12 sps:$4 sm:$0xff]  }
  0xec   : > { %6421 = vmatprep.subr.bf16.mxu1 %v6674_v42  ;;  %v1275_v21 = vsel %vm6969_vm14, 0, %v1274_v11  ;;  %v7819_v18 = vld [vmem:[#allocation2 + $0xf4] ss:$12 sps:$4 sm:$0xff]   ;;  %v7835_v34 = vld [vmem:[#allocation2 + $0x10c] ss:$12 sps:$4 sm:$0xff]  }
  0xed   : > { %1276 = vst [vmem:[#allocation2 + $0x194] sm:$0x8] %v1275_v21  ;;  %v6720_v36 = vld [vmem:[%s8281_s2 + $0x220] sm:$0xff]   ;;  %v6692_v63 = vld [vmem:[#allocation2 + $0xc8] ss:$12 sps:$4 sm:$0xff]  }
  0xee   : > { %3574 = vmatmul.mubr.bf16.gmra.mxu1 %v6647_v15  ;;  %6128 = vmatpush3.bf16.msra.mxu0 %v6667_v8  ;;  %v6678_v53 = vld [vmem:[#allocation2 + $0x170] ss:$12 sps:$4 sm:$0xff]   ;;  %v6736_v11 = vld [vmem:[%s8281_s2 + $0x208] sm:$0xff]  }
  0xef   : > { %3581 = vmatprep.mubr.bf16.mxu1 %v6652_v54  ;;  %6422 = vmatpush3.bf16.msra.mxu1 %v6674_v42  ;;  %v7833_v15 = vld [vmem:[#allocation2 + $0xf0] ss:$12 sps:$4 sm:$0xff]   ;;  %v6694_v54 = vld [vmem:[#allocation2 + $0xe0] ss:$12 sps:$4 sm:$0xff]  }
  0xf0   : > { %6423 = vmatprep.subr.bf16.mxu1 %v6684_v16  ;;  %6129 = vmatprep.subr.bf16.mxu0 %v6669_v17  ;;  %v6735_v56 = vld [vmem:[%s8281_s2 + $0x210] sm:$0xff]  }
  0xf1   : > { %6402 = vmatmul.mubr.bf16.gmra.mxu0 %v6670_v51  ;;  %v6697_v21 = vld [vmem:[%s8281_s2 + $0x1b0] sm:$0xff]  }
  0xf2   : > { %6130 = vmatpush3.bf16.msra.mxu0 %v6671_v55  ;;  %6405 = vmatprep.mubr.bf16.mxu0 %v6678_v53  ;;  %v7824_v59 = vld [vmem:[#allocation2 + $0x180] ss:$12 sps:$4 sm:$0xff]   ;;  %v6702_v55 = vld [vmem:[#allocation2 + $0xf8] ss:$12 sps:$4 sm:$0xff]  }
  0xf3   : > { %6424 = vmatpush3.bf16.msra.mxu1 %v6684_v16  ;;  %6131 = vmatprep.subr.bf16.mxu0 %v6676_v24  ;;  %v6695_v16 = vld [vmem:[%s8281_s2 + $0x1b8] sm:$0xff]   ;;  %v6696_v24 = vld [vmem:[%s8281_s2 + $0x1f0] sm:$0xff]  }
  0xf4   : > { %6201 = vmatprep.subr.bf16.mxu1 %v6693_v2  ;;  %v6680_v22 = vld [vmem:[#allocation2 + $0x188] ss:$12 sps:$4 sm:$0xff]  }
  0xf6   : > { %3582 = vmatmul.mubr.bf16.gmra.mxu1 %v6655_v28  ;;  %6132 = vmatpush3.bf16.msra.mxu0 %v6677_v45  ;;  %v7856_v45 = vld [vmem:[#allocation2 + $0x108] ss:$12 sps:$4 sm:$0xff]  }
  0xf7   : > { %3589 = vmatprep.mubr.bf16.mxu1 %v7774_v30  ;;  %6133 = vmatprep.subr.bf16.mxu0 %v6679_v50  ;;  %v5817_v0 = vpop.f32.mrf.mxu0  ;;  %v6703_v50 = vld [vmem:[%s8281_s2 + $0x1e8] sm:$0xff]  }
  0xf9   : > { %6406 = vmatmul.mubr.bf16.gmra.mxu0 %v6680_v22  ;;  %v5818_v12 = vpop.f32.mrf.mxu0 }
  0xfa   : > { %6134 = vmatpush3.bf16.msra.mxu0 %v6681_v44  ;;  %4015 = vmatprep.mubr.bf16.mxu0 %v6690_v48  ;;  %v5819_v57 = vadd.f32 %v5818_v12, %v5817_v0  ;;  %v7863_v48 = vld [vmem:[#allocation2 + $0x124] ss:$12 sps:$4 sm:$0xff]  }
  0xfb   : > { %6135 = vmatprep.subr.bf16.mxu0 %v6686_v62  ;;  %v5820_v9 = vpop.f32.mrf.mxu0  ;;  %v6704_v62 = vld [vmem:[#allocation2 + $0x110] ss:$12 sps:$4 sm:$0xff]   ;;  %v6737_v12 = vld [vmem:[%s8281_s2 + $0x200] sm:$0xff]  }
  0xfd   : > { %v5821_v38 = vpop.f32.mrf.mxu0  ;;  %v6299_v13 = vpop.f32.mrf.mxu1 }
  0xfe   : > { %3590 = vmatmul.mubr.bf16.gmra.mxu1 %v7789_v25  ;;  %6136 = vmatpush3.bf16.msra.mxu0 %v6687_v26  ;;  %v5822_v14 = vadd.f32 %v5821_v38, %v5820_v9  ;;  %v6705_v26 = vld [vmem:[%s8281_s2 + $0x1a8] sm:$0xff]   ;;  %v6706_v9 = vld [vmem:[%s8281_s2 + $0x1e0] sm:$0xff]  }
  0xff   : > { %3597 = vmatprep.mubr.bf16.mxu1 %v7791_v35  ;;  %6441 = vmatprep.subr.bf16.mxu0 %v6691_v7  ;;  %v1850_v33 = vpop.f32.mrf.mxu1 }
 0x100   : > { %v7808_v46 = vadd.f32 %v5819_v57, %v1850_v33  ;;  %v6712_v57 = vld [vmem:[#allocation2 + $0x128] ss:$12 sps:$4 sm:$0xff]  }
 0x101   : > { %v5823_v31 = vpop.f32.mrf.mxu0  ;;  %4016 = vmatmul.mubr.bf16.vlgmr.msra.gmra.mxu0 %v6688_v5  ;;  %v6300_v60 = vpop.f32.mrf.mxu1 }
 0x102   : > { %6442 = vmatpush3.bf16.msra.mxu0 %v6691_v7  ;;  %4023 = vmatprep.mubr.bf16.mxu0 %v6698_v37 }
 0x103   : > { %v5824_v47 = vpop.f32.mrf.mxu0  ;;  %6443 = vmatprep.subr.bf16.mxu0 %v6700_v29  ;;  %v1853_v10 = vpop.f32.mrf.mxu1 }
 0x104   : > { %v5825_v32 = vadd.f32 %v5824_v47, %v5823_v31  ;;  %v7817_v39 = vadd.f32 %v5822_v14, %v1853_v10  ;;  %v6707_v14 = vld [vmem:[%s8281_s2 + $0x1a0] sm:$0xff]   ;;  %v6713_v31 = vld [vmem:[%s8281_s2 + $0x1d8] sm:$0xff]  }
 0x105   : > { %v5826_v4 = vpop.f32.mrf.mxu0  ;;  %v7888_v47 = vld [vmem:[#allocation2 + $0x13c] ss:$12 sps:$4 sm:$0xff]   ;;  %v6722_v10 = vld [vmem:[#allocation2 + $0x158] ss:$12 sps:$4 sm:$0xff]  }
 0x106   : > { %3598 = vmatmul.mubr.bf16.gmra.mxu1 %v7804_v27  ;;  %v7814_v20 = vadd.f32 %v6299_v13, %v5825_v32  ;;  %6444 = vmatpush3.bf16.msra.mxu0 %v6700_v29  ;;  %v7881_v29 = vld [vmem:[#allocation2 + $0x120] ss:$12 sps:$4 sm:$0xff]  }
 0x107   : > { %3605 = vmatprep.mubr.bf16.mxu1 %v7806_v1  ;;  %v5827_v6 = vpop.f32.mrf.mxu0  ;;  %6445 = vmatprep.subr.bf16.mxu0 %v6710_v43 }
 0x108   : > { %v5828_v52 = vadd.f32 %v5827_v6, %v5826_v4 }
 0x109   : > { %4024 = vmatmul.mubr.bf16.gmra.mxu0 %v6701_v23  ;;  %v6716_v23 = vld [vmem:[%s8281_s2 + $0x1d0] sm:$0xff]  }
 0x10a   : > { %v7826_v58 = vadd.f32 %v6300_v60, %v5828_v52  ;;  %4031 = vmatprep.mubr.bf16.mxu0 %v7819_v18  ;;  %v5829_v42 = vpop.f32.mrf.mxu0  ;;  %6446 = vmatpush3.bf16.msra.mxu0 %v6710_v43  ;;  %v6714_v60 = vld [vmem:[#allocation2 + $0x140] ss:$12 sps:$4 sm:$0xff]   ;;  %v6715_v43 = vld [vmem:[%s8281_s2 + $0x198] sm:$0xff]  }
 0x10b   : > { %6447 = vmatprep.subr.bf16.mxu0 %v6720_v36 }
 0x10c   : > { %v5830_v61 = vpop.f32.mrf.mxu0 }
 0x10d   : > { %v5831_v19 = vadd.f32 %v5830_v61, %v5829_v42  ;;  %v6717_v42 = vld [vmem:[%s8281_s2 + $0x190] sm:$0xff]   ;;  %v7903_v61 = vld [vmem:[#allocation2 + $0x138] ss:$12 sps:$4 sm:$0xff]  }
 0x10e   : > { %3606 = vmatmul.mubr.bf16.gmra.mxu1 %v7824_v59  ;;  %v5832_v49 = vpop.f32.mrf.mxu0  ;;  %6448 = vmatpush3.bf16.msra.mxu0 %v6720_v36 }
 0x10f   : > { %6425 = vmatprep.mubr.bf16.mxu1 %v6692_v63  ;;  %v6303_v8 = vpop.f32.mrf.mxu1  ;;  %6449 = vmatprep.subr.bf16.mxu0 %v6731_v41 }
 0x110   : > { %v5833_v17 = vpop.f32.mrf.mxu0 }
 0x111   : > { %v1866_v3 = vpop.f32.mrf.mxu1  ;;  %4032 = vmatmul.mubr.bf16.gmra.mxu0 %v7833_v15  ;;  %v5834_v51 = vadd.f32 %v5833_v17, %v5832_v49  ;;  %v6725_v17 = vld [vmem:[%s8281_s2 + $0x188] sm:$0xff]  }
 0x112   : > { %v7847_v40 = vadd.f32 %v5831_v19, %v1866_v3  ;;  %4039 = vmatprep.mubr.bf16.mxu0 %v7835_v34  ;;  %6450 = vmatpush3.bf16.msra.mxu0 %v6731_v41  ;;  %v6723_v19 = vld [vmem:[%s8281_s2 + $0x1c8] sm:$0xff]   ;;  %v6726_v3 = vld [vmem:[%s8281_s2 + $0x1c0] sm:$0xff]  }
 0x113   : > { %v6304_v28 = vpop.f32.mrf.mxu1  ;;  %6451 = vmatprep.subr.bf16.mxu0 %v6735_v56 }
 0x115   : > { %v1869_v2 = vpop.f32.mrf.mxu1 }
 0x116   : > { %6426 = vmatmul.mubr.bf16.vlgmr.msra.gmra.mxu1 %v6694_v54  ;;  %v7861_v44 = vadd.f32 %v5834_v51, %v1869_v2  ;;  %6452 = vmatpush3.bf16.msra.mxu0 %v6735_v56  ;;  %v6724_v54 = vld [vmem:[#allocation2 + $0x170] ss:$12 sps:$4 sm:$0xff]  }
 0x117   : > { %6202 = vmatpush3.bf16.msra.mxu1 %v6695_v16  ;;  %6429 = vmatprep.mubr.bf16.mxu1 %v6702_v55  ;;  %v5835_v53 = vpop.f32.mrf.mxu0 }
 0x118   : > { %6203 = vmatprep.subr.bf16.mxu1 %v6696_v24  ;;  %6453 = vmatprep.subr.bf16.mxu0 %v6736_v11 }
 0x119   : > { %v5836_v22 = vpop.f32.mrf.mxu0  ;;  %4040 = vmatmul.mubr.bf16.gmra.mxu0 %v7856_v45 }
 0x11a   : > { %v5837_v0 = vadd.f32 %v5836_v22, %v5835_v53  ;;  %4047 = vmatprep.mubr.bf16.mxu0 %v7863_v48  ;;  %6454 = vmatpush3.bf16.msra.mxu0 %v6736_v11 }
 0x11b   : > { %6204 = vmatpush3.bf16.msra.mxu1 %v6697_v21  ;;  %v5838_v7 = vpop.f32.mrf.mxu0  ;;  %6455 = vmatprep.subr.bf16.mxu0 %v6737_v12  ;;  %v6727_v21 = vld [vmem:[%s8281_s2 + $0x180] sm:$0xff]  }
 0x11c   : > { %6205 = vmatprep.subr.bf16.mxu1 %v6703_v50  ;;  %v7875_v5 = vadd.f32 %v6303_v8, %v5837_v0 }
 0x11d   : > { %v5839_v38 = vpop.f32.mrf.mxu0 }
 0x11e   : > { %6430 = vmatmul.mubr.bf16.gmra.mxu1 %v6704_v62  ;;  %v5840_v13 = vadd.f32 %v5839_v38, %v5838_v7  ;;  %v6307_v37 = vpop.f32.mrf.mxu1  ;;  %6456 = vmatpush3.bf16.msra.mxu0 %v6737_v12 }
 0x11f   : > { %6206 = vmatpush3.bf16.msra.mxu1 %v6705_v26  ;;  %6433 = vmatprep.mubr.bf16.mxu1 %v6712_v57 }
 0x120   : > { %6207 = vmatprep.subr.bf16.mxu1 %v6706_v9  ;;  %v7886_v33 = vadd.f32 %v6304_v28, %v5840_v13  ;;  %v1882_v32 = vpop.f32.mrf.mxu1 }
 0x121   : > { %v5841_v4 = vpop.f32.mrf.mxu0  ;;  %4048 = vmatmul.mubr.bf16.gmra.mxu0 %v7881_v29 }
 0x122   : > { %4055 = vmatprep.mubr.bf16.mxu0 %v7888_v47  ;;  %v6308_v36 = vpop.f32.mrf.mxu1 }
 0x123   : > { %6208 = vmatpush3.bf16.msra.mxu1 %v6707_v14  ;;  %v5842_v6 = vpop.f32.mrf.mxu0  ;;  %v6738_v14 = vld [vmem:[#allocation2 + $0xf8] ss:$12 sps:$4 sm:$0xff]  }
 0x124   : > { %6209 = vmatprep.subr.bf16.mxu1 %v6713_v31  ;;  %v5843_v52 = vadd.f32 %v5842_v6, %v5841_v4  ;;  %v1885_v56 = vpop.f32.mrf.mxu1 }
 0x125   : > { %v5844_v63 = vpop.f32.mrf.mxu0 }
 0x126   : > { %6434 = vmatmul.mubr.bf16.gmra.mxu1 %v6714_v60  ;;  %v7901_v41 = vadd.f32 %v5843_v52, %v1882_v32  ;;  %v6739_v52 = vld [vmem:[#allocation2 + $0x110] ss:$12 sps:$4 sm:$0xff]  }
 0x127   : > { %6210 = vmatpush3.bf16.msra.mxu1 %v6715_v43  ;;  %6437 = vmatprep.mubr.bf16.mxu1 %v6722_v10  ;;  %v5845_v49 = vpop.f32.mrf.mxu0 }
 0x128   : > { %6211 = vmatprep.subr.bf16.mxu1 %v6716_v23  ;;  %v5846_v8 = vadd.f32 %v5845_v49, %v5844_v63 }
 0x129   : > { %v5847_v16 = vpop.f32.mrf.mxu0  ;;  %4056 = vmatmul.mubr.bf16.gmra.mxu0 %v7903_v61 }
 0x12a   : > { %v7911_v55 = vadd.f32 %v5846_v8, %v1885_v56  ;;  %4063 = vmatprep.mubr.bf16.mxu0 %v7774_v30 }
 0x12b   : > { %6212 = vmatpush3.bf16.msra.mxu1 %v6717_v42  ;;  %v5848_v51 = vpop.f32.mrf.mxu0 }
 0x12c   : > { %6213 = vmatprep.subr.bf16.mxu1 %v6723_v19  ;;  %v5849_v24 = vadd.f32 %v5848_v51, %v5847_v16  ;;  %v6744_v16 = vld [vmem:[#allocation2 + $0x140] ss:$12 sps:$4 sm:$0xff]   ;;  %v6745_v51 = vld [vmem:[#allocation2 + $0x158] ss:$12 sps:$4 sm:$0xff]  }
 0x12d   : > { %v5850_v11 = vpop.f32.mrf.mxu0 }
 0x12e   : > { %v6311_v28 = vpop.f32.mrf.mxu1  ;;  %6438 = vmatmul.mubr.bf16.gmra.mxu1 %v6724_v54  ;;  %v7922_v2 = vadd.f32 %v6307_v37, %v5849_v24 }
 0x12f   : > { %6214 = vmatpush3.bf16.msra.mxu1 %v6725_v17  ;;  %4562 = vmatprep.mubr.bf16.mxu1 %v7819_v18  ;;  %v5851_v50 = vpop.f32.mrf.mxu0 }
 0x130   : > { %v1898_v53 = vpop.f32.mrf.mxu1  ;;  %6215 = vmatprep.subr.bf16.mxu1 %v6726_v3  ;;  %v5852_v22 = vadd.f32 %v5851_v50, %v5850_v11  ;;  %v6742_v11 = vld [vmem:[#allocation2 + $0x154] ss:$12 sps:$4 sm:$0xff]   ;;  %v6746_v50 = vld [vmem:[#allocation2 + $0x170] ss:$12 sps:$4 sm:$0xff]  }
 0x131   : > { %v5853_v0 = vpop.f32.mrf.mxu0  ;;  %4064 = vmatmul.mubr.bf16.gmra.mxu0 %v7789_v25 }
 0x132   : > { %v6312_v62 = vpop.f32.mrf.mxu1  ;;  %v7924_v30 = vadd.f32 %v6308_v36, %v5852_v22  ;;  %4071 = vmatprep.mubr.bf16.mxu0 %v7791_v35 }
 0x133   : > { %6216 = vmatpush3.bf16.msra.mxu1 %v6727_v21  ;;  %v5854_v26 = vpop.f32.mrf.mxu0 }
 0x134   : > { %8299 = vst [vmem:[#allocation3_spill] sm:$0xff] %v7924_v30  ;;  %v1901_v12 = vpop.f32.mrf.mxu1  ;;  %v5855_v57 = vadd.f32 %v5854_v26, %v5853_v0  ;;  %v6747_v0 = vld [vmem:[#allocation2 + $0x188] ss:$12 sps:$4 sm:$0xff]   ;;  %v6740_v26 = vld [vmem:[#allocation2 + $0x150] ss:$12 sps:$4 sm:$0xff]  }
 0x135   : > { %v5856_v18 = vpop.f32.mrf.mxu0 }
 0x136   : > { %v5897_v7 = vpop.f32.mrf.mxu1  ;;  %4563 = vmatmul.mubr.bf16.vlgmr.msra.gmra.mxu1 %v7833_v15  ;;  %v7930_v9 = vadd.f32 %v5855_v57, %v1898_v53 }
 0x137   : > { %4570 = vmatprep.mubr.bf16.mxu1 %v7835_v34  ;;  %v5857_v13 = vpop.f32.mrf.mxu0 }
 0x138   : > { %8300 = vst [vmem:[#allocation4_spill] sm:$0xff] %v7930_v9  ;;  %v5898_v38 = vpop.f32.mrf.mxu1  ;;  %v5858_v31 = vadd.f32 %v5857_v13, %v5856_v18  ;;  %v6748_v13 = vld [vmem:[#allocation2 + $0x1a0] ss:$12 sps:$4 sm:$0xff]  }
 0x139   : > { %v5899_v37 = vadd.f32 %v5898_v38, %v5897_v7  ;;  %v5859_v25 = vpop.f32.mrf.mxu0  ;;  %4072 = vmatmul.mubr.bf16.gmra.mxu0 %v7804_v27 }
 0x13a   : > { %v7932_v60 = vpop.f32.mrf.mxu1  ;;  %v7934_v32 = vadd.f32 %v5858_v31, %v1901_v12  ;;  %6457 = vmatprep.mubr.bf16.mxu0 %v6738_v14 }
 0x13b   : > { %v7938_v4 = vadd.f32 %v5899_v37, %v7808_v46  ;;  %v5860_v34 = vpop.f32.mrf.mxu0  ;;  %v6743_v46 = vld [vmem:[#allocation2 + $0x128] ss:$12 sps:$4 sm:$0xff]  }
 0x13c   : > { %8301 = vst [vmem:[#allocation5_spill] sm:$0xff] %v7934_v32  ;;  %v7940_v15 = vpop.f32.mrf.mxu1  ;;  %v5861_v43 = vadd.f32 %v5860_v34, %v5859_v25 }
 0x13d   : > { %v5862_v23 = vpop.f32.mrf.mxu0 }
 0x13e   : > { %v7942_v10 = vpop.f32.mrf.mxu1  ;;  %4571 = vmatmul.mubr.bf16.gmra.mxu1 %v7856_v45  ;;  %v7946_v6 = vadd.f32 %v6311_v28, %v5861_v43 }
 0x13f   : > { %4578 = vmatprep.mubr.bf16.mxu1 %v7863_v48  ;;  %v5863_v63 = vpop.f32.mrf.mxu0 }
 0x140   : > { %v7948_v36 = vpop.f32.mrf.mxu1  ;;  %v5864_v42 = vadd.f32 %v5863_v63, %v5862_v23 }
 0x141   : > { %v7952_v49 = vpop.f32.mrf.mxu0  ;;  %6458 = vmatmul.mubr.bf16.vlgmr.msra.gmra.mxu0 %v6739_v52 }
 0x142   : > { %v7950_v19 = vpop.f32.mrf.mxu1  ;;  %v7954_v8 = vadd.f32 %v6312_v62, %v5864_v42  ;;  %6461 = vmatprep.mubr.bf16.mxu0 %v6743_v46 }
 0x143   : > { %v7958_v45 = vpop.f32.mrf.mxu0 }
 0x144   : > { %v7956_v56 = vpop.f32.mrf.mxu1 }
 0x145   : > { %v7963_v54 = vpop.f32.mrf.mxu0 }
 0x146   : > { %v7960_v48 = vpop.f32.mrf.mxu1  ;;  %4579 = vmatmul.mubr.bf16.gmra.mxu1 %v7881_v29 }
 0x147   : > { %4586 = vmatprep.mubr.bf16.mxu1 %v7888_v47  ;;  %v7968_v3 = vpop.f32.mrf.mxu0 }
 0x148   : > { %v7966_v17 = vpop.f32.mrf.mxu1 }
 0x149   : > { %v7972_v28 = vpop.f32.mrf.mxu0  ;;  %6462 = vmatmul.mubr.bf16.gmra.mxu0 %v6744_v16 }
 0x14a   : > { %v7970_v24 = vpop.f32.mrf.mxu1  ;;  %6465 = vmatprep.mubr.bf16.mxu0 %v6745_v51  ;;  %v6755_v51 = vld [vmem:[#allocation2] sm:$0xff] }
 0x14b   : > { %v7976_v53 = vpop.f32.mrf.mxu0 }
 0x14c   : > { %v7974_v21 = vpop.f32.mrf.mxu1 }
 0x14d   : > { %v7981_v47 = vpop.f32.mrf.mxu0 }
 0x14e   : > { %v7978_v29 = vpop.f32.mrf.mxu1  ;;  %4587 = vmatmul.mubr.bf16.gmra.mxu1 %v7903_v61 }
 0x14f   : > { %4594 = vmatprep.mubr.bf16.mxu1 %v6742_v11  ;;  %v7985_v62 = vpop.f32.mrf.mxu0  ;;  %v5501_v11 = vcombine.high %v6755_v51, %v6755_v51 }
 0x150   : > { %v7983_v22 = vpop.f32.mrf.mxu1 }
 0x151   : > { %v6339_v57 = vpop.f32.mrf.mxu0  ;;  %6466 = vmatmul.mubr.bf16.gmra.mxu0 %v6746_v50 }
 0x152   : > { %v7987_v12 = vpop.f32.mrf.mxu1  ;;  %6469 = vmatprep.mubr.bf16.mxu0 %v6747_v0 }
 0x153   : > { %v7991_v18 = vpop.f32.mrf.mxu0 }
 0x154   : > { %v7989_v7 = vpop.f32.mrf.mxu1 }
 0x155   : > { %v7995_v38 = vpop.f32.mrf.mxu0 }
 0x156   : > { %v7993_v61 = vpop.f32.mrf.mxu1  ;;  %4595 = vmatmul.mubr.bf16.gmra.mxu1 %v6740_v26  ;;  %8302 = vst [vmem:[#allocation6_spill] sm:$0xff] %v7995_v38 }
 0x157   : > { %4602 = vmatprep.mubr.bf16.mxu1 %v7791_v35  ;;  %v8000_v37 = vpop.f32.mrf.mxu0 }
 0x158   : > { %v7998_v14 = vpop.f32.mrf.mxu1  ;;  %8303 = vst [vmem:[#allocation7_spill] sm:$0xff] %v8000_v37 }
 0x159   : > { %v6343_v25 = vpop.f32.mrf.mxu0  ;;  %6470 = vmatmul.mubr.bf16.gmra.mxu0 %v6748_v13 }
 0x15a   : > { %v8002_v31 = vpop.f32.mrf.mxu1 }
 0x15b   : > { %v8006_v43 = vpop.f32.mrf.mxu0 }
 0x15c   : > { %v8004_v34 = vpop.f32.mrf.mxu1  ;;  %8304 = vst [vmem:[#allocation8_spill] sm:$0xff] %v8006_v43 }
 0x15d   : > { %v6344_v52 = vpop.f32.mrf.mxu0 }
 0x15e   : > { %v5927_v23 = vpop.f32.mrf.mxu1  ;;  %4603 = vmatmul.mubr.bf16.gmra.mxu1 %v7804_v27 }
 0x15f   : > { %4610 = vmatprep.mubr.bf16.mxu1 %v7806_v1  ;;  %v8010_v63 = vpop.f32.mrf.mxu0 }
 0x160   : > { %v5928_v35 = vpop.f32.mrf.mxu1  ;;  %8305 = vst [vmem:[#allocation9_spill] sm:$0xff] %v8010_v63 }
 0x161   : > { %v5929_v46 = vadd.f32 %v5928_v35, %v5927_v23  ;;  %v5977_v50 = vpop.f32.mrf.mxu0 }
 0x162   : > { %v8012_v42 = vpop.f32.mrf.mxu1 }
 0x163   : > { %8306 = vst [vmem:[#allocation10_spill] sm:$0xff] %v8012_v42  ;;  %v2260_v16 = vadd.f32 %v5929_v46, %v7922_v2  ;;  %v5978_v13 = vpop.f32.mrf.mxu0  ;;  %v5500_v2 = vcombine.low %v6755_v51, %v6755_v51  ;;  %v5908_v51 = vadd.f32 %v7956_v56, %v7950_v19 }
 0x164   : > { %v8015_v0 = vpop.f32.mrf.mxu1 }
 0x165   : > { %8307 = vst [vmem:[#allocation11_spill] sm:$0xff] %v8015_v0  ;;  %v8017_v26 = vadd.f32 %v6339_v57, %v2260_v16  ;;  %v5980_v1 = vpop.f32.mrf.mxu0  ;;  %v2231_v56 = vadd.f32 %v5908_v51, %v7826_v58 }
 0x166   : > { %v8019_v27 = vpop.f32.mrf.mxu1  ;;  %4611 = vmatmul.mubr.bf16.gmra.mxu1 %v7824_v59 }
 0x167   : > { %8308 = vst [vmem:[#allocation12_spill] sm:$0xff] %v8017_v26  ;;  %8309 = vst [vmem:[#allocation13_spill] sm:$0xff] %v8019_v27  ;;  %4618 = vmatprep.mubr.bf16.mxu1 %v5501_v11  ;;  %v5981_v23 = vpop.f32.mrf.mxu0  ;;  %v2328_v58 = vadd.f32 %v7963_v54, %v2231_v56  ;;  %v5923_v56 = vadd.f32 %v7998_v14, %v7993_v61 }
 0x168   : > { %v8022_v63 = vpop.f32.mrf.mxu1 }
 0x169   : > { %8310 = vst [vmem:[#allocation14_spill] sm:$0xff] %v8022_v63  ;;  %v5983_v46 = vpop.f32.mrf.mxu0  ;;  %v5905_v63 = vadd.f32 %v7948_v36, %v7942_v10  ;;  %v5911_v10 = vadd.f32 %v7966_v17, %v7960_v48  ;;  %v5917_v48 = vadd.f32 %v7983_v22, %v7978_v29 }
 0x16a   : > { %v8024_v35 = vpop.f32.mrf.mxu1 }
 0x16b   : > { %8311 = vst [vmem:[#allocation15_spill] sm:$0xff] %v8024_v35  ;;  %v5984_v43 = vpop.f32.mrf.mxu0  ;;  %v2228_v36 = vadd.f32 %v5905_v63, %v7814_v20  ;;  %v5914_v20 = vadd.f32 %v7974_v21, %v7970_v24  ;;  %v2236_v63 = vadd.f32 %v5911_v10, %v7847_v40  ;;  %v5920_v24 = vadd.f32 %v7989_v7, %v7987_v12 }
 0x16c   : > { %v8026_v32 = vpop.f32.mrf.mxu1  ;;  %v5985_v35 = vadd.f32 %v5984_v43, %v5983_v46  ;;  %v2244_v22 = vadd.f32 %v5917_v48, %v7875_v5 }
 0x16d   : > { %8312 = vst [vmem:[#allocation16_spill] sm:$0xff] %v8026_v32  ;;  %v5986_v57 = vpop.f32.mrf.mxu0  ;;  %v2333_v21 = vadd.f32 %v7976_v53, %v2236_v63  ;;  %v2239_v40 = vadd.f32 %v5914_v20, %v7861_v44 }
 0x16e   : > { %v5939_v9 = vpop.f32.mrf.mxu1  ;;  %4619 = vmatmul.mubr.bf16.gmra.mxu1 %v5500_v2  ;;  %v5979_v2 = vadd.f32 %v5978_v13, %v5977_v50  ;;  %v5982_v50 = vadd.f32 %v5981_v23, %v5980_v1 }
 0x16f   : > { %v5987_v26 = vpop.f32.mrf.mxu0 }
 0x170   : > { %v5940_v16 = vpop.f32.mrf.mxu1 }
 0x171   : > { %v5941_v38 = vadd.f32 %v5940_v16, %v5939_v9  ;;  %v5989_v11 = vpop.f32.mrf.mxu0  ;;  %v5902_v9 = vadd.f32 %v7940_v15, %v7932_v60  ;;  %v2325_v60 = vadd.f32 %v7952_v49, %v2228_v36  ;;  %v2317_v15 = vadd.f32 %v7958_v45, %v7938_v4 }
 0x172   : > { %v5942_v30 = vpop.f32.mrf.mxu1 }
 0x173   : > { %v2276_v59 = vadd.f32 %v5941_v38, %v7946_v6  ;;  %v5990_v0 = vpop.f32.mrf.mxu0  ;;  %v5988_v38 = vadd.f32 %v5987_v26, %v5986_v57 }
 0x174   : > { %v5943_v27 = vpop.f32.mrf.mxu1  ;;  %v5991_v1 = vadd.f32 %v5990_v0, %v5989_v11 }
 0x175   : > { %v8033_v32 = vadd.f32 %v6343_v25, %v2276_v59  ;;  %v5944_v37 = vadd.f32 %v5943_v27, %v5942_v30  ;;  %v5992_v42 = vpop.f32.mrf.mxu0 }
 0x176   : > { %v6363_v16 = vpop.f32.mrf.mxu1 }
 0x177   : > { %v2279_v6 = vadd.f32 %v5944_v37, %v7954_v8  ;;  %v2873_v19 = vadd.f32 %v6363_v16, %v5985_v35  ;;  %v5993_v13 = vpop.f32.mrf.mxu0  ;;  %v2223_v8 = vadd.f32 %v5902_v9, %v7817_v39  ;;  %v2247_v9 = vadd.f32 %v5920_v24, %v7886_v33 }
 0x178   : > { %v2864_v43 = vpop.f32.mrf.mxu1  ;;  %v5994_v12 = vadd.f32 %v5993_v13, %v5992_v42  ;;  %v2336_v16 = vadd.f32 %v7985_v62, %v2239_v40  ;;  %v8313_v40 = vld [vmem:[#allocation10_spill] sm:$0xff] }
 0x179   : > { %v8042_v30 = vadd.f32 %v6344_v52, %v2279_v6  ;;  %v2865_v25 = vadd.f32 %v5979_v2, %v2864_v43  ;;  %v5995_v52 = vpop.f32.mrf.mxu0  ;;  %v2929_v27 = vadd.f32 %v2873_v19, %v2325_v60  ;;  %v2320_v4 = vadd.f32 %v7968_v3, %v2223_v8 }
 0x17a   : > { %v6364_v37 = vpop.f32.mrf.mxu1  ;;  %v2341_v2 = vadd.f32 %v7972_v28, %v2244_v22 }
 0x17b   : > { %v2876_v17 = vadd.f32 %v6364_v37, %v5988_v38  ;;  %v2927_v26 = vadd.f32 %v2865_v25, %v2317_v15  ;;  %v5996_v23 = vpop.f32.mrf.mxu0  ;;  %v2967_v3 = vmul.f32 %v2929_v27, %v2929_v27  ;;  %v2344_v25 = vadd.f32 %v7981_v47, %v2247_v9 }
 0x17c   : > { %v2867_v49 = vpop.f32.mrf.mxu1  ;;  %v5997_v29 = vadd.f32 %v5996_v23, %v5995_v52  ;;  %v2252_v47 = vadd.f32 %v5923_v56, %v7901_v41 }
 0x17d   : > { %v2868_v39 = vadd.f32 %v5982_v50, %v2867_v49  ;;  %v2930_v45 = vadd.f32 %v2876_v17, %v2328_v58  ;;  %v5998_v57 = vpop.f32.mrf.mxu0  ;;  %v2965_v59 = vmul.f32 %v2927_v26, %v2927_v26  ;;  %v5926_v58 = vadd.f32 %v8004_v34, %v8002_v31 }
 0x17e   : > { %v6367_v54 = vpop.f32.mrf.mxu1  ;;  %v2349_v23 = vadd.f32 %v7991_v18, %v2252_v47 }
 0x17f   : > { %v2928_v35 = vadd.f32 %v2868_v39, %v2320_v4  ;;  %v5699_v46 = vpack.c.bf16 %v2930_v45, %v2929_v27  ;;  %v2889_v7 = vadd.f32 %v6367_v54, %v5997_v29  ;;  %v5999_v51 = vpop.f32.mrf.mxu0  ;;  %v2968_v43 = vmul.f32 %v2930_v45, %v2930_v45 }
 0x180   : > { %v2880_v53 = vpop.f32.mrf.mxu1  ;;  %v6000_v38 = vadd.f32 %v5999_v51, %v5998_v57 }
 0x181   : > { %v2943_v0 = vadd.f32 %v2928_v35, %v2927_v26  ;;  %v2966_v5 = vmul.f32 %v2928_v35, %v2928_v35  ;;  %v5694_v11 = vpack.c.bf16 %v2928_v35, %v2927_v26  ;;  %5786 = vst [vmem:[%s8065_s17 + $0x8] sm:$0xff] %v5699_v46   ;;  %v2881_v44 = vadd.f32 %v5991_v1, %v2880_v53  ;;  %v6001_v19 = vpop.f32.mrf.mxu0  ;;  %v8314_v35 = vld [vmem:[#allocation11_spill] sm:$0xff] }
 0x182   : > { %v6368_v6 = vpop.f32.mrf.mxu1  ;;  %v2933_v13 = vadd.f32 %v2889_v7, %v2341_v2  ;;  %v5932_v46 = vadd.f32 %v8314_v35, %v8313_v40  ;;  %v8325_v40 = vld [vmem:[#allocation5_spill] sm:$0xff] }
 0x183   : > { %v2981_v10 = vadd.f32 %v2966_v5, %v2965_v59  ;;  %5695 = vst [vmem:[%s8065_s17] sm:$0xff] %v5694_v11   ;;  %v2944_v36 = vadd.f32 %v2943_v0, %v2929_v27  ;;  %v2931_v42 = vadd.f32 %v2881_v44, %v2333_v21  ;;  %v2892_v28 = vadd.f32 %v6368_v6, %v6000_v38  ;;  %v6002_v8 = vpop.f32.mrf.mxu0  ;;  %v8317_v6 = vld [vmem:[#allocation14_spill] sm:$0xff] }
 0x184   : > { %v2883_v50 = vpop.f32.mrf.mxu1  ;;  %v6003_v48 = vadd.f32 %v6002_v8, %v6001_v19  ;;  %v2971_v26 = vmul.f32 %v2933_v13, %v2933_v13  ;;  %v2255_v21 = vadd.f32 %v5926_v58, %v7911_v55 }
 0x185   : > { %v2982_v60 = vadd.f32 %v2981_v10, %v2967_v3  ;;  %v2945_v33 = vadd.f32 %v2944_v36, %v2930_v45  ;;  %v2969_v15 = vmul.f32 %v2931_v42, %v2931_v42  ;;  %v2884_v62 = vadd.f32 %v5994_v12, %v2883_v50  ;;  %v6004_v14 = vpop.f32.mrf.mxu0  ;;  %v8315_v3 = vld [vmem:[#allocation7_spill] sm:$0xff] }
 0x186   : > { %v6371_v37 = vpop.f32.mrf.mxu1  ;;  %v2934_v20 = vadd.f32 %v2892_v28, %v2344_v25  ;;  %v2352_v53 = vadd.f32 %v8315_v3, %v2255_v21  ;;  %v8318_v10 = vld [vmem:[#allocation3_spill] sm:$0xff] }
 0x187   : > { %v2983_v17 = vadd.f32 %v2982_v60, %v2968_v43  ;;  %v2946_v52 = vadd.f32 %v2945_v33, %v2931_v42  ;;  %v2932_v61 = vadd.f32 %v2884_v62, %v2336_v16  ;;  %v6005_v1 = vpop.f32.mrf.mxu0  ;;  %v8316_v16 = vld [vmem:[#allocation13_spill] sm:$0xff]  ;;  %v2263_v36 = vadd.f32 %v5932_v46, %v8318_v10  ;;  %v8319_v60 = vld [vmem:[#allocation12_spill] sm:$0xff] }
 0x188   : > { %v2896_v63 = vpop.f32.mrf.mxu1  ;;  %v5709_v49 = vpack.c.bf16 %v2934_v20, %v2933_v13  ;;  %v6006_v34 = vadd.f32 %v6005_v1, %v6004_v14  ;;  %v2972_v29 = vmul.f32 %v2934_v20, %v2934_v20  ;;  %v5935_v38 = vadd.f32 %v8317_v6, %v8316_v16  ;;  %v8321_v14 = vld [vmem:[#allocation4_spill] sm:$0xff] }
 0x189   : > { %v2984_v27 = vadd.f32 %v2983_v17, %v2969_v15  ;;  %v2947_v4 = vadd.f32 %v2946_v52, %v2932_v61  ;;  %v2970_v39 = vmul.f32 %v2932_v61, %v2932_v61  ;;  %v5704_v45 = vpack.c.bf16 %v2932_v61, %v2931_v42  ;;  %v6007_v22 = vpop.f32.mrf.mxu0  ;;  %v8324_v1 = vld [vmem:[#allocation8_spill] sm:$0xff] }
 0x18a   : > { %v6372_v24 = vpop.f32.mrf.mxu1  ;;  %5788 = vst [vmem:[%s8065_s17 + $0x18] sm:$0xff] %v5709_v49   ;;  %v2897_v31 = vadd.f32 %v6003_v48, %v2896_v63  ;;  %v8322_v63 = vld [vmem:[#allocation15_spill] sm:$0xff] }
 0x18b   : > { %v2985_v54 = vadd.f32 %v2984_v27, %v2970_v39  ;;  %5787 = vst [vmem:[%s8065_s17 + $0x10] sm:$0xff] %v5704_v45   ;;  %v2948_v41 = vadd.f32 %v2947_v4, %v2933_v13  ;;  %v6008_v0 = vpop.f32.mrf.mxu0 }
 0x18c   : > { %v2899_v57 = vpop.f32.mrf.mxu1  ;;  %v2935_v59 = vadd.f32 %v2897_v31, %v2349_v23  ;;  %v6009_v55 = vadd.f32 %v6008_v0, %v6007_v22 }
 0x18d   : > { %v2986_v12 = vadd.f32 %v2985_v54, %v2971_v26  ;;  %v2949_v18 = vadd.f32 %v2948_v41, %v2934_v20  ;;  %v2900_v7 = vadd.f32 %v6006_v34, %v2899_v57  ;;  %v6010_v9 = vpop.f32.mrf.mxu0  ;;  %v8320_v20 = vld [vmem:[#allocation6_spill] sm:$0xff]  ;;  %v8323_v26 = vld [vmem:[#allocation16_spill] sm:$0xff] }
 0x18e   : > { %v8085_v5 = vpop.f32.mrf.mxu1  ;;  %v2973_v11 = vmul.f32 %v2935_v59, %v2935_v59  ;;  %v2905_v42 = vadd.f32 %v6371_v37, %v6009_v55  ;;  %v2360_v48 = vadd.f32 %v8320_v20, %v2263_v36  ;;  %v2268_v37 = vadd.f32 %v5935_v38, %v8321_v14 }
 0x18f   : > { %v2987_v44 = vadd.f32 %v2986_v12, %v2972_v29  ;;  %v2950_v51 = vadd.f32 %v2949_v18, %v2935_v59  ;;  %v2936_v2 = vadd.f32 %v2900_v7, %v2352_v53  ;;  %v6011_v13 = vpop.f32.mrf.mxu0  ;;  %v5938_v49 = vadd.f32 %v8323_v26, %v8322_v63  ;;  %v8326_v12 = vld [vmem:[#allocation9_spill] sm:$0xff] }
 0x190   : > { %v2912_v43 = vpop.f32.mrf.mxu1  ;;  %v2937_v33 = vadd.f32 %v2905_v42, %v8319_v60  ;;  %v6012_v15 = vadd.f32 %v6011_v13, %v6010_v9  ;;  %v2365_v23 = vadd.f32 %v8324_v1, %v2268_v37 }
 0x191   : > { %v2988_v19 = vadd.f32 %v2987_v44, %v2973_v11  ;;  %v2951_v56 = vadd.f32 %v2950_v51, %v2936_v2  ;;  %v2974_v25 = vmul.f32 %v2936_v2, %v2936_v2  ;;  %v5714_v50 = vpack.c.bf16 %v2936_v2, %v2935_v59  ;;  %v6013_v8 = vpop.f32.mrf.mxu0 }
 0x192   : > { %v6376_v28 = vpop.f32.mrf.mxu1  ;;  %v2975_v52 = vmul.f32 %v2937_v33, %v2937_v33  ;;  %v2908_v61 = vadd.f32 %v6372_v24, %v6012_v15  ;;  %v2271_v35 = vadd.f32 %v5938_v49, %v8325_v40 }
 0x193   : > { %v2989_v62 = vadd.f32 %v2988_v19, %v2974_v25  ;;  %5789 = vst [vmem:[%s8065_s17 + $0x20] sm:$0xff] %v5714_v50   ;;  %v2952_v17 = vadd.f32 %v2951_v56, %v2937_v33  ;;  %v6014_v47 = vpop.f32.mrf.mxu0 }
 0x194   : > { %v2915_v58 = vpop.f32.mrf.mxu1  ;;  %v2938_v39 = vadd.f32 %v2908_v61, %v2360_v48  ;;  %v6015_v45 = vadd.f32 %v6014_v47, %v6013_v8  ;;  %v2368_v18 = vadd.f32 %v8326_v12, %v2271_v35 }
 0x195   : > { %v2990_v4 = vadd.f32 %v2989_v62, %v2975_v52  ;;  %v6016_v31 = vpop.f32.mrf.mxu0 }
 0x196   : > { %v6057_v27 = vpop.f32.mrf.mxu1  ;;  %v2953_v21 = vadd.f32 %v2952_v17, %v2938_v39  ;;  %v2976_v54 = vmul.f32 %v2938_v39, %v2938_v39  ;;  %v5719_v41 = vpack.c.bf16 %v2938_v39, %v2937_v33  ;;  %v2913_v29 = vadd.f32 %v6015_v45, %v2912_v43 }
 0x197   : > { %v6017_v22 = vpop.f32.mrf.mxu0 }
 0x198   : > { %v6058_v34 = vpop.f32.mrf.mxu1  ;;  %v2991_v57 = vadd.f32 %v2990_v4, %v2976_v54  ;;  %5790 = vst [vmem:[%s8065_s17 + $0x28] sm:$0xff] %v5719_v41   ;;  %v2939_v59 = vadd.f32 %v2913_v29, %v2365_v23  ;;  %v6018_v3 = vadd.f32 %v6017_v22, %v6016_v31 }
 0x199   : > { %v6059_v24 = vadd.f32 %v6058_v34, %v6057_v27  ;;  %v6019_v53 = vpop.f32.mrf.mxu0 }
 0x19a   : > { %v6060_v46 = vpop.f32.mrf.mxu1  ;;  %v2954_v0 = vadd.f32 %v2953_v21, %v2939_v59  ;;  %v2977_v11 = vmul.f32 %v2939_v59, %v2939_v59  ;;  %v2916_v55 = vadd.f32 %v6018_v3, %v2915_v58 }
 0x19b   : > { %v6020_v51 = vpop.f32.mrf.mxu0 }
 0x19c   : > { %v6061_v7 = vpop.f32.mrf.mxu1  ;;  %v2992_v9 = vadd.f32 %v2991_v57, %v2977_v11  ;;  %v2940_v16 = vadd.f32 %v2916_v55, %v2368_v18  ;;  %v6021_v6 = vadd.f32 %v6020_v51, %v6019_v53 }
 0x19d   : > { %v6062_v44 = vadd.f32 %v6061_v7, %v6060_v46  ;;  %v6022_v38 = vpop.f32.mrf.mxu0 }
 0x19e   : > { %v6063_v2 = vpop.f32.mrf.mxu1  ;;  %v2955_v36 = vadd.f32 %v2954_v0, %v2940_v16  ;;  %v2978_v43 = vmul.f32 %v2940_v16, %v2940_v16  ;;  %v5724_v42 = vpack.c.bf16 %v2940_v16, %v2939_v59  ;;  %v2921_v19 = vadd.f32 %v8085_v5, %v6021_v6 }
 0x19f   : > { %v6023_v25 = vpop.f32.mrf.mxu0 }
 0x1a0   : > { %v6064_v10 = vpop.f32.mrf.mxu1  ;;  %v2993_v13 = vadd.f32 %v2992_v9, %v2978_v43  ;;  %5791 = vst [vmem:[%s8065_s17 + $0x30] sm:$0xff] %v5724_v42   ;;  %v2941_v60 = vadd.f32 %v2921_v19, %v8033_v32  ;;  %v6024_v33 = vadd.f32 %v6023_v25, %v6022_v38 }
 0x1a1   : > { %v6065_v56 = vadd.f32 %v6064_v10, %v6063_v2  ;;  %v6395_v15 = vpop.f32.mrf.mxu0 }
 0x1a2   : > { %v6066_v50 = vpop.f32.mrf.mxu1  ;;  %v2956_v8 = vadd.f32 %v2955_v36, %v2941_v60  ;;  %v2979_v20 = vmul.f32 %v2941_v60, %v2941_v60  ;;  %v2924_v48 = vadd.f32 %v6376_v28, %v6024_v33 }
 0x1a3   : > { %v8103_v58 = vadd.f32 %v6395_v15, %v6065_v56  ;;  %v3648_v52 = vpop.f32.mrf.mxu0 }
 0x1a4   : > { %v6067_v62 = vpop.f32.mrf.mxu1  ;;  %v2994_v5 = vadd.f32 %v2993_v13, %v2979_v20  ;;  %v2942_v14 = vadd.f32 %v2924_v48, %v8042_v30  ;;  %v3649_v37 = vadd.f32 %v6059_v24, %v3648_v52 }
 0x1a5   : > { %v6068_v17 = vadd.f32 %v6067_v62, %v6066_v50  ;;  %v6396_v47 = vpop.f32.mrf.mxu0 }
 0x1a6   : > { %v6069_v61 = vpop.f32.mrf.mxu1  ;;  %v8106_v26 = vadd.f32 %v2956_v8, %v2942_v14  ;;  %v2980_v32 = vmul.f32 %v2942_v14, %v2942_v14  ;;  %v5729_v49 = vpack.c.bf16 %v2942_v14, %v2941_v60 }
 0x1a7   : > { %v8108_v27 = vadd.f32 %v6396_v47, %v6068_v17  ;;  %v3651_v28 = vpop.f32.mrf.mxu0 }
 0x1a8   : > { %v6070_v63 = vpop.f32.mrf.mxu1  ;;  %8327 = vst [vmem:[#allocation10_spill] sm:$0xff] %v8106_v26  ;;  %v8110_v45 = vadd.f32 %v2994_v5, %v2980_v32  ;;  %5792 = vst [vmem:[%s8065_s17 + $0x38] sm:$0xff] %v5729_v49   ;;  %v8113_v1 = vadd.f32 %v6062_v44, %v3651_v28 }
 0x1a9   : > { %v6071_v4 = vadd.f32 %v6070_v63, %v6069_v61  ;;  %v6399_v23 = vpop.f32.mrf.mxu0 }
 0x1aa   : > { %v6072_v39 = vpop.f32.mrf.mxu1  ;;  %8328 = vst [vmem:[#allocation11_spill] sm:$0xff] %v8110_v45 }
 0x1ab   : > { %v3664_v34 = vpop.f32.mrf.mxu0 }
 0x1ac   : > { %v6073_v31 = vpop.f32.mrf.mxu1  ;;  %v8115_v54 = vadd.f32 %v6071_v4, %v3664_v34 }
 0x1ad   : > { %v6074_v30 = vadd.f32 %v6073_v31, %v6072_v39  ;;  %v6400_v41 = vpop.f32.mrf.mxu0 }
 0x1ae   : > { %v6075_v21 = vpop.f32.mrf.mxu1 }
 0x1af   : > { %v3667_v22 = vpop.f32.mrf.mxu0 }
 0x1b0   : > { %v6076_v29 = vpop.f32.mrf.mxu1  ;;  %v8117_v35 = vadd.f32 %v6074_v30, %v3667_v22 }
 0x1b1   : > { %v6077_v24 = vadd.f32 %v6076_v29, %v6075_v21  ;;  %v6403_v57 = vpop.f32.mrf.mxu0 }
 0x1b2   : > { %v6078_v40 = vpop.f32.mrf.mxu1 }
 0x1b3   : > { %v8119_v46 = vadd.f32 %v6399_v23, %v6077_v24  ;;  %v3680_v53 = vpop.f32.mrf.mxu0 }
 0x1b4   : > { %v6079_v59 = vpop.f32.mrf.mxu1 }
 0x1b5   : > { %v6080_v3 = vadd.f32 %v6079_v59, %v6078_v40  ;;  %v6404_v7 = vpop.f32.mrf.mxu0 }
 0x1b6   : > { %v6081_v12 = vpop.f32.mrf.mxu1 }
 0x1b7   : > { %v8121_v18 = vadd.f32 %v6400_v41, %v6080_v3  ;;  %v3683_v55 = vpop.f32.mrf.mxu0 }
 0x1b8   : > { %v6082_v0 = vpop.f32.mrf.mxu1 }
 0x1b9   : > { %v6083_v11 = vadd.f32 %v6082_v0, %v6081_v12  ;;  %v6407_v2 = vpop.f32.mrf.mxu0 }
 0x1ba   : > { %v6084_v44 = vpop.f32.mrf.mxu1 }
 0x1bb   : > { %v8123_v51 = vadd.f32 %v6083_v11, %v3680_v53  ;;  %v3696_v6 = vpop.f32.mrf.mxu0 }
 0x1bc   : > { %v6085_v9 = vpop.f32.mrf.mxu1 }
 0x1bd   : > { %v6086_v16 = vadd.f32 %v6085_v9, %v6084_v44  ;;  %v6408_v36 = vpop.f32.mrf.mxu0 }
 0x1be   : > { %v6087_v38 = vpop.f32.mrf.mxu1 }
 0x1bf   : > { %v8125_v10 = vadd.f32 %v6086_v16, %v3683_v55  ;;  %v3699_v19 = vpop.f32.mrf.mxu0 }
 0x1c0   : > { %v6088_v43 = vpop.f32.mrf.mxu1 }
 0x1c1   : > { %v6089_v42 = vadd.f32 %v6088_v43, %v6087_v38  ;;  %v6137_v50 = vpop.f32.mrf.mxu0 }
 0x1c2   : > { %v6090_v56 = vpop.f32.mrf.mxu1 }
 0x1c3   : > { %v3689_v25 = vadd.f32 %v6403_v57, %v6089_v42  ;;  %v6138_v33 = vpop.f32.mrf.mxu0 }
 0x1c4   : > { %v6091_v13 = vpop.f32.mrf.mxu1  ;;  %v6139_v62 = vadd.f32 %v6138_v33, %v6137_v50 }
 0x1c5   : > { %v6092_v60 = vadd.f32 %v6091_v13, %v6090_v56  ;;  %v8129_v20 = vpop.f32.mrf.mxu0 }
 0x1c6   : > { %v6093_v15 = vpop.f32.mrf.mxu1  ;;  %v8131_v17 = vadd.f32 %v6139_v62, %v3649_v37 }
 0x1c7   : > { %v8127_v8 = vadd.f32 %v6404_v7, %v6092_v60  ;;  %v8133_v61 = vpop.f32.mrf.mxu0 }
 0x1c8   : > { %v6094_v48 = vpop.f32.mrf.mxu1 }
 0x1c9   : > { %8329 = vst [vmem:[#allocation7_spill] sm:$0xff] %v8127_v8  ;;  %v6095_v52 = vadd.f32 %v6094_v48, %v6093_v15  ;;  %v6143_v47 = vpop.f32.mrf.mxu0 }
 0x1ca   : > { %v6096_v5 = vpop.f32.mrf.mxu1 }
 0x1cb   : > { %v8135_v14 = vadd.f32 %v6095_v52, %v3696_v6  ;;  %v6144_v49 = vpop.f32.mrf.mxu0 }
 0x1cc   : > { %v6097_v63 = vpop.f32.mrf.mxu1 }
 0x1cd   : > { %8330 = vst [vmem:[#allocation13_spill] sm:$0xff] %v8135_v14  ;;  %v6098_v32 = vadd.f32 %v6097_v63, %v6096_v5  ;;  %v6146_v39 = vpop.f32.mrf.mxu0 }
 0x1ce   : > { %v6099_v4 = vpop.f32.mrf.mxu1 }
 0x1cf   : > { %v8137_v28 = vadd.f32 %v6098_v32, %v3699_v19  ;;  %v6147_v30 = vpop.f32.mrf.mxu0 }
 0x1d0   : > { %v6100_v23 = vpop.f32.mrf.mxu1 }
 0x1d1   : > { %8331 = vst [vmem:[#allocation14_spill] sm:$0xff] %v8137_v28  ;;  %v6101_v31 = vadd.f32 %v6100_v23, %v6099_v4  ;;  %v8139_v21 = vpop.f32.mrf.mxu0  ;;  %v6148_v28 = vadd.f32 %v6147_v30, %v6146_v39 }
 0x1d2   : > { %v6102_v34 = vpop.f32.mrf.mxu1 }
 0x1d3   : > { %v3705_v37 = vadd.f32 %v6407_v2, %v6101_v31  ;;  %v8141_v24 = vpop.f32.mrf.mxu0 }
 0x1d4   : > { %v6103_v41 = vpop.f32.mrf.mxu1  ;;  %v6151_v30 = vadd.f32 %v8141_v24, %v8139_v21 }
 0x1d5   : > { %v6104_v29 = vadd.f32 %v6103_v41, %v6102_v34  ;;  %v8145_v57 = vpop.f32.mrf.mxu0 }
 0x1d6   : > { %v8143_v22 = vpop.f32.mrf.mxu1  ;;  %v4034_v21 = vadd.f32 %v6151_v30, %v8115_v54 }
 0x1d7   : > { %v3708_v40 = vadd.f32 %v6408_v36, %v6104_v29  ;;  %v8149_v3 = vpop.f32.mrf.mxu0 }
 0x1d8   : > { %v8147_v59 = vpop.f32.mrf.mxu1  ;;  %v6154_v24 = vadd.f32 %v8149_v3, %v8145_v57 }
 0x1d9   : > { %v8153_v12 = vpop.f32.mrf.mxu0 }
 0x1da   : > { %v8151_v53 = vpop.f32.mrf.mxu1 }
 0x1db   : > { %v8157_v0 = vpop.f32.mrf.mxu0 }
 0x1dc   : > { %v8155_v7 = vpop.f32.mrf.mxu1 }
 0x1dd   : > { %v8161_v55 = vpop.f32.mrf.mxu0 }
 0x1de   : > { %v8159_v11 = vpop.f32.mrf.mxu1 }
 0x1df   : > { %v8165_v2 = vpop.f32.mrf.mxu0 }
 0x1e0   : > { %v8163_v44 = vpop.f32.mrf.mxu1 }
 0x1e1   : > { %v8169_v16 = vpop.f32.mrf.mxu0  ;;  %v4131_v3 = vadd.f32 %v8163_v44, %v4034_v21 }
 0x1e2   : > { %v8167_v9 = vpop.f32.mrf.mxu1 }
 0x1e3   : > { %v8173_v38 = vpop.f32.mrf.mxu0 }
 0x1e4   : > { %v8171_v6 = vpop.f32.mrf.mxu1 }
 0x1e5   : > { %v8175_v43 = vpop.f32.mrf.mxu0 }
 0x1e6   : > { %v6435_v36 = vpop.f32.mrf.mxu1 }
 0x1e7   : > { %v8179_v19 = vpop.f32.mrf.mxu0 }
 0x1e8   : > { %v8177_v42 = vpop.f32.mrf.mxu1 }
 0x1e9   : > { %v6167_v50 = vpop.f32.mrf.mxu0 }
 0x1ea   : > { %v8181_v56 = vpop.f32.mrf.mxu1 }
 0x1eb   : > { %8332 = vst [vmem:[#allocation3_spill] sm:$0xff] %v8181_v56  ;;  %v6168_v60 = vpop.f32.mrf.mxu0 }
 0x1ec   : > { %v8183_v13 = vpop.f32.mrf.mxu1  ;;  %v6169_v15 = vadd.f32 %v6168_v60, %v6167_v50 }
 0x1ed   : > { %8333 = vst [vmem:[#allocation12_spill] sm:$0xff] %v8183_v13  ;;  %v8185_v62 = vpop.f32.mrf.mxu0  ;;  %v4029_v13 = vadd.f32 %v6148_v28, %v8108_v27 }
 0x1ee   : > { %v6439_v33 = vpop.f32.mrf.mxu1  ;;  %v4058_v52 = vadd.f32 %v6169_v15, %v3689_v25 }
 0x1ef   : > { %v8189_v5 = vpop.f32.mrf.mxu0 }
 0x1f0   : > { %v8187_v48 = vpop.f32.mrf.mxu1  ;;  %8335 = vst [vmem:[#allocation4_spill] sm:$0xff] %v8189_v5  ;;  %v8191_v32 = vadd.f32 %v6435_v36, %v4058_v52  ;;  %v6145_v36 = vadd.f32 %v6144_v49, %v6143_v47 }
 0x1f1   : > { %8334 = vst [vmem:[#allocation6_spill] sm:$0xff] %v8187_v48  ;;  %v8193_v4 = vpop.f32.mrf.mxu0 }
 0x1f2   : > { %v6440_v63 = vpop.f32.mrf.mxu1  ;;  %8336 = vst [vmem:[#allocation15_spill] sm:$0xff] %v8191_v32  ;;  %8337 = vst [vmem:[#allocation16_spill] sm:$0xff] %v8193_v4 }
 0x1f3   : > { %v8197_v31 = vpop.f32.mrf.mxu0 }
 0x1f4   : > { %v8195_v23 = vpop.f32.mrf.mxu1  ;;  %8339 = vst [vmem:[#allocation5_spill] sm:$0xff] %v8197_v31 }
 0x1f5   : > { %8338 = vst [vmem:[#allocation8_spill] sm:$0xff] %v8195_v23  ;;  %v8199_v41 = vpop.f32.mrf.mxu0  ;;  %v6142_v23 = vadd.f32 %v8133_v61, %v8129_v20 }
 0x1f6   : > { %v6217_v34 = vpop.f32.mrf.mxu1  ;;  %8340 = vst [vmem:[#allocation9_spill] sm:$0xff] %v8199_v41 }
 0x1f7   : > { %v8201_v50 = vpop.f32.mrf.mxu0  ;;  %v4021_v39 = vadd.f32 %v6142_v23, %v8113_v1  ;;  %v4126_v1 = vadd.f32 %v8151_v53, %v4029_v13 }
 0x1f8   : > { %v6218_v29 = vpop.f32.mrf.mxu1  ;;  %8341 = vst [vmem:[#allocation17_spill] sm:$0xff] %v8201_v50  ;;  %v4026_v50 = vadd.f32 %v6145_v36, %v8103_v58  ;;  %v4115_v58 = vadd.f32 %v8147_v59, %v8131_v17 }
 0x1f9   : > { %v6179_v45 = vpop.f32.mrf.mxu0  ;;  %v6219_v5 = vadd.f32 %v6218_v29, %v6217_v34  ;;  %v4037_v34 = vadd.f32 %v6154_v24, %v8117_v35 }
 0x1fa   : > { %v6220_v60 = vpop.f32.mrf.mxu1 }
 0x1fb   : > { %v6180_v15 = vpop.f32.mrf.mxu0 }
 0x1fc   : > { %v6221_v25 = vpop.f32.mrf.mxu1  ;;  %v6181_v48 = vadd.f32 %v6180_v15, %v6179_v45 }
 0x1fd   : > { %v6182_v52 = vpop.f32.mrf.mxu0  ;;  %v6222_v28 = vadd.f32 %v6221_v25, %v6220_v60 }
 0x1fe   : > { %v6223_v26 = vpop.f32.mrf.mxu1  ;;  %v4074_v14 = vadd.f32 %v6181_v48, %v3705_v37 }
 0x1ff   : > { %v6183_v32 = vpop.f32.mrf.mxu0 }
 0x200   : > { %v6224_v56 = vpop.f32.mrf.mxu1  ;;  %v8205_v41 = vadd.f32 %v6439_v33, %v4074_v14  ;;  %v6184_v4 = vadd.f32 %v6183_v32, %v6182_v52 }
 0x201   : > { %v6459_v8 = vpop.f32.mrf.mxu0  ;;  %v6225_v45 = vadd.f32 %v6224_v56, %v6223_v26 }
 0x202   : > { %v6226_v31 = vpop.f32.mrf.mxu1  ;;  %v4077_v49 = vadd.f32 %v6184_v4, %v3708_v40  ;;  %v4123_v40 = vadd.f32 %v8143_v22, %v4026_v50  ;;  %v6157_v22 = vadd.f32 %v8157_v0, %v8153_v12  ;;  %v6160_v0 = vadd.f32 %v8165_v2, %v8161_v55 }
 0x203   : > { %v4661_v20 = vpop.f32.mrf.mxu0  ;;  %v4670_v33 = vadd.f32 %v6459_v8, %v6225_v45  ;;  %v4118_v8 = vadd.f32 %v8155_v7, %v4021_v39  ;;  %v6163_v39 = vadd.f32 %v8173_v38, %v8169_v16 }
 0x204   : > { %v6227_v47 = vpop.f32.mrf.mxu1  ;;  %v8212_v14 = vadd.f32 %v6440_v63, %v4077_v49  ;;  %v4662_v48 = vadd.f32 %v6219_v5, %v4661_v20  ;;  %v4042_v12 = vadd.f32 %v6157_v22, %v8119_v46  ;;  %v4134_v20 = vadd.f32 %v8171_v6, %v4037_v34 }
 0x205   : > { %v6228_v61 = vadd.f32 %v6227_v47, %v6226_v31  ;;  %v6460_v27 = vpop.f32.mrf.mxu0  ;;  %v4726_v17 = vadd.f32 %v4670_v33, %v4123_v40  ;;  %v4045_v2 = vadd.f32 %v6160_v0, %v8121_v18  ;;  %v4050_v38 = vadd.f32 %v6163_v39, %v8123_v51 }
 0x206   : > { %v6229_v37 = vpop.f32.mrf.mxu1  ;;  %v4724_v63 = vadd.f32 %v4662_v48, %v4115_v58  ;;  %v4139_v58 = vadd.f32 %v8159_v11, %v4042_v12  ;;  %v6166_v6 = vadd.f32 %v8179_v19, %v8175_v43  ;;  %v8342_v12 = vld [vmem:[#allocation4_spill] sm:$0xff] }
 0x207   : > { %v4673_v56 = vadd.f32 %v6460_v27, %v6228_v61  ;;  %v4664_v32 = vpop.f32.mrf.mxu0  ;;  %v4764_v36 = vmul.f32 %v4726_v17, %v4726_v17  ;;  %v4147_v34 = vadd.f32 %v8177_v42, %v4050_v38  ;;  %v6172_v0 = vadd.f32 %v8342_v12, %v8185_v62  ;;  %v8348_v38 = vld [vmem:[#allocation13_spill] sm:$0xff]  ;;  %v8354_v12 = vld [vmem:[#allocation8_spill] sm:$0xff] }
 0x208   : > { %v6230_v26 = vpop.f32.mrf.mxu1  ;;  %v4665_v4 = vadd.f32 %v6222_v28, %v4664_v32  ;;  %v4762_v57 = vmul.f32 %v4724_v63, %v4724_v63  ;;  %v4053_v19 = vadd.f32 %v6166_v6, %v8125_v10 }
 0x209   : > { %v4727_v59 = vadd.f32 %v4673_v56, %v4126_v1  ;;  %v6463_v23 = vpop.f32.mrf.mxu0  ;;  %v6231_v53 = vadd.f32 %v6230_v26, %v6229_v37 }
 0x20a   : > { %v6232_v5 = vpop.f32.mrf.mxu1  ;;  %v4725_v54 = vadd.f32 %v4665_v4, %v4118_v8 }
 0x20b   : > { %v5739_v31 = vpack.c.bf16 %v4727_v59, %v4726_v17  ;;  %v4677_v7 = vpop.f32.mrf.mxu0  ;;  %v4765_v46 = vmul.f32 %v4727_v59, %v4727_v59 }
 0x20c   : > { %v6233_v13 = vpop.f32.mrf.mxu1  ;;  %v4740_v50 = vadd.f32 %v4725_v54, %v4724_v63  ;;  %v4763_v60 = vmul.f32 %v4725_v54, %v4725_v54  ;;  %v5734_v25 = vpack.c.bf16 %v4725_v54, %v4724_v63  ;;  %v4678_v15 = vadd.f32 %v6231_v53, %v4677_v7 }
 0x20d   : > { %5794 = vst [vmem:[%s8065_s17 + $0x48] sm:$0xff] %v5739_v31   ;;  %v6464_v52 = vpop.f32.mrf.mxu0  ;;  %v6234_v45 = vadd.f32 %v6233_v13, %v6232_v5 }
 0x20e   : > { %v6235_v29 = vpop.f32.mrf.mxu1  ;;  %v4741_v47 = vadd.f32 %v4740_v50, %v4726_v17  ;;  %v4778_v49 = vadd.f32 %v4763_v60, %v4762_v57  ;;  %5793 = vst [vmem:[%s8065_s17 + $0x40] sm:$0xff] %v5734_v25   ;;  %v4728_v44 = vadd.f32 %v4678_v15, %v4131_v3  ;;  %v4142_v17 = vadd.f32 %v8167_v9, %v4045_v2 }
 0x20f   : > { %v4680_v61 = vpop.f32.mrf.mxu0 }
 0x210   : > { %v6236_v35 = vpop.f32.mrf.mxu1  ;;  %v4779_v33 = vadd.f32 %v4778_v49, %v4764_v36  ;;  %v4742_v48 = vadd.f32 %v4741_v47, %v4727_v59  ;;  %v4681_v55 = vadd.f32 %v6234_v45, %v4680_v61  ;;  %v4766_v1 = vmul.f32 %v4728_v44, %v4728_v44  ;;  %v8343_v45 = vld [vmem:[#allocation12_spill] sm:$0xff] }
 0x211   : > { %v6237_v30 = vadd.f32 %v6236_v35, %v6235_v29  ;;  %v6467_v28 = vpop.f32.mrf.mxu0  ;;  %v4150_v35 = vadd.f32 %v8343_v45, %v4053_v19  ;;  %v8353_v19 = vld [vmem:[#allocation6_spill] sm:$0xff] }
 0x212   : > { %v6238_v37 = vpop.f32.mrf.mxu1  ;;  %v4743_v40 = vadd.f32 %v4742_v48, %v4728_v44  ;;  %v4780_v56 = vadd.f32 %v4779_v33, %v4765_v46  ;;  %v4729_v16 = vadd.f32 %v4681_v55, %v4134_v20  ;;  %v8344_v20 = vld [vmem:[#allocation7_spill] sm:$0xff]  ;;  %v8346_v46 = vld [vmem:[#allocation5_spill] sm:$0xff] }
 0x213   : > { %v4686_v27 = vadd.f32 %v6463_v23, %v6237_v30  ;;  %v4693_v63 = vpop.f32.mrf.mxu0  ;;  %v4061_v61 = vadd.f32 %v6172_v0, %v8344_v20 }
 0x214   : > { %v6239_v26 = vpop.f32.mrf.mxu1  ;;  %v4781_v18 = vadd.f32 %v4780_v56, %v4766_v1  ;;  %v4744_v8 = vadd.f32 %v4743_v40, %v4729_v16  ;;  %v4767_v11 = vmul.f32 %v4729_v16, %v4729_v16  ;;  %v5744_v5 = vpack.c.bf16 %v4729_v16, %v4728_v44  ;;  %v8347_v1 = vld [vmem:[#allocation15_spill] sm:$0xff] }
 0x215   : > { %v6240_v21 = vadd.f32 %v6239_v26, %v6238_v37  ;;  %v4730_v24 = vadd.f32 %v4686_v27, %v4139_v58  ;;  %v6468_v51 = vpop.f32.mrf.mxu0  ;;  %v8345_v37 = vld [vmem:[#allocation16_spill] sm:$0xff] }
 0x216   : > { %v6241_v32 = vpop.f32.mrf.mxu1  ;;  %v4782_v53 = vadd.f32 %v4781_v18, %v4767_v11  ;;  %5795 = vst [vmem:[%s8065_s17 + $0x50] sm:$0xff] %v5744_v5   ;;  %v6175_v33 = vadd.f32 %v8346_v46, %v8345_v37  ;;  %v8356_v46 = vld [vmem:[#allocation11_spill] sm:$0xff] }
 0x217   : > { %v4689_v59 = vadd.f32 %v6464_v52, %v6240_v21  ;;  %v4768_v22 = vmul.f32 %v4730_v24, %v4730_v24  ;;  %v4745_v23 = vadd.f32 %v4744_v8, %v4730_v24  ;;  %v4696_v50 = vpop.f32.mrf.mxu0  ;;  %v8349_v21 = vld [vmem:[#allocation9_spill] sm:$0xff]  ;;  %v8351_v8 = vld [vmem:[#allocation3_spill] sm:$0xff] }
 0x218   : > { %v6242_v4 = vpop.f32.mrf.mxu1  ;;  %v4066_v6 = vadd.f32 %v6175_v33, %v8348_v38  ;;  %v4158_v11 = vadd.f32 %v8351_v8, %v4061_v61  ;;  %v2996_v33 = vrot.slane %v8356_v46, 4 }
 0x219   : > { %v6243_v13 = vadd.f32 %v6242_v4, %v6241_v32  ;;  %v4731_v43 = vadd.f32 %v4689_v59, %v4142_v17  ;;  %v4783_v54 = vadd.f32 %v4782_v53, %v4768_v22  ;;  %v6471_v49 = vpop.f32.mrf.mxu0  ;;  %v8352_v53 = vld [vmem:[#allocation14_spill] sm:$0xff] }
 0x21a   : > { %v6244_v31 = vpop.f32.mrf.mxu1 }
 0x21b   : > { %v4769_v57 = vmul.f32 %v4731_v43, %v4731_v43  ;;  %v5749_v3 = vpack.c.bf16 %v4731_v43, %v4730_v24  ;;  %v4694_v7 = vadd.f32 %v6243_v13, %v4693_v63  ;;  %v4746_v9 = vadd.f32 %v4745_v23, %v4731_v43  ;;  %v4709_v26 = vpop.f32.mrf.mxu0  ;;  %v8350_v24 = vld [vmem:[#allocation17_spill] sm:$0xff] }
 0x21c   : > { %v6245_v29 = vpop.f32.mrf.mxu1  ;;  %v6178_v63 = vadd.f32 %v8350_v24, %v8349_v21 }
 0x21d   : > { %v6246_v60 = vadd.f32 %v6245_v29, %v6244_v31  ;;  %5796 = vst [vmem:[%s8065_s17 + $0x58] sm:$0xff] %v5749_v3   ;;  %v4732_v25 = vadd.f32 %v4694_v7, %v4147_v34  ;;  %v4784_v15 = vadd.f32 %v4783_v54, %v4769_v57  ;;  %v6472_v59 = vpop.f32.mrf.mxu0  ;;  %v4163_v31 = vadd.f32 %v8353_v19, %v4066_v6 }
 0x21e   : > { %v6247_v36 = vpop.f32.mrf.mxu1  ;;  %v4069_v13 = vadd.f32 %v6178_v63, %v8352_v53 }
 0x21f   : > { %v4747_v52 = vadd.f32 %v4746_v9, %v4732_v25  ;;  %v4770_v10 = vmul.f32 %v4732_v25, %v4732_v25  ;;  %v4697_v47 = vadd.f32 %v6246_v60, %v4696_v50  ;;  %v4712_v9 = vpop.f32.mrf.mxu0 }
 0x220   : > { %v6248_v42 = vpop.f32.mrf.mxu1  ;;  %v4166_v0 = vadd.f32 %v8354_v12, %v4069_v13 }
 0x221   : > { %v6249_v44 = vadd.f32 %v6248_v42, %v6247_v36  ;;  %v4785_v39 = vadd.f32 %v4784_v15, %v4770_v10  ;;  %v4733_v30 = vadd.f32 %v4697_v47, %v4150_v35  ;;  %v8355_v47 = vld [vmem:[#allocation10_spill] sm:$0xff] }
 0x222   : > { %v6250_v48 = vpop.f32.mrf.mxu1  ;;  %v2958_v42 = vrot.slane %v8355_v47, 4 }
 0x223   : > { %v4702_v55 = vadd.f32 %v6467_v28, %v6249_v44  ;;  %v4748_v62 = vadd.f32 %v4747_v52, %v4733_v30  ;;  %v4771_v2 = vmul.f32 %v4733_v30, %v4733_v30  ;;  %v5754_v58 = vpack.c.bf16 %v4733_v30, %v4732_v25 }
 0x224   : > { %v6251_v27 = vpop.f32.mrf.mxu1 }
 0x225   : > { %v6252_v40 = vadd.f32 %v6251_v27, %v6250_v48  ;;  %v4734_v56 = vadd.f32 %v4702_v55, %v8347_v1  ;;  %v4786_v16 = vadd.f32 %v4785_v39, %v4771_v2  ;;  %5797 = vst [vmem:[%s8065_s17 + $0x60] sm:$0xff] %v5754_v58   ;;  %v2959_v2 = vadd.f32 %v2958_v42, %v8355_v47 }
 0x226   : > { %v6253_v32 = vpop.f32.mrf.mxu1 }
 0x227   : > { %v4772_v18 = vmul.f32 %v4734_v56, %v4734_v56  ;;  %v4705_v28 = vadd.f32 %v6468_v51, %v6252_v40  ;;  %v4749_v5 = vadd.f32 %v4748_v62, %v4734_v56  ;;  %v2997_v40 = vadd.f32 %v2996_v33, %v8356_v46 }
 0x228   : > { %v6254_v17 = vpop.f32.mrf.mxu1 }
 0x229   : > { %v6255_v4 = vadd.f32 %v6254_v17, %v6253_v32  ;;  %v4735_v22 = vadd.f32 %v4705_v28, %v4158_v11  ;;  %v4787_v23 = vadd.f32 %v4786_v16, %v4772_v18  ;;  %v2998_v21 = vrot.slane %v2997_v40, 2 }
 0x22a   : > { %v6256_v43 = vpop.f32.mrf.mxu1 }
 0x22b   : > { %v4773_v54 = vmul.f32 %v4735_v22, %v4735_v22  ;;  %v5759_v34 = vpack.c.bf16 %v4735_v22, %v4734_v56  ;;  %v4710_v57 = vadd.f32 %v6255_v4, %v4709_v26  ;;  %v4750_v3 = vadd.f32 %v4749_v5, %v4735_v22 }
 0x22c   : > { %v6257_v7 = vpop.f32.mrf.mxu1  ;;  %v2960_v56 = vrot.slane %v2959_v2, 2  ;;  %v2999_v8 = vadd.f32 %v2998_v21, %v2997_v40 }
 0x22d   : > { %5798 = vst [vmem:[%s8065_s17 + $0x68] sm:$0xff] %v5759_v34   ;;  %v6258_v51 = vadd.f32 %v6257_v7, %v6256_v43  ;;  %v4736_v29 = vadd.f32 %v4710_v57, %v4163_v31  ;;  %v4788_v50 = vadd.f32 %v4787_v23, %v4773_v54 }
 0x22e   : > { %v6259_v60 = vpop.f32.mrf.mxu1  ;;  %v2961_v63 = vadd.f32 %v2960_v56, %v2959_v2 }
 0x22f   : > { %v4751_v25 = vadd.f32 %v4750_v3, %v4736_v29  ;;  %v4774_v15 = vmul.f32 %v4736_v29, %v4736_v29  ;;  %v4713_v36 = vadd.f32 %v6258_v51, %v4712_v9 }
 0x230   : > { %v6260_v52 = vpop.f32.mrf.mxu1  ;;  %v2962_v5 = vrot.slane %v2961_v63, 1 }
 0x231   : > { %v4789_v10 = vadd.f32 %v4788_v50, %v4774_v15  ;;  %v6261_v45 = vadd.f32 %v6260_v52, %v6259_v60  ;;  %v4737_v35 = vadd.f32 %v4713_v36, %v4166_v0 }
 0x232   : > { %v6262_v44 = vpop.f32.mrf.mxu1  ;;  %v2963_v23 = vadd.f32 %v2962_v5, %v2961_v63 }
 0x233   : > { %v4718_v39 = vadd.f32 %v6471_v49, %v6261_v45  ;;  %v4752_v30 = vadd.f32 %v4751_v25, %v4737_v35  ;;  %v4775_v20 = vmul.f32 %v4737_v35, %v4737_v35  ;;  %v5764_v61 = vpack.c.bf16 %v4737_v35, %v4736_v29 }
 0x234   : > { %v6263_v37 = vpop.f32.mrf.mxu1 }
 0x235   : > { %v4738_v48 = vadd.f32 %v4718_v39, %v8205_v41  ;;  %v4790_v55 = vadd.f32 %v4789_v10, %v4775_v20  ;;  %5799 = vst [vmem:[%s8065_s17 + $0x70] sm:$0xff] %v5764_v61   ;;  %v6264_v62 = vadd.f32 %v6263_v37, %v6262_v44 }
 0x237   : > { %v4776_v58 = vmul.f32 %v4738_v48, %v4738_v48  ;;  %v4753_v27 = vadd.f32 %v4752_v30, %v4738_v48  ;;  %v4721_v26 = vadd.f32 %v6472_v59, %v6264_v62 }
 0x239   : > { %v4791_v49 = vadd.f32 %v4790_v55, %v4776_v58  ;;  %v4739_v1 = vadd.f32 %v4721_v26, %v8212_v14  ;;  %v3000_v14 = vrot.slane %v2999_v8, 1 }
 0x23b   : > { %v4754_v16 = vadd.f32 %v4753_v27, %v4739_v1  ;;  %v4777_v38 = vmul.f32 %v4739_v1, %v4739_v1  ;;  %v5769_v6 = vpack.c.bf16 %v4739_v1, %v4738_v48  ;;  %v3001_v43 = vadd.f32 %v3000_v14, %v2999_v8 }
 0x23d   : > { %v4755_v41 = vrot.slane %v4754_v16, 4  ;;  %v4792_v24 = vadd.f32 %v4791_v49, %v4777_v38  ;;  %5800 = vst [vmem:[%s8065_s17 + $0x78] sm:$0xff] %v5769_v6  }
 0x23f   : > { %v4756_v32 = vadd.f32 %v4755_v41, %v4754_v16  ;;  %v4793_v18 = vrot.slane %v4792_v24, 4 }
 0x241   : > { %v4757_v11 = vrot.slane %v4756_v32, 2  ;;  %v4794_v28 = vadd.f32 %v4793_v18, %v4792_v24 }
 0x243   : > { %v4758_v17 = vadd.f32 %v4757_v11, %v4756_v32  ;;  %v4795_v59 = vrot.slane %v4794_v28, 2 }
 0x245   : > { %v4759_v4 = vrot.slane %v4758_v17, 1  ;;  %v4796_v22 = vadd.f32 %v4795_v59, %v4794_v28 }
 0x247   : > { %v4760_v53 = vadd.f32 %v4759_v4, %v4758_v17  ;;  %v4797_v13 = vrot.slane %v4796_v22, 1 }
 0x249   : > { %v4761_v19 = vadd.f32 %v4760_v53, %v2963_v23  ;;  %v4798_v31 = vadd.f32 %v4797_v13, %v4796_v22 }
 0x24b   : > { %v4799_v54 = vadd.f32 %v4798_v31, %v3001_v43  ;;  %4881 = vst [vmem:[%s238_s21] sm:$0x1] %v4761_v19 }
 0x24d   : > { %4882 = vst [vmem:[%s241_s24] sm:$0x1] %v4799_v54 }
 0x24e PF: > { %s16_s18 = sadd.s32 1, %s6762_s18  }
 0x24f   : > { %p13_p4 = scmp.ge.s32.totalorder %s16_s18, 4  }
 0x251   :  { %15 = sbr.rel (!%p13_p4) target bundleno = 1 (0x1), region = 95 }

</bundles_post_ra>
